<compile_context>
chip_gen: v7x
topology: tpu7x:2x2x1
jax: 0.10.0
libtpu: 0.0.40
codegen_flags: <defaults>
</compile_context>

<pallas_src>
import jax
import jax.numpy as jnp
from jax.experimental import pallas as pl
from jax.experimental.pallas import tpu as pltpu


NUM_FEATURES = 32          # stand-in for ResNet50's 2048 (small test shape)
HIDDEN1 = 2000             # bottleneck_layer1: Linear(num_features + 1, 2000)
HIDDEN2 = 1024             # bottleneck_layer2: Linear(2000, 1024)
NUM_CLASSES = 65           # classifier_layer:  Linear(1024, 65)

_LANE = 128
_SUBLANE = 8
_MAX_BATCH_TILE = 512      # fills the 256-wide MXU M-dim on v6e/v7x


def _round_up(n, m):
    return ((n + m - 1) // m) * m


F_PAD = _round_up(NUM_FEATURES, _LANE)      # 128
H1_PAD = _round_up(HIDDEN1, _LANE)          # 2048
NC_PAD = _round_up(NUM_CLASSES, _LANE)      # 128


def _bsp_cdan_kernel(
    pooled_ref,  # [TB, C]        f32  (global-average-pooled x, from wrapper)
    dom_ref,     # [TB, 1]        f32  (domain_code)
    wf_ref,      # [C, F_PAD]     bf16 synthetic feature-extractor projection
    bf_ref,      # [1, F_PAD]     f32
    w1a_ref,     # [F_PAD, H1_PAD] bf16 bottleneck_layer1 rows for resnet_feat
    w1b_ref,     # [1, H1_PAD]    f32  bottleneck_layer1 row for domain_code
    b1_ref,      # [1, H1_PAD]    f32
    w2_ref,      # [H1_PAD, H2]   bf16 bottleneck_layer2
    b2_ref,      # [1, H2]        f32
    wc_ref,      # [H2, NC_PAD]   bf16 classifier_layer
    bc_ref,      # [1, NC_PAD]    f32
    feat_ref,    # out: [TB, F_PAD]   resnet_feat (padded)
    out_ref,     # out: [TB, H2]      bottleneck output
    outc_ref,    # out: [TB, NC_PAD]  classifier logits (padded)
):
    # ---- synthetic backbone tail: linear + ReLU on pooled features ----
    pooled = pooled_ref[...]                                  # [TB, C] f32
    feat = jnp.dot(pooled.astype(jnp.bfloat16), wf_ref[...],
                   preferred_element_type=jnp.float32) + bf_ref[...]
    feat = jnp.maximum(feat, 0.0)                             # [TB, F_PAD] f32
    feat_ref[...] = feat

    # ---- feature = cat([resnet_feat, domain_code], dim=1) (concat-free) ----
    dom = dom_ref[...]                                        # [TB, 1] f32
    h1 = (jnp.dot(feat.astype(jnp.bfloat16), w1a_ref[...],
                  preferred_element_type=jnp.float32)
          + dom * w1b_ref[...]                                # [TB,1]*[1,H1]
          + b1_ref[...])
    h1 = jnp.maximum(h1, 0.0)                                 # ReLU; [TB, H1_PAD]
    # Dropout(0.5): identity in eval mode.

    # ---- bottleneck_layer2 + ReLU (+ Dropout identity) ----
    h2 = jnp.dot(h1.astype(jnp.bfloat16), w2_ref[...],
                 preferred_element_type=jnp.float32) + b2_ref[...]
    h2 = jnp.maximum(h2, 0.0)                                 # [TB, H2]
    out_ref[...] = h2

    # ---- classifier_layer ----
    outc_ref[...] = (jnp.dot(h2.astype(jnp.bfloat16), wc_ref[...],
                             preferred_element_type=jnp.float32)
                     + bc_ref[...])                           # [TB, NC_PAD]


def _pad2(a, rows, cols):
    r, c = a.shape
    return jnp.pad(a, ((0, rows - r), (0, cols - c)))


def _padded_bytes(shape, dtype):
    """VMEM footprint of a block after lane/sublane padding (conservative)."""
    itemsize = jnp.dtype(dtype).itemsize
    shape = tuple(int(d) for d in shape)
    if len(shape) < 2:
        shape = (1,) * (2 - len(shape)) + shape
    lead = 1
    for d in shape[:-2]:
        lead *= d
    sub = (_SUBLANE * 4) // itemsize            # 8 rows f32, 16 rows bf16
    return lead * _round_up(shape[-2], sub) * _round_up(shape[-1], _LANE) * itemsize


def init_params(key, in_channels, num_features=NUM_FEATURES):
    """Parameter init mimicking PyTorch init_weights(); padded + bf16 weights."""
    ks = jax.random.split(key, 4)

    def xavier_normal(k, fan_in, fan_out):
        std = jnp.sqrt(2.0 / (fan_in + fan_out)).astype(jnp.float32)
        return jax.random.normal(k, (fan_in, fan_out), dtype=jnp.float32) * std

    f_pad = _round_up(num_features, _LANE)

    # synthetic backbone projection (stand-in for ResNet50 fc features)
    wf = xavier_normal(ks[0], in_channels, num_features)
    bf = jnp.zeros((1, num_features), jnp.float32)

    # bottleneck_layer1: Linear(num_features + 1, 2000), xavier_normal, zero bias
    w1_full = xavier_normal(ks[1], num_features + 1, HIDDEN1)
    w1a = w1_full[:num_features, :]                  # rows for resnet_feat
    w1b = w1_full[num_features:num_features + 1, :]  # row for domain_code
    b1 = jnp.zeros((1, HIDDEN1), jnp.float32)

    # bottleneck_layer2: Linear(2000, 1024)
    w2 = xavier_normal(ks[2], HIDDEN1, HIDDEN2)
    b2 = jnp.zeros((1, HIDDEN2), jnp.float32)

    # classifier_layer: Linear(1024, 65)
    wc = xavier_normal(ks[3], HIDDEN2, NUM_CLASSES)
    bc = jnp.zeros((1, NUM_CLASSES), jnp.float32)

    # Zero-pad to lane-dense widths; big weights stored bf16, biases stay f32.
    # Padded b1 / w1a rows / w2 rows / wc columns are zero => padded h1 columns
    # are exactly 0 after ReLU and contribute nothing downstream (exact).
    return dict(
        wf=_pad2(wf, in_channels, f_pad).astype(jnp.bfloat16),
        bf=_pad2(bf, 1, f_pad),
        w1a=_pad2(w1a, f_pad, H1_PAD).astype(jnp.bfloat16),
        w1b=_pad2(w1b, 1, H1_PAD),
        b1=_pad2(b1, 1, H1_PAD),
        w2=_pad2(w2, H1_PAD, HIDDEN2).astype(jnp.bfloat16),
        b2=b2,
        wc=_pad2(wc, HIDDEN2, NC_PAD).astype(jnp.bfloat16),
        bc=_pad2(bc, 1, NC_PAD),
    )


@jax.jit
def bsp_cdan_forward(x, domain_code, params):
    """Returns (out, outC, resnet_feat) matching the PyTorch module."""
    B, C, H, W = x.shape
    f_pad = params["wf"].shape[1]
    h1_pad = params["w1a"].shape[1]
    h2_dim = params["w2"].shape[1]
    nc_pad = params["wc"].shape[1]

    # Global average pool in the wrapper (review): kernel streams [TB, C]
    # instead of [TB, C, H*W], avoiding the 3-D block + C->8 sublane padding.
    pooled = x.reshape(B, C, H * W).astype(jnp.float32).mean(axis=-1)   # [B, C]
    dom = domain_code.astype(jnp.float32).reshape(B, 1)

    # Batch tile: sublane-aligned (>=8 rows f32), up to 512 rows per step to
    # fill the 256-wide MXU M-dim and amortize per-grid-step overhead.
    tb = min(_round_up(B, _SUBLANE), _MAX_BATCH_TILE)
    b_pad = _round_up(B, tb)
    nb = b_pad // tb
    if b_pad != B:
        pooled = jnp.pad(pooled, ((0, b_pad - B), (0, 0)))
        dom = jnp.pad(dom, ((0, b_pad - B), (0, 0)))

    def _resident(p):
        # Constant index_map: weight stays VMEM-resident across the grid.
        # Buffered(1): no need for a second buffer since it is never re-fetched.
        return pl.BlockSpec(p.shape, lambda i: (0, 0),
                            pipeline_mode=pl.Buffered(1))

    in_specs = [
        pl.BlockSpec((tb, C), lambda i: (i, 0)),          # pooled x
        pl.BlockSpec((tb, 1), lambda i: (i, 0)),          # domain_code
        _resident(params["wf"]), _resident(params["bf"]),
        _resident(params["w1a"]), _resident(params["w1b"]),
        _resident(params["b1"]),
        _resident(params["w2"]), _resident(params["b2"]),
        _resident(params["wc"]), _resident(params["bc"]),
    ]
    out_specs = (
        pl.BlockSpec((tb, f_pad), lambda i: (i, 0)),
        pl.BlockSpec((tb, h2_dim), lambda i: (i, 0)),
        pl.BlockSpec((tb, nc_pad), lambda i: (i, 0)),
    )
    out_shapes = (
        jax.ShapeDtypeStruct((b_pad, f_pad), jnp.float32),     # resnet_feat (padded)
        jax.ShapeDtypeStruct((b_pad, h2_dim), jnp.float32),    # out
        jax.ShapeDtypeStruct((b_pad, nc_pad), jnp.float32),    # outC (padded)
    )

    # Honest scoped-VMEM estimate:
    #   weights counted ONCE (Buffered(1)), I/O blocks double-buffered,
    #   f32 intermediates (feat/h1/h2/logits) plus their bf16 cast copies,
    #   all with lane/sublane padding.  Derived headroom for compiler-internal
    #   scratch instead of a blanket floor; capped below v7x's 64 MiB VMEM.
    weight_bytes = sum(_padded_bytes(p.shape, p.dtype) for p in params.values())
    io_bytes = 2 * (
        _padded_bytes((tb, C), jnp.float32)
        + _padded_bytes((tb, 1), jnp.float32)
        + _padded_bytes((tb, f_pad), jnp.float32)
        + _padded_bytes((tb, h2_dim), jnp.float32)
        + _padded_bytes((tb, nc_pad), jnp.float32)
    )
    interm_bytes = (
        _padded_bytes((tb, f_pad), jnp.float32) + _padded_bytes((tb, f_pad), jnp.bfloat16)
        + _padded_bytes((tb, h1_pad), jnp.float32) + _padded_bytes((tb, h1_pad), jnp.bfloat16)
        + _padded_bytes((tb, h2_dim), jnp.float32) + _padded_bytes((tb, h2_dim), jnp.bfloat16)
        + _padded_bytes((tb, nc_pad), jnp.float32)
    )
    est = weight_bytes + io_bytes + interm_bytes
    vmem_limit = int(min(est + est // 2 + (6 << 20), 48 << 20))

    # Small grids: "arbitrary" avoids each v7x TensorCore DMA-ing its own copy
    # of the resident weights (weight-DMA-bound regime).  Larger grids shard.
    dim_sem = ("arbitrary",) if nb <= 2 else ("parallel",)

    feat, out, outc = pl.pallas_call(
        _bsp_cdan_kernel,
        out_shape=out_shapes,
        grid=(nb,),
        in_specs=in_specs,
        out_specs=out_specs,
        compiler_params=pltpu.CompilerParams(
            dimension_semantics=dim_sem,
            vmem_limit_bytes=vmem_limit,
        ),
    )(
        pooled,
        dom,
        params["wf"], params["bf"],
        params["w1a"], params["w1b"], params["b1"],
        params["w2"], params["b2"],
        params["wc"], params["bc"],
    )

    # Slice padded batch / lanes back to logical shapes.
    return (out[:B],
            outc[:B, :NUM_CLASSES],
            feat[:B, :NUM_FEATURES])


if __name__ == "__main__":
    key = jax.random.PRNGKey(0)
    k_x, k_d, k_p = jax.random.split(key, 3)

    B, C, H, W = 2, 4, 16, 16
    x = jax.random.normal(k_x, (B, C, H, W), dtype=jnp.float32)
    # domain code: one scalar per example (0.0 = source, 1.0 = target)
    domain_code = (jax.random.uniform(k_d, (B, 1)) > 0.5).astype(jnp.float32)

    params = init_params(k_p, in_channels=C, num_features=NUM_FEATURES)

    out, outC, resnet_feat = bsp_cdan_forward(x, domain_code, params)
    jax.block_until_ready((out, outC, resnet_feat))

    assert out.shape == (B, HIDDEN2)
    assert outC.shape == (B, NUM_CLASSES)
    assert resnet_feat.shape == (B, NUM_FEATURES)
    print("KERNEL_OK")
</pallas_src>

<mosaic_0001>
module attributes {stable_mosaic.version = 11 : i64} {
  func.func @_bsp_cdan_kernel(%arg0: i32, %arg1: memref<8x4xf32, #tpu.memory_space<vmem>>, %arg2: memref<8x1xf32, #tpu.memory_space<vmem>>, %arg3: memref<4x128xbf16, #tpu.memory_space<vmem>>, %arg4: memref<1x128xf32, #tpu.memory_space<vmem>>, %arg5: memref<128x2048xbf16, #tpu.memory_space<vmem>>, %arg6: memref<1x2048xf32, #tpu.memory_space<vmem>>, %arg7: memref<1x2048xf32, #tpu.memory_space<vmem>>, %arg8: memref<2048x1024xbf16, #tpu.memory_space<vmem>>, %arg9: memref<1x1024xf32, #tpu.memory_space<vmem>>, %arg10: memref<1024x128xbf16, #tpu.memory_space<vmem>>, %arg11: memref<1x128xf32, #tpu.memory_space<vmem>>, %arg12: memref<8x128xf32, #tpu.memory_space<vmem>>, %arg13: memref<8x1024xf32, #tpu.memory_space<vmem>>, %arg14: memref<8x128xf32, #tpu.memory_space<vmem>>) attributes {dimension_semantics = [#tpu.dimension_semantics<arbitrary>], iteration_bounds = array<i64: 1>, scalar_prefetch = 0 : i64, scratch_operands = 0 : i64, tpu.core_type = #tpu.core_type<tc>, window_params = [{transform_indices = @transform_0, window_bounds = array<i64: 8, 4>}, {transform_indices = @transform_1, window_bounds = array<i64: 8, 1>}, {pipeline_mode = #tpu.pipeline_mode<synchronous>, transform_indices = @transform_2, window_bounds = array<i64: 4, 128>}, {pipeline_mode = #tpu.pipeline_mode<synchronous>, transform_indices = @transform_3, window_bounds = array<i64: 1, 128>}, {pipeline_mode = #tpu.pipeline_mode<synchronous>, transform_indices = @transform_4, window_bounds = array<i64: 128, 2048>}, {pipeline_mode = #tpu.pipeline_mode<synchronous>, transform_indices = @transform_5, window_bounds = array<i64: 1, 2048>}, {pipeline_mode = #tpu.pipeline_mode<synchronous>, transform_indices = @transform_6, window_bounds = array<i64: 1, 2048>}, {pipeline_mode = #tpu.pipeline_mode<synchronous>, transform_indices = @transform_7, window_bounds = array<i64: 2048, 1024>}, {pipeline_mode = #tpu.pipeline_mode<synchronous>, transform_indices = @transform_8, window_bounds = array<i64: 1, 1024>}, {pipeline_mode = #tpu.pipeline_mode<synchronous>, transform_indices = @transform_9, window_bounds = array<i64: 1024, 128>}, {pipeline_mode = #tpu.pipeline_mode<synchronous>, transform_indices = @transform_10, window_bounds = array<i64: 1, 128>}, {transform_indices = @transform_11, window_bounds = array<i64: 8, 128>}, {transform_indices = @transform_12, window_bounds = array<i64: 8, 1024>}, {transform_indices = @transform_13, window_bounds = array<i64: 8, 128>}]} {
    %c0 = arith.constant 0 : index
    %c0_0 = arith.constant 0 : index
    %0 = vector.load %arg1[%c0, %c0_0] : memref<8x4xf32, #tpu.memory_space<vmem>>, vector<8x4xf32>
    %1 = arith.truncf %0 : vector<8x4xf32> to vector<8x4xbf16>
    %c0_1 = arith.constant 0 : index
    %c0_2 = arith.constant 0 : index
    %2 = vector.load %arg3[%c0_1, %c0_2] : memref<4x128xbf16, #tpu.memory_space<vmem>>, vector<4x128xbf16>
    %cst = arith.constant dense<0.000000e+00> : vector<8x128xf32>
    %3 = tpu.matmul %1, %2, %cst {dimension_numbers = #tpu.dot_dimension_numbers<[1], [0], [0], [1], [0, 0, 1, 1], [], []>} : vector<8x4xbf16>, vector<4x128xbf16>, vector<8x128xf32> -> vector<8x128xf32>
    %c0_3 = arith.constant 0 : index
    %c0_4 = arith.constant 0 : index
    %4 = vector.load %arg4[%c0_3, %c0_4] : memref<1x128xf32, #tpu.memory_space<vmem>>, vector<1x128xf32>
    %5 = vector.broadcast %4 : vector<1x128xf32> to vector<8x128xf32>
    %6 = arith.addf %3, %5 : vector<8x128xf32>
    %cst_5 = arith.constant 0.000000e+00 : f32
    %7 = vector.broadcast %cst_5 : f32 to vector<8x128xf32>
    %8 = arith.maximumf %6, %7 : vector<8x128xf32>
    %c0_6 = arith.constant 0 : index
    %c0_7 = arith.constant 0 : index
    %9 = vector.load %arg12[%c0_6, %c0_7] : memref<8x128xf32, #tpu.memory_space<vmem>>, vector<8x128xf32>
    tpu.vector_store %arg12[%c0_6, %c0_7], %8 {strides = array<i32>} : memref<8x128xf32, #tpu.memory_space<vmem>>, vector<8x128xf32>,
    %c0_8 = arith.constant 0 : index
    %c0_9 = arith.constant 0 : index
    %10 = vector.load %arg2[%c0_8, %c0_9] : memref<8x1xf32, #tpu.memory_space<vmem>>, vector<8x1xf32>
    %11 = arith.truncf %8 : vector<8x128xf32> to vector<8x128xbf16>
    %c0_10 = arith.constant 0 : index
    %c0_11 = arith.constant 0 : index
    %12 = vector.load %arg5[%c0_10, %c0_11] : memref<128x2048xbf16, #tpu.memory_space<vmem>>, vector<128x2048xbf16>
    %cst_12 = arith.constant dense<0.000000e+00> : vector<8x2048xf32>
    %13 = tpu.matmul %11, %12, %cst_12 {dimension_numbers = #tpu.dot_dimension_numbers<[1], [0], [0], [1], [0, 0, 1, 1], [], []>} : vector<8x128xbf16>, vector<128x2048xbf16>, vector<8x2048xf32> -> vector<8x2048xf32>
    %c0_13 = arith.constant 0 : index
    %c0_14 = arith.constant 0 : index
    %14 = vector.load %arg6[%c0_13, %c0_14] : memref<1x2048xf32, #tpu.memory_space<vmem>>, vector<1x2048xf32>
    %15 = vector.broadcast %10 : vector<8x1xf32> to vector<8x2048xf32>
    %16 = vector.broadcast %14 : vector<1x2048xf32> to vector<8x2048xf32>
    %17 = arith.mulf %15, %16 : vector<8x2048xf32>
    %18 = arith.addf %13, %17 : vector<8x2048xf32>
    %c0_15 = arith.constant 0 : index
    %c0_16 = arith.constant 0 : index
    %19 = vector.load %arg7[%c0_15, %c0_16] : memref<1x2048xf32, #tpu.memory_space<vmem>>, vector<1x2048xf32>
    %20 = vector.broadcast %19 : vector<1x2048xf32> to vector<8x2048xf32>
    %21 = arith.addf %18, %20 : vector<8x2048xf32>
    %cst_17 = arith.constant 0.000000e+00 : f32
    %22 = vector.broadcast %cst_17 : f32 to vector<8x2048xf32>
    %23 = arith.maximumf %21, %22 : vector<8x2048xf32>
    %24 = arith.truncf %23 : vector<8x2048xf32> to vector<8x2048xbf16>
    %c0_18 = arith.constant 0 : index
    %c0_19 = arith.constant 0 : index
    %25 = vector.load %arg8[%c0_18, %c0_19] : memref<2048x1024xbf16, #tpu.memory_space<vmem>>, vector<2048x1024xbf16>
    %cst_20 = arith.constant dense<0.000000e+00> : vector<8x1024xf32>
    %26 = tpu.matmul %24, %25, %cst_20 {dimension_numbers = #tpu.dot_dimension_numbers<[1], [0], [0], [1], [0, 0, 1, 1], [], []>} : vector<8x2048xbf16>, vector<2048x1024xbf16>, vector<8x1024xf32> -> vector<8x1024xf32>
    %c0_21 = arith.constant 0 : index
    %c0_22 = arith.constant 0 : index
    %27 = vector.load %arg9[%c0_21, %c0_22] : memref<1x1024xf32, #tpu.memory_space<vmem>>, vector<1x1024xf32>
    %28 = vector.broadcast %27 : vector<1x1024xf32> to vector<8x1024xf32>
    %29 = arith.addf %26, %28 : vector<8x1024xf32>
    %cst_23 = arith.constant 0.000000e+00 : f32
    %30 = vector.broadcast %cst_23 : f32 to vector<8x1024xf32>
    %31 = arith.maximumf %29, %30 : vector<8x1024xf32>
    %c0_24 = arith.constant 0 : index
    %c0_25 = arith.constant 0 : index
    %32 = vector.load %arg13[%c0_24, %c0_25] : memref<8x1024xf32, #tpu.memory_space<vmem>>, vector<8x1024xf32>
    tpu.vector_store %arg13[%c0_24, %c0_25], %31 {strides = array<i32>} : memref<8x1024xf32, #tpu.memory_space<vmem>>, vector<8x1024xf32>,
    %33 = arith.truncf %31 : vector<8x1024xf32> to vector<8x1024xbf16>
    %c0_26 = arith.constant 0 : index
    %c0_27 = arith.constant 0 : index
    %34 = vector.load %arg10[%c0_26, %c0_27] : memref<1024x128xbf16, #tpu.memory_space<vmem>>, vector<1024x128xbf16>
    %cst_28 = arith.constant dense<0.000000e+00> : vector<8x128xf32>
    %35 = tpu.matmul %33, %34, %cst_28 {dimension_numbers = #tpu.dot_dimension_numbers<[1], [0], [0], [1], [0, 0, 1, 1], [], []>} : vector<8x1024xbf16>, vector<1024x128xbf16>, vector<8x128xf32> -> vector<8x128xf32>
    %c0_29 = arith.constant 0 : index
    %c0_30 = arith.constant 0 : index
    %36 = vector.load %arg11[%c0_29, %c0_30] : memref<1x128xf32, #tpu.memory_space<vmem>>, vector<1x128xf32>
    %37 = vector.broadcast %36 : vector<1x128xf32> to vector<8x128xf32>
    %38 = arith.addf %35, %37 : vector<8x128xf32>
    %c0_31 = arith.constant 0 : index
    %c0_32 = arith.constant 0 : index
    %39 = vector.load %arg14[%c0_31, %c0_32] : memref<8x128xf32, #tpu.memory_space<vmem>>, vector<8x128xf32>
    tpu.vector_store %arg14[%c0_31, %c0_32], %38 {strides = array<i32>} : memref<8x128xf32, #tpu.memory_space<vmem>>, vector<8x128xf32>,
    return
  }
  func.func @transform_0(%arg0: i32) -> (i32, i32) {
    %c0_i32 = arith.constant 0 : i32
    %c0_i32_0 = arith.constant 0 : i32
    return %arg0, %c0_i32 : i32, i32
  }
  func.func @transform_1(%arg0: i32) -> (i32, i32) {
    %c0_i32 = arith.constant 0 : i32
    %c0_i32_0 = arith.constant 0 : i32
    return %arg0, %c0_i32 : i32, i32
  }
  func.func @transform_2(%arg0: i32) -> (i32, i32) {
    %c0_i32 = arith.constant 0 : i32
    %c0_i32_0 = arith.constant 0 : i32
    %c0_i32_1 = arith.constant 0 : i32
    return %c0_i32, %c0_i32_0 : i32, i32
  }
  func.func @transform_3(%arg0: i32) -> (i32, i32) {
    %c0_i32 = arith.constant 0 : i32
    %c0_i32_0 = arith.constant 0 : i32
    %c0_i32_1 = arith.constant 0 : i32
    return %c0_i32, %c0_i32_0 : i32, i32
  }
  func.func @transform_4(%arg0: i32) -> (i32, i32) {
    %c0_i32 = arith.constant 0 : i32
    %c0_i32_0 = arith.constant 0 : i32
    %c0_i32_1 = arith.constant 0 : i32
    return %c0_i32, %c0_i32_0 : i32, i32
  }
  func.func @transform_5(%arg0: i32) -> (i32, i32) {
    %c0_i32 = arith.constant 0 : i32
    %c0_i32_0 = arith.constant 0 : i32
    %c0_i32_1 = arith.constant 0 : i32
    return %c0_i32, %c0_i32_0 : i32, i32
  }
  func.func @transform_6(%arg0: i32) -> (i32, i32) {
    %c0_i32 = arith.constant 0 : i32
    %c0_i32_0 = arith.constant 0 : i32
    %c0_i32_1 = arith.constant 0 : i32
    return %c0_i32, %c0_i32_0 : i32, i32
  }
  func.func @transform_7(%arg0: i32) -> (i32, i32) {
    %c0_i32 = arith.constant 0 : i32
    %c0_i32_0 = arith.constant 0 : i32
    %c0_i32_1 = arith.constant 0 : i32
    return %c0_i32, %c0_i32_0 : i32, i32
  }
  func.func @transform_8(%arg0: i32) -> (i32, i32) {
    %c0_i32 = arith.constant 0 : i32
    %c0_i32_0 = arith.constant 0 : i32
    %c0_i32_1 = arith.constant 0 : i32
    return %c0_i32, %c0_i32_0 : i32, i32
  }
  func.func @transform_9(%arg0: i32) -> (i32, i32) {
    %c0_i32 = arith.constant 0 : i32
    %c0_i32_0 = arith.constant 0 : i32
    %c0_i32_1 = arith.constant 0 : i32
    return %c0_i32, %c0_i32_0 : i32, i32
  }
  func.func @transform_10(%arg0: i32) -> (i32, i32) {
    %c0_i32 = arith.constant 0 : i32
    %c0_i32_0 = arith.constant 0 : i32
    %c0_i32_1 = arith.constant 0 : i32
    return %c0_i32, %c0_i32_0 : i32, i32
  }
  func.func @transform_11(%arg0: i32) -> (i32, i32) {
    %c0_i32 = arith.constant 0 : i32
    %c0_i32_0 = arith.constant 0 : i32
    return %arg0, %c0_i32 : i32, i32
  }
  func.func @transform_12(%arg0: i32) -> (i32, i32) {
    %c0_i32 = arith.constant 0 : i32
    %c0_i32_0 = arith.constant 0 : i32
    return %arg0, %c0_i32 : i32, i32
  }
  func.func @transform_13(%arg0: i32) -> (i32, i32) {
    %c0_i32 = arith.constant 0 : i32
    %c0_i32_0 = arith.constant 0 : i32
    return %arg0, %c0_i32 : i32, i32
  }
}

</mosaic_0001>

<bundles_post_ra>
// kernel: bsp_cdan_forward.1
= control target key start
LH: loop header
LB: loop body
LE: loop exit
PB: predicated region body
PF: predicated region fallthrough
CT: control target
= control target key end

     0   :  { %19 = vsyncpa [#allocation3], 0  ;;  %s12076_s0 = inlined_call_operand.vmem [shape: f32[8,4], index: 0, kind: input, shape index: {}]   ;;  %s12077_s1 = inlined_call_operand.vmem [shape: f32[8,1], index: 1, kind: input, shape index: {}]   ;;  %s12078_s2 = inlined_call_operand.hbm [shape: bf16[4,128], index: 2, kind: input, shape index: {}]   ;;  %s12079_s3 = inlined_call_operand.hbm [shape: f32[1,128], index: 3, kind: input, shape index: {}]   ;;  %s12080_s4 = inlined_call_operand.hbm [shape: bf16[128,2048], index: 4, kind: input, shape index: {}]   ;;  %s12081_s5 = inlined_call_operand.hbm [shape: f32[1,2048], index: 5, kind: input, shape index: {}]   ;;  %s12082_s6 = inlined_call_operand.hbm [shape: f32[1,2048], index: 6, kind: input, shape index: {}]   ;;  %s12083_s7 = inlined_call_operand.hbm [shape: bf16[2048,1024], index: 7, kind: input, shape index: {}]   ;;  %s12084_s8 = inlined_call_operand.hbm [shape: f32[1,1024], index: 8, kind: input, shape index: {}]   ;;  %s12085_s9 = inlined_call_operand.hbm [shape: bf16[1024,128], index: 9, kind: input, shape index: {}]   ;;  %s12086_s10 = inlined_call_operand.hbm [shape: f32[1,128], index: 10, kind: input, shape index: {}]   ;;  %s12087_s11 = inlined_call_operand.vmem [shape: f32[8,128], index: 11, kind: output, shape index: {0}]   ;;  %s12088_s12 = inlined_call_operand.vmem [shape: f32[8,1024], index: 12, kind: output, shape index: {1}]   ;;  %s12089_s13 = inlined_call_operand.vmem [shape: f32[8,128], index: 13, kind: output, shape index: {2}]  }
   0x1   :  { %20 = vsyncpa [#allocation5], 0 }
   0x2   :  { %21 = vsyncpa [#allocation8], 0 }
   0x3   :  { %22 = vsyncpa [#allocation11], 0 }
   0x4   :  { %23 = vsyncpa [#allocation14], 0  ;;  %s11497_s25 = smov [#allocation4]   ;;  %s11498_s27 = smov [#allocation7]  }
   0x5   :  { %s44_s26 = sshll.u32 %s11497_s25, 4  ;;  %s66_s28 = sshll.u32 %s11498_s27, 4  ;;  %s45_s26 = int_to_ptr.vmem [resolvable:$true] %s44_s26  ;;  %s67_s28 = int_to_ptr.vmem [resolvable:$true] %s66_s28 }
   0x6   :  { %s11289_s14 = scalar_lea.hbm %s12079_s3, 16 }
   0x7   :  { %p11290_p0 = scmp.ne.s32.totalorder %s12079_s3, %s11289_s14  ;;  %p11293_p1 = scmp.lt.u32.totalorder %s11289_s14, %s12079_s3 }
   0x9   :  { %p11295_p2 = pnand %p11293_p1, %p11290_p0 }
   0xb   :  { %11298 = shalt.err (!%p11295_p2)
}
   0xc   :  { %s11299_s19 = scalar_lea.vmem %s45_s26, 16  ;;  %s11303_s20 = scalar_lea.vmem %s45_s26, 32 }
   0xd   :  { %p11300_p3 = scmp.ne.s32.totalorder %s45_s26, %s11299_s19  ;;  %p11304_p4 = scmp.lt.s32.totalorder %s45_s26, %s45_s26 }
   0xe   :  { %p11305_p5 = scmp.lt.s32.totalorder %s11303_s20, %s11299_s19 }
  0x10   :  { %p11306_p6 = por %p11305_p5, %p11304_p4 }
  0x12   :  { %p11307_p7 = pnand %p11306_p6, %p11300_p3 }
  0x14   :  { %11310 = shalt.err (!%p11307_p7)
}
  0x15   :  { %47 = dma.hbm_to_vmem [thread:$0]  %s12079_s3, 16, %s45_s26, [#allocation5]  }
  0x16   :  { %s11311_s25 = scalar_lea.hbm %s12081_s5, 256 }
  0x17   :  { %p11312_p8 = scmp.ne.s32.totalorder %s12081_s5, %s11311_s25  ;;  %p11315_p9 = scmp.lt.u32.totalorder %s11311_s25, %s12081_s5 }
  0x19   :  { %p11317_p10 = pnand %p11315_p9, %p11312_p8 }
  0x1b   :  { %11320 = shalt.err (!%p11317_p10)
}
  0x1c   :  { %s11321_s15 = scalar_lea.vmem %s67_s28, 256  ;;  %p11326_p12 = scmp.lt.s32.totalorder %s67_s28, %s67_s28 }
  0x1d   :  { %p11322_p11 = scmp.ne.s32.totalorder %s67_s28, %s11321_s15  ;;  %p11327_p13 = scmp.lt.s32.totalorder %s11321_s15, %s11321_s15 }
  0x1f   :  { %p11328_p0 = por %p11327_p13, %p11326_p12 }
  0x21   :  { %p11329_p1 = pnand %p11328_p0, %p11322_p11 }
  0x23   :  { %11332 = shalt.err (!%p11329_p1)
}
  0x24   :  { %69 = dma.hbm_to_vmem [thread:$0]  %s12081_s5, 256, %s67_s28, [#allocation8]  }
  0x25   :  { %s11499_s16 = smov [#allocation10]   ;;  %s11333_s20 = scalar_lea.hbm %s12083_s7, 131072 }
  0x26   :  { %s85_s17 = sshll.u32 %s11499_s16, 4  ;;  %p11334_p2 = scmp.ne.s32.totalorder %s12083_s7, %s11333_s20  ;;  %s86_s17 = int_to_ptr.vmem [resolvable:$true] %s85_s17 }
  0x27   :  { %p11337_p3 = scmp.lt.u32.totalorder %s11333_s20, %s12083_s7 }
  0x29   :  { %p11339_p4 = pnand %p11337_p3, %p11334_p2 }
  0x2b   :  { %11342 = shalt.err (!%p11339_p4)
}
  0x2c   :  { %s11343_s25 = scalar_lea.vmem %s86_s17, 131072  ;;  %p11348_p6 = scmp.lt.s32.totalorder %s86_s17, %s86_s17 }
  0x2d   :  { %p11344_p5 = scmp.ne.s32.totalorder %s86_s17, %s11343_s25  ;;  %p11349_p7 = scmp.lt.s32.totalorder %s11343_s25, %s11343_s25 }
  0x2f   :  { %p11350_p8 = por %p11349_p7, %p11348_p6 }
  0x31   :  { %p11351_p9 = pnand %p11350_p8, %p11344_p5 }
  0x33   :  { %11354 = shalt.err (!%p11351_p9)
}
  0x34   :  { %s11500_s5 = smov 512   ;;  %s11501_s28 = smov 32  }
  0x35   :  { %91 = dma.hbm_to_vmem [thread:$0]  %s12083_s7, 131072, %s86_s17, [#allocation11], %s11500_s5, %s11500_s5, %s11501_s28  }
  0x36   :  { %s11502_s30 = smov [#allocation13]   ;;  %s11503_s15 = smov [#allocation2]  }
  0x37   :  { %s107_s14 = sshll.u32 %s11502_s30, 4  ;;  %s34_s3 = sshll.u32 %s11503_s15, 4  ;;  %s108_s14 = int_to_ptr.vmem [resolvable:$true] %s107_s14  ;;  %s35_s3 = int_to_ptr.vmem [resolvable:$true] %s34_s3 }
  0x38   :  { %s11355_s18 = scalar_lea.hbm %s12085_s9, 8192 }
  0x39   :  { %p11356_p10 = scmp.ne.s32.totalorder %s12085_s9, %s11355_s18  ;;  %p11359_p11 = scmp.lt.u32.totalorder %s11355_s18, %s12085_s9 }
  0x3b   :  { %p11361_p12 = pnand %p11359_p11, %p11356_p10 }
  0x3d   :  { %11364 = shalt.err (!%p11361_p12)
}
  0x3e   :  { %s11365_s7 = scalar_lea.vmem %s108_s14, 8192  ;;  %p11370_p0 = scmp.lt.s32.totalorder %s108_s14, %s108_s14 }
  0x3f   :  { %p11366_p13 = scmp.ne.s32.totalorder %s108_s14, %s11365_s7  ;;  %p11371_p1 = scmp.lt.s32.totalorder %s11365_s7, %s11365_s7 }
  0x41   :  { %p11372_p2 = por %p11371_p1, %p11370_p0 }
  0x43   :  { %p11373_p3 = pnand %p11372_p2, %p11366_p13 }
  0x45   :  { %11376 = shalt.err (!%p11373_p3)
}
  0x46   :  { %s11504_s17 = smov 64   ;;  %s11505_s23 = smov 4  }
  0x47   :  { %113 = dma.hbm_to_vmem [thread:$0]  %s12085_s9, 8192, %s108_s14, [#allocation14], %s11504_s17, %s11504_s17, %s11505_s23  }
  0x48   :  { %s11377_s27 = scalar_lea.hbm %s12078_s2, 32 }
  0x49   :  { %p11378_p4 = scmp.ne.s32.totalorder %s12078_s2, %s11377_s27  ;;  %p11381_p5 = scmp.lt.u32.totalorder %s11377_s27, %s12078_s2 }
  0x4b   :  { %p11383_p6 = pnand %p11381_p5, %p11378_p4 }
  0x4d   :  { %11386 = shalt.err (!%p11383_p6)
}
  0x4e   :  { %s11387_s16 = scalar_lea.vmem %s35_s3, 32  ;;  %p11392_p8 = scmp.lt.s32.totalorder %s35_s3, %s35_s3 }
  0x4f   :  { %p11388_p7 = scmp.ne.s32.totalorder %s35_s3, %s11387_s16  ;;  %p11393_p9 = scmp.lt.s32.totalorder %s11387_s16, %s11387_s16 }
  0x51   :  { %p11394_p10 = por %p11393_p9, %p11392_p8 }
  0x53   :  { %p11395_p11 = pnand %p11394_p10, %p11388_p7 }
  0x55   :  { %11398 = shalt.err (!%p11395_p11)
}
  0x56   :  { %37 = dma.hbm_to_vmem [thread:$0]  %s12078_s2, 32, %s35_s3, [#allocation3]  }
  0x57   :  { %s11506_s18 = smov [#allocation6]   ;;  %s11399_s22 = scalar_lea.hbm %s12080_s4, 16384 }
  0x58   :  { %s53_s19 = sshll.u32 %s11506_s18, 4  ;;  %p11400_p12 = scmp.ne.s32.totalorder %s12080_s4, %s11399_s22  ;;  %s54_s19 = int_to_ptr.vmem [resolvable:$true] %s53_s19 }
  0x59   :  { %p11403_p13 = scmp.lt.u32.totalorder %s11399_s22, %s12080_s4 }
  0x5b   :  { %p11405_p0 = pnand %p11403_p13, %p11400_p12 }
  0x5d   :  { %11408 = shalt.err (!%p11405_p0)
}
  0x5e   :  { %s11409_s5 = scalar_lea.vmem %s54_s19, 16384  ;;  %p11414_p2 = scmp.lt.s32.totalorder %s54_s19, %s54_s19 }
  0x5f   :  { %p11410_p1 = scmp.ne.s32.totalorder %s54_s19, %s11409_s5  ;;  %p11415_p3 = scmp.lt.s32.totalorder %s11409_s5, %s11409_s5 }
  0x61   :  { %p11416_p4 = por %p11415_p3, %p11414_p2 }
  0x63   :  { %p11417_p5 = pnand %p11416_p4, %p11410_p1 }
  0x65   :  { %11420 = shalt.err (!%p11417_p5)
}
  0x66   :  { %s11507_s2 = smov 1024   ;;  %s11508_s27 = smov [#allocation9]  }
  0x67   :  { %59 = dma.hbm_to_vmem [thread:$0]  %s12080_s4, 16384, %s54_s19, [#allocation5], %s11507_s2, %s11507_s2, %s11504_s17  }
  0x68   :  { %s76_s29 = sshll.u32 %s11508_s27, 4  ;;  %s11509_s30 = smov [#allocation12]   ;;  %s77_s29 = int_to_ptr.vmem [resolvable:$true] %s76_s29 }
  0x69   :  { %s98_s15 = sshll.u32 %s11509_s30, 4  ;;  %s11421_s9 = scalar_lea.hbm %s12082_s6, 256  ;;  %s99_s15 = int_to_ptr.vmem [resolvable:$true] %s98_s15 }
  0x6a   :  { %p11422_p6 = scmp.ne.s32.totalorder %s12082_s6, %s11421_s9  ;;  %p11425_p7 = scmp.lt.u32.totalorder %s11421_s9, %s12082_s6 }
  0x6c   :  { %p11427_p8 = pnand %p11425_p7, %p11422_p6 }
  0x6e   :  { %11430 = shalt.err (!%p11427_p8)
}
  0x6f   :  { %s11431_s4 = scalar_lea.vmem %s77_s29, 256  ;;  %p11436_p10 = scmp.lt.s32.totalorder %s77_s29, %s77_s29 }
  0x70   :  { %p11432_p9 = scmp.ne.s32.totalorder %s77_s29, %s11431_s4  ;;  %p11437_p11 = scmp.lt.s32.totalorder %s11431_s4, %s11431_s4 }
  0x72   :  { %p11438_p12 = por %p11437_p11, %p11436_p10 }
  0x74   :  { %p11439_p13 = pnand %p11438_p12, %p11432_p9 }
  0x76   :  { %11442 = shalt.err (!%p11439_p13)
}
  0x77   :  { %79 = dma.hbm_to_vmem [thread:$0]  %s12082_s6, 256, %s77_s29, [#allocation8]  }
  0x78   :  { %s11443_s23 = scalar_lea.hbm %s12084_s8, 128 }
  0x79   :  { %p11444_p0 = scmp.ne.s32.totalorder %s12084_s8, %s11443_s23  ;;  %p11447_p1 = scmp.lt.u32.totalorder %s11443_s23, %s12084_s8 }
  0x7b   :  { %p11449_p2 = pnand %p11447_p1, %p11444_p0 }
  0x7d   :  { %11452 = shalt.err (!%p11449_p2)
}
  0x7e   :  { %s11453_s3 = scalar_lea.vmem %s99_s15, 128  ;;  %p11458_p4 = scmp.lt.s32.totalorder %s99_s15, %s99_s15 }
  0x7f   :  { %p11454_p3 = scmp.ne.s32.totalorder %s99_s15, %s11453_s3  ;;  %p11459_p5 = scmp.lt.s32.totalorder %s11453_s3, %s11453_s3 }
  0x81   :  { %p11460_p6 = por %p11459_p5, %p11458_p4 }
  0x83   :  { %p11461_p7 = pnand %p11460_p6, %p11454_p3 }
  0x85   :  { %11464 = shalt.err (!%p11461_p7)
}
  0x86   :  { %101 = dma.hbm_to_vmem [thread:$0]  %s12084_s8, 128, %s99_s15, [#allocation11]  }
  0x87   :  { %s11510_s27 = smov [#allocation15]   ;;  %s11465_s16 = scalar_lea.hbm %s12086_s10, 16 }
  0x88   :  { %s120_s29 = sshll.u32 %s11510_s27, 4  ;;  %p11466_p8 = scmp.ne.s32.totalorder %s12086_s10, %s11465_s16  ;;  %s121_s29 = int_to_ptr.vmem [resolvable:$true] %s120_s29 }
  0x89   :  { %p11469_p9 = scmp.lt.u32.totalorder %s11465_s16, %s12086_s10 }
  0x8b   :  { %p11471_p10 = pnand %p11469_p9, %p11466_p8 }
  0x8d   :  { %11474 = shalt.err (!%p11471_p10)
}
  0x8e   :  { %s11475_s21 = scalar_lea.vmem %s121_s29, 16  ;;  %s11479_s8 = scalar_lea.vmem %s121_s29, 32 }
  0x8f   :  { %p11476_p11 = scmp.ne.s32.totalorder %s121_s29, %s11475_s21  ;;  %p11480_p12 = scmp.lt.s32.totalorder %s121_s29, %s121_s29 }
  0x90   :  { %p11481_p13 = scmp.lt.s32.totalorder %s11479_s8, %s11475_s21 }
  0x92   :  { %p11482_p0 = por %p11481_p13, %p11480_p12 }
  0x94   :  { %p11483_p1 = pnand %p11482_p0, %p11476_p11 }
  0x96   :  { %11486 = shalt.err (!%p11483_p1)
}
  0x97   :  { %123 = dma.hbm_to_vmem [thread:$0]  %s12086_s10, 16, %s121_s29, [#allocation14]  }
  0x98   :  { %11487 = dma.done.wait [#allocation3], 32  }
  0x99   :  { %11488 = vsyncadd [#allocation3], 4294967264 }
  0x9a   :  { %11489 = dma.done.wait [#allocation5], 16400  }
  0x9b   :  { %11490 = vsyncadd [#allocation5], 4294950896 }
  0x9c   :  { %11491 = dma.done.wait [#allocation8], 512  }
  0x9d   :  { %11492 = vsyncadd [#allocation8], 4294966784 }
  0x9e   :  { %11493 = dma.done.wait [#allocation11], 131200  }
  0x9f   :  { %11494 = vsyncadd [#allocation11], 4294836096 }
  0xa0   :  { %11495 = dma.done.wait [#allocation14], 8208  }
  0xa1   :  { %11496 = vsyncadd [#allocation14], 4294959088  ;;  %v11511_v0 = vmov 0.0   ;;  %vm11512_vm0 = vmmov 0   ;;  %vm166_vm1 = vcmask 1041408   ;;  %v152_v2 = vld [vmem:[%s12076_s0] sm:$0xff] }
  0xa2   :  { %11075 = vmatprep.subr.bf16.mxu0 %v11511_v0  ;;  %11077 = vmatprep.mubr.msk.bf16.mxu0 %vm11512_vm0, %v11511_v0  ;;  %v154_v1 = vld [vmem:[#allocation2] sm:$0x3]  ;;  %v214_v3 = vld [vmem:[#allocation6] sm:$0xff]  ;;  %v153_v5 = vpack.c.bf16 %v152_v2, %v152_v2  ;;  %vm162_vm2 = vcmask 31744   ;;  %v215_v7 = vld [vmem:[#allocation6 + $0x8] sm:$0xff] }
  0xa3   :  { %v168_v4 = vsel %vm166_vm1, %v154_v1, 0  ;;  %v222_v6 = vld [vmem:[#allocation6 + $0x40] sm:$0xff]  ;;  %v223_v8 = vld [vmem:[#allocation6 + $0x48] sm:$0xff] }
  0xa4   :  { %11076 = vmatpush3.bf16.msra.mxu0 %v168_v4  ;;  %v9769_v9 = vcombine.high %v214_v3, %v222_v6  ;;  %v9770_v10 = vcombine.low %v215_v7, %v223_v8  ;;  %v9771_v11 = vcombine.high %v215_v7, %v223_v8  ;;  %v9768_v12 = vcombine.low %v214_v3, %v222_v6  ;;  %v230_v13 = vld [vmem:[#allocation6 + $0x80] sm:$0xff]  ;;  %v231_v15 = vld [vmem:[#allocation6 + $0x88] sm:$0xff]  ;;  %v224_v6 = vld [vmem:[#allocation6 + $0x50] sm:$0xff] }
  0xa5   :  { %v238_v14 = vld [vmem:[#allocation6 + $0xc0] sm:$0xff]  ;;  %v239_v17 = vld [vmem:[#allocation6 + $0xc8] sm:$0xff]  ;;  %v217_v7 = vld [vmem:[#allocation6 + $0x18] sm:$0xff] }
  0xa6   :  { %v9785_v16 = vcombine.high %v230_v13, %v238_v14  ;;  %v246_v18 = vld [vmem:[#allocation6 + $0x100] sm:$0xff]  ;;  %1087 = vmatprep.subr.bf16.mxu1 %v9769_v9  ;;  %1128 = vmatprep.subr.bf16.mxu0 %v9771_v11  ;;  %v9787_v20 = vcombine.high %v231_v15, %v239_v17  ;;  %v247_v21 = vld [vmem:[#allocation6 + $0x108] sm:$0xff]  ;;  %v9784_v23 = vcombine.low %v230_v13, %v238_v14  ;;  %v225_v9 = vld [vmem:[#allocation6 + $0x58] sm:$0xff]  ;;  %v11513_v13 = vmov 0  }
  0xa7   :  { %v254_v19 = vld [vmem:[#allocation6 + $0x140] sm:$0xff]  ;;  %v255_v22 = vld [vmem:[#allocation6 + $0x148] sm:$0xff]  ;;  %11078 = vmatmul.mubr.msk.bf16.vlgmr.msra.gmra.mrb[0].mxu0 %vm162_vm2, %v153_v5  ;;  %1088 = vmatpush1.bf16.msra.mxu1 %v9768_v12  ;;  %v9786_v24 = vcombine.low %v231_v15, %v239_v17  ;;  %v216_v5 = vld [vmem:[#allocation6 + $0x10] sm:$0xff]  ;;  %v9774_v11 = vcombine.low %v217_v7, %v225_v9  ;;  %v9775_v12 = vcombine.high %v217_v7, %v225_v9 }
  0xa8   :  { %1129 = vmatpush1.bf16.msra.mxu0 %v9770_v10  ;;  %1089 = vmatprep.subr.bf16.mxu1 %v9785_v16  ;;  %v9801_v25 = vcombine.high %v246_v18, %v254_v19  ;;  %v9803_v26 = vcombine.high %v247_v21, %v255_v22  ;;  %v262_v27 = vld [vmem:[#allocation6 + $0x180] sm:$0xff]  ;;  %v263_v29 = vld [vmem:[#allocation6 + $0x188] sm:$0xff]  ;;  %v9800_v31 = vcombine.low %v246_v18, %v254_v19  ;;  %v9766_v15 = vld [vmem:[#allocation4] ss:$0 sm:$0xff] }
  0xa9   :  { %1130 = vmatprep.subr.bf16.mxu0 %v9787_v20  ;;  %v270_v28 = vld [vmem:[#allocation6 + $0x1c0] sm:$0xff]  ;;  %v271_v30 = vld [vmem:[#allocation6 + $0x1c8] sm:$0xff]  ;;  %v9802_v34 = vcombine.low %v247_v21, %v255_v22  ;;  %v9773_v8 = vcombine.high %v216_v5, %v224_v6  ;;  %v9772_v10 = vcombine.low %v216_v5, %v224_v6  ;;  %1119 = vmatprep.mubr.bf16.mxu1 %v11513_v13  ;;  %v232_v19 = vld [vmem:[#allocation6 + $0x90] sm:$0xff] }
  0xaa   :  { %v278_v32 = vld [vmem:[#allocation6 + $0x200] sm:$0xff]  ;;  %v9817_v35 = vcombine.high %v262_v27, %v270_v28  ;;  %v279_v36 = vld [vmem:[#allocation6 + $0x208] sm:$0xff]  ;;  %v9819_v38 = vcombine.high %v263_v29, %v271_v30  ;;  %v9816_v39 = vcombine.low %v262_v27, %v270_v28  ;;  %v9818_v42 = vcombine.low %v263_v29, %v271_v30  ;;  %1160 = vmatprep.mubr.bf16.mxu0 %v11513_v13  ;;  %v240_v21 = vld [vmem:[#allocation6 + $0xd0] sm:$0xff] }
  0xab   :  { %1090 = vmatpush1.bf16.msra.mxu1 %v9784_v23  ;;  %v286_v33 = vld [vmem:[#allocation6 + $0x240] sm:$0xff]  ;;  %v287_v37 = vld [vmem:[#allocation6 + $0x248] sm:$0xff]  ;;  %11218 = vset.pattern.permute.xlu0 %v11513_v13  ;;  %v233_v22 = vld [vmem:[#allocation6 + $0x98] sm:$0xff]  ;;  %v9789_v27 = vcombine.high %v232_v19, %v240_v21 }
  0xac   :  { %1131 = vmatpush1.bf16.msra.mxu0 %v9786_v24  ;;  %1091 = vmatprep.subr.bf16.mxu1 %v9801_v25  ;;  %v294_v40 = vld [vmem:[#allocation6 + $0x280] sm:$0xff]  ;;  %v9833_v43 = vcombine.high %v278_v32, %v286_v33  ;;  %v295_v44 = vld [vmem:[#allocation6 + $0x288] sm:$0xff]  ;;  %v9835_v46 = vcombine.high %v279_v36, %v287_v37  ;;  %v9832_v47 = vcombine.low %v278_v32, %v286_v33  ;;  %v241_v23 = vld [vmem:[#allocation6 + $0xd8] sm:$0xff] }
  0xad   :  { %1132 = vmatprep.subr.bf16.mxu0 %v9803_v26  ;;  %v302_v41 = vld [vmem:[#allocation6 + $0x2c0] sm:$0xff]  ;;  %v303_v45 = vld [vmem:[#allocation6 + $0x2c8] sm:$0xff]  ;;  %v9834_v50 = vcombine.low %v279_v36, %v287_v37  ;;  %v9791_v28 = vcombine.high %v233_v22, %v241_v23  ;;  %v248_v29 = vld [vmem:[#allocation6 + $0x110] sm:$0xff]  ;;  %v9788_v33 = vcombine.low %v232_v19, %v240_v21 }
  0xae   :  { %v310_v48 = vld [vmem:[#allocation6 + $0x300] sm:$0xff]  ;;  %v9849_v51 = vcombine.high %v294_v40, %v302_v41  ;;  %v311_v52 = vld [vmem:[#allocation6 + $0x308] sm:$0xff]  ;;  %v9851_v54 = vcombine.high %v295_v44, %v303_v45  ;;  %v9848_v55 = vcombine.low %v294_v40, %v302_v41  ;;  %v9850_v56 = vcombine.low %v295_v44, %v303_v45  ;;  %v256_v30 = vld [vmem:[#allocation6 + $0x150] sm:$0xff] }
  0xaf   :  { %1092 = vmatpush1.bf16.msra.mxu1 %v9800_v31  ;;  %v318_v49 = vld [vmem:[#allocation6 + $0x340] sm:$0xff]  ;;  %v319_v53 = vld [vmem:[#allocation6 + $0x348] sm:$0xff]  ;;  %v249_v31 = vld [vmem:[#allocation6 + $0x118] sm:$0xff]  ;;  %v9804_v41 = vcombine.low %v248_v29, %v256_v30 }
  0xb0   :  { %1133 = vmatpush1.bf16.msra.mxu0 %v9802_v34  ;;  %1093 = vmatprep.subr.bf16.mxu1 %v9817_v35  ;;  %v9865_v57 = vcombine.high %v310_v48, %v318_v49  ;;  %v9867_v58 = vcombine.high %v311_v52, %v319_v53  ;;  %v9864_v59 = vcombine.low %v310_v48, %v318_v49  ;;  %v326_v61 = vld [vmem:[#allocation6 + $0x380] sm:$0xff]  ;;  %v327_v63 = vld [vmem:[#allocation6 + $0x388] sm:$0xff]  ;;  %v257_v32 = vld [vmem:[#allocation6 + $0x158] sm:$0xff] }
  0xb1   :  { %1134 = vmatprep.subr.bf16.mxu0 %v9819_v38  ;;  %v9866_v60 = vcombine.low %v311_v52, %v319_v53  ;;  %v334_v62 = vld [vmem:[#allocation6 + $0x3c0] sm:$0xff]  ;;  %v335_v1 = vld [vmem:[#allocation6 + $0x3c8] sm:$0xff]  ;;  %v9790_v34 = vcombine.low %v233_v22, %v241_v23  ;;  %v9805_v35 = vcombine.high %v248_v29, %v256_v30  ;;  %v9807_v36 = vcombine.high %v249_v31, %v257_v32  ;;  %v264_v37 = vld [vmem:[#allocation6 + $0x190] sm:$0xff] }
  0xb2   :  { %v9881_v0 = vcombine.high %v326_v61, %v334_v62  ;;  %v9882_v2 = vcombine.low %v327_v63, %v335_v1  ;;  %v9883_v3 = vcombine.high %v327_v63, %v335_v1  ;;  %v9880_v4 = vcombine.low %v326_v61, %v334_v62  ;;  %v212_v14 = vld [vmem:[%s12077_s1] sm:$0xff]  ;;  %v272_v38 = vld [vmem:[#allocation6 + $0x1d0] sm:$0xff] }
  0xb3   :  { %1094 = vmatpush1.bf16.msra.mxu1 %v9816_v39  ;;  %346 = vperm.xlu0 %11218, %v212_v14   ;;  %v265_v39 = vld [vmem:[#allocation6 + $0x198] sm:$0xff]  ;;  %v280_v45 = vld [vmem:[#allocation6 + $0x210] sm:$0xff]  ;;  %v9820_v49 = vcombine.low %v264_v37, %v272_v38  ;;  %v218_v14 = vld [vmem:[#allocation6 + $0x20] sm:$0xff] }
  0xb4   :  { %1135 = vmatpush1.bf16.msra.mxu0 %v9818_v42  ;;  %1095 = vmatprep.subr.bf16.mxu1 %v9833_v43  ;;  %v273_v40 = vld [vmem:[#allocation6 + $0x1d8] sm:$0xff]  ;;  %v9806_v42 = vcombine.low %v249_v31, %v257_v32  ;;  %v9821_v43 = vcombine.high %v264_v37, %v272_v38  ;;  %v296_v53 = vld [vmem:[#allocation6 + $0x290] sm:$0xff]  ;;  %v234_v22 = vld [vmem:[#allocation6 + $0xa0] sm:$0xff] }
  0xb5   :  { %1136 = vmatprep.subr.bf16.mxu0 %v9835_v46  ;;  %v9823_v44 = vcombine.high %v265_v39, %v273_v40  ;;  %v288_v46 = vld [vmem:[#allocation6 + $0x250] sm:$0xff]  ;;  %v289_v48 = vld [vmem:[#allocation6 + $0x258] sm:$0xff]  ;;  %v242_v23 = vld [vmem:[#allocation6 + $0xe0] sm:$0xff] }
  0xb6   :  { %v312_v61 = vld [vmem:[#allocation6 + $0x310] sm:$0xff]  ;;  %v313_v63 = vld [vmem:[#allocation6 + $0x318] sm:$0xff]  ;;  %v9793_v29 = vcombine.high %v234_v22, %v242_v23  ;;  %v250_v31 = vld [vmem:[#allocation6 + $0x120] sm:$0xff] }
  0xb7   :  { %1096 = vmatpush1.bf16.msra.mxu1 %v9832_v47  ;;  %v281_v47 = vld [vmem:[#allocation6 + $0x218] sm:$0xff]  ;;  %v320_v62 = vld [vmem:[#allocation6 + $0x350] sm:$0xff]  ;;  %v258_v32 = vld [vmem:[#allocation6 + $0x160] sm:$0xff] }
  0xb8   :  { %1137 = vmatpush1.bf16.msra.mxu0 %v9834_v50  ;;  %1097 = vmatprep.subr.bf16.mxu1 %v9849_v51  ;;  %v9822_v50 = vcombine.low %v265_v39, %v273_v40  ;;  %v9837_v51 = vcombine.high %v280_v45, %v288_v46  ;;  %v9839_v52 = vcombine.high %v281_v47, %v289_v48  ;;  %v328_v5 = vld [vmem:[#allocation6 + $0x390] sm:$0xff]  ;;  %v329_v7 = vld [vmem:[#allocation6 + $0x398] sm:$0xff]  ;;  %v266_v39 = vld [vmem:[#allocation6 + $0x1a0] sm:$0xff] }
  0xb9   :  { %1138 = vmatprep.subr.bf16.mxu0 %v9851_v54  ;;  %v304_v54 = vld [vmem:[#allocation6 + $0x2d0] sm:$0xff]  ;;  %v9868_v9 = vcombine.low %v312_v61, %v320_v62  ;;  %v9809_v37 = vcombine.high %v250_v31, %v258_v32  ;;  %v274_v40 = vld [vmem:[#allocation6 + $0x1e0] sm:$0xff] }
  0xba   :  { %v9852_v1 = vcombine.low %v296_v53, %v304_v54  ;;  %v336_v6 = vld [vmem:[#allocation6 + $0x3d0] sm:$0xff] }
  0xbb   :  { %1098 = vmatpush1.bf16.msra.mxu1 %v9848_v55  ;;  %v297_v55 = vld [vmem:[#allocation6 + $0x298] sm:$0xff] }
  0xbc   :  { %1139 = vmatpush1.bf16.msra.mxu0 %v9850_v56  ;;  %1099 = vmatprep.subr.bf16.mxu1 %v9865_v57  ;;  %v305_v56 = vld [vmem:[#allocation6 + $0x2d8] sm:$0xff]  ;;  %v9836_v57 = vcombine.low %v280_v45, %v288_v46  ;;  %v9825_v45 = vcombine.high %v266_v39, %v274_v40 }
  0xbd   :  { %1140 = vmatprep.subr.bf16.mxu0 %v9867_v58  ;;  %v9838_v58 = vcombine.low %v281_v47, %v289_v48  ;;  %v282_v47 = vld [vmem:[#allocation6 + $0x220] sm:$0xff] }
  0xbe   :  { %v290_v48 = vld [vmem:[#allocation6 + $0x260] sm:$0xff] }
  0xbf   :  { %1100 = vmatpush1.bf16.msra.mxu1 %v9864_v59  ;;  %v9853_v59 = vcombine.high %v296_v53, %v304_v54  ;;  %v9841_v53 = vcombine.high %v282_v47, %v290_v48 }
  0xc0   :  { %1141 = vmatpush1.bf16.msra.mxu0 %v9866_v60  ;;  %1101 = vmatprep.subr.bf16.mxu1 %v9881_v0  ;;  %v9855_v60 = vcombine.high %v297_v55, %v305_v56  ;;  %v321_v0 = vld [vmem:[#allocation6 + $0x358] sm:$0xff] }
  0xc1   :  { %1142 = vmatprep.subr.bf16.mxu0 %v9883_v3  ;;  %v9869_v3 = vcombine.high %v312_v61, %v320_v62 }
  0xc3   :  { %1102 = vmatpush1.bf16.msra.mxu1 %v9880_v4  ;;  %v9871_v4 = vcombine.high %v313_v63, %v321_v0 }
  0xc4   :  { %1143 = vmatpush1.bf16.msra.mxu0 %v9882_v2  ;;  %1169 = vmatprep.subr.bf16.mxu1 %v9773_v8  ;;  %v9854_v2 = vcombine.low %v297_v55, %v305_v56  ;;  %v337_v8 = vld [vmem:[#allocation6 + $0x3d8] sm:$0xff]  ;;  %v298_v55 = vld [vmem:[#allocation6 + $0x2a0] sm:$0xff] }
  0xc5   :  { %1210 = vmatprep.subr.bf16.mxu0 %v9775_v12  ;;  %v9887_v12 = vcombine.high %v329_v7, %v337_v8  ;;  %v9886_v19 = vcombine.low %v329_v7, %v337_v8  ;;  %v306_v56 = vld [vmem:[#allocation6 + $0x2e0] sm:$0xff] }
  0xc6   :  { %v9857_v61 = vcombine.high %v298_v55, %v306_v56  ;;  %v330_v7 = vld [vmem:[#allocation6 + $0x3a0] sm:$0xff] }
  0xc7   :  { %v338_v8 = vld [vmem:[#allocation6 + $0x3e0] sm:$0xff] }
 0x17a   :  { %v204_v16 = vpop.f32.mrb[0].mxu0 }
 0x17b   :  { %v205_v17 = vadd.f32 %v9766_v15, %v204_v16  ;;  %v11079_v18 = vpop.f32.mrb[1].mxu0  ;;  %v226_v15 = vld [vmem:[#allocation6 + $0x60] sm:$0xff]  ;;  %v219_v16 = vld [vmem:[#allocation6 + $0x28] sm:$0xff] }
 0x17c   :  { %v207_v20 = vpop.f32.mrb[2].mxu0  ;;  %v9884_v18 = vcombine.low %v328_v5, %v336_v6 }
 0x17d   :  { %v210_v24 = vmax.f32 %v205_v17, 0.0  ;;  %v11080_v25 = vpop.f32.mrb[3].mxu0  ;;  %v227_v17 = vld [vmem:[#allocation6 + $0x68] sm:$0xff]  ;;  %v9777_v20 = vcombine.high %v218_v14, %v226_v15 }
 0x17e   :  { %v9779_v21 = vcombine.high %v219_v16, %v227_v17  ;;  %v243_v25 = vld [vmem:[#allocation6 + $0xe8] sm:$0xff] }
 0x17f   :  { %211 = vst [vmem:[%s12087_s11] sm:$0xff] %v210_v24  ;;  %v11708_v26 = vpack.c.bf16 %v210_v24, %v210_v24  ;;  %v235_v24 = vld [vmem:[#allocation6 + $0xa8] sm:$0xff] }
 0x180   :  { %v9795_v30 = vcombine.high %v235_v24, %v243_v25 }
 0x181   :  { %1120 = vmatmul.mubr.bf16.vlgmr.msra.gmra.mrb[0].mxu1 %v11708_v26  ;;  %1161 = vmatmul.mubr.bf16.vlgmr.msra.gmra.mrb[4].mxu0 %v11708_v26 }
 0x182   :  { %1170 = vmatpush1.bf16.msra.mxu1 %v9772_v10  ;;  %1211 = vmatpush1.bf16.msra.mxu0 %v9774_v11  ;;  %v9870_v10 = vcombine.low %v313_v63, %v321_v0  ;;  %v9885_v11 = vcombine.high %v328_v5, %v336_v6  ;;  %v314_v63 = vld [vmem:[#allocation6 + $0x320] sm:$0xff] }
 0x183   :  { %1171 = vmatprep.subr.bf16.mxu1 %v9789_v27  ;;  %1212 = vmatprep.subr.bf16.mxu0 %v9791_v28  ;;  %v9776_v27 = vcombine.low %v218_v14, %v226_v15  ;;  %v9778_v28 = vcombine.low %v219_v16, %v227_v17  ;;  %v322_v0 = vld [vmem:[#allocation6 + $0x360] sm:$0xff]  ;;  %v9889_v14 = vcombine.high %v330_v7, %v338_v8  ;;  %v220_v16 = vld [vmem:[#allocation6 + $0x30] sm:$0xff] }
 0x184   :  { %1201 = vmatprep.mubr.bf16.mxu1 %v11513_v13  ;;  %1242 = vmatprep.mubr.bf16.mxu0 %v11513_v13  ;;  %v9873_v5 = vcombine.high %v314_v63, %v322_v0  ;;  %v228_v17 = vld [vmem:[#allocation6 + $0x70] sm:$0xff] }
 0x186   :  { %1172 = vmatpush1.bf16.msra.mxu1 %v9788_v33  ;;  %1213 = vmatpush1.bf16.msra.mxu0 %v9790_v34  ;;  %v251_v33 = vld [vmem:[#allocation6 + $0x128] sm:$0xff] }
 0x187   :  { %1173 = vmatprep.subr.bf16.mxu1 %v9805_v35  ;;  %1214 = vmatprep.subr.bf16.mxu0 %v9807_v36  ;;  %v259_v34 = vld [vmem:[#allocation6 + $0x168] sm:$0xff]  ;;  %v9792_v35 = vcombine.low %v234_v22, %v242_v23  ;;  %v9794_v36 = vcombine.low %v235_v24, %v243_v25  ;;  %v9781_v22 = vcombine.high %v220_v16, %v228_v17  ;;  %v236_v24 = vld [vmem:[#allocation6 + $0xb0] sm:$0xff] }
 0x188   :  { %v9811_v38 = vcombine.high %v251_v33, %v259_v34  ;;  %v244_v25 = vld [vmem:[#allocation6 + $0xf0] sm:$0xff] }
 0x18a   :  { %1174 = vmatpush1.bf16.msra.mxu1 %v9804_v41  ;;  %1215 = vmatpush1.bf16.msra.mxu0 %v9806_v42  ;;  %v267_v41 = vld [vmem:[#allocation6 + $0x1a8] sm:$0xff] }
 0x18b   :  { %1175 = vmatprep.subr.bf16.mxu1 %v9821_v43  ;;  %1216 = vmatprep.subr.bf16.mxu0 %v9823_v44  ;;  %v275_v42 = vld [vmem:[#allocation6 + $0x1e8] sm:$0xff]  ;;  %v9808_v43 = vcombine.low %v250_v31, %v258_v32  ;;  %v9810_v44 = vcombine.low %v251_v33, %v259_v34  ;;  %v9797_v31 = vcombine.high %v236_v24, %v244_v25  ;;  %v252_v33 = vld [vmem:[#allocation6 + $0x130] sm:$0xff] }
 0x18c   :  { %v9827_v46 = vcombine.high %v267_v41, %v275_v42  ;;  %v260_v34 = vld [vmem:[#allocation6 + $0x170] sm:$0xff] }
 0x18e   :  { %1176 = vmatpush1.bf16.msra.mxu1 %v9820_v49  ;;  %1217 = vmatpush1.bf16.msra.mxu0 %v9822_v50  ;;  %v283_v49 = vld [vmem:[#allocation6 + $0x228] sm:$0xff] }
 0x18f   :  { %1177 = vmatprep.subr.bf16.mxu1 %v9837_v51  ;;  %1218 = vmatprep.subr.bf16.mxu0 %v9839_v52  ;;  %v291_v50 = vld [vmem:[#allocation6 + $0x268] sm:$0xff]  ;;  %v9824_v51 = vcombine.low %v266_v39, %v274_v40  ;;  %v9826_v52 = vcombine.low %v267_v41, %v275_v42  ;;  %v9813_v39 = vcombine.high %v252_v33, %v260_v34  ;;  %v268_v41 = vld [vmem:[#allocation6 + $0x1b0] sm:$0xff] }
 0x190   :  { %v9843_v54 = vcombine.high %v283_v49, %v291_v50  ;;  %v276_v42 = vld [vmem:[#allocation6 + $0x1f0] sm:$0xff] }
 0x192   :  { %1178 = vmatpush1.bf16.msra.mxu1 %v9836_v57  ;;  %1219 = vmatpush1.bf16.msra.mxu0 %v9838_v58  ;;  %v299_v57 = vld [vmem:[#allocation6 + $0x2a8] sm:$0xff] }
 0x193   :  { %1179 = vmatprep.subr.bf16.mxu1 %v9853_v59  ;;  %1220 = vmatprep.subr.bf16.mxu0 %v9855_v60  ;;  %v307_v58 = vld [vmem:[#allocation6 + $0x2e8] sm:$0xff]  ;;  %v9840_v59 = vcombine.low %v282_v47, %v290_v48  ;;  %v9842_v60 = vcombine.low %v283_v49, %v291_v50  ;;  %v9829_v47 = vcombine.high %v268_v41, %v276_v42  ;;  %v284_v49 = vld [vmem:[#allocation6 + $0x230] sm:$0xff] }
 0x194   :  { %v9859_v62 = vcombine.high %v299_v57, %v307_v58  ;;  %v292_v50 = vld [vmem:[#allocation6 + $0x270] sm:$0xff] }
 0x196   :  { %1180 = vmatpush1.bf16.msra.mxu1 %v9852_v1  ;;  %1221 = vmatpush1.bf16.msra.mxu0 %v9854_v2  ;;  %v315_v1 = vld [vmem:[#allocation6 + $0x328] sm:$0xff] }
 0x197   :  { %1181 = vmatprep.subr.bf16.mxu1 %v9869_v3  ;;  %1222 = vmatprep.subr.bf16.mxu0 %v9871_v4  ;;  %v323_v2 = vld [vmem:[#allocation6 + $0x368] sm:$0xff]  ;;  %v9856_v3 = vcombine.low %v298_v55, %v306_v56  ;;  %v9858_v4 = vcombine.low %v299_v57, %v307_v58  ;;  %v300_v57 = vld [vmem:[#allocation6 + $0x2b0] sm:$0xff] }
 0x198   :  { %v9875_v6 = vcombine.high %v315_v1, %v323_v2  ;;  %v308_v58 = vld [vmem:[#allocation6 + $0x2f0] sm:$0xff] }
 0x19a   :  { %1182 = vmatpush1.bf16.msra.mxu1 %v9868_v9  ;;  %1223 = vmatpush1.bf16.msra.mxu0 %v9870_v10  ;;  %v331_v9 = vld [vmem:[#allocation6 + $0x3a8] sm:$0xff] }
 0x19b   :  { %1183 = vmatprep.subr.bf16.mxu1 %v9885_v11  ;;  %1224 = vmatprep.subr.bf16.mxu0 %v9887_v12  ;;  %v339_v10 = vld [vmem:[#allocation6 + $0x3e8] sm:$0xff]  ;;  %v9872_v11 = vcombine.low %v314_v63, %v322_v0  ;;  %v9874_v12 = vcombine.low %v315_v1, %v323_v2  ;;  %v9861_v0 = vcombine.high %v300_v57, %v308_v58  ;;  %v316_v2 = vld [vmem:[#allocation6 + $0x330] sm:$0xff] }
 0x19c   :  { %v9891_v15 = vcombine.high %v331_v9, %v339_v10 }
 0x19e   :  { %1184 = vmatpush1.bf16.msra.mxu1 %v9884_v18  ;;  %1225 = vmatpush1.bf16.msra.mxu0 %v9886_v19  ;;  %v221_v18 = vld [vmem:[#allocation6 + $0x38] sm:$0xff] }
 0x19f   :  { %1251 = vmatprep.subr.bf16.mxu1 %v9777_v20  ;;  %1292 = vmatprep.subr.bf16.mxu0 %v9779_v21  ;;  %v229_v19 = vld [vmem:[#allocation6 + $0x78] sm:$0xff]  ;;  %v9888_v20 = vcombine.low %v330_v7, %v338_v8  ;;  %v9890_v21 = vcombine.low %v331_v9, %v339_v10  ;;  %v9860_v8 = vcombine.low %v300_v57, %v308_v58 }
 0x1a0   :  { %v9783_v23 = vcombine.high %v221_v18, %v229_v19 }
 0x1a1   :  { %1202 = vmatmul.mubr.bf16.vlgmr.msra.gmra.mrb[4].mxu1 %v11708_v26  ;;  %1243 = vmatmul.mubr.bf16.vlgmr.msra.gmra.mrb[8].mxu0 %v11708_v26 }
 0x1a2   :  { %1252 = vmatpush1.bf16.msra.mxu1 %v9776_v27  ;;  %1293 = vmatpush1.bf16.msra.mxu0 %v9778_v28  ;;  %v237_v27 = vld [vmem:[#allocation6 + $0xb8] sm:$0xff] }
 0x1a3   :  { %1253 = vmatprep.subr.bf16.mxu1 %v9793_v29  ;;  %1294 = vmatprep.subr.bf16.mxu0 %v9795_v30  ;;  %v245_v28 = vld [vmem:[#allocation6 + $0xf8] sm:$0xff]  ;;  %v9780_v29 = vcombine.low %v220_v16, %v228_v17  ;;  %v9782_v30 = vcombine.low %v221_v18, %v229_v19  ;;  %v332_v19 = vld [vmem:[#allocation6 + $0x3b0] sm:$0xff] }
 0x1a4   :  { %1283 = vmatprep.mubr.bf16.mxu1 %v11513_v13  ;;  %1324 = vmatprep.mubr.bf16.mxu0 %v11513_v13  ;;  %v9799_v32 = vcombine.high %v237_v27, %v245_v28 }
 0x1a6   :  { %1254 = vmatpush1.bf16.msra.mxu1 %v9792_v35  ;;  %1295 = vmatpush1.bf16.msra.mxu0 %v9794_v36  ;;  %v253_v35 = vld [vmem:[#allocation6 + $0x138] sm:$0xff] }
 0x1a7   :  { %1255 = vmatprep.subr.bf16.mxu1 %v9809_v37  ;;  %1296 = vmatprep.subr.bf16.mxu0 %v9811_v38  ;;  %v261_v36 = vld [vmem:[#allocation6 + $0x178] sm:$0xff]  ;;  %v9796_v37 = vcombine.low %v236_v24, %v244_v25  ;;  %v9798_v38 = vcombine.low %v237_v27, %v245_v28 }
 0x1a8   :  { %v9815_v40 = vcombine.high %v253_v35, %v261_v36 }
 0x1aa   :  { %1256 = vmatpush1.bf16.msra.mxu1 %v9808_v43  ;;  %1297 = vmatpush1.bf16.msra.mxu0 %v9810_v44  ;;  %v269_v43 = vld [vmem:[#allocation6 + $0x1b8] sm:$0xff] }
 0x1ab   :  { %1257 = vmatprep.subr.bf16.mxu1 %v9825_v45  ;;  %1298 = vmatprep.subr.bf16.mxu0 %v9827_v46  ;;  %v277_v44 = vld [vmem:[#allocation6 + $0x1f8] sm:$0xff]  ;;  %v9812_v45 = vcombine.low %v252_v33, %v260_v34  ;;  %v9814_v46 = vcombine.low %v253_v35, %v261_v36  ;;  %v1547_v34 = vld [vmem:[#allocation10] sm:$0xff]  ;;  %v1548_v36 = vld [vmem:[#allocation10 + $0x8] sm:$0xff] }
 0x1ac   :  { %v9831_v48 = vcombine.high %v269_v43, %v277_v44  ;;  %v9830_v55 = vcombine.low %v269_v43, %v277_v44  ;;  %v1551_v35 = vld [vmem:[#allocation10 + $0x20] sm:$0xff] }
 0x1ae   :  { %1258 = vmatpush1.bf16.msra.mxu1 %v9824_v51  ;;  %1299 = vmatpush1.bf16.msra.mxu0 %v9826_v52  ;;  %v285_v51 = vld [vmem:[#allocation6 + $0x238] sm:$0xff] }
 0x1af   :  { %1259 = vmatprep.subr.bf16.mxu1 %v9841_v53  ;;  %1300 = vmatprep.subr.bf16.mxu0 %v9843_v54  ;;  %v293_v52 = vld [vmem:[#allocation6 + $0x278] sm:$0xff]  ;;  %v351_v53 = vlaneseq  ;;  %v9828_v54 = vcombine.low %v268_v41, %v276_v42 }
 0x1b0   :  { %v9847_v56 = vcombine.high %v285_v51, %v293_v52  ;;  %v9846_v63 = vcombine.low %v285_v51, %v293_v52  ;;  %v1560_v51 = vld [vmem:[#allocation10 + $0x68] sm:$0xff] }
 0x1b2   :  { %1260 = vmatpush1.bf16.msra.mxu1 %v9840_v59  ;;  %1301 = vmatpush1.bf16.msra.mxu0 %v9842_v60  ;;  %v301_v59 = vld [vmem:[#allocation6 + $0x2b8] sm:$0xff] }
 0x1b3   :  { %1261 = vmatprep.subr.bf16.mxu1 %v9857_v61  ;;  %1302 = vmatprep.subr.bf16.mxu0 %v9859_v62  ;;  %v309_v60 = vld [vmem:[#allocation6 + $0x2f8] sm:$0xff]  ;;  %v11722_v61 = vshrl.u32 %v351_v53, 7  ;;  %v9844_v62 = vcombine.low %v284_v49, %v292_v50  ;;  %v11778_v53 = vld [vmem:[#allocation10 + $0x400] sm:$0xff] }
 0x1b4   :  { %v9863_v1 = vcombine.high %v301_v59, %v309_v60 }
 0x1b5   :  { %v11727_v7 = vsub.s32 2, %v11722_v61  ;;  %v11730_v9 = vsub.s32 4, %v11722_v61  ;;  %v11733_v10 = vsub.s32 6, %v11722_v61  ;;  %v11743_v16 = vsub.s32 7, %v11722_v61 }
 0x1b6   :  { %1262 = vmatpush1.bf16.msra.mxu1 %v9856_v3  ;;  %1303 = vmatpush1.bf16.msra.mxu0 %v9858_v4  ;;  %v11724_v3 = vld [vmem:[#allocation7] sm:$0xff]  ;;  %v324_v4 = vld [vmem:[#allocation6 + $0x370] sm:$0xff] }
 0x1b7   :  { %1263 = vmatprep.subr.bf16.mxu1 %v9873_v5  ;;  %1304 = vmatprep.subr.bf16.mxu0 %v9875_v6  ;;  %v317_v5 = vld [vmem:[#allocation6 + $0x338] sm:$0xff]  ;;  %v9877_v17 = vcombine.high %v316_v2, %v324_v4  ;;  %v370_v24 = vrot.slane %v11724_v3, %v11730_v9  ;;  %v378_v25 = vrot.slane %v11724_v3, %v11733_v10 }
 0x1b8   :  { %v325_v6 = vld [vmem:[#allocation6 + $0x378] sm:$0xff]  ;;  %v382_v28 = vrot.slane %v11724_v3, %v11743_v16 }
 0x1b9   :  { %v9879_v18 = vcombine.high %v317_v5, %v325_v6 }
 0x1ba   :  { %1264 = vmatpush1.bf16.msra.mxu1 %v9872_v11  ;;  %1305 = vmatpush1.bf16.msra.mxu0 %v9874_v12  ;;  %v9862_v11 = vcombine.low %v301_v59, %v309_v60  ;;  %v11735_v12 = vpop.permute.xlu0 %346  ;;  %v9896_v59 = vcombine.low %v1547_v34, %v1551_v35 }
 0x1bb   :  { %1265 = vmatprep.subr.bf16.mxu1 %v9889_v14  ;;  %1306 = vmatprep.subr.bf16.mxu0 %v9891_v15  ;;  %v362_v14 = vrot.slane %v11724_v3, %v11727_v7  ;;  %v11740_v15 = vsub.s32 5, %v11722_v61  ;;  %v11771_v42 = vmul.f32 %v382_v28, %v11735_v12  ;;  %v1575_v28 = vld [vmem:[#allocation10 + $0xe0] sm:$0xff] }
 0x1bd   :  { %v374_v27 = vrot.slane %v11724_v3, %v11740_v15 }
 0x1be   :  { %1266 = vmatpush1.bf16.msra.mxu1 %v9888_v20  ;;  %1307 = vmatpush1.bf16.msra.mxu0 %v9890_v21  ;;  %v340_v20 = vld [vmem:[#allocation6 + $0x3f0] sm:$0xff]  ;;  %v333_v21 = vld [vmem:[#allocation6 + $0x3b8] sm:$0xff] }
 0x1bf   :  { %1333 = vmatprep.subr.bf16.mxu1 %v9781_v22  ;;  %1374 = vmatprep.subr.bf16.mxu0 %v9783_v23  ;;  %v341_v22 = vld [vmem:[#allocation6 + $0x3f8] sm:$0xff]  ;;  %v11746_v23 = vmul.f32 %v362_v14, %v11735_v12  ;;  %v11768_v41 = vmul.f32 %v374_v27, %v11735_v12  ;;  %v9892_v44 = vcombine.low %v332_v19, %v340_v20  ;;  %v1567_v14 = vld [vmem:[#allocation10 + $0xa0] sm:$0xff] }
 0x1c0   :  { %v9895_v33 = vcombine.high %v333_v21, %v341_v22  ;;  %v1571_v27 = vld [vmem:[#allocation10 + $0xc0] sm:$0xff] }
 0x1c1   :  { %1284 = vmatmul.mubr.bf16.vlgmr.msra.gmra.mrb[8].mxu1 %v11708_v26  ;;  %1325 = vmatmul.mubr.bf16.vlgmr.msra.gmra.mrb[12].mxu0 %v11708_v26 }
 0x1c2   :  { %1334 = vmatpush1.bf16.msra.mxu1 %v9780_v29  ;;  %1375 = vmatpush1.bf16.msra.mxu0 %v9782_v30  ;;  %v9876_v29 = vcombine.low %v316_v2, %v324_v4  ;;  %v9878_v30 = vcombine.low %v317_v5, %v325_v6  ;;  %v1563_v5 = vld [vmem:[#allocation10 + $0x80] sm:$0xff] }
 0x1c3   :  { %1335 = vmatprep.subr.bf16.mxu1 %v9797_v31  ;;  %1376 = vmatprep.subr.bf16.mxu0 %v9799_v32  ;;  %v11756_v31 = vld [vmem:[#allocation7 + $0x8] sm:$0xff]  ;;  %v9893_v32 = vcombine.high %v332_v19, %v340_v20 }
 0x1c4   :  { %1365 = vmatprep.mubr.bf16.mxu1 %v11513_v13  ;;  %1406 = vmatprep.mubr.bf16.mxu0 %v11513_v13  ;;  %v9845_v13 = vcombine.high %v284_v49, %v292_v50  ;;  %v394_v43 = vrot.slane %v11756_v31, %v11727_v7  ;;  %v1556_v50 = vld [vmem:[#allocation10 + $0x48] sm:$0xff]  ;;  %v410_v57 = vrot.slane %v11756_v31, %v11733_v10 }
 0x1c5   :  { %v406_v58 = vrot.slane %v11756_v31, %v11740_v15 }
 0x1c6   :  { %1336 = vmatpush1.bf16.msra.mxu1 %v9796_v37  ;;  %1377 = vmatpush1.bf16.msra.mxu0 %v9798_v38  ;;  %v1552_v37 = vld [vmem:[#allocation10 + $0x28] sm:$0xff]  ;;  %v11759_v38 = vsub.s32 3, %v11722_v61  ;;  %v11776_v52 = vmul.f32 %v394_v43, %v11735_v12 }
 0x1c7   :  { %1337 = vmatprep.subr.bf16.mxu1 %v9813_v39  ;;  %1378 = vmatprep.subr.bf16.mxu0 %v9815_v40  ;;  %v11762_v39 = vmul.f32 %v370_v24, %v11735_v12  ;;  %v11765_v40 = vmul.f32 %v378_v25, %v11735_v12  ;;  %v9899_v49 = vcombine.high %v1548_v36, %v1552_v37  ;;  %v1584_v43 = vld [vmem:[#allocation10 + $0x128] sm:$0xff] }
 0x1c8   :  { %v9898_v60 = vcombine.low %v1548_v36, %v1552_v37  ;;  %v11810_v19 = vmul.f32 %v406_v58, %v11735_v12  ;;  %v9913_v24 = vcombine.high %v1563_v5, %v1567_v14  ;;  %v1583_v36 = vld [vmem:[#allocation10 + $0x120] sm:$0xff]  ;;  %v1580_v37 = vld [vmem:[#allocation10 + $0x108] sm:$0xff] }
 0x1ca   :  { %1338 = vmatpush1.bf16.msra.mxu1 %v9812_v45  ;;  %1379 = vmatpush1.bf16.msra.mxu0 %v9814_v46  ;;  %v9894_v45 = vcombine.low %v333_v21, %v341_v22  ;;  %v1555_v46 = vld [vmem:[#allocation10 + $0x40] sm:$0xff]  ;;  %v9906_v22 = vcombine.low %v1556_v50, %v1560_v51 }
 0x1cb   :  { %1339 = vmatprep.subr.bf16.mxu1 %v9829_v47  ;;  %1380 = vmatprep.subr.bf16.mxu0 %v9831_v48  ;;  %v1559_v47 = vld [vmem:[#allocation10 + $0x60] sm:$0xff]  ;;  %v9897_v48 = vcombine.high %v1547_v34, %v1551_v35  ;;  %v9921_v34 = vcombine.high %v1571_v27, %v1575_v28 }
 0x1cc   :  { %v9904_v21 = vcombine.low %v1555_v46, %v1559_v47  ;;  %v1579_v35 = vld [vmem:[#allocation10 + $0x100] sm:$0xff] }
 0x1ce   :  { %1340 = vmatpush1.bf16.msra.mxu1 %v9828_v54  ;;  %1381 = vmatpush1.bf16.msra.mxu0 %v9830_v55  ;;  %v11780_v54 = vld [vmem:[#allocation10 + $0x420] sm:$0xff]  ;;  %v11782_v55 = vld [vmem:[#allocation10 + $0x408] sm:$0xff] }
 0x1cf   :  { %1341 = vmatprep.subr.bf16.mxu1 %v9845_v13  ;;  %1382 = vmatprep.subr.bf16.mxu0 %v9847_v56  ;;  %v398_v13 = vrot.slane %v11756_v31, %v11759_v38  ;;  %v402_v56 = vrot.slane %v11756_v31, %v11730_v9  ;;  %v10024_v2 = vcombine.low %v11778_v53, %v11780_v54 }
 0x1d1   :  { %v11801_v6 = vmul.f32 %v398_v13, %v11735_v12  ;;  %v9928_v13 = vcombine.low %v1579_v35, %v1583_v36 }
 0x1d2   :  { %1342 = vmatpush1.bf16.msra.mxu1 %v9844_v62  ;;  %1383 = vmatpush1.bf16.msra.mxu0 %v9846_v63  ;;  %v9905_v62 = vcombine.high %v1555_v46, %v1559_v47  ;;  %v11792_v63 = vld [vmem:[#allocation10 + $0x428] sm:$0xff]  ;;  %v9929_v46 = vcombine.high %v1579_v35, %v1583_v36  ;;  %v9931_v47 = vcombine.high %v1580_v37, %v1584_v43 }
 0x1d3   :  { %1343 = vmatprep.subr.bf16.mxu1 %v9861_v0  ;;  %1384 = vmatprep.subr.bf16.mxu0 %v9863_v1  ;;  %v414_v0 = vrot.slane %v11756_v31, %v11743_v16  ;;  %v9907_v1 = vcombine.high %v1556_v50, %v1560_v51  ;;  %v10026_v4 = vcombine.low %v11782_v55, %v11792_v63  ;;  %v1588_v50 = vld [vmem:[#allocation10 + $0x148] sm:$0xff] }
 0x1d4   :  { %v1592_v51 = vld [vmem:[#allocation10 + $0x168] sm:$0xff] }
 0x1d5   :  { %v11813_v20 = vmul.f32 %v414_v0, %v11735_v12  ;;  %v9939_v58 = vcombine.high %v1588_v50, %v1592_v51  ;;  %v1600_v0 = vld [vmem:[#allocation10 + $0x1a8] sm:$0xff] }
 0x1d6   :  { %1344 = vmatpush1.bf16.msra.mxu1 %v9860_v8  ;;  %1385 = vmatpush1.bf16.msra.mxu0 %v9862_v11  ;;  %v11804_v8 = vmul.f32 %v402_v56, %v11735_v12  ;;  %v11807_v11 = vmul.f32 %v410_v57, %v11735_v12  ;;  %v9930_v56 = vcombine.low %v1580_v37, %v1584_v43  ;;  %v1619_v43 = vld [vmem:[#allocation10 + $0x240] sm:$0xff] }
 0x1d7   :  { %1345 = vmatprep.subr.bf16.mxu1 %v9877_v17  ;;  %1386 = vmatprep.subr.bf16.mxu0 %v9879_v18  ;;  %v1564_v17 = vld [vmem:[#allocation10 + $0x88] sm:$0xff] }
 0x1d8   :  { %v1568_v18 = vld [vmem:[#allocation10 + $0xa8] sm:$0xff] }
 0x1d9   :  { %v9915_v25 = vcombine.high %v1564_v17, %v1568_v18 }
 0x1da   :  { %1346 = vmatpush1.bf16.msra.mxu1 %v9876_v29  ;;  %1387 = vmatpush1.bf16.msra.mxu0 %v9878_v30  ;;  %v1572_v29 = vld [vmem:[#allocation10 + $0xc8] sm:$0xff] }
 0x1db   :  { %1347 = vmatprep.subr.bf16.mxu1 %v9893_v32  ;;  %1388 = vmatprep.subr.bf16.mxu0 %v9895_v33  ;;  %v1576_v30 = vld [vmem:[#allocation10 + $0xe8] sm:$0xff]  ;;  %v9912_v32 = vcombine.low %v1563_v5, %v1567_v14  ;;  %v9914_v33 = vcombine.low %v1564_v17, %v1568_v18  ;;  %v9938_v5 = vcombine.low %v1588_v50, %v1592_v51  ;;  %v1603_v18 = vld [vmem:[#allocation10 + $0x1c0] sm:$0xff] }
 0x1dc   :  { %v1627_v51 = vld [vmem:[#allocation10 + $0x280] sm:$0xff] }
 0x1de   :  { %1348 = vmatpush1.bf16.msra.mxu1 %v9892_v44  ;;  %1389 = vmatpush1.bf16.msra.mxu0 %v9894_v45  ;;  %v9920_v44 = vcombine.low %v1571_v27, %v1575_v28  ;;  %v9922_v45 = vcombine.low %v1572_v29, %v1576_v30 }
 0x1df   :  { %7733 = vmatprep.subr.bf16.mxu1 %v9897_v48  ;;  %8061 = vmatprep.subr.bf16.mxu0 %v9899_v49  ;;  %v1587_v48 = vld [vmem:[#allocation10 + $0x140] sm:$0xff] }
 0x1e0   :  { %v1591_v49 = vld [vmem:[#allocation10 + $0x160] sm:$0xff] }
 0x1e1   :  { %1366 = vmatmul.mubr.bf16.vlgmr.msra.gmra.mrb[12].mxu1 %v11708_v26  ;;  %1407 = vmatmul.mubr.bf16.vlgmr.msra.gmra.mrb[16].mxu0 %v11708_v26  ;;  %v9923_v26 = vcombine.high %v1572_v29, %v1576_v30  ;;  %v9937_v57 = vcombine.high %v1587_v48, %v1591_v49  ;;  %v1611_v30 = vld [vmem:[#allocation10 + $0x200] sm:$0xff] }
 0x1e2   :  { %7734 = vmatpush1.bf16.msra.mxu1 %v9896_v59  ;;  %8062 = vmatpush1.bf16.msra.mxu0 %v9898_v60  ;;  %v1595_v59 = vld [vmem:[#allocation10 + $0x180] sm:$0xff] }
 0x1e3   :  { %7735 = vmatprep.subr.bf16.mxu1 %v9905_v62  ;;  %8063 = vmatprep.subr.bf16.mxu0 %v9907_v1  ;;  %v1599_v60 = vld [vmem:[#allocation10 + $0x1a0] sm:$0xff]  ;;  %v1596_v62 = vld [vmem:[#allocation10 + $0x188] sm:$0xff]  ;;  %v9936_v1 = vcombine.low %v1587_v48, %v1591_v49 }
 0x1e4   :  { %v9945_v14 = vcombine.high %v1595_v59, %v1599_v60  ;;  %v9947_v17 = vcombine.high %v1596_v62, %v1600_v0  ;;  %v9946_v27 = vcombine.low %v1596_v62, %v1600_v0  ;;  %v1635_v0 = vld [vmem:[#allocation10 + $0x2c0] sm:$0xff] }
 0x1e6   :  { %7736 = vmatpush1.bf16.msra.mxu1 %v9904_v21  ;;  %8064 = vmatpush1.bf16.msra.mxu0 %v9906_v22  ;;  %v1607_v21 = vld [vmem:[#allocation10 + $0x1e0] sm:$0xff]  ;;  %v1604_v22 = vld [vmem:[#allocation10 + $0x1c8] sm:$0xff] }
 0x1e7   :  { %7737 = vmatprep.subr.bf16.mxu1 %v9913_v24  ;;  %8065 = vmatprep.subr.bf16.mxu0 %v9915_v25  ;;  %v1608_v24 = vld [vmem:[#allocation10 + $0x1e8] sm:$0xff]  ;;  %v9944_v25 = vcombine.low %v1595_v59, %v1599_v60  ;;  %v9953_v28 = vcombine.high %v1603_v18, %v1607_v21 }
 0x1e8   :  { %v9955_v29 = vcombine.high %v1604_v22, %v1608_v24  ;;  %v9954_v35 = vcombine.low %v1604_v22, %v1608_v24  ;;  %v1643_v24 = vld [vmem:[#allocation10 + $0x300] sm:$0xff] }
 0x1ea   :  { %7738 = vmatpush1.bf16.msra.mxu1 %v9912_v32  ;;  %8066 = vmatpush1.bf16.msra.mxu0 %v9914_v33  ;;  %v1615_v32 = vld [vmem:[#allocation10 + $0x220] sm:$0xff]  ;;  %v1612_v33 = vld [vmem:[#allocation10 + $0x208] sm:$0xff] }
 0x1eb   :  { %7739 = vmatprep.subr.bf16.mxu1 %v9921_v34  ;;  %8067 = vmatprep.subr.bf16.mxu0 %v9923_v26  ;;  %v1616_v34 = vld [vmem:[#allocation10 + $0x228] sm:$0xff]  ;;  %v9952_v26 = vcombine.low %v1603_v18, %v1607_v21  ;;  %v9961_v36 = vcombine.high %v1611_v30, %v1615_v32 }
 0x1ec   :  { %v9963_v37 = vcombine.high %v1612_v33, %v1616_v34  ;;  %v9962_v48 = vcombine.low %v1612_v33, %v1616_v34  ;;  %v1651_v34 = vld [vmem:[#allocation10 + $0x340] sm:$0xff] }
 0x1ee   :  { %7740 = vmatpush1.bf16.msra.mxu1 %v9920_v44  ;;  %8068 = vmatpush1.bf16.msra.mxu0 %v9922_v45  ;;  %v1623_v44 = vld [vmem:[#allocation10 + $0x260] sm:$0xff]  ;;  %v1620_v45 = vld [vmem:[#allocation10 + $0x248] sm:$0xff] }
 0x1ef   :  { %7741 = vmatprep.subr.bf16.mxu1 %v9929_v46  ;;  %8069 = vmatprep.subr.bf16.mxu0 %v9931_v47  ;;  %v1624_v46 = vld [vmem:[#allocation10 + $0x268] sm:$0xff]  ;;  %v9960_v47 = vcombine.low %v1611_v30, %v1615_v32  ;;  %v9969_v49 = vcombine.high %v1619_v43, %v1623_v44 }
 0x1f0   :  { %v9971_v50 = vcombine.high %v1620_v45, %v1624_v46  ;;  %v9970_v59 = vcombine.low %v1620_v45, %v1624_v46  ;;  %v1659_v46 = vld [vmem:[#allocation10 + $0x380] sm:$0xff] }
 0x1f2   :  { %7742 = vmatpush1.bf16.msra.mxu1 %v9928_v13  ;;  %8070 = vmatpush1.bf16.msra.mxu0 %v9930_v56  ;;  %v1631_v13 = vld [vmem:[#allocation10 + $0x2a0] sm:$0xff]  ;;  %v1628_v56 = vld [vmem:[#allocation10 + $0x288] sm:$0xff] }
 0x1f3   :  { %7743 = vmatprep.subr.bf16.mxu1 %v9937_v57  ;;  %8071 = vmatprep.subr.bf16.mxu0 %v9939_v58  ;;  %v1632_v57 = vld [vmem:[#allocation10 + $0x2a8] sm:$0xff]  ;;  %v9968_v58 = vcombine.low %v1619_v43, %v1623_v44  ;;  %v9977_v60 = vcombine.high %v1627_v51, %v1631_v13 }
 0x1f4   :  { %v9979_v62 = vcombine.high %v1628_v56, %v1632_v57  ;;  %v9978_v18 = vcombine.low %v1628_v56, %v1632_v57  ;;  %v1667_v57 = vld [vmem:[#allocation10 + $0x3c0] sm:$0xff] }
 0x1f6   :  { %7744 = vmatpush1.bf16.msra.mxu1 %v9936_v1  ;;  %8072 = vmatpush1.bf16.msra.mxu0 %v9938_v5  ;;  %v1639_v1 = vld [vmem:[#allocation10 + $0x2e0] sm:$0xff]  ;;  %v1636_v5 = vld [vmem:[#allocation10 + $0x2c8] sm:$0xff] }
 0x1f7   :  { %7745 = vmatprep.subr.bf16.mxu1 %v9945_v14  ;;  %8073 = vmatprep.subr.bf16.mxu0 %v9947_v17  ;;  %v1640_v14 = vld [vmem:[#allocation10 + $0x2e8] sm:$0xff]  ;;  %v9976_v17 = vcombine.low %v1627_v51, %v1631_v13  ;;  %v9985_v21 = vcombine.high %v1635_v0, %v1639_v1 }
 0x1f8   :  { %v9987_v22 = vcombine.high %v1636_v5, %v1640_v14  ;;  %v9986_v30 = vcombine.low %v1636_v5, %v1640_v14 }
 0x1fa   :  { %7746 = vmatpush1.bf16.msra.mxu1 %v9944_v25  ;;  %8074 = vmatpush1.bf16.msra.mxu0 %v9946_v27  ;;  %v1647_v25 = vld [vmem:[#allocation10 + $0x320] sm:$0xff]  ;;  %v1644_v27 = vld [vmem:[#allocation10 + $0x308] sm:$0xff] }
 0x1fb   :  { %7747 = vmatprep.subr.bf16.mxu1 %v9953_v28  ;;  %8075 = vmatprep.subr.bf16.mxu0 %v9955_v29  ;;  %v1648_v28 = vld [vmem:[#allocation10 + $0x328] sm:$0xff]  ;;  %v9984_v29 = vcombine.low %v1635_v0, %v1639_v1  ;;  %v9993_v32 = vcombine.high %v1643_v24, %v1647_v25 }
 0x1fc   :  { %v9995_v33 = vcombine.high %v1644_v27, %v1648_v28  ;;  %v9994_v43 = vcombine.low %v1644_v27, %v1648_v28  ;;  %v366_v28 = vrot.slane %v11724_v3, %v11759_v38 }
 0x1fe   :  { %7748 = vmatpush1.bf16.msra.mxu1 %v9952_v26  ;;  %8076 = vmatpush1.bf16.msra.mxu0 %v9954_v35  ;;  %v1655_v26 = vld [vmem:[#allocation10 + $0x360] sm:$0xff]  ;;  %v1652_v35 = vld [vmem:[#allocation10 + $0x348] sm:$0xff] }
 0x1ff   :  { %7749 = vmatprep.subr.bf16.mxu1 %v9961_v36  ;;  %8077 = vmatprep.subr.bf16.mxu0 %v9963_v37  ;;  %v1656_v36 = vld [vmem:[#allocation10 + $0x368] sm:$0xff]  ;;  %v9992_v37 = vcombine.low %v1643_v24, %v1647_v25  ;;  %v10001_v44 = vcombine.high %v1651_v34, %v1655_v26  ;;  %v11825_v24 = vsub.s32 1, %v11722_v61 }
 0x200   :  { %v10003_v45 = vcombine.high %v1652_v35, %v1656_v36  ;;  %v10002_v51 = vcombine.low %v1652_v35, %v1656_v36 }
 0x201   :  { %v358_v27 = vrot.slane %v11724_v3, %v11825_v24 }
 0x202   :  { %7750 = vmatpush1.bf16.msra.mxu1 %v9960_v47  ;;  %8078 = vmatpush1.bf16.msra.mxu0 %v9962_v48  ;;  %v1663_v47 = vld [vmem:[#allocation10 + $0x3a0] sm:$0xff]  ;;  %v1660_v48 = vld [vmem:[#allocation10 + $0x388] sm:$0xff] }
 0x203   :  { %7751 = vmatprep.subr.bf16.mxu1 %v9969_v49  ;;  %8079 = vmatprep.subr.bf16.mxu0 %v9971_v50  ;;  %v1664_v49 = vld [vmem:[#allocation10 + $0x3a8] sm:$0xff]  ;;  %v10000_v50 = vcombine.low %v1651_v34, %v1655_v26  ;;  %v10009_v13 = vcombine.high %v1659_v46, %v1663_v47 }
 0x204   :  { %v10011_v56 = vcombine.high %v1660_v48, %v1664_v49  ;;  %v10010_v0 = vcombine.low %v1660_v48, %v1664_v49 }
 0x206   :  { %7752 = vmatpush1.bf16.msra.mxu1 %v9968_v58  ;;  %8080 = vmatpush1.bf16.msra.mxu0 %v9970_v59  ;;  %v1671_v58 = vld [vmem:[#allocation10 + $0x3e0] sm:$0xff]  ;;  %v1668_v59 = vld [vmem:[#allocation10 + $0x3c8] sm:$0xff] }
 0x207   :  { %7753 = vmatprep.subr.bf16.mxu1 %v9977_v60  ;;  %8081 = vmatprep.subr.bf16.mxu0 %v9979_v62  ;;  %v1672_v60 = vld [vmem:[#allocation10 + $0x3e8] sm:$0xff]  ;;  %v10008_v62 = vcombine.low %v1659_v46, %v1663_v47  ;;  %v10017_v1 = vcombine.high %v1667_v57, %v1671_v58  ;;  %v10016_v14 = vcombine.low %v1667_v57, %v1671_v58 }
 0x208   :  { %v10019_v5 = vcombine.high %v1668_v59, %v1672_v60 }
 0x20a   :  { %7754 = vmatpush1.bf16.msra.mxu1 %v9976_v17  ;;  %8082 = vmatpush1.bf16.msra.mxu0 %v9978_v18  ;;  %v10018_v17 = vcombine.low %v1668_v59, %v1672_v60  ;;  %v10025_v18 = vcombine.high %v11778_v53, %v11780_v54 }
 0x20b   :  { %7755 = vmatprep.subr.bf16.mxu1 %v9985_v21  ;;  %8083 = vmatprep.subr.bf16.mxu0 %v9987_v22  ;;  %v10027_v21 = vcombine.high %v11782_v55, %v11792_v63  ;;  %v11822_v22 = vsub.s32 0, %v11722_v61 }
 0x20d   :  { %v354_v25 = vrot.slane %v11724_v3, %v11822_v22 }
 0x20e   :  { %7756 = vmatpush1.bf16.msra.mxu1 %v9984_v29  ;;  %8084 = vmatpush1.bf16.msra.mxu0 %v9986_v30  ;;  %v11833_v29 = vld [vmem:[#allocation9] sm:$0xff] }
 0x20f   :  { %7757 = vmatprep.subr.bf16.mxu1 %v9993_v32  ;;  %8085 = vmatprep.subr.bf16.mxu0 %v9995_v33  ;;  %v431_v30 = vmul.f32 %v354_v25, %v11735_v12  ;;  %v432_v32 = vmul.f32 %v358_v27, %v11735_v12  ;;  %v434_v33 = vmul.f32 %v366_v28, %v11735_v12  ;;  %v1695_v27 = vld [vmem:[#allocation10 + $0x4a0] sm:$0xff]  ;;  %v1692_v28 = vld [vmem:[#allocation10 + $0x488] sm:$0xff] }
 0x210   :  { %v1422_v61 = vrot.slane %v11833_v29, %v11822_v22  ;;  %v1430_v34 = vrot.slane %v11833_v29, %v11727_v7  ;;  %v1426_v36 = vrot.slane %v11833_v29, %v11825_v24  ;;  %v1434_v3 = vrot.slane %v11833_v29, %v11759_v38 }
 0x212   :  { %7758 = vmatpush1.bf16.msra.mxu1 %v9992_v37  ;;  %8086 = vmatpush1.bf16.msra.mxu0 %v9994_v43 }
 0x213   :  { %7759 = vmatprep.subr.bf16.mxu1 %v10001_v44  ;;  %8087 = vmatprep.subr.bf16.mxu0 %v10003_v45 }
 0x216   :  { %7760 = vmatpush1.bf16.msra.mxu1 %v10000_v50  ;;  %8088 = vmatpush1.bf16.msra.mxu0 %v10002_v51 }
 0x217   :  { %7761 = vmatprep.subr.bf16.mxu1 %v10009_v13  ;;  %8089 = vmatprep.subr.bf16.mxu0 %v10011_v56 }
 0x21a   :  { %7762 = vmatpush1.bf16.msra.mxu1 %v10008_v62  ;;  %8090 = vmatpush1.bf16.msra.mxu0 %v10010_v0  ;;  %v1683_v62 = vld [vmem:[#allocation10 + $0x440] sm:$0xff] }
 0x21b   :  { %7763 = vmatprep.subr.bf16.mxu1 %v10017_v1  ;;  %8091 = vmatprep.subr.bf16.mxu0 %v10019_v5  ;;  %v1687_v1 = vld [vmem:[#allocation10 + $0x460] sm:$0xff]  ;;  %v1684_v5 = vld [vmem:[#allocation10 + $0x448] sm:$0xff] }
 0x21e   :  { %7764 = vmatpush1.bf16.msra.mxu1 %v10016_v14  ;;  %8092 = vmatpush1.bf16.msra.mxu0 %v10018_v17 }
 0x21f   :  { %7774 = vmatprep.subr.bf16.mxu1 %v10025_v18  ;;  %8102 = vmatprep.subr.bf16.mxu0 %v10027_v21  ;;  %v1691_v18 = vld [vmem:[#allocation10 + $0x480] sm:$0xff]  ;;  %v10033_v21 = vcombine.high %v1683_v62, %v1687_v1 }
 0x220   :  { %v10040_v53 = vcombine.low %v1691_v18, %v1695_v27 }
 0x254   :  { %v1121_v26 = vpop.f32.mrb[0].mxu1  ;;  %v1162_v35 = vpop.f32.mrb[4].mxu0 }
 0x255   :  { %v1122_v37 = vadd.f32 %v1121_v26, %v431_v30  ;;  %v1163_v43 = vadd.f32 %v1162_v35, %v11746_v23  ;;  %v1123_v44 = vpop.f32.mrb[1].mxu1  ;;  %v1164_v45 = vpop.f32.mrb[5].mxu0  ;;  %v1688_v23 = vld [vmem:[#allocation10 + $0x468] sm:$0xff]  ;;  %v1699_v35 = vld [vmem:[#allocation10 + $0x4c0] sm:$0xff] }
 0x256   :  { %v1124_v46 = vadd.f32 %v1123_v44, %v432_v32  ;;  %v1165_v47 = vadd.f32 %v1164_v45, %v434_v33  ;;  %v1125_v48 = vpop.f32.mrb[2].mxu1  ;;  %v1166_v49 = vpop.f32.mrb[6].mxu0  ;;  %v10035_v25 = vcombine.high %v1684_v5, %v1688_v23  ;;  %v1696_v30 = vld [vmem:[#allocation10 + $0x4a8] sm:$0xff]  ;;  %v10032_v33 = vcombine.low %v1683_v62, %v1687_v1  ;;  %v1723_v62 = vld [vmem:[#allocation10 + $0x580] sm:$0xff] }
 0x257   :  { %v1499_v50 = vadd.f32 %v1422_v61, %v1122_v37  ;;  %v11847_v51 = vadd.f32 %v1430_v34, %v1163_v43  ;;  %v1126_v13 = vpop.f32.mrb[3].mxu1  ;;  %v1167_v56 = vpop.f32.mrb[7].mxu0  ;;  %v10034_v61 = vcombine.low %v1684_v5, %v1688_v23  ;;  %v10041_v34 = vcombine.high %v1691_v18, %v1695_v27  ;;  %v1704_v37 = vld [vmem:[#allocation10 + $0x4e8] sm:$0xff]  ;;  %v1715_v49 = vld [vmem:[#allocation10 + $0x540] sm:$0xff] }
 0x258   :  { %v1500_v57 = vadd.f32 %v1426_v36, %v1124_v46  ;;  %v1502_v58 = vadd.f32 %v1434_v3, %v1165_v47  ;;  %v10043_v26 = vcombine.high %v1692_v28, %v1696_v30  ;;  %v1703_v36 = vld [vmem:[#allocation10 + $0x4e0] sm:$0xff]  ;;  %v1700_v3 = vld [vmem:[#allocation10 + $0x4c8] sm:$0xff]  ;;  %v10042_v54 = vcombine.low %v1692_v28, %v1696_v30 }
 0x259   :  { %v1515_v59 = vmax.f32 %v1499_v50, 0.0  ;;  %v10049_v55 = vcombine.high %v1699_v35, %v1703_v36  ;;  %v10051_v63 = vcombine.high %v1700_v3, %v1704_v37  ;;  %v1708_v43 = vld [vmem:[#allocation10 + $0x508] sm:$0xff]  ;;  %v10048_v45 = vcombine.low %v1699_v35, %v1703_v36  ;;  %v1719_v50 = vld [vmem:[#allocation10 + $0x560] sm:$0xff] }
 0x25a   :  { %v1516_v60 = vmax.f32 %v1500_v57, 0.0  ;;  %v1518_v0 = vmax.f32 %v1502_v58, 0.0  ;;  %v1712_v44 = vld [vmem:[#allocation10 + $0x528] sm:$0xff]  ;;  %v10050_v46 = vcombine.low %v1700_v3, %v1704_v37  ;;  %v10064_v23 = vcombine.low %v1715_v49, %v1719_v50  ;;  %v1731_v27 = vld [vmem:[#allocation10 + $0x5c0] sm:$0xff] }
 0x25b   :  { %v11851_v17 = vpack.c.bf16 %v1515_v59, %v1515_v59  ;;  %v10059_v48 = vcombine.high %v1708_v43, %v1712_v44  ;;  %v1716_v13 = vld [vmem:[#allocation10 + $0x548] sm:$0xff]  ;;  %v10058_v58 = vcombine.low %v1708_v43, %v1712_v44  ;;  %v10065_v59 = vcombine.high %v1715_v49, %v1719_v50  ;;  %v1735_v28 = vld [vmem:[#allocation10 + $0x5e0] sm:$0xff] }
 0x25c   :  { %v11849_v14 = vpack.c.bf16 %v1516_v60, %v1516_v60  ;;  %v11855_v32 = vpack.c.bf16 %v1518_v0, %v1518_v0  ;;  %v1720_v56 = vld [vmem:[#allocation10 + $0x568] sm:$0xff]  ;;  %v1727_v0 = vld [vmem:[#allocation10 + $0x5a0] sm:$0xff]  ;;  %v1450_v35 = vrot.slane %v11833_v29, %v11743_v16 }
 0x25d   :  { %v10067_v60 = vcombine.high %v1716_v13, %v1720_v56  ;;  %v1724_v1 = vld [vmem:[#allocation10 + $0x588] sm:$0xff]  ;;  %v10066_v18 = vcombine.low %v1716_v13, %v1720_v56  ;;  %v10072_v37 = vcombine.low %v1723_v62, %v1727_v0  ;;  %v1739_v44 = vld [vmem:[#allocation10 + $0x600] sm:$0xff] }
 0x25e   :  { %7765 = vmatprep.mubr.bf16.mxu1 %v11849_v14  ;;  %8093 = vmatprep.mubr.bf16.mxu0 %v11849_v14  ;;  %v1728_v5 = vld [vmem:[#allocation10 + $0x5a8] sm:$0xff] }
 0x25f   :  { %7766 = vmatmul.mubr.bf16.vlgmr.msra.gmra.mrb[16].mxu1 %v11851_v17  ;;  %8094 = vmatmul.mubr.bf16.vlgmr.msra.gmra.mrb[20].mxu0 %v11851_v17  ;;  %v1732_v30 = vld [vmem:[#allocation10 + $0x5c8] sm:$0xff] }
 0x260   :  { %7775 = vmatpush1.bf16.msra.mxu1 %v10024_v2  ;;  %8103 = vmatpush1.bf16.msra.mxu0 %v10026_v4  ;;  %v1707_v2 = vld [vmem:[#allocation10 + $0x500] sm:$0xff]  ;;  %v1740_v49 = vld [vmem:[#allocation10 + $0x608] sm:$0xff] }
 0x261   :  { %7806 = vmatprep.mubr.bf16.mxu1 %v11855_v32  ;;  %8134 = vmatprep.mubr.bf16.mxu0 %v11855_v32  ;;  %v1711_v4 = vld [vmem:[#allocation10 + $0x520] sm:$0xff]  ;;  %v1744_v50 = vld [vmem:[#allocation10 + $0x628] sm:$0xff] }
 0x262   :  { %7776 = vmatprep.subr.bf16.mxu1 %v10033_v21  ;;  %8104 = vmatprep.subr.bf16.mxu0 %v10035_v25  ;;  %v10057_v47 = vcombine.high %v1707_v2, %v1711_v4  ;;  %v10056_v57 = vcombine.low %v1707_v2, %v1711_v4  ;;  %v10073_v21 = vcombine.high %v1723_v62, %v1727_v0  ;;  %v1747_v62 = vld [vmem:[#allocation10 + $0x640] sm:$0xff] }
 0x263   :  { %v10075_v25 = vcombine.high %v1724_v1, %v1728_v5  ;;  %v1751_v0 = vld [vmem:[#allocation10 + $0x660] sm:$0xff] }
 0x264   :  { %7777 = vmatpush1.bf16.msra.mxu1 %v10032_v33  ;;  %8105 = vmatpush1.bf16.msra.mxu0 %v10034_v61  ;;  %v1736_v33 = vld [vmem:[#allocation10 + $0x5e8] sm:$0xff]  ;;  %v1438_v61 = vrot.slane %v11833_v29, %v11730_v9 }
 0x265   :  { %7778 = vmatprep.subr.bf16.mxu1 %v10041_v34  ;;  %8106 = vmatprep.subr.bf16.mxu0 %v10043_v26  ;;  %v1446_v34 = vrot.slane %v11833_v29, %v11733_v10  ;;  %v1442_v26 = vrot.slane %v11833_v29, %v11740_v15  ;;  %v10083_v43 = vcombine.high %v1732_v30, %v1736_v33 }
 0x268   :  { %7779 = vmatpush1.bf16.msra.mxu1 %v10040_v53  ;;  %8107 = vmatpush1.bf16.msra.mxu0 %v10042_v54  ;;  %v10074_v53 = vcombine.low %v1724_v1, %v1728_v5  ;;  %v10081_v54 = vcombine.high %v1731_v27, %v1735_v28  ;;  %v1748_v1 = vld [vmem:[#allocation10 + $0x648] sm:$0xff] }
 0x269   :  { %7780 = vmatprep.subr.bf16.mxu1 %v10049_v55  ;;  %8108 = vmatprep.subr.bf16.mxu0 %v10051_v63  ;;  %v1752_v5 = vld [vmem:[#allocation10 + $0x668] sm:$0xff] }
 0x26c   :  { %7781 = vmatpush1.bf16.msra.mxu1 %v10048_v45  ;;  %8109 = vmatpush1.bf16.msra.mxu0 %v10050_v46 }
 0x26d   :  { %7782 = vmatprep.subr.bf16.mxu1 %v10057_v47  ;;  %8110 = vmatprep.subr.bf16.mxu0 %v10059_v48  ;;  %v1743_v48 = vld [vmem:[#allocation10 + $0x620] sm:$0xff] }
 0x270   :  { %7783 = vmatpush1.bf16.msra.mxu1 %v10056_v57  ;;  %8111 = vmatpush1.bf16.msra.mxu0 %v10058_v58  ;;  %v10080_v57 = vcombine.low %v1731_v27, %v1735_v28  ;;  %v1755_v27 = vld [vmem:[#allocation10 + $0x680] sm:$0xff] }
 0x271   :  { %7784 = vmatprep.subr.bf16.mxu1 %v10065_v59  ;;  %8112 = vmatprep.subr.bf16.mxu0 %v10067_v60  ;;  %v10091_v60 = vcombine.high %v1740_v49, %v1744_v50  ;;  %v1759_v28 = vld [vmem:[#allocation10 + $0x6a0] sm:$0xff] }
 0x274   :  { %v1203_v36 = vpop.f32.mrb[4].mxu1  ;;  %v1244_v3 = vpop.f32.mrb[8].mxu0  ;;  %7785 = vmatpush1.bf16.msra.mxu1 %v10064_v23  ;;  %8113 = vmatpush1.bf16.msra.mxu0 %v10066_v18  ;;  %v10088_v23 = vcombine.low %v1739_v44, %v1743_v48  ;;  %v10090_v18 = vcombine.low %v1740_v49, %v1744_v50  ;;  %v1779_v49 = vld [vmem:[#allocation10 + $0x740] sm:$0xff] }
 0x275   :  { %v1204_v55 = vadd.f32 %v1203_v36, %v11762_v39  ;;  %v1245_v63 = vadd.f32 %v1244_v3, %v11765_v40  ;;  %v1205_v2 = vpop.f32.mrb[5].mxu1  ;;  %v1246_v4 = vpop.f32.mrb[9].mxu0  ;;  %7786 = vmatprep.subr.bf16.mxu1 %v10073_v21  ;;  %8114 = vmatprep.subr.bf16.mxu0 %v10075_v25  ;;  %v10097_v21 = vcombine.high %v1747_v62, %v1751_v0  ;;  %v1763_v36 = vld [vmem:[#allocation10 + $0x6c0] sm:$0xff] }
 0x276   :  { %v1206_v45 = vadd.f32 %v1205_v2, %v11768_v41  ;;  %v1247_v29 = vadd.f32 %v1246_v4, %v11771_v42  ;;  %v1207_v46 = vpop.f32.mrb[6].mxu1  ;;  %v1248_v47 = vpop.f32.mrb[10].mxu0  ;;  %v10082_v41 = vcombine.low %v1732_v30, %v1736_v33  ;;  %v10089_v42 = vcombine.high %v1739_v44, %v1743_v48  ;;  %v1760_v30 = vld [vmem:[#allocation10 + $0x6a8] sm:$0xff]  ;;  %v1767_v3 = vld [vmem:[#allocation10 + $0x6e0] sm:$0xff] }
 0x277   :  { %v11879_v13 = vadd.f32 %v1438_v61, %v1204_v55  ;;  %v11881_v39 = vadd.f32 %v1446_v34, %v1245_v63  ;;  %v1208_v40 = vpop.f32.mrb[7].mxu1  ;;  %v1249_v56 = vpop.f32.mrb[11].mxu0  ;;  %v10099_v25 = vcombine.high %v1748_v1, %v1752_v5  ;;  %v1756_v61 = vld [vmem:[#allocation10 + $0x688] sm:$0xff]  ;;  %v10096_v33 = vcombine.low %v1747_v62, %v1751_v0  ;;  %v1771_v4 = vld [vmem:[#allocation10 + $0x700] sm:$0xff] }
 0x278   :  { %v11883_v58 = vadd.f32 %v1442_v26, %v1206_v45  ;;  %v11885_v59 = vadd.f32 %v1450_v35, %v1247_v29  ;;  %7787 = vmatpush1.bf16.msra.mxu1 %v10072_v37  ;;  %8115 = vmatpush1.bf16.msra.mxu0 %v10074_v53  ;;  %v10098_v34 = vcombine.low %v1748_v1, %v1752_v5  ;;  %v1764_v37 = vld [vmem:[#allocation10 + $0x6c8] sm:$0xff]  ;;  %v1783_v50 = vld [vmem:[#allocation10 + $0x760] sm:$0xff] }
 0x279   :  { %7788 = vmatprep.subr.bf16.mxu1 %v10081_v54  ;;  %8116 = vmatprep.subr.bf16.mxu0 %v10083_v43  ;;  %v10105_v26 = vcombine.high %v1755_v27, %v1759_v28  ;;  %v10107_v35 = vcombine.high %v1756_v61, %v1760_v30  ;;  %v1768_v53 = vld [vmem:[#allocation10 + $0x6e8] sm:$0xff]  ;;  %v10104_v54 = vcombine.low %v1755_v27, %v1759_v28  ;;  %v1775_v43 = vld [vmem:[#allocation10 + $0x720] sm:$0xff]  ;;  %v11891_v27 = vld [vmem:[#allocation9 + $0x8] sm:$0xff] }
 0x27a   :  { %v10106_v55 = vcombine.low %v1756_v61, %v1760_v30  ;;  %v10113_v63 = vcombine.high %v1763_v36, %v1767_v3  ;;  %v10115_v2 = vcombine.high %v1764_v37, %v1768_v53  ;;  %v1772_v44 = vld [vmem:[#allocation10 + $0x708] sm:$0xff]  ;;  %v10112_v29 = vcombine.low %v1763_v36, %v1767_v3  ;;  %v1787_v62 = vld [vmem:[#allocation10 + $0x780] sm:$0xff] }
 0x27b   :  { %v1776_v45 = vld [vmem:[#allocation10 + $0x728] sm:$0xff]  ;;  %v10114_v46 = vcombine.low %v1764_v37, %v1768_v53  ;;  %v10121_v47 = vcombine.high %v1771_v4, %v1775_v43  ;;  %v1791_v0 = vld [vmem:[#allocation10 + $0x7a0] sm:$0xff]  ;;  %v1462_v36 = vrot.slane %v11891_v27, %v11727_v7  ;;  %v1466_v3 = vrot.slane %v11891_v27, %v11759_v38 }
 0x27c   :  { %7789 = vmatpush1.bf16.msra.mxu1 %v10080_v57  ;;  %8117 = vmatpush1.bf16.msra.mxu0 %v10082_v41  ;;  %v10123_v48 = vcombine.high %v1772_v44, %v1776_v45  ;;  %v1780_v40 = vld [vmem:[#allocation10 + $0x748] sm:$0xff]  ;;  %v10120_v57 = vcombine.low %v1771_v4, %v1775_v43  ;;  %v10122_v41 = vcombine.low %v1772_v44, %v1776_v45  ;;  %v1795_v30 = vld [vmem:[#allocation10 + $0x7c0] sm:$0xff] }
 0x27d   :  { %7790 = vmatprep.subr.bf16.mxu1 %v10089_v42  ;;  %8118 = vmatprep.subr.bf16.mxu0 %v10091_v60  ;;  %v1784_v56 = vld [vmem:[#allocation10 + $0x768] sm:$0xff]  ;;  %v10129_v42 = vcombine.high %v1779_v49, %v1783_v50  ;;  %v10137_v28 = vcombine.high %v1787_v62, %v1791_v0 }
 0x27e   :  { %v10131_v60 = vcombine.high %v1780_v40, %v1784_v56  ;;  %v1788_v1 = vld [vmem:[#allocation10 + $0x788] sm:$0xff] }
 0x27f   :  { %v1792_v5 = vld [vmem:[#allocation10 + $0x7a8] sm:$0xff] }
 0x280   :  { %7791 = vmatpush1.bf16.msra.mxu1 %v10088_v23  ;;  %8119 = vmatpush1.bf16.msra.mxu0 %v10090_v18  ;;  %v386_v23 = vrot.slane %v11756_v31, %v11822_v22  ;;  %v390_v18 = vrot.slane %v11756_v31, %v11825_v24  ;;  %v10139_v61 = vcombine.high %v1788_v1, %v1792_v5 }
 0x281   :  { %7792 = vmatprep.subr.bf16.mxu1 %v10097_v21  ;;  %8120 = vmatprep.subr.bf16.mxu0 %v10099_v25  ;;  %v10128_v21 = vcombine.low %v1779_v49, %v1783_v50  ;;  %v10130_v25 = vcombine.low %v1780_v40, %v1784_v56  ;;  %v1807_v49 = vld [vmem:[#allocation10 + $0x820] sm:$0xff]  ;;  %v1804_v50 = vld [vmem:[#allocation10 + $0x808] sm:$0xff] }
 0x282   :  { %v440_v31 = vmul.f32 %v390_v18, %v11735_v12  ;;  %v1808_v40 = vld [vmem:[#allocation10 + $0x828] sm:$0xff] }
 0x283   :  { %v1812_v18 = vld [vmem:[#allocation10 + $0x848] sm:$0xff] }
 0x284   :  { %7793 = vmatpush1.bf16.msra.mxu1 %v10096_v33  ;;  %8121 = vmatpush1.bf16.msra.mxu0 %v10098_v34  ;;  %v1799_v33 = vld [vmem:[#allocation10 + $0x7e0] sm:$0xff]  ;;  %v1796_v34 = vld [vmem:[#allocation10 + $0x7c8] sm:$0xff] }
 0x285   :  { %7794 = vmatprep.subr.bf16.mxu1 %v10105_v26  ;;  %8122 = vmatprep.subr.bf16.mxu0 %v10107_v35  ;;  %v1800_v26 = vld [vmem:[#allocation10 + $0x7e8] sm:$0xff]  ;;  %v439_v35 = vmul.f32 %v386_v23, %v11735_v12  ;;  %v1803_v12 = vld [vmem:[#allocation10 + $0x800] sm:$0xff] }
 0x286   :  { %v10147_v45 = vcombine.high %v1796_v34, %v1800_v26  ;;  %v1815_v23 = vld [vmem:[#allocation10 + $0x860] sm:$0xff] }
 0x288   :  { %7795 = vmatpush1.bf16.msra.mxu1 %v10104_v54  ;;  %8123 = vmatpush1.bf16.msra.mxu0 %v10106_v55  ;;  %v10136_v54 = vcombine.low %v1787_v62, %v1791_v0  ;;  %v10138_v55 = vcombine.low %v1788_v1, %v1792_v5  ;;  %v1517_v62 = vmax.f32 %v11847_v51, 0.0  ;;  %v10155_v0 = vcombine.high %v1804_v50, %v1808_v40  ;;  %v1811_v5 = vld [vmem:[#allocation10 + $0x840] sm:$0xff] }
 0x289   :  { %7796 = vmatprep.subr.bf16.mxu1 %v10113_v63  ;;  %8124 = vmatprep.subr.bf16.mxu0 %v10115_v2  ;;  %v10145_v63 = vcombine.high %v1795_v30, %v1799_v33  ;;  %v1520_v1 = vmax.f32 %v11883_v58, 0.0  ;;  %v10161_v51 = vcombine.high %v1811_v5, %v1815_v23  ;;  %v1820_v58 = vld [vmem:[#allocation10 + $0x888] sm:$0xff] }
 0x28c   :  { %7797 = vmatpush1.bf16.msra.mxu1 %v10112_v29  ;;  %8125 = vmatpush1.bf16.msra.mxu0 %v10114_v46 }
 0x28d   :  { %7798 = vmatprep.subr.bf16.mxu1 %v10121_v47  ;;  %8126 = vmatprep.subr.bf16.mxu0 %v10123_v48 }
 0x290   :  { %7799 = vmatpush1.bf16.msra.mxu1 %v10120_v57  ;;  %8127 = vmatpush1.bf16.msra.mxu0 %v10122_v41 }
 0x291   :  { %7800 = vmatprep.subr.bf16.mxu1 %v10129_v42  ;;  %8128 = vmatprep.subr.bf16.mxu0 %v10131_v60  ;;  %v10144_v42 = vcombine.low %v1795_v30, %v1799_v33  ;;  %v10146_v60 = vcombine.low %v1796_v34, %v1800_v26  ;;  %v11913_v30 = vpack.c.bf16 %v1520_v1, %v1520_v1  ;;  %v1819_v34 = vld [vmem:[#allocation10 + $0x880] sm:$0xff] }
 0x292   :  { %v1823_v26 = vld [vmem:[#allocation10 + $0x8a0] sm:$0xff] }
 0x294   :  { %v1285_v37 = vpop.f32.mrb[8].mxu1  ;;  %v1326_v53 = vpop.f32.mrb[12].mxu0  ;;  %7801 = vmatpush1.bf16.msra.mxu1 %v10128_v21  ;;  %8129 = vmatpush1.bf16.msra.mxu0 %v10130_v25  ;;  %v1816_v21 = vld [vmem:[#allocation10 + $0x868] sm:$0xff]  ;;  %v10152_v25 = vcombine.low %v1803_v12, %v1807_v49 }
 0x295   :  { %v11899_v2 = vadd.f32 %v1285_v37, %v439_v35  ;;  %v1327_v4 = vadd.f32 %v1326_v53, %v11776_v52  ;;  %v1287_v43 = vpop.f32.mrb[9].mxu1  ;;  %v1328_v44 = vpop.f32.mrb[13].mxu0  ;;  %7802 = vmatprep.subr.bf16.mxu1 %v10137_v28  ;;  %8130 = vmatprep.subr.bf16.mxu0 %v10139_v61  ;;  %v11911_v28 = vpack.c.bf16 %v1517_v62, %v1517_v62  ;;  %v1824_v35 = vld [vmem:[#allocation10 + $0x8a8] sm:$0xff]  ;;  %v1827_v53 = vld [vmem:[#allocation10 + $0x8c0] sm:$0xff] }
 0x296   :  { %v11902_v29 = vadd.f32 %v1287_v43, %v440_v31  ;;  %v1329_v46 = vadd.f32 %v1328_v44, %v11801_v6  ;;  %v1289_v47 = vpop.f32.mrb[10].mxu1  ;;  %v1330_v48 = vpop.f32.mrb[14].mxu0  ;;  %v10153_v6 = vcombine.high %v1803_v12, %v1807_v49  ;;  %v10154_v61 = vcombine.low %v1804_v50, %v1808_v40  ;;  %v1835_v12 = vld [vmem:[#allocation10 + $0x900] sm:$0xff]  ;;  %v1848_v62 = vld [vmem:[#allocation10 + $0x968] sm:$0xff] }
 0x297   :  { %v11905_v56 = vadd.f32 %v1462_v36, %v1327_v4  ;;  %v1290_v57 = vpop.f32.mrb[11].mxu1  ;;  %v1331_v41 = vpop.f32.mrb[15].mxu0  ;;  %v10163_v33 = vcombine.high %v1812_v18, %v1816_v21  ;;  %v10160_v36 = vcombine.low %v1811_v5, %v1815_v23  ;;  %v10162_v31 = vcombine.low %v1812_v18, %v1816_v21  ;;  %v1836_v47 = vld [vmem:[#allocation10 + $0x908] sm:$0xff]  ;;  %v1851_v23 = vld [vmem:[#allocation10 + $0x980] sm:$0xff] }
 0x298   :  { %v11907_v52 = vadd.f32 %v1466_v3, %v1329_v46  ;;  %7803 = vmatpush1.bf16.msra.mxu1 %v10136_v54  ;;  %8131 = vmatpush1.bf16.msra.mxu0 %v10138_v55  ;;  %v10169_v3 = vcombine.high %v1819_v34, %v1823_v26  ;;  %v10171_v37 = vcombine.high %v1820_v58, %v1824_v35  ;;  %v1831_v54 = vld [vmem:[#allocation10 + $0x8e0] sm:$0xff]  ;;  %v1828_v55 = vld [vmem:[#allocation10 + $0x8c8] sm:$0xff] }
 0x299   :  { %7804 = vmatprep.subr.bf16.mxu1 %v10145_v63  ;;  %8132 = vmatprep.subr.bf16.mxu0 %v10147_v45  ;;  %v1832_v63 = vld [vmem:[#allocation10 + $0x8e8] sm:$0xff]  ;;  %v10168_v4 = vcombine.low %v1819_v34, %v1823_v26  ;;  %v10170_v43 = vcombine.low %v1820_v58, %v1824_v35  ;;  %v10177_v44 = vcombine.high %v1827_v53, %v1831_v54  ;;  %v1839_v46 = vld [vmem:[#allocation10 + $0x920] sm:$0xff] }
 0x29a   :  { %v10179_v45 = vcombine.high %v1828_v55, %v1832_v63  ;;  %v1840_v48 = vld [vmem:[#allocation10 + $0x928] sm:$0xff]  ;;  %v10176_v49 = vcombine.low %v1827_v53, %v1831_v54  ;;  %v10178_v50 = vcombine.low %v1828_v55, %v1832_v63  ;;  %v10185_v40 = vcombine.high %v1835_v12, %v1839_v46  ;;  %v1843_v41 = vld [vmem:[#allocation10 + $0x940] sm:$0xff] }
 0x29b   :  { %v10187_v57 = vcombine.high %v1836_v47, %v1840_v48  ;;  %v1855_v18 = vld [vmem:[#allocation10 + $0x9a0] sm:$0xff]  ;;  %v1852_v21 = vld [vmem:[#allocation10 + $0x988] sm:$0xff]  ;;  %v1470_v35 = vrot.slane %v11891_v27, %v11730_v9  ;;  %v1474_v54 = vrot.slane %v11891_v27, %v11740_v15  ;;  %v1482_v55 = vrot.slane %v11891_v27, %v11743_v16 }
 0x29c   :  { %7805 = vmatpush1.bf16.msra.mxu1 %v10144_v42  ;;  %8133 = vmatpush1.bf16.msra.mxu0 %v10146_v60  ;;  %v1847_v42 = vld [vmem:[#allocation10 + $0x960] sm:$0xff]  ;;  %v1844_v60 = vld [vmem:[#allocation10 + $0x948] sm:$0xff]  ;;  %v10200_v63 = vcombine.low %v1851_v23, %v1855_v18 }
 0x29d   :  { %7815 = vmatprep.subr.bf16.mxu1 %v10153_v6  ;;  %8143 = vmatprep.subr.bf16.mxu0 %v10155_v0  ;;  %v10184_v6 = vcombine.low %v1835_v12, %v1839_v46  ;;  %v10186_v0 = vcombine.low %v1836_v47, %v1840_v48  ;;  %v10193_v1 = vcombine.high %v1843_v41, %v1847_v42  ;;  %v1859_v26 = vld [vmem:[#allocation10 + $0x9c0] sm:$0xff] }
 0x29e   :  { %v10195_v5 = vcombine.high %v1844_v60, %v1848_v62  ;;  %v1863_v58 = vld [vmem:[#allocation10 + $0x9e0] sm:$0xff] }
 0x29f   :  { %7807 = vmatmul.mubr.bf16.vlgmr.msra.gmra.mrb[16].mxu1 %v11911_v28  ;;  %8135 = vmatmul.mubr.bf16.vlgmr.msra.gmra.mrb[20].mxu0 %v11911_v28  ;;  %v10209_v46 = vcombine.high %v1859_v26, %v1863_v58 }
 0x2a0   :  { %7816 = vmatpush1.bf16.msra.mxu1 %v10152_v25  ;;  %7847 = vmatprep.mubr.bf16.mxu1 %v11913_v30  ;;  %v1856_v25 = vld [vmem:[#allocation10 + $0x9a8] sm:$0xff] }
 0x2a1   :  { %8144 = vmatpush1.bf16.msra.mxu0 %v10154_v61  ;;  %8175 = vmatprep.mubr.bf16.mxu0 %v11913_v30  ;;  %v10192_v61 = vcombine.low %v1843_v41, %v1847_v42  ;;  %v10203_v34 = vcombine.high %v1852_v21, %v1856_v25  ;;  %v1871_v41 = vld [vmem:[#allocation10 + $0xa20] sm:$0xff] }
 0x2a2   :  { %7817 = vmatprep.subr.bf16.mxu1 %v10161_v51  ;;  %8145 = vmatprep.subr.bf16.mxu0 %v10163_v33  ;;  %v10194_v51 = vcombine.low %v1844_v60, %v1848_v62  ;;  %v10201_v33 = vcombine.high %v1851_v23, %v1855_v18  ;;  %v1868_v62 = vld [vmem:[#allocation10 + $0xa08] sm:$0xff]  ;;  %v1875_v18 = vld [vmem:[#allocation10 + $0xa40] sm:$0xff] }
 0x2a4   :  { %7818 = vmatpush1.bf16.msra.mxu1 %v10160_v36  ;;  %v1478_v36 = vrot.slane %v11891_v27, %v11733_v10 }
 0x2a5   :  { %8146 = vmatpush1.bf16.msra.mxu0 %v10162_v31  ;;  %7819 = vmatprep.subr.bf16.mxu1 %v10169_v3  ;;  %v1860_v31 = vld [vmem:[#allocation10 + $0x9c8] sm:$0xff] }
 0x2a6   :  { %8147 = vmatprep.subr.bf16.mxu0 %v10171_v37  ;;  %v1864_v3 = vld [vmem:[#allocation10 + $0x9e8] sm:$0xff] }
 0x2a8   :  { %7820 = vmatpush1.bf16.msra.mxu1 %v10168_v4  ;;  %v10202_v4 = vcombine.low %v1852_v21, %v1856_v25  ;;  %v1879_v21 = vld [vmem:[#allocation10 + $0xa60] sm:$0xff]  ;;  %v1876_v25 = vld [vmem:[#allocation10 + $0xa48] sm:$0xff] }
 0x2a9   :  { %8148 = vmatpush1.bf16.msra.mxu0 %v10170_v43  ;;  %7821 = vmatprep.subr.bf16.mxu1 %v10177_v44 }
 0x2aa   :  { %8149 = vmatprep.subr.bf16.mxu0 %v10179_v45 }
 0x2ac   :  { %7822 = vmatpush1.bf16.msra.mxu1 %v10176_v49 }
 0x2ad   :  { %8150 = vmatpush1.bf16.msra.mxu0 %v10178_v50  ;;  %7823 = vmatprep.subr.bf16.mxu1 %v10185_v40  ;;  %v10211_v40 = vcombine.high %v1860_v31, %v1864_v3 }
 0x2ae   :  { %8151 = vmatprep.subr.bf16.mxu0 %v10187_v57  ;;  %v1867_v57 = vld [vmem:[#allocation10 + $0xa00] sm:$0xff] }
 0x2b0   :  { %7824 = vmatpush1.bf16.msra.mxu1 %v10184_v6  ;;  %v1872_v6 = vld [vmem:[#allocation10 + $0xa28] sm:$0xff] }
 0x2b1   :  { %8152 = vmatpush1.bf16.msra.mxu0 %v10186_v0  ;;  %7825 = vmatprep.subr.bf16.mxu1 %v10193_v1  ;;  %v10219_v23 = vcombine.high %v1868_v62, %v1872_v6 }
 0x2b2   :  { %8153 = vmatprep.subr.bf16.mxu0 %v10195_v5  ;;  %v10217_v5 = vcombine.high %v1867_v57, %v1871_v41 }
 0x2b4   :  { %v1367_v37 = vpop.f32.mrb[12].mxu1  ;;  %v1408_v53 = vpop.f32.mrb[16].mxu0  ;;  %7826 = vmatpush1.bf16.msra.mxu1 %v10192_v61  ;;  %v1880_v61 = vld [vmem:[#allocation10 + $0xa68] sm:$0xff] }
 0x2b5   :  { %v1368_v43 = vadd.f32 %v1367_v37, %v11804_v8  ;;  %v1409_v44 = vadd.f32 %v1408_v53, %v11807_v11  ;;  %8154 = vmatpush1.bf16.msra.mxu0 %v10194_v51  ;;  %v1369_v45 = vpop.f32.mrb[13].mxu1  ;;  %v1410_v12 = vpop.f32.mrb[17].mxu0  ;;  %7827 = vmatprep.subr.bf16.mxu1 %v10201_v33  ;;  %v10216_v51 = vcombine.low %v1867_v57, %v1871_v41  ;;  %v1888_v37 = vld [vmem:[#allocation10 + $0xaa8] sm:$0xff] }
 0x2b6   :  { %v1370_v47 = vadd.f32 %v1369_v45, %v11810_v19  ;;  %v1411_v48 = vadd.f32 %v1410_v12, %v11813_v20  ;;  %v1371_v49 = vpop.f32.mrb[14].mxu1  ;;  %v1412_v50 = vpop.f32.mrb[18].mxu0  ;;  %8155 = vmatprep.subr.bf16.mxu0 %v10203_v34  ;;  %v10208_v19 = vcombine.low %v1859_v26, %v1863_v58  ;;  %v10210_v20 = vcombine.low %v1860_v31, %v1864_v3  ;;  %v1887_v26 = vld [vmem:[#allocation10 + $0xaa0] sm:$0xff]  ;;  %v1884_v58 = vld [vmem:[#allocation10 + $0xa88] sm:$0xff] }
 0x2b7   :  { %v11931_v42 = vadd.f32 %v1470_v35, %v1368_v43  ;;  %v11933_v8 = vadd.f32 %v1478_v36, %v1409_v44  ;;  %v1372_v11 = vpop.f32.mrb[15].mxu1  ;;  %v1413_v60 = vpop.f32.mrb[19].mxu0  ;;  %v10218_v33 = vcombine.low %v1868_v62, %v1872_v6  ;;  %v10225_v34 = vcombine.high %v1875_v18, %v1879_v21  ;;  %v1883_v36 = vld [vmem:[#allocation10 + $0xa80] sm:$0xff]  ;;  %v1896_v43 = vld [vmem:[#allocation10 + $0xae8] sm:$0xff] }
 0x2b8   :  { %v11935_v0 = vadd.f32 %v1474_v54, %v1370_v47  ;;  %v11937_v1 = vadd.f32 %v1482_v55, %v1411_v48  ;;  %7828 = vmatpush1.bf16.msra.mxu1 %v10200_v63  ;;  %v10227_v35 = vcombine.high %v1876_v25, %v1880_v61  ;;  %v10224_v31 = vcombine.low %v1875_v18, %v1879_v21  ;;  %v1891_v55 = vld [vmem:[#allocation10 + $0xac0] sm:$0xff]  ;;  %v1900_v49 = vld [vmem:[#allocation10 + $0xb08] sm:$0xff] }
 0x2b9   :  { %8156 = vmatpush1.bf16.msra.mxu0 %v10202_v4  ;;  %7829 = vmatprep.subr.bf16.mxu1 %v10209_v46  ;;  %v10226_v3 = vcombine.low %v1876_v25, %v1880_v61  ;;  %v10233_v53 = vcombine.high %v1883_v36, %v1887_v26  ;;  %v10235_v54 = vcombine.high %v1884_v58, %v1888_v37  ;;  %v1895_v63 = vld [vmem:[#allocation10 + $0xae0] sm:$0xff]  ;;  %v1892_v4 = vld [vmem:[#allocation10 + $0xac8] sm:$0xff] }
 0x2ba   :  { %8157 = vmatprep.subr.bf16.mxu0 %v10211_v40  ;;  %v10232_v44 = vcombine.low %v1883_v36, %v1887_v26  ;;  %v10234_v45 = vcombine.low %v1884_v58, %v1888_v37  ;;  %v10241_v12 = vcombine.high %v1891_v55, %v1895_v63  ;;  %v10243_v46 = vcombine.high %v1892_v4, %v1896_v43  ;;  %v1899_v47 = vld [vmem:[#allocation10 + $0xb00] sm:$0xff]  ;;  %v1904_v50 = vld [vmem:[#allocation10 + $0xb28] sm:$0xff] }
 0x2bb   :  { %v1903_v48 = vld [vmem:[#allocation10 + $0xb20] sm:$0xff]  ;;  %v10240_v40 = vcombine.low %v1891_v55, %v1895_v63  ;;  %v10242_v57 = vcombine.low %v1892_v4, %v1896_v43  ;;  %v10251_v11 = vcombine.high %v1900_v49, %v1904_v50  ;;  %v1908_v6 = vld [vmem:[#allocation10 + $0xb48] sm:$0xff] }
 0x2bc   :  { %7830 = vmatpush1.bf16.msra.mxu1 %v10208_v19  ;;  %v10249_v41 = vcombine.high %v1899_v47, %v1903_v48  ;;  %v1907_v60 = vld [vmem:[#allocation10 + $0xb40] sm:$0xff]  ;;  %v1912_v19 = vld [vmem:[#allocation10 + $0xb68] sm:$0xff] }
 0x2bd   :  { %8158 = vmatpush1.bf16.msra.mxu0 %v10210_v20  ;;  %7831 = vmatprep.subr.bf16.mxu1 %v10217_v5  ;;  %v1911_v62 = vld [vmem:[#allocation10 + $0xb60] sm:$0xff]  ;;  %v10248_v20 = vcombine.low %v1899_v47, %v1903_v48  ;;  %v10250_v5 = vcombine.low %v1900_v49, %v1904_v50  ;;  %v10259_v18 = vcombine.high %v1908_v6, %v1912_v19  ;;  %v1916_v61 = vld [vmem:[#allocation10 + $0xb88] sm:$0xff]  ;;  %v1522_v49 = vmax.f32 %v11885_v59, 0.0 }
 0x2be   :  { %8159 = vmatprep.subr.bf16.mxu0 %v10219_v23  ;;  %v10257_v23 = vcombine.high %v1907_v60, %v1911_v62  ;;  %v1915_v21 = vld [vmem:[#allocation10 + $0xb80] sm:$0xff]  ;;  %v1924_v37 = vld [vmem:[#allocation10 + $0xbc8] sm:$0xff] }
 0x2bf   :  { %v1919_v25 = vld [vmem:[#allocation10 + $0xba0] sm:$0xff]  ;;  %v1932_v43 = vld [vmem:[#allocation10 + $0xc08] sm:$0xff] }
 0x2c0   :  { %7832 = vmatpush1.bf16.msra.mxu1 %v10216_v51  ;;  %v1920_v51 = vld [vmem:[#allocation10 + $0xba8] sm:$0xff]  ;;  %v1923_v26 = vld [vmem:[#allocation10 + $0xbc0] sm:$0xff] }
 0x2c1   :  { %8160 = vmatpush1.bf16.msra.mxu0 %v10218_v33  ;;  %7833 = vmatprep.subr.bf16.mxu1 %v10225_v34  ;;  %v10256_v33 = vcombine.low %v1907_v60, %v1911_v62  ;;  %v10258_v34 = vcombine.low %v1908_v6, %v1912_v19  ;;  %v10267_v36 = vcombine.high %v1916_v61, %v1920_v51  ;;  %v1927_v58 = vld [vmem:[#allocation10 + $0xbe0] sm:$0xff] }
 0x2c2   :  { %8161 = vmatprep.subr.bf16.mxu0 %v10227_v35  ;;  %v10265_v35 = vcombine.high %v1915_v21, %v1919_v25  ;;  %v1931_v63 = vld [vmem:[#allocation10 + $0xc00] sm:$0xff] }
 0x2c3   :  { %v1935_v4 = vld [vmem:[#allocation10 + $0xc20] sm:$0xff] }
 0x2c4   :  { %7834 = vmatpush1.bf16.msra.mxu1 %v10224_v31  ;;  %v1928_v31 = vld [vmem:[#allocation10 + $0xbe8] sm:$0xff]  ;;  %v10281_v47 = vcombine.high %v1931_v63, %v1935_v4  ;;  %v1939_v50 = vld [vmem:[#allocation10 + $0xc40] sm:$0xff] }
 0x2c5   :  { %8162 = vmatpush1.bf16.msra.mxu0 %v10226_v3  ;;  %7835 = vmatprep.subr.bf16.mxu1 %v10233_v53  ;;  %v10264_v3 = vcombine.low %v1915_v21, %v1919_v25  ;;  %v10266_v53 = vcombine.low %v1916_v61, %v1920_v51  ;;  %v10275_v55 = vcombine.high %v1924_v37, %v1928_v31  ;;  %v1947_v6 = vld [vmem:[#allocation10 + $0xc80] sm:$0xff] }
 0x2c6   :  { %8163 = vmatprep.subr.bf16.mxu0 %v10235_v54  ;;  %v10273_v54 = vcombine.high %v1923_v26, %v1927_v58  ;;  %v1951_v19 = vld [vmem:[#allocation10 + $0xca0] sm:$0xff] }
 0x2c7   :  { %v10297_v25 = vcombine.high %v1947_v6, %v1951_v19  ;;  %v1955_v51 = vld [vmem:[#allocation10 + $0xcc0] sm:$0xff] }
 0x2c8   :  { %7836 = vmatpush1.bf16.msra.mxu1 %v10232_v44  ;;  %v1936_v44 = vld [vmem:[#allocation10 + $0xc28] sm:$0xff] }
 0x2c9   :  { %8164 = vmatpush1.bf16.msra.mxu0 %v10234_v45  ;;  %7837 = vmatprep.subr.bf16.mxu1 %v10241_v12  ;;  %v10272_v45 = vcombine.low %v1923_v26, %v1927_v58  ;;  %v1519_v12 = vmax.f32 %v11879_v13, 0.0  ;;  %v10283_v48 = vcombine.high %v1932_v43, %v1936_v44  ;;  %v10282_v62 = vcombine.low %v1932_v43, %v1936_v44  ;;  %v1971_v44 = vld [vmem:[#allocation10 + $0xd40] sm:$0xff] }
 0x2ca   :  { %8165 = vmatprep.subr.bf16.mxu0 %v10243_v46  ;;  %v10274_v46 = vcombine.low %v1924_v37, %v1928_v31  ;;  %v1963_v31 = vld [vmem:[#allocation10 + $0xd00] sm:$0xff] }
 0x2cb   :  { %v11941_v60 = vpack.c.bf16 %v1519_v12, %v1519_v12  ;;  %v1972_v12 = vld [vmem:[#allocation10 + $0xd48] sm:$0xff] }
 0x2cc   :  { %7838 = vmatpush1.bf16.msra.mxu1 %v10240_v40  ;;  %v1943_v40 = vld [vmem:[#allocation10 + $0xc60] sm:$0xff] }
 0x2cd   :  { %8166 = vmatpush1.bf16.msra.mxu0 %v10242_v57  ;;  %7839 = vmatprep.subr.bf16.mxu1 %v10249_v41  ;;  %v10280_v57 = vcombine.low %v1931_v63, %v1935_v4  ;;  %v1940_v41 = vld [vmem:[#allocation10 + $0xc48] sm:$0xff]  ;;  %v10289_v13 = vcombine.high %v1939_v50, %v1943_v40 }
 0x2ce   :  { %8167 = vmatprep.subr.bf16.mxu0 %v10251_v11  ;;  %v1944_v11 = vld [vmem:[#allocation10 + $0xc68] sm:$0xff] }
 0x2cf   :  { %v10291_v59 = vcombine.high %v1940_v41, %v1944_v11  ;;  %v10290_v21 = vcombine.low %v1940_v41, %v1944_v11  ;;  %v1980_v41 = vld [vmem:[#allocation10 + $0xd88] sm:$0xff] }
 0x2d0   :  { %7840 = vmatpush1.bf16.msra.mxu1 %v10248_v20  ;;  %v11943_v20 = vpack.c.bf16 %v1522_v49, %v1522_v49  ;;  %v1984_v11 = vld [vmem:[#allocation10 + $0xda8] sm:$0xff] }
 0x2d1   :  { %8168 = vmatpush1.bf16.msra.mxu0 %v10250_v5  ;;  %7841 = vmatprep.subr.bf16.mxu1 %v10257_v23  ;;  %v1948_v5 = vld [vmem:[#allocation10 + $0xc88] sm:$0xff] }
 0x2d2   :  { %8169 = vmatprep.subr.bf16.mxu0 %v10259_v18  ;;  %v1952_v23 = vld [vmem:[#allocation10 + $0xca8] sm:$0xff]  ;;  %v10288_v18 = vcombine.low %v1939_v50, %v1943_v40  ;;  %v1979_v40 = vld [vmem:[#allocation10 + $0xd80] sm:$0xff] }
 0x2d3   :  { %v10299_v61 = vcombine.high %v1948_v5, %v1952_v23  ;;  %v10298_v26 = vcombine.low %v1948_v5, %v1952_v23  ;;  %v1991_v5 = vld [vmem:[#allocation10 + $0xde0] sm:$0xff]  ;;  %v1988_v23 = vld [vmem:[#allocation10 + $0xdc8] sm:$0xff] }
 0x2d4   :  { %7842 = vmatpush1.bf16.msra.mxu1 %v10256_v33  ;;  %v1959_v33 = vld [vmem:[#allocation10 + $0xce0] sm:$0xff] }
 0x2d5   :  { %8170 = vmatpush1.bf16.msra.mxu0 %v10258_v34  ;;  %7843 = vmatprep.subr.bf16.mxu1 %v10265_v35  ;;  %v1956_v34 = vld [vmem:[#allocation10 + $0xcc8] sm:$0xff]  ;;  %v10305_v58 = vcombine.high %v1955_v51, %v1959_v33 }
 0x2d6   :  { %8171 = vmatprep.subr.bf16.mxu0 %v10267_v36  ;;  %v1960_v35 = vld [vmem:[#allocation10 + $0xce8] sm:$0xff]  ;;  %v10296_v36 = vcombine.low %v1947_v6, %v1951_v19  ;;  %v10331_v19 = vcombine.high %v1980_v41, %v1984_v11 }
 0x2d7   :  { %v10307_v37 = vcombine.high %v1956_v34, %v1960_v35  ;;  %v10306_v63 = vcombine.low %v1956_v34, %v1960_v35  ;;  %v1999_v34 = vld [vmem:[#allocation10 + $0xe20] sm:$0xff]  ;;  %v1996_v35 = vld [vmem:[#allocation10 + $0xe08] sm:$0xff] }
 0x2d8   :  { %7844 = vmatpush1.bf16.msra.mxu1 %v10264_v3  ;;  %v1967_v3 = vld [vmem:[#allocation10 + $0xd20] sm:$0xff] }
 0x2d9   :  { %8172 = vmatpush1.bf16.msra.mxu0 %v10266_v53  ;;  %7845 = vmatprep.subr.bf16.mxu1 %v10273_v54  ;;  %v1964_v53 = vld [vmem:[#allocation10 + $0xd08] sm:$0xff]  ;;  %v10313_v4 = vcombine.high %v1963_v31, %v1967_v3 }
 0x2da   :  { %8173 = vmatprep.subr.bf16.mxu0 %v10275_v55  ;;  %v1968_v54 = vld [vmem:[#allocation10 + $0xd28] sm:$0xff]  ;;  %v10304_v55 = vcombine.low %v1955_v51, %v1959_v33  ;;  %v1995_v33 = vld [vmem:[#allocation10 + $0xe00] sm:$0xff] }
 0x2db   :  { %v10315_v43 = vcombine.high %v1964_v53, %v1968_v54 }
 0x2dc   :  { %7846 = vmatpush1.bf16.msra.mxu1 %v10272_v45  ;;  %v1975_v45 = vld [vmem:[#allocation10 + $0xd60] sm:$0xff] }
 0x2dd   :  { %8174 = vmatpush1.bf16.msra.mxu0 %v10274_v46  ;;  %7856 = vmatprep.subr.bf16.mxu1 %v10281_v47  ;;  %v1976_v46 = vld [vmem:[#allocation10 + $0xd68] sm:$0xff]  ;;  %v10312_v47 = vcombine.low %v1963_v31, %v1967_v3  ;;  %v10321_v49 = vcombine.high %v1971_v44, %v1975_v45  ;;  %v2003_v3 = vld [vmem:[#allocation10 + $0xe40] sm:$0xff] }
 0x2de   :  { %8184 = vmatprep.subr.bf16.mxu0 %v10283_v48  ;;  %v10314_v48 = vcombine.low %v1964_v53, %v1968_v54  ;;  %v10323_v50 = vcombine.high %v1972_v12, %v1976_v46  ;;  %v2007_v53 = vld [vmem:[#allocation10 + $0xe60] sm:$0xff]  ;;  %v2004_v54 = vld [vmem:[#allocation10 + $0xe48] sm:$0xff] }
 0x2df   :  { %7848 = vmatmul.mubr.bf16.vlgmr.msra.gmra.mrb[16].mxu1 %v11941_v60 }
 0x2e0   :  { %8176 = vmatmul.mubr.bf16.vlgmr.msra.gmra.mrb[20].mxu0 %v11941_v60  ;;  %7857 = vmatpush1.bf16.msra.mxu1 %v10280_v57  ;;  %v1983_v57 = vld [vmem:[#allocation10 + $0xda0] sm:$0xff] }
 0x2e1   :  { %7888 = vmatprep.mubr.bf16.mxu1 %v11943_v20  ;;  %8185 = vmatpush1.bf16.msra.mxu0 %v10282_v62  ;;  %v10320_v62 = vcombine.low %v1971_v44, %v1975_v45  ;;  %v10329_v6 = vcombine.high %v1979_v40, %v1983_v57  ;;  %v2011_v45 = vld [vmem:[#allocation10 + $0xe80] sm:$0xff] }
 0x2e2   :  { %8216 = vmatprep.mubr.bf16.mxu0 %v11943_v20  ;;  %7858 = vmatprep.subr.bf16.mxu1 %v10289_v13  ;;  %v10322_v13 = vcombine.low %v1972_v12, %v1976_v46  ;;  %v2015_v12 = vld [vmem:[#allocation10 + $0xea0] sm:$0xff]  ;;  %v2012_v46 = vld [vmem:[#allocation10 + $0xe88] sm:$0xff] }
 0x2e3   :  { %8186 = vmatprep.subr.bf16.mxu0 %v10291_v59  ;;  %v1987_v59 = vld [vmem:[#allocation10 + $0xdc0] sm:$0xff] }
 0x2e4   :  { %7859 = vmatpush1.bf16.msra.mxu1 %v10288_v18  ;;  %v1992_v18 = vld [vmem:[#allocation10 + $0xde8] sm:$0xff] }
 0x2e5   :  { %8187 = vmatpush1.bf16.msra.mxu0 %v10290_v21  ;;  %7860 = vmatprep.subr.bf16.mxu1 %v10297_v25  ;;  %v10328_v21 = vcombine.low %v1979_v40, %v1983_v57  ;;  %v10330_v25 = vcombine.low %v1980_v41, %v1984_v11  ;;  %v10339_v51 = vcombine.high %v1988_v23, %v1992_v18  ;;  %v2019_v57 = vld [vmem:[#allocation10 + $0xec0] sm:$0xff]  ;;  %v2020_v11 = vld [vmem:[#allocation10 + $0xec8] sm:$0xff] }
 0x2e6   :  { %8188 = vmatprep.subr.bf16.mxu0 %v10299_v61  ;;  %v10337_v61 = vcombine.high %v1987_v59, %v1991_v5  ;;  %v2023_v41 = vld [vmem:[#allocation10 + $0xee0] sm:$0xff] }
 0x2e8   :  { %7861 = vmatpush1.bf16.msra.mxu1 %v10296_v36  ;;  %v2000_v36 = vld [vmem:[#allocation10 + $0xe28] sm:$0xff] }
 0x2e9   :  { %8189 = vmatpush1.bf16.msra.mxu0 %v10298_v26  ;;  %7862 = vmatprep.subr.bf16.mxu1 %v10305_v58  ;;  %v10336_v26 = vcombine.low %v1987_v59, %v1991_v5  ;;  %v10338_v58 = vcombine.low %v1988_v23, %v1992_v18  ;;  %v10347_v31 = vcombine.high %v1996_v35, %v2000_v36  ;;  %v2027_v5 = vld [vmem:[#allocation10 + $0xf00] sm:$0xff]  ;;  %v2028_v18 = vld [vmem:[#allocation10 + $0xf08] sm:$0xff] }
 0x2ea   :  { %8190 = vmatprep.subr.bf16.mxu0 %v10307_v37  ;;  %v10345_v37 = vcombine.high %v1995_v33, %v1999_v34  ;;  %v2031_v23 = vld [vmem:[#allocation10 + $0xf20] sm:$0xff] }
 0x2ec   :  { %7863 = vmatpush1.bf16.msra.mxu1 %v10304_v55  ;;  %v2008_v55 = vld [vmem:[#allocation10 + $0xe68] sm:$0xff] }
 0x2ed   :  { %8191 = vmatpush1.bf16.msra.mxu0 %v10306_v63  ;;  %7864 = vmatprep.subr.bf16.mxu1 %v10313_v4  ;;  %v10344_v63 = vcombine.low %v1995_v33, %v1999_v34  ;;  %v10346_v4 = vcombine.low %v1996_v35, %v2000_v36  ;;  %v10355_v44 = vcombine.high %v2004_v54, %v2008_v55  ;;  %v2035_v34 = vld [vmem:[#allocation10 + $0xf40] sm:$0xff]  ;;  %v2036_v36 = vld [vmem:[#allocation10 + $0xf48] sm:$0xff] }
 0x2ee   :  { %8192 = vmatprep.subr.bf16.mxu0 %v10315_v43  ;;  %v10353_v43 = vcombine.high %v2003_v3, %v2007_v53  ;;  %v2039_v35 = vld [vmem:[#allocation10 + $0xf60] sm:$0xff] }
 0x2f0   :  { %7865 = vmatpush1.bf16.msra.mxu1 %v10312_v47  ;;  %v2016_v47 = vld [vmem:[#allocation10 + $0xea8] sm:$0xff] }
 0x2f1   :  { %8193 = vmatpush1.bf16.msra.mxu0 %v10314_v48  ;;  %7866 = vmatprep.subr.bf16.mxu1 %v10321_v49  ;;  %v10352_v48 = vcombine.low %v2003_v3, %v2007_v53  ;;  %v10354_v49 = vcombine.low %v2004_v54, %v2008_v55  ;;  %v10363_v40 = vcombine.high %v2012_v46, %v2016_v47  ;;  %v2043_v53 = vld [vmem:[#allocation10 + $0xf80] sm:$0xff]  ;;  %v2044_v55 = vld [vmem:[#allocation10 + $0xf88] sm:$0xff] }
 0x2f2   :  { %8194 = vmatprep.subr.bf16.mxu0 %v10323_v50  ;;  %v10361_v50 = vcombine.high %v2011_v45, %v2015_v12  ;;  %v2047_v54 = vld [vmem:[#allocation10 + $0xfa0] sm:$0xff] }
 0x2f4   :  { %7867 = vmatpush1.bf16.msra.mxu1 %v10320_v62  ;;  %v2024_v62 = vld [vmem:[#allocation10 + $0xee8] sm:$0xff] }
 0x2f5   :  { %8195 = vmatpush1.bf16.msra.mxu0 %v10322_v13  ;;  %7868 = vmatprep.subr.bf16.mxu1 %v10329_v6  ;;  %v10360_v13 = vcombine.low %v2011_v45, %v2015_v12  ;;  %v10362_v6 = vcombine.low %v2012_v46, %v2016_v47  ;;  %v10371_v59 = vcombine.high %v2020_v11, %v2024_v62  ;;  %v2051_v12 = vld [vmem:[#allocation10 + $0xfc0] sm:$0xff] }
 0x2f6   :  { %8196 = vmatprep.subr.bf16.mxu0 %v10331_v19  ;;  %v10369_v19 = vcombine.high %v2019_v57, %v2023_v41  ;;  %v2055_v46 = vld [vmem:[#allocation10 + $0xfe0] sm:$0xff]  ;;  %v1458_v47 = vrot.slane %v11891_v27, %v11825_v24  ;;  %v1521_v27 = vmax.f32 %v11881_v39, 0.0 }
 0x2f8   :  { %7869 = vmatpush1.bf16.msra.mxu1 %v10328_v21  ;;  %v2032_v21 = vld [vmem:[#allocation10 + $0xf28] sm:$0xff] }
 0x2f9   :  { %8197 = vmatpush1.bf16.msra.mxu0 %v10330_v25  ;;  %7870 = vmatprep.subr.bf16.mxu1 %v10337_v61  ;;  %v10368_v25 = vcombine.low %v2019_v57, %v2023_v41  ;;  %v10370_v61 = vcombine.low %v2020_v11, %v2024_v62  ;;  %v10379_v33 = vcombine.high %v2028_v18, %v2032_v21  ;;  %v2059_v11 = vld [vmem:[#allocation10 + $0x1000] sm:$0xff] }
 0x2fa   :  { %8198 = vmatprep.subr.bf16.mxu0 %v10339_v51  ;;  %v10377_v51 = vcombine.high %v2027_v5, %v2031_v23  ;;  %v10401_v57 = vcombine.high %v2051_v12, %v2055_v46  ;;  %v2063_v62 = vld [vmem:[#allocation10 + $0x1020] sm:$0xff] }
 0x2fc   :  { %7871 = vmatpush1.bf16.msra.mxu1 %v10336_v26  ;;  %v2040_v26 = vld [vmem:[#allocation10 + $0xf68] sm:$0xff] }
 0x2fd   :  { %8199 = vmatpush1.bf16.msra.mxu0 %v10338_v58  ;;  %7872 = vmatprep.subr.bf16.mxu1 %v10345_v37  ;;  %v10376_v58 = vcombine.low %v2027_v5, %v2031_v23  ;;  %v10378_v37 = vcombine.low %v2028_v18, %v2032_v21  ;;  %v10387_v3 = vcombine.high %v2036_v36, %v2040_v26 }
 0x2fe   :  { %8200 = vmatprep.subr.bf16.mxu0 %v10347_v31  ;;  %v10385_v31 = vcombine.high %v2035_v34, %v2039_v35  ;;  %v10409_v23 = vcombine.high %v2059_v11, %v2063_v62 }
 0x300   :  { %7873 = vmatpush1.bf16.msra.mxu1 %v10344_v63  ;;  %v2048_v63 = vld [vmem:[#allocation10 + $0xfa8] sm:$0xff] }
 0x301   :  { %8201 = vmatpush1.bf16.msra.mxu0 %v10346_v4  ;;  %7874 = vmatprep.subr.bf16.mxu1 %v10353_v43  ;;  %v10384_v4 = vcombine.low %v2035_v34, %v2039_v35  ;;  %v10386_v43 = vcombine.low %v2036_v36, %v2040_v26  ;;  %v10395_v45 = vcombine.high %v2044_v55, %v2048_v63  ;;  %v2072_v34 = vld [vmem:[#allocation10 + $0x1068] sm:$0xff]  ;;  %v2075_v36 = vld [vmem:[#allocation10 + $0x1080] sm:$0xff] }
 0x302   :  { %8202 = vmatprep.subr.bf16.mxu0 %v10355_v44  ;;  %v10393_v44 = vcombine.high %v2043_v53, %v2047_v54  ;;  %v2079_v26 = vld [vmem:[#allocation10 + $0x10a0] sm:$0xff] }
 0x304   :  { %7875 = vmatpush1.bf16.msra.mxu1 %v10352_v48  ;;  %v2052_v48 = vld [vmem:[#allocation10 + $0xfc8] sm:$0xff] }
 0x305   :  { %8203 = vmatpush1.bf16.msra.mxu0 %v10354_v49  ;;  %7876 = vmatprep.subr.bf16.mxu1 %v10361_v50  ;;  %v2056_v49 = vld [vmem:[#allocation10 + $0xfe8] sm:$0xff]  ;;  %v10392_v50 = vcombine.low %v2043_v53, %v2047_v54 }
 0x306   :  { %8204 = vmatprep.subr.bf16.mxu0 %v10363_v40  ;;  %v10394_v40 = vcombine.low %v2044_v55, %v2048_v63  ;;  %v10403_v41 = vcombine.high %v2052_v48, %v2056_v49  ;;  %v10402_v5 = vcombine.low %v2052_v48, %v2056_v49  ;;  %v10425_v55 = vcombine.high %v2075_v36, %v2079_v26  ;;  %v2091_v49 = vld [vmem:[#allocation10 + $0x1100] sm:$0xff] }
 0x308   :  { %7877 = vmatpush1.bf16.msra.mxu1 %v10360_v13  ;;  %v1508_v13 = vadd.f32 %v1458_v47, %v11902_v29  ;;  %v11953_v29 = vpack.c.bf16 %v1521_v27, %v1521_v27  ;;  %v2104_v27 = vld [vmem:[#allocation10 + $0x1168] sm:$0xff] }
 0x309   :  { %8205 = vmatpush1.bf16.msra.mxu0 %v10362_v6  ;;  %7878 = vmatprep.subr.bf16.mxu1 %v10369_v19  ;;  %v2060_v6 = vld [vmem:[#allocation10 + $0x1008] sm:$0xff] }
 0x30a   :  { %8206 = vmatprep.subr.bf16.mxu0 %v10371_v59  ;;  %v2064_v19 = vld [vmem:[#allocation10 + $0x1028] sm:$0xff]  ;;  %v10400_v59 = vcombine.low %v2051_v12, %v2055_v46  ;;  %v1524_v21 = vmax.f32 %v1508_v13, 0.0  ;;  %v10424_v12 = vcombine.low %v2075_v36, %v2079_v26  ;;  %v2115_v26 = vld [vmem:[#allocation10 + $0x11c0] sm:$0xff] }
 0x30b   :  { %v10411_v18 = vcombine.high %v2060_v6, %v2064_v19  ;;  %v10410_v35 = vcombine.low %v2060_v6, %v2064_v19  ;;  %v2099_v6 = vld [vmem:[#allocation10 + $0x1140] sm:$0xff] }
 0x30c   :  { %7879 = vmatpush1.bf16.msra.mxu1 %v10368_v25  ;;  %v2067_v25 = vld [vmem:[#allocation10 + $0x1040] sm:$0xff] }
 0x30d   :  { %8207 = vmatpush1.bf16.msra.mxu0 %v10370_v61  ;;  %7880 = vmatprep.subr.bf16.mxu1 %v10377_v51  ;;  %v2071_v61 = vld [vmem:[#allocation10 + $0x1060] sm:$0xff]  ;;  %v10408_v51 = vcombine.low %v2059_v11, %v2063_v62 }
 0x30e   :  { %8208 = vmatprep.subr.bf16.mxu0 %v10379_v33  ;;  %v2068_v33 = vld [vmem:[#allocation10 + $0x1048] sm:$0xff]  ;;  %v10417_v39 = vcombine.high %v2067_v25, %v2071_v61  ;;  %v10416_v53 = vcombine.low %v2067_v25, %v2071_v61  ;;  %v2103_v19 = vld [vmem:[#allocation10 + $0x1160] sm:$0xff] }
 0x30f   :  { %v10418_v54 = vcombine.low %v2068_v33, %v2072_v34  ;;  %v2107_v25 = vld [vmem:[#allocation10 + $0x1180] sm:$0xff] }
 0x310   :  { %7881 = vmatpush1.bf16.msra.mxu1 %v10376_v58  ;;  %v11955_v58 = vpack.c.bf16 %v1524_v21, %v1524_v21  ;;  %v2111_v61 = vld [vmem:[#allocation10 + $0x11a0] sm:$0xff] }
 0x311   :  { %8209 = vmatpush1.bf16.msra.mxu0 %v10378_v37  ;;  %7882 = vmatprep.subr.bf16.mxu1 %v10385_v31  ;;  %v10419_v37 = vcombine.high %v2068_v33, %v2072_v34  ;;  %v2076_v31 = vld [vmem:[#allocation10 + $0x1088] sm:$0xff]  ;;  %v10448_v34 = vcombine.low %v2099_v6, %v2103_v19 }
 0x312   :  { %8210 = vmatprep.subr.bf16.mxu0 %v10387_v3  ;;  %v2080_v3 = vld [vmem:[#allocation10 + $0x10a8] sm:$0xff] }
 0x313   :  { %v10427_v63 = vcombine.high %v2076_v31, %v2080_v3  ;;  %v10426_v46 = vcombine.low %v2076_v31, %v2080_v3  ;;  %v2112_v33 = vld [vmem:[#allocation10 + $0x11a8] sm:$0xff] }
 0x314   :  { %7883 = vmatpush1.bf16.msra.mxu1 %v10384_v4  ;;  %v2083_v4 = vld [vmem:[#allocation10 + $0x10c0] sm:$0xff]  ;;  %v2116_v31 = vld [vmem:[#allocation10 + $0x11c8] sm:$0xff] }
 0x315   :  { %8211 = vmatpush1.bf16.msra.mxu0 %v10386_v43  ;;  %7884 = vmatprep.subr.bf16.mxu1 %v10393_v44  ;;  %v2087_v43 = vld [vmem:[#allocation10 + $0x10e0] sm:$0xff]  ;;  %v2084_v44 = vld [vmem:[#allocation10 + $0x10c8] sm:$0xff] }
 0x316   :  { %8212 = vmatprep.subr.bf16.mxu0 %v10395_v45  ;;  %v2088_v45 = vld [vmem:[#allocation10 + $0x10e8] sm:$0xff]  ;;  %v10433_v47 = vcombine.high %v2083_v4, %v2087_v43 }
 0x317   :  { %v10435_v48 = vcombine.high %v2084_v44, %v2088_v45  ;;  %v10434_v11 = vcombine.low %v2084_v44, %v2088_v45  ;;  %v2120_v3 = vld [vmem:[#allocation10 + $0x11e8] sm:$0xff] }
 0x318   :  { %7885 = vmatpush1.bf16.msra.mxu1 %v10392_v50  ;;  %v2095_v50 = vld [vmem:[#allocation10 + $0x1120] sm:$0xff]  ;;  %v2124_v44 = vld [vmem:[#allocation10 + $0x1208] sm:$0xff] }
 0x319   :  { %8213 = vmatpush1.bf16.msra.mxu0 %v10394_v40  ;;  %7886 = vmatprep.subr.bf16.mxu1 %v10401_v57  ;;  %v2092_v40 = vld [vmem:[#allocation10 + $0x1108] sm:$0xff]  ;;  %v10441_v62 = vcombine.high %v2091_v49, %v2095_v50 }
 0x31a   :  { %8214 = vmatprep.subr.bf16.mxu0 %v10403_v41  ;;  %v2096_v57 = vld [vmem:[#allocation10 + $0x1128] sm:$0xff]  ;;  %v10432_v41 = vcombine.low %v2083_v4, %v2087_v43  ;;  %v2123_v4 = vld [vmem:[#allocation10 + $0x1200] sm:$0xff] }
 0x31b   :  { %v10443_v13 = vcombine.high %v2092_v40, %v2096_v57  ;;  %v2127_v43 = vld [vmem:[#allocation10 + $0x1220] sm:$0xff]  ;;  %v2128_v45 = vld [vmem:[#allocation10 + $0x1228] sm:$0xff] }
 0x31c   :  { %7887 = vmatpush1.bf16.msra.mxu1 %v10400_v59  ;;  %v2100_v59 = vld [vmem:[#allocation10 + $0x1148] sm:$0xff] }
 0x31d   :  { %8215 = vmatpush1.bf16.msra.mxu0 %v10402_v5  ;;  %7897 = vmatprep.subr.bf16.mxu1 %v10409_v23  ;;  %v10440_v5 = vcombine.low %v2091_v49, %v2095_v50  ;;  %v10442_v23 = vcombine.low %v2092_v40, %v2096_v57  ;;  %v10451_v21 = vcombine.high %v2100_v59, %v2104_v27  ;;  %v2131_v49 = vld [vmem:[#allocation10 + $0x1240] sm:$0xff]  ;;  %v2132_v40 = vld [vmem:[#allocation10 + $0x1248] sm:$0xff] }
 0x31e   :  { %8225 = vmatprep.subr.bf16.mxu0 %v10411_v18  ;;  %v10449_v18 = vcombine.high %v2099_v6, %v2103_v19  ;;  %v2135_v50 = vld [vmem:[#allocation10 + $0x1260] sm:$0xff]  ;;  %v2136_v57 = vld [vmem:[#allocation10 + $0x1268] sm:$0xff] }
 0x31f   :  { %7889 = vmatmul.mubr.bf16.vlgmr.msra.gmra.mrb[16].mxu1 %v11953_v29  ;;  %v2139_v6 = vld [vmem:[#allocation10 + $0x1280] sm:$0xff] }
 0x320   :  { %8217 = vmatmul.mubr.bf16.vlgmr.msra.gmra.mrb[20].mxu0 %v11953_v29  ;;  %7898 = vmatpush1.bf16.msra.mxu1 %v10408_v51  ;;  %v2108_v51 = vld [vmem:[#allocation10 + $0x1188] sm:$0xff]  ;;  %v2143_v19 = vld [vmem:[#allocation10 + $0x12a0] sm:$0xff] }
 0x321   :  { %7929 = vmatprep.mubr.bf16.mxu1 %v11955_v58  ;;  %8226 = vmatpush1.bf16.msra.mxu0 %v10410_v35  ;;  %v10450_v35 = vcombine.low %v2100_v59, %v2104_v27  ;;  %v10459_v36 = vcombine.high %v2108_v51, %v2112_v33  ;;  %v2140_v59 = vld [vmem:[#allocation10 + $0x1288] sm:$0xff] }
 0x322   :  { %8257 = vmatprep.mubr.bf16.mxu0 %v11955_v58  ;;  %7899 = vmatprep.subr.bf16.mxu1 %v10417_v39  ;;  %v10457_v39 = vcombine.high %v2107_v25, %v2111_v61  ;;  %v2144_v27 = vld [vmem:[#allocation10 + $0x12a8] sm:$0xff] }
 0x323   :  { %8227 = vmatprep.subr.bf16.mxu0 %v10419_v37  ;;  %v2119_v37 = vld [vmem:[#allocation10 + $0x11e0] sm:$0xff] }
 0x324   :  { %7900 = vmatpush1.bf16.msra.mxu1 %v10416_v53  ;;  %v10456_v53 = vcombine.low %v2107_v25, %v2111_v61  ;;  %v2147_v25 = vld [vmem:[#allocation10 + $0x12c0] sm:$0xff] }
 0x325   :  { %8228 = vmatpush1.bf16.msra.mxu0 %v10418_v54  ;;  %7901 = vmatprep.subr.bf16.mxu1 %v10425_v55  ;;  %v10458_v54 = vcombine.low %v2108_v51, %v2112_v33  ;;  %v10465_v55 = vcombine.high %v2115_v26, %v2119_v37  ;;  %v2151_v61 = vld [vmem:[#allocation10 + $0x12e0] sm:$0xff]  ;;  %v2148_v51 = vld [vmem:[#allocation10 + $0x12c8] sm:$0xff] }
 0x326   :  { %8229 = vmatprep.subr.bf16.mxu0 %v10427_v63  ;;  %v10467_v63 = vcombine.high %v2116_v31, %v2120_v3  ;;  %v2152_v33 = vld [vmem:[#allocation10 + $0x12e8] sm:$0xff] }
 0x328   :  { %7902 = vmatpush1.bf16.msra.mxu1 %v10424_v12  ;;  %v10464_v12 = vcombine.low %v2115_v26, %v2119_v37  ;;  %v2155_v26 = vld [vmem:[#allocation10 + $0x1300] sm:$0xff] }
 0x329   :  { %8230 = vmatpush1.bf16.msra.mxu0 %v10426_v46  ;;  %7903 = vmatprep.subr.bf16.mxu1 %v10433_v47  ;;  %v10466_v46 = vcombine.low %v2116_v31, %v2120_v3  ;;  %v10473_v47 = vcombine.high %v2123_v4, %v2127_v43  ;;  %v2159_v37 = vld [vmem:[#allocation10 + $0x1320] sm:$0xff]  ;;  %v2156_v31 = vld [vmem:[#allocation10 + $0x1308] sm:$0xff] }
 0x32a   :  { %8231 = vmatprep.subr.bf16.mxu0 %v10435_v48  ;;  %v10475_v48 = vcombine.high %v2124_v44, %v2128_v45  ;;  %v2160_v3 = vld [vmem:[#allocation10 + $0x1328] sm:$0xff] }
 0x32c   :  { %7904 = vmatpush1.bf16.msra.mxu1 %v10432_v41  ;;  %v10472_v41 = vcombine.low %v2123_v4, %v2127_v43  ;;  %v2163_v4 = vld [vmem:[#allocation10 + $0x1340] sm:$0xff] }
 0x32d   :  { %8232 = vmatpush1.bf16.msra.mxu0 %v10434_v11  ;;  %7905 = vmatprep.subr.bf16.mxu1 %v10441_v62  ;;  %v10474_v11 = vcombine.low %v2124_v44, %v2128_v45  ;;  %v10481_v62 = vcombine.high %v2131_v49, %v2135_v50  ;;  %v2167_v43 = vld [vmem:[#allocation10 + $0x1360] sm:$0xff]  ;;  %v2164_v44 = vld [vmem:[#allocation10 + $0x1348] sm:$0xff] }
 0x32e   :  { %8233 = vmatprep.subr.bf16.mxu0 %v10443_v13  ;;  %v10483_v13 = vcombine.high %v2132_v40, %v2136_v57  ;;  %v2168_v45 = vld [vmem:[#allocation10 + $0x1368] sm:$0xff] }
 0x330   :  { %7906 = vmatpush1.bf16.msra.mxu1 %v10440_v5  ;;  %v10480_v5 = vcombine.low %v2131_v49, %v2135_v50  ;;  %v2171_v49 = vld [vmem:[#allocation10 + $0x1380] sm:$0xff] }
 0x331   :  { %8234 = vmatpush1.bf16.msra.mxu0 %v10442_v23  ;;  %7907 = vmatprep.subr.bf16.mxu1 %v10449_v18  ;;  %v10482_v23 = vcombine.low %v2132_v40, %v2136_v57  ;;  %v10489_v18 = vcombine.high %v2139_v6, %v2143_v19  ;;  %v2175_v50 = vld [vmem:[#allocation10 + $0x13a0] sm:$0xff]  ;;  %v2172_v40 = vld [vmem:[#allocation10 + $0x1388] sm:$0xff] }
 0x332   :  { %8235 = vmatprep.subr.bf16.mxu0 %v10451_v21  ;;  %v10491_v21 = vcombine.high %v2140_v59, %v2144_v27  ;;  %v2176_v57 = vld [vmem:[#allocation10 + $0x13a8] sm:$0xff] }
 0x334   :  { %7908 = vmatpush1.bf16.msra.mxu1 %v10448_v34  ;;  %v10488_v34 = vcombine.low %v2139_v6, %v2143_v19  ;;  %v10521_v6 = vcombine.high %v2171_v49, %v2175_v50  ;;  %v10523_v19 = vcombine.high %v2172_v40, %v2176_v57 }
 0x335   :  { %8236 = vmatpush1.bf16.msra.mxu0 %v10450_v35  ;;  %7909 = vmatprep.subr.bf16.mxu1 %v10457_v39  ;;  %v10490_v35 = vcombine.low %v2140_v59, %v2144_v27  ;;  %v10497_v39 = vcombine.high %v2147_v25, %v2151_v61  ;;  %v2179_v59 = vld [vmem:[#allocation10 + $0x13c0] sm:$0xff] }
 0x336   :  { %8237 = vmatprep.subr.bf16.mxu0 %v10459_v36  ;;  %v10499_v36 = vcombine.high %v2148_v51, %v2152_v33  ;;  %v2183_v27 = vld [vmem:[#allocation10 + $0x13e0] sm:$0xff] }
 0x338   :  { %7910 = vmatpush1.bf16.msra.mxu1 %v10456_v53  ;;  %v10496_v53 = vcombine.low %v2147_v25, %v2151_v61  ;;  %v10522_v25 = vcombine.low %v2172_v40, %v2176_v57  ;;  %v10529_v61 = vcombine.high %v2179_v59, %v2183_v27 }
 0x339   :  { %8238 = vmatpush1.bf16.msra.mxu0 %v10458_v54  ;;  %7911 = vmatprep.subr.bf16.mxu1 %v10465_v55  ;;  %v10498_v54 = vcombine.low %v2148_v51, %v2152_v33  ;;  %v10505_v55 = vcombine.high %v2155_v26, %v2159_v37  ;;  %v2187_v33 = vld [vmem:[#allocation10 + $0x1400] sm:$0xff] }
 0x33a   :  { %8239 = vmatprep.subr.bf16.mxu0 %v10467_v63  ;;  %v10507_v63 = vcombine.high %v2156_v31, %v2160_v3 }
 0x33c   :  { %7912 = vmatpush1.bf16.msra.mxu1 %v10464_v12  ;;  %v10504_v12 = vcombine.low %v2155_v26, %v2159_v37 }
 0x33d   :  { %8240 = vmatpush1.bf16.msra.mxu0 %v10466_v46  ;;  %7913 = vmatprep.subr.bf16.mxu1 %v10473_v47  ;;  %v10506_v46 = vcombine.low %v2156_v31, %v2160_v3  ;;  %v10513_v47 = vcombine.high %v2163_v4, %v2167_v43 }
 0x33e   :  { %8241 = vmatprep.subr.bf16.mxu0 %v10475_v48  ;;  %v10515_v48 = vcombine.high %v2164_v44, %v2168_v45 }
 0x340   :  { %7914 = vmatpush1.bf16.msra.mxu1 %v10472_v41  ;;  %v10512_v41 = vcombine.low %v2163_v4, %v2167_v43  ;;  %v2200_v4 = vld [vmem:[#allocation10 + $0x1468] sm:$0xff] }
 0x341   :  { %8242 = vmatpush1.bf16.msra.mxu0 %v10474_v11  ;;  %7915 = vmatprep.subr.bf16.mxu1 %v10481_v62  ;;  %v11283_v11 = vld [vmem:[#allocation9 + $0x8] sm:$0xff] }
 0x342   :  { %8243 = vmatprep.subr.bf16.mxu0 %v10483_v13  ;;  %v1454_v62 = vrot.slane %v11283_v11, %v11822_v22  ;;  %v10514_v13 = vcombine.low %v2164_v44, %v2168_v45  ;;  %v2211_v11 = vld [vmem:[#allocation10 + $0x14c0] sm:$0xff] }
 0x344   :  { %7916 = vmatpush1.bf16.msra.mxu1 %v10480_v5  ;;  %v2180_v5 = vld [vmem:[#allocation10 + $0x13c8] sm:$0xff] }
 0x345   :  { %8244 = vmatpush1.bf16.msra.mxu0 %v10482_v23  ;;  %7917 = vmatprep.subr.bf16.mxu1 %v10489_v18  ;;  %v2184_v23 = vld [vmem:[#allocation10 + $0x13e8] sm:$0xff]  ;;  %v10520_v18 = vcombine.low %v2171_v49, %v2175_v50 }
 0x346   :  { %8245 = vmatprep.subr.bf16.mxu0 %v10491_v21  ;;  %v1507_v21 = vadd.f32 %v1454_v62, %v11899_v2  ;;  %v10531_v51 = vcombine.high %v2180_v5, %v2184_v23  ;;  %v10530_v37 = vcombine.low %v2180_v5, %v2184_v23  ;;  %v1526_v2 = vmax.f32 %v11907_v52, 0.0  ;;  %v2208_v49 = vld [vmem:[#allocation10 + $0x14a8] sm:$0xff]  ;;  %v2215_v62 = vld [vmem:[#allocation10 + $0x14e0] sm:$0xff] }
 0x347   :  { %v2219_v23 = vld [vmem:[#allocation10 + $0x1500] sm:$0xff] }
 0x348   :  { %7918 = vmatpush1.bf16.msra.mxu1 %v10488_v34  ;;  %v2191_v34 = vld [vmem:[#allocation10 + $0x1420] sm:$0xff]  ;;  %v1523_v26 = vmax.f32 %v1507_v21, 0.0  ;;  %v2220_v21 = vld [vmem:[#allocation10 + $0x1508] sm:$0xff] }
 0x349   :  { %8246 = vmatpush1.bf16.msra.mxu0 %v10490_v35  ;;  %7919 = vmatprep.subr.bf16.mxu1 %v10497_v39  ;;  %v2188_v35 = vld [vmem:[#allocation10 + $0x1408] sm:$0xff]  ;;  %v10537_v31 = vcombine.high %v2187_v33, %v2191_v34 }
 0x34a   :  { %8247 = vmatprep.subr.bf16.mxu0 %v10499_v36  ;;  %v2192_v39 = vld [vmem:[#allocation10 + $0x1428] sm:$0xff]  ;;  %v10528_v36 = vcombine.low %v2179_v59, %v2183_v27  ;;  %v11964_v43 = vpack.c.bf16 %v1523_v26, %v1523_v26  ;;  %v10561_v27 = vcombine.high %v2211_v11, %v2215_v62 }
 0x34b   :  { %v10539_v3 = vcombine.high %v2188_v35, %v2192_v39  ;;  %v10538_v44 = vcombine.low %v2188_v35, %v2192_v39  ;;  %v2227_v35 = vld [vmem:[#allocation10 + $0x1540] sm:$0xff]  ;;  %v2232_v26 = vld [vmem:[#allocation10 + $0x1568] sm:$0xff] }
 0x34c   :  { %7920 = vmatpush1.bf16.msra.mxu1 %v10496_v53  ;;  %v2195_v53 = vld [vmem:[#allocation10 + $0x1440] sm:$0xff] }
 0x34d   :  { %8248 = vmatpush1.bf16.msra.mxu0 %v10498_v54  ;;  %7921 = vmatprep.subr.bf16.mxu1 %v10505_v55  ;;  %v2199_v54 = vld [vmem:[#allocation10 + $0x1460] sm:$0xff]  ;;  %v10536_v55 = vcombine.low %v2187_v33, %v2191_v34 }
 0x34e   :  { %8249 = vmatprep.subr.bf16.mxu0 %v10507_v63  ;;  %v2196_v63 = vld [vmem:[#allocation10 + $0x1448] sm:$0xff]  ;;  %v10545_v45 = vcombine.high %v2195_v53, %v2199_v54  ;;  %v10544_v50 = vcombine.low %v2195_v53, %v2199_v54  ;;  %v2231_v39 = vld [vmem:[#allocation10 + $0x1560] sm:$0xff] }
 0x34f   :  { %v10547_v52 = vcombine.high %v2196_v63, %v2200_v4  ;;  %v10546_v40 = vcombine.low %v2196_v63, %v2200_v4  ;;  %v2235_v53 = vld [vmem:[#allocation10 + $0x1580] sm:$0xff]  ;;  %v2240_v63 = vld [vmem:[#allocation10 + $0x15a8] sm:$0xff]  ;;  %v10576_v4 = vcombine.low %v2227_v35, %v2231_v39 }
 0x350   :  { %7922 = vmatpush1.bf16.msra.mxu1 %v10504_v12  ;;  %v2203_v12 = vld [vmem:[#allocation10 + $0x1480] sm:$0xff] }
 0x351   :  { %8250 = vmatpush1.bf16.msra.mxu0 %v10506_v46  ;;  %7923 = vmatprep.subr.bf16.mxu1 %v10513_v47  ;;  %v2207_v46 = vld [vmem:[#allocation10 + $0x14a0] sm:$0xff]  ;;  %v11966_v47 = vpack.c.bf16 %v1526_v2, %v1526_v2 }
 0x352   :  { %8251 = vmatprep.subr.bf16.mxu0 %v10515_v48  ;;  %v2204_v48 = vld [vmem:[#allocation10 + $0x1488] sm:$0xff]  ;;  %v10553_v57 = vcombine.high %v2203_v12, %v2207_v46  ;;  %v2239_v54 = vld [vmem:[#allocation10 + $0x15a0] sm:$0xff] }
 0x353   :  { %v10554_v59 = vcombine.low %v2204_v48, %v2208_v49 }
 0x354   :  { %7924 = vmatpush1.bf16.msra.mxu1 %v10512_v41  ;;  %v10555_v41 = vcombine.high %v2204_v48, %v2208_v49  ;;  %v2244_v48 = vld [vmem:[#allocation10 + $0x15c8] sm:$0xff] }
 0x355   :  { %8252 = vmatpush1.bf16.msra.mxu0 %v10514_v13  ;;  %7925 = vmatprep.subr.bf16.mxu1 %v10521_v6  ;;  %v2212_v13 = vld [vmem:[#allocation10 + $0x14c8] sm:$0xff] }
 0x356   :  { %8253 = vmatprep.subr.bf16.mxu0 %v10523_v19  ;;  %v2216_v6 = vld [vmem:[#allocation10 + $0x14e8] sm:$0xff]  ;;  %v10552_v19 = vcombine.low %v2203_v12, %v2207_v46  ;;  %v2243_v46 = vld [vmem:[#allocation10 + $0x15c0] sm:$0xff] }
 0x357   :  { %v10563_v5 = vcombine.high %v2212_v13, %v2216_v6  ;;  %v2248_v49 = vld [vmem:[#allocation10 + $0x15e8] sm:$0xff] }
 0x358   :  { %7926 = vmatpush1.bf16.msra.mxu1 %v10520_v18  ;;  %v2223_v18 = vld [vmem:[#allocation10 + $0x1520] sm:$0xff] }
 0x359   :  { %8254 = vmatpush1.bf16.msra.mxu0 %v10522_v25  ;;  %7927 = vmatprep.subr.bf16.mxu1 %v10529_v61  ;;  %v2224_v25 = vld [vmem:[#allocation10 + $0x1528] sm:$0xff]  ;;  %v10560_v61 = vcombine.low %v2211_v11, %v2215_v62  ;;  %v10569_v33 = vcombine.high %v2219_v23, %v2223_v18  ;;  %v2251_v11 = vld [vmem:[#allocation10 + $0x1600] sm:$0xff] }
 0x35a   :  { %8255 = vmatprep.subr.bf16.mxu0 %v10531_v51  ;;  %v10562_v51 = vcombine.low %v2212_v13, %v2216_v6  ;;  %v10571_v34 = vcombine.high %v2220_v21, %v2224_v25  ;;  %v2255_v62 = vld [vmem:[#allocation10 + $0x1620] sm:$0xff]  ;;  %v2252_v13 = vld [vmem:[#allocation10 + $0x1608] sm:$0xff] }
 0x35b   :  { %v2256_v6 = vld [vmem:[#allocation10 + $0x1628] sm:$0xff] }
 0x35c   :  { %7928 = vmatpush1.bf16.msra.mxu1 %v10528_v36  ;;  %v2228_v36 = vld [vmem:[#allocation10 + $0x1548] sm:$0xff] }
 0x35d   :  { %8256 = vmatpush1.bf16.msra.mxu0 %v10530_v37  ;;  %7938 = vmatprep.subr.bf16.mxu1 %v10537_v31  ;;  %v10568_v37 = vcombine.low %v2219_v23, %v2223_v18  ;;  %v10570_v31 = vcombine.low %v2220_v21, %v2224_v25  ;;  %v10579_v2 = vcombine.high %v2228_v36, %v2232_v26  ;;  %v2259_v23 = vld [vmem:[#allocation10 + $0x1640] sm:$0xff]  ;;  %v2260_v21 = vld [vmem:[#allocation10 + $0x1648] sm:$0xff] }
 0x35e   :  { %8266 = vmatprep.subr.bf16.mxu0 %v10539_v3  ;;  %v10577_v3 = vcombine.high %v2227_v35, %v2231_v39  ;;  %v2263_v18 = vld [vmem:[#allocation10 + $0x1660] sm:$0xff]  ;;  %v2264_v25 = vld [vmem:[#allocation10 + $0x1668] sm:$0xff] }
 0x35f   :  { %7930 = vmatmul.mubr.bf16.vlgmr.msra.gmra.mrb[16].mxu1 %v11964_v43  ;;  %v2267_v35 = vld [vmem:[#allocation10 + $0x1680] sm:$0xff] }
 0x360   :  { %8258 = vmatmul.mubr.bf16.vlgmr.msra.gmra.mrb[20].mxu0 %v11964_v43  ;;  %7939 = vmatpush1.bf16.msra.mxu1 %v10536_v55  ;;  %v2236_v55 = vld [vmem:[#allocation10 + $0x1588] sm:$0xff]  ;;  %v2271_v39 = vld [vmem:[#allocation10 + $0x16a0] sm:$0xff] }
 0x361   :  { %7970 = vmatprep.mubr.bf16.mxu1 %v11966_v47  ;;  %8267 = vmatpush1.bf16.msra.mxu0 %v10538_v44  ;;  %v10578_v44 = vcombine.low %v2228_v36, %v2232_v26  ;;  %v10587_v12 = vcombine.high %v2236_v55, %v2240_v63  ;;  %v2268_v36 = vld [vmem:[#allocation10 + $0x1688] sm:$0xff] }
 0x362   :  { %8298 = vmatprep.mubr.bf16.mxu0 %v11966_v47  ;;  %7940 = vmatprep.subr.bf16.mxu1 %v10545_v45  ;;  %v10585_v45 = vcombine.high %v2235_v53, %v2239_v54  ;;  %v2272_v26 = vld [vmem:[#allocation10 + $0x16a8] sm:$0xff] }
 0x363   :  { %8268 = vmatprep.subr.bf16.mxu0 %v10547_v52  ;;  %v2247_v52 = vld [vmem:[#allocation10 + $0x15e0] sm:$0xff] }
 0x364   :  { %7941 = vmatpush1.bf16.msra.mxu1 %v10544_v50  ;;  %v10584_v50 = vcombine.low %v2235_v53, %v2239_v54  ;;  %v2275_v53 = vld [vmem:[#allocation10 + $0x16c0] sm:$0xff] }
 0x365   :  { %8269 = vmatpush1.bf16.msra.mxu0 %v10546_v40  ;;  %7942 = vmatprep.subr.bf16.mxu1 %v10553_v57  ;;  %v10586_v40 = vcombine.low %v2236_v55, %v2240_v63  ;;  %v10593_v57 = vcombine.high %v2243_v46, %v2247_v52  ;;  %v2279_v54 = vld [vmem:[#allocation10 + $0x16e0] sm:$0xff]  ;;  %v2276_v55 = vld [vmem:[#allocation10 + $0x16c8] sm:$0xff] }
 0x366   :  { %8270 = vmatprep.subr.bf16.mxu0 %v10555_v41  ;;  %v10595_v41 = vcombine.high %v2244_v48, %v2248_v49  ;;  %v2280_v63 = vld [vmem:[#allocation10 + $0x16e8] sm:$0xff] }
 0x368   :  { %7943 = vmatpush1.bf16.msra.mxu1 %v10552_v19  ;;  %v10592_v19 = vcombine.low %v2243_v46, %v2247_v52  ;;  %v2283_v46 = vld [vmem:[#allocation10 + $0x1700] sm:$0xff] }
 0x369   :  { %8271 = vmatpush1.bf16.msra.mxu0 %v10554_v59  ;;  %7944 = vmatprep.subr.bf16.mxu1 %v10561_v27  ;;  %v10594_v59 = vcombine.low %v2244_v48, %v2248_v49  ;;  %v10601_v27 = vcombine.high %v2251_v11, %v2255_v62  ;;  %v2287_v52 = vld [vmem:[#allocation10 + $0x1720] sm:$0xff]  ;;  %v2284_v48 = vld [vmem:[#allocation10 + $0x1708] sm:$0xff] }
 0x36a   :  { %8272 = vmatprep.subr.bf16.mxu0 %v10563_v5  ;;  %v10603_v5 = vcombine.high %v2252_v13, %v2256_v6  ;;  %v2288_v49 = vld [vmem:[#allocation10 + $0x1728] sm:$0xff] }
 0x36c   :  { %7945 = vmatpush1.bf16.msra.mxu1 %v10560_v61  ;;  %v10600_v61 = vcombine.low %v2251_v11, %v2255_v62  ;;  %v2291_v11 = vld [vmem:[#allocation10 + $0x1740] sm:$0xff] }
 0x36d   :  { %8273 = vmatpush1.bf16.msra.mxu0 %v10562_v51  ;;  %7946 = vmatprep.subr.bf16.mxu1 %v10569_v33  ;;  %v10602_v51 = vcombine.low %v2252_v13, %v2256_v6  ;;  %v10609_v33 = vcombine.high %v2259_v23, %v2263_v18  ;;  %v2295_v62 = vld [vmem:[#allocation10 + $0x1760] sm:$0xff]  ;;  %v2292_v13 = vld [vmem:[#allocation10 + $0x1748] sm:$0xff] }
 0x36e   :  { %8274 = vmatprep.subr.bf16.mxu0 %v10571_v34  ;;  %v10611_v34 = vcombine.high %v2260_v21, %v2264_v25  ;;  %v2296_v6 = vld [vmem:[#allocation10 + $0x1768] sm:$0xff] }
 0x370   :  { %7947 = vmatpush1.bf16.msra.mxu1 %v10568_v37  ;;  %v10608_v37 = vcombine.low %v2259_v23, %v2263_v18  ;;  %v2299_v23 = vld [vmem:[#allocation10 + $0x1780] sm:$0xff] }
 0x371   :  { %8275 = vmatpush1.bf16.msra.mxu0 %v10570_v31  ;;  %7948 = vmatprep.subr.bf16.mxu1 %v10577_v3  ;;  %v10610_v31 = vcombine.low %v2260_v21, %v2264_v25  ;;  %v10617_v3 = vcombine.high %v2267_v35, %v2271_v39  ;;  %v2303_v18 = vld [vmem:[#allocation10 + $0x17a0] sm:$0xff]  ;;  %v2300_v21 = vld [vmem:[#allocation10 + $0x1788] sm:$0xff] }
 0x372   :  { %8276 = vmatprep.subr.bf16.mxu0 %v10579_v2  ;;  %v10619_v2 = vcombine.high %v2268_v36, %v2272_v26  ;;  %v2304_v25 = vld [vmem:[#allocation10 + $0x17a8] sm:$0xff] }
 0x374   :  { %7949 = vmatpush1.bf16.msra.mxu1 %v10576_v4  ;;  %v10616_v4 = vcombine.low %v2267_v35, %v2271_v39  ;;  %v2307_v35 = vld [vmem:[#allocation10 + $0x17c0] sm:$0xff] }
 0x375   :  { %8277 = vmatpush1.bf16.msra.mxu0 %v10578_v44  ;;  %7950 = vmatprep.subr.bf16.mxu1 %v10585_v45  ;;  %v10618_v44 = vcombine.low %v2268_v36, %v2272_v26  ;;  %v10625_v45 = vcombine.high %v2275_v53, %v2279_v54  ;;  %v2311_v39 = vld [vmem:[#allocation10 + $0x17e0] sm:$0xff]  ;;  %v2308_v36 = vld [vmem:[#allocation10 + $0x17c8] sm:$0xff] }
 0x376   :  { %8278 = vmatprep.subr.bf16.mxu0 %v10587_v12  ;;  %v10627_v12 = vcombine.high %v2276_v55, %v2280_v63  ;;  %v2312_v26 = vld [vmem:[#allocation10 + $0x17e8] sm:$0xff] }
 0x378   :  { %7951 = vmatpush1.bf16.msra.mxu1 %v10584_v50  ;;  %v10624_v50 = vcombine.low %v2275_v53, %v2279_v54  ;;  %v2315_v53 = vld [vmem:[#allocation10 + $0x1800] sm:$0xff] }
 0x379   :  { %8279 = vmatpush1.bf16.msra.mxu0 %v10586_v40  ;;  %7952 = vmatprep.subr.bf16.mxu1 %v10593_v57  ;;  %v10626_v40 = vcombine.low %v2276_v55, %v2280_v63  ;;  %v10633_v57 = vcombine.high %v2283_v46, %v2287_v52  ;;  %v2319_v54 = vld [vmem:[#allocation10 + $0x1820] sm:$0xff]  ;;  %v2316_v55 = vld [vmem:[#allocation10 + $0x1808] sm:$0xff] }
 0x37a   :  { %8280 = vmatprep.subr.bf16.mxu0 %v10595_v41  ;;  %v10635_v41 = vcombine.high %v2284_v48, %v2288_v49  ;;  %v2320_v63 = vld [vmem:[#allocation10 + $0x1828] sm:$0xff] }
 0x37c   :  { %7953 = vmatpush1.bf16.msra.mxu1 %v10592_v19  ;;  %v10632_v19 = vcombine.low %v2283_v46, %v2287_v52  ;;  %v10667_v46 = vcombine.high %v2316_v55, %v2320_v63  ;;  %v1528_v52 = vmax.f32 %v11935_v0, 0.0 }
 0x37d   :  { %8281 = vmatpush1.bf16.msra.mxu0 %v10594_v59  ;;  %7954 = vmatprep.subr.bf16.mxu1 %v10601_v27  ;;  %v10634_v59 = vcombine.low %v2284_v48, %v2288_v49  ;;  %v10641_v27 = vcombine.high %v2291_v11, %v2295_v62  ;;  %v2323_v48 = vld [vmem:[#allocation10 + $0x1840] sm:$0xff] }
 0x37e   :  { %8282 = vmatprep.subr.bf16.mxu0 %v10603_v5  ;;  %v10643_v5 = vcombine.high %v2292_v13, %v2296_v6  ;;  %v2327_v49 = vld [vmem:[#allocation10 + $0x1860] sm:$0xff] }
 0x380   :  { %7955 = vmatpush1.bf16.msra.mxu1 %v10600_v61  ;;  %v10640_v61 = vcombine.low %v2291_v11, %v2295_v62  ;;  %v10666_v11 = vcombine.low %v2316_v55, %v2320_v63  ;;  %v2331_v62 = vld [vmem:[#allocation10 + $0x1880] sm:$0xff] }
 0x381   :  { %8283 = vmatpush1.bf16.msra.mxu0 %v10602_v51  ;;  %7956 = vmatprep.subr.bf16.mxu1 %v10609_v33  ;;  %v10642_v51 = vcombine.low %v2292_v13, %v2296_v6  ;;  %v10649_v33 = vcombine.high %v2299_v23, %v2303_v18  ;;  %v2335_v13 = vld [vmem:[#allocation10 + $0x18a0] sm:$0xff]  ;;  %v11976_v6 = vpack.c.bf16 %v1528_v52, %v1528_v52 }
 0x382   :  { %8284 = vmatprep.subr.bf16.mxu0 %v10611_v34  ;;  %v10651_v34 = vcombine.high %v2300_v21, %v2304_v25  ;;  %v2355_v55 = vld [vmem:[#allocation10 + $0x1940] sm:$0xff] }
 0x383   :  { %v2359_v63 = vld [vmem:[#allocation10 + $0x1960] sm:$0xff] }
 0x384   :  { %7957 = vmatpush1.bf16.msra.mxu1 %v10608_v37  ;;  %v10648_v37 = vcombine.low %v2299_v23, %v2303_v18  ;;  %v10681_v23 = vcombine.high %v2331_v62, %v2335_v13 }
 0x385   :  { %8285 = vmatpush1.bf16.msra.mxu0 %v10610_v31  ;;  %7958 = vmatprep.subr.bf16.mxu1 %v10617_v3  ;;  %v10650_v31 = vcombine.low %v2300_v21, %v2304_v25  ;;  %v10657_v3 = vcombine.high %v2307_v35, %v2311_v39  ;;  %v2339_v21 = vld [vmem:[#allocation10 + $0x18c0] sm:$0xff] }
 0x386   :  { %8286 = vmatprep.subr.bf16.mxu0 %v10619_v2  ;;  %v10659_v2 = vcombine.high %v2308_v36, %v2312_v26  ;;  %v2343_v25 = vld [vmem:[#allocation10 + $0x18e0] sm:$0xff] }
 0x388   :  { %7959 = vmatpush1.bf16.msra.mxu1 %v10616_v4  ;;  %v10656_v4 = vcombine.low %v2307_v35, %v2311_v39  ;;  %v10689_v35 = vcombine.high %v2339_v21, %v2343_v25 }
 0x389   :  { %8287 = vmatpush1.bf16.msra.mxu0 %v10618_v44  ;;  %7960 = vmatprep.subr.bf16.mxu1 %v10625_v45  ;;  %v1525_v44 = vmax.f32 %v11905_v56, 0.0  ;;  %v10658_v45 = vcombine.low %v2308_v36, %v2312_v26  ;;  %v10673_v56 = vcombine.high %v2323_v48, %v2327_v49  ;;  %v2347_v36 = vld [vmem:[#allocation10 + $0x1900] sm:$0xff] }
 0x38a   :  { %8288 = vmatprep.subr.bf16.mxu0 %v10627_v12  ;;  %v10665_v12 = vcombine.high %v2315_v53, %v2319_v54  ;;  %v2351_v26 = vld [vmem:[#allocation10 + $0x1920] sm:$0xff] }
 0x38c   :  { %7961 = vmatpush1.bf16.msra.mxu1 %v10624_v50  ;;  %v10664_v50 = vcombine.low %v2315_v53, %v2319_v54  ;;  %v10697_v53 = vcombine.high %v2347_v36, %v2351_v26 }
 0x38d   :  { %8289 = vmatpush1.bf16.msra.mxu0 %v10626_v40  ;;  %7962 = vmatprep.subr.bf16.mxu1 %v10633_v57  ;;  %v2324_v40 = vld [vmem:[#allocation10 + $0x1848] sm:$0xff] }
 0x38e   :  { %8290 = vmatprep.subr.bf16.mxu0 %v10635_v41  ;;  %v2328_v57 = vld [vmem:[#allocation10 + $0x1868] sm:$0xff]  ;;  %v11974_v41 = vpack.c.bf16 %v1525_v44, %v1525_v44 }
 0x38f   :  { %v10675_v0 = vcombine.high %v2324_v40, %v2328_v57  ;;  %v2360_v44 = vld [vmem:[#allocation10 + $0x1968] sm:$0xff] }
 0x390   :  { %7963 = vmatpush1.bf16.msra.mxu1 %v10632_v19  ;;  %v2332_v19 = vld [vmem:[#allocation10 + $0x1888] sm:$0xff] }
 0x391   :  { %8291 = vmatpush1.bf16.msra.mxu0 %v10634_v59  ;;  %7964 = vmatprep.subr.bf16.mxu1 %v10641_v27  ;;  %v2336_v59 = vld [vmem:[#allocation10 + $0x18a8] sm:$0xff]  ;;  %v10672_v27 = vcombine.low %v2323_v48, %v2327_v49  ;;  %v2363_v48 = vld [vmem:[#allocation10 + $0x1980] sm:$0xff] }
 0x392   :  { %8292 = vmatprep.subr.bf16.mxu0 %v10643_v5  ;;  %v10674_v5 = vcombine.low %v2324_v40, %v2328_v57  ;;  %v10683_v18 = vcombine.high %v2332_v19, %v2336_v59  ;;  %v2367_v49 = vld [vmem:[#allocation10 + $0x19a0] sm:$0xff]  ;;  %v2368_v40 = vld [vmem:[#allocation10 + $0x19a8] sm:$0xff]  ;;  %v10704_v57 = vcombine.low %v2355_v55, %v2359_v63 }
 0x394   :  { %7965 = vmatpush1.bf16.msra.mxu1 %v10640_v61  ;;  %v2340_v61 = vld [vmem:[#allocation10 + $0x18c8] sm:$0xff] }
 0x395   :  { %8293 = vmatpush1.bf16.msra.mxu0 %v10642_v51  ;;  %7966 = vmatprep.subr.bf16.mxu1 %v10649_v33  ;;  %v2344_v51 = vld [vmem:[#allocation10 + $0x18e8] sm:$0xff]  ;;  %v10680_v33 = vcombine.low %v2331_v62, %v2335_v13  ;;  %v2371_v13 = vld [vmem:[#allocation10 + $0x19c0] sm:$0xff] }
 0x396   :  { %8294 = vmatprep.subr.bf16.mxu0 %v10651_v34  ;;  %v10682_v34 = vcombine.low %v2332_v19, %v2336_v59  ;;  %v10691_v39 = vcombine.high %v2340_v61, %v2344_v51  ;;  %v2372_v19 = vld [vmem:[#allocation10 + $0x19c8] sm:$0xff] }
 0x397   :  { %v2376_v59 = vld [vmem:[#allocation10 + $0x19e8] sm:$0xff] }
 0x398   :  { %7967 = vmatpush1.bf16.msra.mxu1 %v10648_v37  ;;  %v2348_v37 = vld [vmem:[#allocation10 + $0x1908] sm:$0xff] }
 0x399   :  { %8295 = vmatpush1.bf16.msra.mxu0 %v10650_v31  ;;  %7968 = vmatprep.subr.bf16.mxu1 %v10657_v3  ;;  %v2352_v31 = vld [vmem:[#allocation10 + $0x1928] sm:$0xff]  ;;  %v10688_v3 = vcombine.low %v2339_v21, %v2343_v25  ;;  %v2379_v21 = vld [vmem:[#allocation10 + $0x1a00] sm:$0xff] }
 0x39a   :  { %8296 = vmatprep.subr.bf16.mxu0 %v10659_v2  ;;  %v10690_v2 = vcombine.low %v2340_v61, %v2344_v51  ;;  %v10699_v54 = vcombine.high %v2348_v37, %v2352_v31  ;;  %v2383_v25 = vld [vmem:[#allocation10 + $0x1a20] sm:$0xff]  ;;  %v2380_v61 = vld [vmem:[#allocation10 + $0x1a08] sm:$0xff] }
 0x39b   :  { %v2384_v51 = vld [vmem:[#allocation10 + $0x1a28] sm:$0xff] }
 0x39c   :  { %7969 = vmatpush1.bf16.msra.mxu1 %v10656_v4  ;;  %v2356_v4 = vld [vmem:[#allocation10 + $0x1948] sm:$0xff] }
 0x39d   :  { %8297 = vmatpush1.bf16.msra.mxu0 %v10658_v45  ;;  %7979 = vmatprep.subr.bf16.mxu1 %v10665_v12  ;;  %v10696_v45 = vcombine.low %v2347_v36, %v2351_v26  ;;  %v10698_v12 = vcombine.low %v2348_v37, %v2352_v31  ;;  %v10707_v52 = vcombine.high %v2356_v4, %v2360_v44  ;;  %v2387_v36 = vld [vmem:[#allocation10 + $0x1a40] sm:$0xff]  ;;  %v2388_v37 = vld [vmem:[#allocation10 + $0x1a48] sm:$0xff] }
 0x39e   :  { %8307 = vmatprep.subr.bf16.mxu0 %v10667_v46  ;;  %v10705_v46 = vcombine.high %v2355_v55, %v2359_v63  ;;  %v2391_v26 = vld [vmem:[#allocation10 + $0x1a60] sm:$0xff]  ;;  %v2392_v31 = vld [vmem:[#allocation10 + $0x1a68] sm:$0xff] }
 0x39f   :  { %7971 = vmatmul.mubr.bf16.vlgmr.msra.gmra.mrb[16].mxu1 %v11974_v41  ;;  %v2395_v55 = vld [vmem:[#allocation10 + $0x1a80] sm:$0xff] }
 0x3a0   :  { %8299 = vmatmul.mubr.bf16.vlgmr.msra.gmra.mrb[20].mxu0 %v11974_v41  ;;  %7980 = vmatpush1.bf16.msra.mxu1 %v10664_v50  ;;  %v2364_v50 = vld [vmem:[#allocation10 + $0x1988] sm:$0xff]  ;;  %v2399_v63 = vld [vmem:[#allocation10 + $0x1aa0] sm:$0xff] }
 0x3a1   :  { %8011 = vmatprep.mubr.bf16.mxu1 %v11976_v6  ;;  %8308 = vmatpush1.bf16.msra.mxu0 %v10666_v11  ;;  %v10706_v11 = vcombine.low %v2356_v4, %v2360_v44  ;;  %v10715_v62 = vcombine.high %v2364_v50, %v2368_v40  ;;  %v2396_v4 = vld [vmem:[#allocation10 + $0x1a88] sm:$0xff] }
 0x3a2   :  { %8339 = vmatprep.mubr.bf16.mxu0 %v11976_v6  ;;  %7981 = vmatprep.subr.bf16.mxu1 %v10673_v56  ;;  %v10713_v56 = vcombine.high %v2363_v48, %v2367_v49  ;;  %v2400_v44 = vld [vmem:[#allocation10 + $0x1aa8] sm:$0xff] }
 0x3a3   :  { %8309 = vmatprep.subr.bf16.mxu0 %v10675_v0  ;;  %v2375_v0 = vld [vmem:[#allocation10 + $0x19e0] sm:$0xff] }
 0x3a4   :  { %7982 = vmatpush1.bf16.msra.mxu1 %v10672_v27  ;;  %v10712_v27 = vcombine.low %v2363_v48, %v2367_v49  ;;  %v2403_v48 = vld [vmem:[#allocation10 + $0x1ac0] sm:$0xff] }
 0x3a5   :  { %8310 = vmatpush1.bf16.msra.mxu0 %v10674_v5  ;;  %7983 = vmatprep.subr.bf16.mxu1 %v10681_v23  ;;  %v10714_v5 = vcombine.low %v2364_v50, %v2368_v40  ;;  %v10721_v23 = vcombine.high %v2371_v13, %v2375_v0  ;;  %v2407_v49 = vld [vmem:[#allocation10 + $0x1ae0] sm:$0xff]  ;;  %v2404_v50 = vld [vmem:[#allocation10 + $0x1ac8] sm:$0xff] }
 0x3a6   :  { %8311 = vmatprep.subr.bf16.mxu0 %v10683_v18  ;;  %v10723_v18 = vcombine.high %v2372_v19, %v2376_v59  ;;  %v2408_v40 = vld [vmem:[#allocation10 + $0x1ae8] sm:$0xff] }
 0x3a8   :  { %7984 = vmatpush1.bf16.msra.mxu1 %v10680_v33  ;;  %v10720_v33 = vcombine.low %v2371_v13, %v2375_v0  ;;  %v2411_v13 = vld [vmem:[#allocation10 + $0x1b00] sm:$0xff] }
 0x3a9   :  { %8312 = vmatpush1.bf16.msra.mxu0 %v10682_v34  ;;  %7985 = vmatprep.subr.bf16.mxu1 %v10689_v35  ;;  %v10722_v34 = vcombine.low %v2372_v19, %v2376_v59  ;;  %v10729_v35 = vcombine.high %v2379_v21, %v2383_v25  ;;  %v2415_v0 = vld [vmem:[#allocation10 + $0x1b20] sm:$0xff]  ;;  %v2412_v19 = vld [vmem:[#allocation10 + $0x1b08] sm:$0xff] }
 0x3aa   :  { %8313 = vmatprep.subr.bf16.mxu0 %v10691_v39  ;;  %v10731_v39 = vcombine.high %v2380_v61, %v2384_v51  ;;  %v2416_v59 = vld [vmem:[#allocation10 + $0x1b28] sm:$0xff] }
 0x3ac   :  { %7986 = vmatpush1.bf16.msra.mxu1 %v10688_v3  ;;  %v10728_v3 = vcombine.low %v2379_v21, %v2383_v25  ;;  %v2419_v21 = vld [vmem:[#allocation10 + $0x1b40] sm:$0xff] }
 0x3ad   :  { %8314 = vmatpush1.bf16.msra.mxu0 %v10690_v2  ;;  %7987 = vmatprep.subr.bf16.mxu1 %v10697_v53  ;;  %v10730_v2 = vcombine.low %v2380_v61, %v2384_v51  ;;  %v10737_v53 = vcombine.high %v2387_v36, %v2391_v26  ;;  %v2423_v25 = vld [vmem:[#allocation10 + $0x1b60] sm:$0xff]  ;;  %v2420_v61 = vld [vmem:[#allocation10 + $0x1b48] sm:$0xff] }
 0x3ae   :  { %8315 = vmatprep.subr.bf16.mxu0 %v10699_v54  ;;  %v10739_v54 = vcombine.high %v2388_v37, %v2392_v31  ;;  %v2424_v51 = vld [vmem:[#allocation10 + $0x1b68] sm:$0xff] }
 0x3b0   :  { %7988 = vmatpush1.bf16.msra.mxu1 %v10696_v45  ;;  %v10736_v45 = vcombine.low %v2387_v36, %v2391_v26  ;;  %v2427_v36 = vld [vmem:[#allocation10 + $0x1b80] sm:$0xff] }
 0x3b1   :  { %8316 = vmatpush1.bf16.msra.mxu0 %v10698_v12  ;;  %7989 = vmatprep.subr.bf16.mxu1 %v10705_v46  ;;  %v10738_v12 = vcombine.low %v2388_v37, %v2392_v31  ;;  %v10745_v46 = vcombine.high %v2395_v55, %v2399_v63  ;;  %v2431_v26 = vld [vmem:[#allocation10 + $0x1ba0] sm:$0xff]  ;;  %v2428_v37 = vld [vmem:[#allocation10 + $0x1b88] sm:$0xff] }
 0x3b2   :  { %8317 = vmatprep.subr.bf16.mxu0 %v10707_v52  ;;  %v10747_v52 = vcombine.high %v2396_v4, %v2400_v44  ;;  %v2432_v31 = vld [vmem:[#allocation10 + $0x1ba8] sm:$0xff] }
 0x3b4   :  { %7990 = vmatpush1.bf16.msra.mxu1 %v10704_v57  ;;  %v10744_v57 = vcombine.low %v2395_v55, %v2399_v63  ;;  %v2435_v55 = vld [vmem:[#allocation10 + $0x1bc0] sm:$0xff] }
 0x3b5   :  { %8318 = vmatpush1.bf16.msra.mxu0 %v10706_v11  ;;  %7991 = vmatprep.subr.bf16.mxu1 %v10713_v56  ;;  %v10746_v11 = vcombine.low %v2396_v4, %v2400_v44  ;;  %v10753_v56 = vcombine.high %v2403_v48, %v2407_v49  ;;  %v2439_v63 = vld [vmem:[#allocation10 + $0x1be0] sm:$0xff]  ;;  %v2436_v4 = vld [vmem:[#allocation10 + $0x1bc8] sm:$0xff] }
 0x3b6   :  { %8319 = vmatprep.subr.bf16.mxu0 %v10715_v62  ;;  %v10755_v62 = vcombine.high %v2404_v50, %v2408_v40  ;;  %v2440_v44 = vld [vmem:[#allocation10 + $0x1be8] sm:$0xff] }
 0x3b8   :  { %7992 = vmatpush1.bf16.msra.mxu1 %v10712_v27  ;;  %v10752_v27 = vcombine.low %v2403_v48, %v2407_v49  ;;  %v2443_v48 = vld [vmem:[#allocation10 + $0x1c00] sm:$0xff] }
 0x3b9   :  { %8320 = vmatpush1.bf16.msra.mxu0 %v10714_v5  ;;  %7993 = vmatprep.subr.bf16.mxu1 %v10721_v23  ;;  %v10754_v5 = vcombine.low %v2404_v50, %v2408_v40  ;;  %v10761_v23 = vcombine.high %v2411_v13, %v2415_v0  ;;  %v2447_v49 = vld [vmem:[#allocation10 + $0x1c20] sm:$0xff]  ;;  %v2444_v50 = vld [vmem:[#allocation10 + $0x1c08] sm:$0xff] }
 0x3ba   :  { %8321 = vmatprep.subr.bf16.mxu0 %v10723_v18  ;;  %v10763_v18 = vcombine.high %v2412_v19, %v2416_v59  ;;  %v2448_v40 = vld [vmem:[#allocation10 + $0x1c28] sm:$0xff] }
 0x3bc   :  { %7994 = vmatpush1.bf16.msra.mxu1 %v10720_v33  ;;  %v10760_v33 = vcombine.low %v2411_v13, %v2415_v0  ;;  %v10795_v13 = vcombine.high %v2444_v50, %v2448_v40  ;;  %v1530_v0 = vmax.f32 %v11937_v1, 0.0 }
 0x3bd   :  { %8322 = vmatpush1.bf16.msra.mxu0 %v10722_v34  ;;  %7995 = vmatprep.subr.bf16.mxu1 %v10729_v35  ;;  %v10762_v34 = vcombine.low %v2412_v19, %v2416_v59  ;;  %v10769_v35 = vcombine.high %v2419_v21, %v2423_v25  ;;  %v2451_v19 = vld [vmem:[#allocation10 + $0x1c40] sm:$0xff] }
 0x3be   :  { %8323 = vmatprep.subr.bf16.mxu0 %v10731_v39  ;;  %v10771_v39 = vcombine.high %v2420_v61, %v2424_v51  ;;  %v2455_v59 = vld [vmem:[#allocation10 + $0x1c60] sm:$0xff] }
 0x3c0   :  { %7996 = vmatpush1.bf16.msra.mxu1 %v10728_v3  ;;  %v10768_v3 = vcombine.low %v2419_v21, %v2423_v25  ;;  %v10794_v21 = vcombine.low %v2444_v50, %v2448_v40  ;;  %v2459_v25 = vld [vmem:[#allocation10 + $0x1c80] sm:$0xff] }
 0x3c1   :  { %8324 = vmatpush1.bf16.msra.mxu0 %v10730_v2  ;;  %7997 = vmatprep.subr.bf16.mxu1 %v10737_v53  ;;  %v10770_v2 = vcombine.low %v2420_v61, %v2424_v51  ;;  %v10777_v53 = vcombine.high %v2427_v36, %v2431_v26  ;;  %v2463_v61 = vld [vmem:[#allocation10 + $0x1ca0] sm:$0xff]  ;;  %v11986_v51 = vpack.c.bf16 %v1530_v0, %v1530_v0 }
 0x3c2   :  { %8325 = vmatprep.subr.bf16.mxu0 %v10739_v54  ;;  %v10779_v54 = vcombine.high %v2428_v37, %v2432_v31  ;;  %v2483_v50 = vld [vmem:[#allocation10 + $0x1d40] sm:$0xff] }
 0x3c3   :  { %v2487_v40 = vld [vmem:[#allocation10 + $0x1d60] sm:$0xff] }
 0x3c4   :  { %7998 = vmatpush1.bf16.msra.mxu1 %v10736_v45  ;;  %v10776_v45 = vcombine.low %v2427_v36, %v2431_v26  ;;  %v10809_v36 = vcombine.high %v2459_v25, %v2463_v61 }
 0x3c5   :  { %8326 = vmatpush1.bf16.msra.mxu0 %v10738_v12  ;;  %7999 = vmatprep.subr.bf16.mxu1 %v10745_v46  ;;  %v10778_v12 = vcombine.low %v2428_v37, %v2432_v31  ;;  %v10785_v46 = vcombine.high %v2435_v55, %v2439_v63  ;;  %v2467_v37 = vld [vmem:[#allocation10 + $0x1cc0] sm:$0xff] }
 0x3c6   :  { %8327 = vmatprep.subr.bf16.mxu0 %v10747_v52  ;;  %v10787_v52 = vcombine.high %v2436_v4, %v2440_v44  ;;  %v2471_v31 = vld [vmem:[#allocation10 + $0x1ce0] sm:$0xff] }
 0x3c8   :  { %8000 = vmatpush1.bf16.msra.mxu1 %v10744_v57  ;;  %v10784_v57 = vcombine.low %v2435_v55, %v2439_v63  ;;  %v10817_v55 = vcombine.high %v2467_v37, %v2471_v31 }
 0x3c9   :  { %8328 = vmatpush1.bf16.msra.mxu0 %v10746_v11  ;;  %8001 = vmatprep.subr.bf16.mxu1 %v10753_v56  ;;  %v1527_v11 = vmax.f32 %v11931_v42, 0.0  ;;  %v10786_v56 = vcombine.low %v2436_v4, %v2440_v44  ;;  %v10801_v42 = vcombine.high %v2451_v19, %v2455_v59  ;;  %v2475_v4 = vld [vmem:[#allocation10 + $0x1d00] sm:$0xff] }
 0x3ca   :  { %8329 = vmatprep.subr.bf16.mxu0 %v10755_v62  ;;  %v10793_v62 = vcombine.high %v2443_v48, %v2447_v49  ;;  %v2479_v44 = vld [vmem:[#allocation10 + $0x1d20] sm:$0xff] }
 0x3cc   :  { %8002 = vmatpush1.bf16.msra.mxu1 %v10752_v27  ;;  %v10792_v27 = vcombine.low %v2443_v48, %v2447_v49  ;;  %v10825_v48 = vcombine.high %v2475_v4, %v2479_v44 }
 0x3cd   :  { %8330 = vmatpush1.bf16.msra.mxu0 %v10754_v5  ;;  %8003 = vmatprep.subr.bf16.mxu1 %v10761_v23  ;;  %v2452_v5 = vld [vmem:[#allocation10 + $0x1c48] sm:$0xff] }
 0x3ce   :  { %8331 = vmatprep.subr.bf16.mxu0 %v10763_v18  ;;  %v2456_v23 = vld [vmem:[#allocation10 + $0x1c68] sm:$0xff]  ;;  %v11984_v18 = vpack.c.bf16 %v1527_v11, %v1527_v11 }
 0x3cf   :  { %v10803_v1 = vcombine.high %v2452_v5, %v2456_v23  ;;  %v2488_v11 = vld [vmem:[#allocation10 + $0x1d68] sm:$0xff] }
 0x3d0   :  { %8004 = vmatpush1.bf16.msra.mxu1 %v10760_v33  ;;  %v2460_v33 = vld [vmem:[#allocation10 + $0x1c88] sm:$0xff] }
 0x3d1   :  { %8332 = vmatpush1.bf16.msra.mxu0 %v10762_v34  ;;  %8005 = vmatprep.subr.bf16.mxu1 %v10769_v35  ;;  %v2464_v34 = vld [vmem:[#allocation10 + $0x1ca8] sm:$0xff]  ;;  %v10800_v35 = vcombine.low %v2451_v19, %v2455_v59  ;;  %v2491_v19 = vld [vmem:[#allocation10 + $0x1d80] sm:$0xff] }
 0x3d2   :  { %8333 = vmatprep.subr.bf16.mxu0 %v10771_v39  ;;  %v10802_v39 = vcombine.low %v2452_v5, %v2456_v23  ;;  %v10811_v26 = vcombine.high %v2460_v33, %v2464_v34  ;;  %v2495_v59 = vld [vmem:[#allocation10 + $0x1da0] sm:$0xff]  ;;  %v2496_v5 = vld [vmem:[#allocation10 + $0x1da8] sm:$0xff]  ;;  %v10832_v23 = vcombine.low %v2483_v50, %v2487_v40 }
 0x3d4   :  { %8006 = vmatpush1.bf16.msra.mxu1 %v10768_v3  ;;  %v2468_v3 = vld [vmem:[#allocation10 + $0x1cc8] sm:$0xff] }
 0x3d5   :  { %8334 = vmatpush1.bf16.msra.mxu0 %v10770_v2  ;;  %8007 = vmatprep.subr.bf16.mxu1 %v10777_v53  ;;  %v2472_v2 = vld [vmem:[#allocation10 + $0x1ce8] sm:$0xff]  ;;  %v10808_v53 = vcombine.low %v2459_v25, %v2463_v61  ;;  %v2499_v61 = vld [vmem:[#allocation10 + $0x1dc0] sm:$0xff] }
 0x3d6   :  { %8335 = vmatprep.subr.bf16.mxu0 %v10779_v54  ;;  %v10810_v54 = vcombine.low %v2460_v33, %v2464_v34  ;;  %v10819_v63 = vcombine.high %v2468_v3, %v2472_v2  ;;  %v2500_v33 = vld [vmem:[#allocation10 + $0x1dc8] sm:$0xff] }
 0x3d7   :  { %v2504_v34 = vld [vmem:[#allocation10 + $0x1de8] sm:$0xff] }
 0x3d8   :  { %8008 = vmatpush1.bf16.msra.mxu1 %v10776_v45  ;;  %v2476_v45 = vld [vmem:[#allocation10 + $0x1d08] sm:$0xff] }
 0x3d9   :  { %8336 = vmatpush1.bf16.msra.mxu0 %v10778_v12  ;;  %8009 = vmatprep.subr.bf16.mxu1 %v10785_v46  ;;  %v2480_v12 = vld [vmem:[#allocation10 + $0x1d28] sm:$0xff]  ;;  %v10816_v46 = vcombine.low %v2467_v37, %v2471_v31  ;;  %v2507_v37 = vld [vmem:[#allocation10 + $0x1e00] sm:$0xff] }
 0x3da   :  { %8337 = vmatprep.subr.bf16.mxu0 %v10787_v52  ;;  %v10818_v52 = vcombine.low %v2468_v3, %v2472_v2  ;;  %v10827_v49 = vcombine.high %v2476_v45, %v2480_v12  ;;  %v2511_v31 = vld [vmem:[#allocation10 + $0x1e20] sm:$0xff]  ;;  %v2508_v3 = vld [vmem:[#allocation10 + $0x1e08] sm:$0xff] }
 0x3db   :  { %v2512_v2 = vld [vmem:[#allocation10 + $0x1e28] sm:$0xff] }
 0x3dc   :  { %8010 = vmatpush1.bf16.msra.mxu1 %v10784_v57  ;;  %v2484_v57 = vld [vmem:[#allocation10 + $0x1d48] sm:$0xff] }
 0x3dd   :  { %8338 = vmatpush1.bf16.msra.mxu0 %v10786_v56  ;;  %8020 = vmatprep.subr.bf16.mxu1 %v10793_v62  ;;  %v10824_v56 = vcombine.low %v2475_v4, %v2479_v44  ;;  %v10826_v62 = vcombine.low %v2476_v45, %v2480_v12  ;;  %v10835_v0 = vcombine.high %v2484_v57, %v2488_v11  ;;  %v2515_v4 = vld [vmem:[#allocation10 + $0x1e40] sm:$0xff]  ;;  %v2516_v45 = vld [vmem:[#allocation10 + $0x1e48] sm:$0xff] }
 0x3de   :  { %8348 = vmatprep.subr.bf16.mxu0 %v10795_v13  ;;  %v10833_v13 = vcombine.high %v2483_v50, %v2487_v40  ;;  %v2519_v44 = vld [vmem:[#allocation10 + $0x1e60] sm:$0xff]  ;;  %v2520_v12 = vld [vmem:[#allocation10 + $0x1e68] sm:$0xff] }
 0x3df   :  { %8012 = vmatmul.mubr.bf16.vlgmr.msra.gmra.mrb[16].mxu1 %v11984_v18  ;;  %v2523_v50 = vld [vmem:[#allocation10 + $0x1e80] sm:$0xff] }
 0x3e0   :  { %8340 = vmatmul.mubr.bf16.vlgmr.msra.gmra.mrb[20].mxu0 %v11984_v18  ;;  %8021 = vmatpush1.bf16.msra.mxu1 %v10792_v27  ;;  %v2492_v27 = vld [vmem:[#allocation10 + $0x1d88] sm:$0xff]  ;;  %v2527_v40 = vld [vmem:[#allocation10 + $0x1ea0] sm:$0xff] }
 0x3e1   :  { %8052 = vmatprep.mubr.bf16.mxu1 %v11986_v51  ;;  %8349 = vmatpush1.bf16.msra.mxu0 %v10794_v21  ;;  %v10834_v21 = vcombine.low %v2484_v57, %v2488_v11  ;;  %v10843_v25 = vcombine.high %v2492_v27, %v2496_v5  ;;  %v2524_v57 = vld [vmem:[#allocation10 + $0x1e88] sm:$0xff] }
 0x3e2   :  { %8380 = vmatprep.mubr.bf16.mxu0 %v11986_v51  ;;  %8022 = vmatprep.subr.bf16.mxu1 %v10801_v42  ;;  %v10841_v42 = vcombine.high %v2491_v19, %v2495_v59  ;;  %v2528_v11 = vld [vmem:[#allocation10 + $0x1ea8] sm:$0xff] }
 0x3e3   :  { %8350 = vmatprep.subr.bf16.mxu0 %v10803_v1  ;;  %v2503_v1 = vld [vmem:[#allocation10 + $0x1de0] sm:$0xff] }
 0x3e4   :  { %8023 = vmatpush1.bf16.msra.mxu1 %v10800_v35  ;;  %v10840_v35 = vcombine.low %v2491_v19, %v2495_v59  ;;  %v2531_v19 = vld [vmem:[#allocation10 + $0x1ec0] sm:$0xff] }
 0x3e5   :  { %8351 = vmatpush1.bf16.msra.mxu0 %v10802_v39  ;;  %8024 = vmatprep.subr.bf16.mxu1 %v10809_v36  ;;  %v10842_v39 = vcombine.low %v2492_v27, %v2496_v5  ;;  %v10849_v36 = vcombine.high %v2499_v61, %v2503_v1  ;;  %v2535_v59 = vld [vmem:[#allocation10 + $0x1ee0] sm:$0xff]  ;;  %v2532_v27 = vld [vmem:[#allocation10 + $0x1ec8] sm:$0xff] }
 0x3e6   :  { %8352 = vmatprep.subr.bf16.mxu0 %v10811_v26  ;;  %v10851_v26 = vcombine.high %v2500_v33, %v2504_v34  ;;  %v2536_v5 = vld [vmem:[#allocation10 + $0x1ee8] sm:$0xff] }
 0x3e8   :  { %8025 = vmatpush1.bf16.msra.mxu1 %v10808_v53  ;;  %v10848_v53 = vcombine.low %v2499_v61, %v2503_v1  ;;  %v2539_v61 = vld [vmem:[#allocation10 + $0x1f00] sm:$0xff] }
 0x3e9   :  { %8353 = vmatpush1.bf16.msra.mxu0 %v10810_v54  ;;  %8026 = vmatprep.subr.bf16.mxu1 %v10817_v55  ;;  %v10850_v54 = vcombine.low %v2500_v33, %v2504_v34  ;;  %v10857_v55 = vcombine.high %v2507_v37, %v2511_v31  ;;  %v2543_v1 = vld [vmem:[#allocation10 + $0x1f20] sm:$0xff]  ;;  %v2540_v33 = vld [vmem:[#allocation10 + $0x1f08] sm:$0xff] }
 0x3ea   :  { %8354 = vmatprep.subr.bf16.mxu0 %v10819_v63  ;;  %v10859_v63 = vcombine.high %v2508_v3, %v2512_v2  ;;  %v2544_v34 = vld [vmem:[#allocation10 + $0x1f28] sm:$0xff] }
 0x3ec   :  { %8027 = vmatpush1.bf16.msra.mxu1 %v10816_v46  ;;  %v10856_v46 = vcombine.low %v2507_v37, %v2511_v31  ;;  %v2547_v37 = vld [vmem:[#allocation10 + $0x1f40] sm:$0xff] }
 0x3ed   :  { %8355 = vmatpush1.bf16.msra.mxu0 %v10818_v52  ;;  %8028 = vmatprep.subr.bf16.mxu1 %v10825_v48  ;;  %v10858_v52 = vcombine.low %v2508_v3, %v2512_v2  ;;  %v10865_v48 = vcombine.high %v2515_v4, %v2519_v44  ;;  %v2551_v31 = vld [vmem:[#allocation10 + $0x1f60] sm:$0xff]  ;;  %v2548_v3 = vld [vmem:[#allocation10 + $0x1f48] sm:$0xff] }
 0x3ee   :  { %8356 = vmatprep.subr.bf16.mxu0 %v10827_v49  ;;  %v10867_v49 = vcombine.high %v2516_v45, %v2520_v12  ;;  %v2552_v2 = vld [vmem:[#allocation10 + $0x1f68] sm:$0xff] }
 0x3f0   :  { %8029 = vmatpush1.bf16.msra.mxu1 %v10824_v56  ;;  %v10864_v56 = vcombine.low %v2515_v4, %v2519_v44  ;;  %v2555_v4 = vld [vmem:[#allocation10 + $0x1f80] sm:$0xff] }
 0x3f1   :  { %8357 = vmatpush1.bf16.msra.mxu0 %v10826_v62  ;;  %8030 = vmatprep.subr.bf16.mxu1 %v10833_v13  ;;  %v10866_v62 = vcombine.low %v2516_v45, %v2520_v12  ;;  %v10873_v13 = vcombine.high %v2523_v50, %v2527_v40  ;;  %v2559_v44 = vld [vmem:[#allocation10 + $0x1fa0] sm:$0xff]  ;;  %v2556_v45 = vld [vmem:[#allocation10 + $0x1f88] sm:$0xff] }
 0x3f2   :  { %8358 = vmatprep.subr.bf16.mxu0 %v10835_v0  ;;  %v10875_v0 = vcombine.high %v2524_v57, %v2528_v11  ;;  %v2560_v12 = vld [vmem:[#allocation10 + $0x1fa8] sm:$0xff] }
 0x3f4   :  { %8031 = vmatpush1.bf16.msra.mxu1 %v10832_v23  ;;  %v10872_v23 = vcombine.low %v2523_v50, %v2527_v40  ;;  %v2563_v50 = vld [vmem:[#allocation10 + $0x1fc0] sm:$0xff] }
 0x3f5   :  { %8359 = vmatpush1.bf16.msra.mxu0 %v10834_v21  ;;  %8032 = vmatprep.subr.bf16.mxu1 %v10841_v42  ;;  %v10874_v21 = vcombine.low %v2524_v57, %v2528_v11  ;;  %v10881_v42 = vcombine.high %v2531_v19, %v2535_v59  ;;  %v2567_v40 = vld [vmem:[#allocation10 + $0x1fe0] sm:$0xff]  ;;  %v2564_v57 = vld [vmem:[#allocation10 + $0x1fc8] sm:$0xff] }
 0x3f6   :  { %8360 = vmatprep.subr.bf16.mxu0 %v10843_v25  ;;  %v10883_v25 = vcombine.high %v2532_v27, %v2536_v5  ;;  %v2568_v11 = vld [vmem:[#allocation10 + $0x1fe8] sm:$0xff] }
 0x3f8   :  { %8033 = vmatpush1.bf16.msra.mxu1 %v10840_v35  ;;  %v10880_v35 = vcombine.low %v2531_v19, %v2535_v59  ;;  %v1549_v19 = vld [vmem:[#allocation10 + $0x10] sm:$0xff] }
 0x3f9   :  { %8361 = vmatpush1.bf16.msra.mxu0 %v10842_v39  ;;  %8034 = vmatprep.subr.bf16.mxu1 %v10849_v36  ;;  %v10882_v39 = vcombine.low %v2532_v27, %v2536_v5  ;;  %v10889_v36 = vcombine.high %v2539_v61, %v2543_v1  ;;  %v1553_v59 = vld [vmem:[#allocation10 + $0x30] sm:$0xff]  ;;  %v1550_v27 = vld [vmem:[#allocation10 + $0x18] sm:$0xff] }
 0x3fa   :  { %8362 = vmatprep.subr.bf16.mxu0 %v10851_v26  ;;  %v10891_v26 = vcombine.high %v2540_v33, %v2544_v34  ;;  %v1554_v5 = vld [vmem:[#allocation10 + $0x38] sm:$0xff] }
 0x3fc   :  { %8035 = vmatpush1.bf16.msra.mxu1 %v10848_v53  ;;  %v10888_v53 = vcombine.low %v2539_v61, %v2543_v1  ;;  %v9903_v61 = vcombine.high %v1550_v27, %v1554_v5  ;;  %v1557_v1 = vld [vmem:[#allocation10 + $0x50] sm:$0xff] }
 0x3fd   :  { %8363 = vmatpush1.bf16.msra.mxu0 %v10850_v54  ;;  %8036 = vmatprep.subr.bf16.mxu1 %v10857_v55  ;;  %v10890_v54 = vcombine.low %v2540_v33, %v2544_v34  ;;  %v10897_v55 = vcombine.high %v2547_v37, %v2551_v31  ;;  %v1561_v33 = vld [vmem:[#allocation10 + $0x70] sm:$0xff]  ;;  %v9900_v34 = vcombine.low %v1549_v19, %v1553_v59 }
 0x3fe   :  { %8364 = vmatprep.subr.bf16.mxu0 %v10859_v63  ;;  %v10899_v63 = vcombine.high %v2548_v3, %v2552_v2 }
 0x400   :  { %8037 = vmatpush1.bf16.msra.mxu1 %v10856_v46  ;;  %v10896_v46 = vcombine.low %v2547_v37, %v2551_v31  ;;  %v9909_v37 = vcombine.high %v1557_v1, %v1561_v33  ;;  %v1569_v31 = vld [vmem:[#allocation10 + $0xb0] sm:$0xff] }
 0x401   :  { %8365 = vmatpush1.bf16.msra.mxu0 %v10858_v52  ;;  %8038 = vmatprep.subr.bf16.mxu1 %v10865_v48  ;;  %v10898_v52 = vcombine.low %v2548_v3, %v2552_v2  ;;  %v10905_v48 = vcombine.high %v2555_v4, %v2559_v44  ;;  %v1566_v2 = vld [vmem:[#allocation10 + $0x98] sm:$0xff] }
 0x402   :  { %8366 = vmatprep.subr.bf16.mxu0 %v10867_v49  ;;  %v10907_v49 = vcombine.high %v2556_v45, %v2560_v12 }
 0x404   :  { %8039 = vmatpush1.bf16.msra.mxu1 %v10864_v56  ;;  %v10904_v56 = vcombine.low %v2555_v4, %v2559_v44  ;;  %v1573_v44 = vld [vmem:[#allocation10 + $0xd0] sm:$0xff] }
 0x405   :  { %8367 = vmatpush1.bf16.msra.mxu0 %v10866_v62  ;;  %8040 = vmatprep.subr.bf16.mxu1 %v10873_v13  ;;  %v10906_v62 = vcombine.low %v2556_v45, %v2560_v12  ;;  %v10913_v13 = vcombine.high %v2563_v50, %v2567_v40  ;;  %v1577_v45 = vld [vmem:[#allocation10 + $0xf0] sm:$0xff]  ;;  %v1574_v12 = vld [vmem:[#allocation10 + $0xd8] sm:$0xff] }
 0x406   :  { %8368 = vmatprep.subr.bf16.mxu0 %v10875_v0  ;;  %v10915_v0 = vcombine.high %v2564_v57, %v2568_v11 }
 0x408   :  { %8041 = vmatpush1.bf16.msra.mxu1 %v10872_v23  ;;  %v10912_v23 = vcombine.low %v2563_v50, %v2567_v40  ;;  %v1581_v40 = vld [vmem:[#allocation10 + $0x110] sm:$0xff] }
 0x409   :  { %8369 = vmatpush1.bf16.msra.mxu0 %v10874_v21  ;;  %8042 = vmatprep.subr.bf16.mxu1 %v10881_v42  ;;  %v1529_v21 = vmax.f32 %v11933_v8, 0.0  ;;  %v10914_v42 = vcombine.low %v2564_v57, %v2568_v11  ;;  %v1565_v8 = vld [vmem:[#allocation10 + $0x90] sm:$0xff]  ;;  %v1582_v11 = vld [vmem:[#allocation10 + $0x118] sm:$0xff] }
 0x40a   :  { %8370 = vmatprep.subr.bf16.mxu0 %v10883_v25  ;;  %v9901_v25 = vcombine.high %v1549_v19, %v1553_v59  ;;  %v1585_v57 = vld [vmem:[#allocation10 + $0x130] sm:$0xff] }
 0x40b   :  { %v1589_v19 = vld [vmem:[#allocation10 + $0x150] sm:$0xff] }
 0x40c   :  { %8043 = vmatpush1.bf16.msra.mxu1 %v10880_v35  ;;  %v1558_v35 = vld [vmem:[#allocation10 + $0x58] sm:$0xff]  ;;  %v1593_v59 = vld [vmem:[#allocation10 + $0x170] sm:$0xff] }
 0x40d   :  { %8371 = vmatpush1.bf16.msra.mxu0 %v10882_v39  ;;  %8044 = vmatprep.subr.bf16.mxu1 %v10889_v36  ;;  %v1562_v39 = vld [vmem:[#allocation10 + $0x78] sm:$0xff]  ;;  %v11993_v36 = vpack.c.bf16 %v1529_v21, %v1529_v21 }
 0x40e   :  { %8372 = vmatprep.subr.bf16.mxu0 %v10891_v26  ;;  %v9902_v26 = vcombine.low %v1550_v27, %v1554_v5  ;;  %v9911_v3 = vcombine.high %v1558_v35, %v1562_v39  ;;  %v1590_v27 = vld [vmem:[#allocation10 + $0x158] sm:$0xff] }
 0x40f   :  { %v1594_v5 = vld [vmem:[#allocation10 + $0x178] sm:$0xff] }
 0x410   :  { %8045 = vmatpush1.bf16.msra.mxu1 %v10888_v53  ;;  %v1570_v53 = vld [vmem:[#allocation10 + $0xb8] sm:$0xff] }
 0x411   :  { %8373 = vmatpush1.bf16.msra.mxu0 %v10890_v54  ;;  %8046 = vmatprep.subr.bf16.mxu1 %v10897_v55  ;;  %v9908_v54 = vcombine.low %v1557_v1, %v1561_v33  ;;  %v9910_v55 = vcombine.low %v1558_v35, %v1562_v39  ;;  %v9919_v4 = vcombine.high %v1566_v2, %v1570_v53  ;;  %v1601_v1 = vld [vmem:[#allocation10 + $0x1b0] sm:$0xff]  ;;  %v1598_v33 = vld [vmem:[#allocation10 + $0x198] sm:$0xff] }
 0x412   :  { %8374 = vmatprep.subr.bf16.mxu0 %v10899_v63  ;;  %v9917_v63 = vcombine.high %v1565_v8, %v1569_v31  ;;  %v9940_v35 = vcombine.low %v1589_v19, %v1593_v59  ;;  %v9942_v39 = vcombine.low %v1590_v27, %v1594_v5 }
 0x414   :  { %8047 = vmatpush1.bf16.msra.mxu1 %v10896_v46  ;;  %v1578_v46 = vld [vmem:[#allocation10 + $0xf8] sm:$0xff] }
 0x415   :  { %8375 = vmatpush1.bf16.msra.mxu0 %v10898_v52  ;;  %8048 = vmatprep.subr.bf16.mxu1 %v10905_v48  ;;  %v9916_v52 = vcombine.low %v1565_v8, %v1569_v31  ;;  %v9918_v48 = vcombine.low %v1566_v2, %v1570_v53  ;;  %v9927_v50 = vcombine.high %v1574_v12, %v1578_v46  ;;  %v1605_v8 = vld [vmem:[#allocation10 + $0x1d0] sm:$0xff]  ;;  %v1610_v2 = vld [vmem:[#allocation10 + $0x1f8] sm:$0xff] }
 0x416   :  { %8376 = vmatprep.subr.bf16.mxu0 %v10907_v49  ;;  %v9925_v49 = vcombine.high %v1573_v44, %v1577_v45  ;;  %v1609_v31 = vld [vmem:[#allocation10 + $0x1f0] sm:$0xff] }
 0x418   :  { %8049 = vmatpush1.bf16.msra.mxu1 %v10904_v56  ;;  %v1586_v56 = vld [vmem:[#allocation10 + $0x138] sm:$0xff] }
 0x419   :  { %8377 = vmatpush1.bf16.msra.mxu0 %v10906_v62  ;;  %8050 = vmatprep.subr.bf16.mxu1 %v10913_v13  ;;  %v9926_v62 = vcombine.low %v1574_v12, %v1578_v46  ;;  %v9933_v13 = vcombine.high %v1581_v40, %v1585_v57  ;;  %v9934_v21 = vcombine.low %v1582_v11, %v1586_v56  ;;  %v1618_v12 = vld [vmem:[#allocation10 + $0x238] sm:$0xff] }
 0x41a   :  { %8378 = vmatprep.subr.bf16.mxu0 %v10915_v0  ;;  %v9935_v0 = vcombine.high %v1582_v11, %v1586_v56  ;;  %v9956_v46 = vcombine.low %v1605_v8, %v1609_v31  ;;  %v1626_v11 = vld [vmem:[#allocation10 + $0x278] sm:$0xff] }
 0x41c   :  { %8051 = vmatpush1.bf16.msra.mxu1 %v10912_v23  ;;  %v9932_v23 = vcombine.low %v1581_v40, %v1585_v57  ;;  %v1625_v40 = vld [vmem:[#allocation10 + $0x270] sm:$0xff]  ;;  %v1622_v57 = vld [vmem:[#allocation10 + $0x258] sm:$0xff] }
 0x41d   :  { %8379 = vmatpush1.bf16.msra.mxu0 %v10914_v42  ;;  %8389 = vmatprep.subr.bf16.mxu1 %v9901_v25  ;;  %v9941_v42 = vcombine.high %v1589_v19, %v1593_v59  ;;  %v9943_v25 = vcombine.high %v1590_v27, %v1594_v5  ;;  %v1633_v19 = vld [vmem:[#allocation10 + $0x2b0] sm:$0xff]  ;;  %v1630_v59 = vld [vmem:[#allocation10 + $0x298] sm:$0xff] }
 0x41e   :  { %8717 = vmatprep.subr.bf16.mxu0 %v9903_v61  ;;  %v1597_v61 = vld [vmem:[#allocation10 + $0x190] sm:$0xff]  ;;  %v1634_v27 = vld [vmem:[#allocation10 + $0x2b8] sm:$0xff] }
 0x41f   :  { %8053 = vmatmul.mubr.bf16.vlgmr.msra.gmra.mrb[16].mxu1 %v11993_v36  ;;  %v9948_v53 = vcombine.low %v1597_v61, %v1601_v1 }
 0x420   :  { %8381 = vmatmul.mubr.bf16.vlgmr.msra.gmra.mrb[20].mxu0 %v11993_v36  ;;  %8390 = vmatpush1.bf16.msra.mxu1 %v9900_v34  ;;  %v1602_v34 = vld [vmem:[#allocation10 + $0x1b8] sm:$0xff] }
 0x421   :  { %8421 = vmatprep.mubr.bf16.mxu1 %v11849_v14  ;;  %8718 = vmatpush1.bf16.msra.mxu0 %v9902_v26  ;;  %v9949_v26 = vcombine.high %v1597_v61, %v1601_v1  ;;  %v1641_v61 = vld [vmem:[#allocation10 + $0x2f0] sm:$0xff]  ;;  %v1638_v1 = vld [vmem:[#allocation10 + $0x2d8] sm:$0xff] }
 0x422   :  { %8749 = vmatprep.mubr.bf16.mxu0 %v11849_v14  ;;  %8391 = vmatprep.subr.bf16.mxu1 %v9909_v37  ;;  %v9924_v14 = vcombine.low %v1573_v44, %v1577_v45  ;;  %v9951_v37 = vcombine.high %v1598_v33, %v1602_v34  ;;  %v1617_v44 = vld [vmem:[#allocation10 + $0x230] sm:$0xff]  ;;  %v1614_v45 = vld [vmem:[#allocation10 + $0x218] sm:$0xff] }
 0x423   :  { %8719 = vmatprep.subr.bf16.mxu0 %v9911_v3  ;;  %v1606_v3 = vld [vmem:[#allocation10 + $0x1d8] sm:$0xff] }
 0x424   :  { %8392 = vmatpush1.bf16.msra.mxu1 %v9908_v54  ;;  %v9950_v54 = vcombine.low %v1598_v33, %v1602_v34  ;;  %v1642_v33 = vld [vmem:[#allocation10 + $0x2f8] sm:$0xff] }
 0x425   :  { %8720 = vmatpush1.bf16.msra.mxu0 %v9910_v55  ;;  %8393 = vmatprep.subr.bf16.mxu1 %v9917_v63  ;;  %v9957_v55 = vcombine.high %v1605_v8, %v1609_v31  ;;  %v9959_v63 = vcombine.high %v1606_v3, %v1610_v2  ;;  %v1649_v8 = vld [vmem:[#allocation10 + $0x330] sm:$0xff]  ;;  %v1646_v31 = vld [vmem:[#allocation10 + $0x318] sm:$0xff] }
 0x426   :  { %8721 = vmatprep.subr.bf16.mxu0 %v9919_v4  ;;  %v1613_v4 = vld [vmem:[#allocation10 + $0x210] sm:$0xff] }
 0x427   :  { %v9964_v56 = vcombine.low %v1613_v4, %v1617_v44 }
 0x428   :  { %8394 = vmatpush1.bf16.msra.mxu1 %v9916_v52  ;;  %v9958_v52 = vcombine.low %v1606_v3, %v1610_v2  ;;  %v1650_v3 = vld [vmem:[#allocation10 + $0x338] sm:$0xff] }
 0x429   :  { %8722 = vmatpush1.bf16.msra.mxu0 %v9918_v48  ;;  %8395 = vmatprep.subr.bf16.mxu1 %v9925_v49  ;;  %v9965_v48 = vcombine.high %v1613_v4, %v1617_v44  ;;  %v9967_v49 = vcombine.high %v1614_v45, %v1618_v12  ;;  %v1657_v4 = vld [vmem:[#allocation10 + $0x370] sm:$0xff]  ;;  %v1654_v44 = vld [vmem:[#allocation10 + $0x358] sm:$0xff] }
 0x42a   :  { %8723 = vmatprep.subr.bf16.mxu0 %v9927_v50  ;;  %v1621_v50 = vld [vmem:[#allocation10 + $0x250] sm:$0xff] }
 0x42b   :  { %v9972_v5 = vcombine.low %v1621_v50, %v1625_v40 }
 0x42c   :  { %8396 = vmatpush1.bf16.msra.mxu1 %v9924_v14  ;;  %v9966_v14 = vcombine.low %v1614_v45, %v1618_v12  ;;  %v1658_v45 = vld [vmem:[#allocation10 + $0x378] sm:$0xff] }
 0x42d   :  { %8724 = vmatpush1.bf16.msra.mxu0 %v9926_v62  ;;  %8397 = vmatprep.subr.bf16.mxu1 %v9933_v13  ;;  %v9973_v62 = vcombine.high %v1621_v50, %v1625_v40  ;;  %v9975_v13 = vcombine.high %v1622_v57, %v1626_v11  ;;  %v1665_v50 = vld [vmem:[#allocation10 + $0x3b0] sm:$0xff]  ;;  %v1662_v40 = vld [vmem:[#allocation10 + $0x398] sm:$0xff] }
 0x42e   :  { %8725 = vmatprep.subr.bf16.mxu0 %v9935_v0  ;;  %v1629_v0 = vld [vmem:[#allocation10 + $0x290] sm:$0xff] }
 0x42f   :  { %v9980_v34 = vcombine.low %v1629_v0, %v1633_v19 }
 0x430   :  { %8398 = vmatpush1.bf16.msra.mxu1 %v9932_v23  ;;  %v9974_v23 = vcombine.low %v1622_v57, %v1626_v11  ;;  %v1666_v57 = vld [vmem:[#allocation10 + $0x3b8] sm:$0xff] }
 0x431   :  { %8726 = vmatpush1.bf16.msra.mxu0 %v9934_v21  ;;  %8399 = vmatprep.subr.bf16.mxu1 %v9941_v42  ;;  %v9981_v21 = vcombine.high %v1629_v0, %v1633_v19  ;;  %v9983_v42 = vcombine.high %v1630_v59, %v1634_v27  ;;  %v1673_v0 = vld [vmem:[#allocation10 + $0x3f0] sm:$0xff]  ;;  %v1670_v19 = vld [vmem:[#allocation10 + $0x3d8] sm:$0xff] }
 0x432   :  { %8727 = vmatprep.subr.bf16.mxu0 %v9943_v25  ;;  %v1637_v25 = vld [vmem:[#allocation10 + $0x2d0] sm:$0xff] }
 0x433   :  { %v9988_v2 = vcombine.low %v1637_v25, %v1641_v61 }
 0x434   :  { %8400 = vmatpush1.bf16.msra.mxu1 %v9940_v35  ;;  %v9982_v35 = vcombine.low %v1630_v59, %v1634_v27  ;;  %v1674_v59 = vld [vmem:[#allocation10 + $0x3f8] sm:$0xff] }
 0x435   :  { %8728 = vmatpush1.bf16.msra.mxu0 %v9942_v39  ;;  %8401 = vmatprep.subr.bf16.mxu1 %v9949_v26  ;;  %v9989_v39 = vcombine.high %v1637_v25, %v1641_v61  ;;  %v9991_v26 = vcombine.high %v1638_v1, %v1642_v33  ;;  %v1681_v25 = vld [vmem:[#allocation10 + $0x430] sm:$0xff]  ;;  %v1678_v61 = vld [vmem:[#allocation10 + $0x418] sm:$0xff] }
 0x436   :  { %8729 = vmatprep.subr.bf16.mxu0 %v9951_v37  ;;  %v1645_v37 = vld [vmem:[#allocation10 + $0x310] sm:$0xff] }
 0x437   :  { %v9996_v12 = vcombine.low %v1645_v37, %v1649_v8 }
 0x438   :  { %8402 = vmatpush1.bf16.msra.mxu1 %v9948_v53  ;;  %v9990_v53 = vcombine.low %v1638_v1, %v1642_v33  ;;  %v1682_v1 = vld [vmem:[#allocation10 + $0x438] sm:$0xff] }
 0x439   :  { %8730 = vmatpush1.bf16.msra.mxu0 %v9950_v54  ;;  %8403 = vmatprep.subr.bf16.mxu1 %v9957_v55  ;;  %v9997_v54 = vcombine.high %v1645_v37, %v1649_v8  ;;  %v9999_v55 = vcombine.high %v1646_v31, %v1650_v3  ;;  %v1689_v37 = vld [vmem:[#allocation10 + $0x470] sm:$0xff] }
 0x43a   :  { %8731 = vmatprep.subr.bf16.mxu0 %v9959_v63  ;;  %v1653_v63 = vld [vmem:[#allocation10 + $0x350] sm:$0xff] }
 0x43b   :  { %v10004_v11 = vcombine.low %v1653_v63, %v1657_v4 }
 0x43c   :  { %8404 = vmatpush1.bf16.msra.mxu1 %v9956_v46  ;;  %v9998_v46 = vcombine.low %v1646_v31, %v1650_v3  ;;  %v1686_v31 = vld [vmem:[#allocation10 + $0x458] sm:$0xff] }
 0x43d   :  { %8732 = vmatpush1.bf16.msra.mxu0 %v9958_v52  ;;  %8405 = vmatprep.subr.bf16.mxu1 %v9965_v48  ;;  %v10005_v52 = vcombine.high %v1653_v63, %v1657_v4  ;;  %v10007_v48 = vcombine.high %v1654_v44, %v1658_v45  ;;  %v1690_v3 = vld [vmem:[#allocation10 + $0x478] sm:$0xff] }
 0x43e   :  { %8733 = vmatprep.subr.bf16.mxu0 %v9967_v49  ;;  %v1661_v49 = vld [vmem:[#allocation10 + $0x390] sm:$0xff]  ;;  %v10039_v63 = vcombine.high %v1686_v31, %v1690_v3  ;;  %v1694_v4 = vld [vmem:[#allocation10 + $0x498] sm:$0xff] }
 0x43f   :  { %v10012_v27 = vcombine.low %v1661_v49, %v1665_v50 }
 0x440   :  { %8406 = vmatpush1.bf16.msra.mxu1 %v9964_v56  ;;  %v10006_v56 = vcombine.low %v1654_v44, %v1658_v45  ;;  %v1698_v44 = vld [vmem:[#allocation10 + $0x4b8] sm:$0xff] }
 0x441   :  { %8734 = vmatpush1.bf16.msra.mxu0 %v9966_v14  ;;  %8407 = vmatprep.subr.bf16.mxu1 %v9973_v62  ;;  %v10013_v14 = vcombine.high %v1661_v49, %v1665_v50  ;;  %v10015_v62 = vcombine.high %v1662_v40, %v1666_v57  ;;  %v1705_v49 = vld [vmem:[#allocation10 + $0x4f0] sm:$0xff]  ;;  %v1702_v50 = vld [vmem:[#allocation10 + $0x4d8] sm:$0xff] }
 0x442   :  { %8735 = vmatprep.subr.bf16.mxu0 %v9975_v13  ;;  %v1669_v13 = vld [vmem:[#allocation10 + $0x3d0] sm:$0xff] }
 0x443   :  { %v10020_v33 = vcombine.low %v1669_v13, %v1673_v0 }
 0x444   :  { %8408 = vmatpush1.bf16.msra.mxu1 %v9972_v5  ;;  %v10014_v5 = vcombine.low %v1662_v40, %v1666_v57  ;;  %v1706_v40 = vld [vmem:[#allocation10 + $0x4f8] sm:$0xff] }
 0x445   :  { %8736 = vmatpush1.bf16.msra.mxu0 %v9974_v23  ;;  %8409 = vmatprep.subr.bf16.mxu1 %v9981_v21  ;;  %v10021_v23 = vcombine.high %v1669_v13, %v1673_v0  ;;  %v10023_v21 = vcombine.high %v1670_v19, %v1674_v59  ;;  %v1710_v13 = vld [vmem:[#allocation10 + $0x518] sm:$0xff] }
 0x446   :  { %8737 = vmatprep.subr.bf16.mxu0 %v9983_v42  ;;  %v1677_v42 = vld [vmem:[#allocation10 + $0x410] sm:$0xff]  ;;  %v1714_v0 = vld [vmem:[#allocation10 + $0x538] sm:$0xff] }
 0x447   :  { %v10028_v8 = vcombine.low %v1677_v42, %v1681_v25 }
 0x448   :  { %8410 = vmatpush1.bf16.msra.mxu1 %v9980_v34  ;;  %v10022_v34 = vcombine.low %v1670_v19, %v1674_v59  ;;  %v10054_v19 = vcombine.low %v1702_v50, %v1706_v40 }
 0x449   :  { %8738 = vmatpush1.bf16.msra.mxu0 %v9982_v35  ;;  %8411 = vmatprep.subr.bf16.mxu1 %v9989_v39  ;;  %v10029_v35 = vcombine.high %v1677_v42, %v1681_v25  ;;  %v10031_v39 = vcombine.high %v1678_v61, %v1682_v1  ;;  %v1722_v42 = vld [vmem:[#allocation10 + $0x578] sm:$0xff] }
 0x44a   :  { %8739 = vmatprep.subr.bf16.mxu0 %v9991_v26  ;;  %v1685_v26 = vld [vmem:[#allocation10 + $0x450] sm:$0xff] }
 0x44b   :  { %v10036_v45 = vcombine.low %v1685_v26, %v1689_v37 }
 0x44c   :  { %8412 = vmatpush1.bf16.msra.mxu1 %v9988_v2  ;;  %v10030_v2 = vcombine.low %v1678_v61, %v1682_v1  ;;  %v10062_v61 = vcombine.low %v1710_v13, %v1714_v0 }
 0x44d   :  { %8740 = vmatpush1.bf16.msra.mxu0 %v9990_v53  ;;  %8413 = vmatprep.subr.bf16.mxu1 %v9997_v54  ;;  %v10037_v53 = vcombine.high %v1685_v26, %v1689_v37  ;;  %v1693_v54 = vld [vmem:[#allocation10 + $0x490] sm:$0xff]  ;;  %v1730_v26 = vld [vmem:[#allocation10 + $0x5b8] sm:$0xff] }
 0x44e   :  { %8741 = vmatprep.subr.bf16.mxu0 %v9999_v55  ;;  %v1697_v55 = vld [vmem:[#allocation10 + $0x4b0] sm:$0xff] }
 0x44f   :  { %v10044_v57 = vcombine.low %v1693_v54, %v1697_v55 }
 0x450   :  { %8414 = vmatpush1.bf16.msra.mxu1 %v9996_v12  ;;  %v10038_v12 = vcombine.low %v1686_v31, %v1690_v3 }
 0x451   :  { %8742 = vmatpush1.bf16.msra.mxu0 %v9998_v46  ;;  %8415 = vmatprep.subr.bf16.mxu1 %v10005_v52  ;;  %v10045_v46 = vcombine.high %v1693_v54, %v1697_v55  ;;  %v10047_v52 = vcombine.high %v1694_v4, %v1698_v44  ;;  %v1734_v54 = vld [vmem:[#allocation10 + $0x5d8] sm:$0xff] }
 0x452   :  { %8743 = vmatprep.subr.bf16.mxu0 %v10007_v48  ;;  %v1701_v48 = vld [vmem:[#allocation10 + $0x4d0] sm:$0xff]  ;;  %v1738_v55 = vld [vmem:[#allocation10 + $0x5f8] sm:$0xff] }
 0x454   :  { %8416 = vmatpush1.bf16.msra.mxu1 %v10004_v11  ;;  %v10053_v11 = vcombine.high %v1701_v48, %v1705_v49 }
 0x455   :  { %8744 = vmatpush1.bf16.msra.mxu0 %v10006_v56  ;;  %8417 = vmatprep.subr.bf16.mxu1 %v10013_v14  ;;  %v10055_v56 = vcombine.high %v1702_v50, %v1706_v40  ;;  %v1709_v14 = vld [vmem:[#allocation10 + $0x510] sm:$0xff]  ;;  %v10086_v50 = vcombine.low %v1734_v54, %v1738_v55 }
 0x456   :  { %8745 = vmatprep.subr.bf16.mxu0 %v10015_v62  ;;  %v1713_v62 = vld [vmem:[#allocation10 + $0x530] sm:$0xff] }
 0x457   :  { %v10061_v59 = vcombine.high %v1709_v14, %v1713_v62  ;;  %v10060_v25 = vcombine.low %v1709_v14, %v1713_v62  ;;  %v1754_v14 = vld [vmem:[#allocation10 + $0x678] sm:$0xff] }
 0x458   :  { %8418 = vmatpush1.bf16.msra.mxu1 %v10012_v27  ;;  %v10063_v27 = vcombine.high %v1710_v13, %v1714_v0 }
 0x459   :  { %8746 = vmatpush1.bf16.msra.mxu0 %v10014_v5  ;;  %8419 = vmatprep.subr.bf16.mxu1 %v10021_v23  ;;  %v1717_v5 = vld [vmem:[#allocation10 + $0x550] sm:$0xff] }
 0x45a   :  { %8747 = vmatprep.subr.bf16.mxu0 %v10023_v21  ;;  %v1721_v23 = vld [vmem:[#allocation10 + $0x570] sm:$0xff]  ;;  %v1718_v21 = vld [vmem:[#allocation10 + $0x558] sm:$0xff] }
 0x45b   :  { %v10069_v1 = vcombine.high %v1717_v5, %v1721_v23  ;;  %v10068_v37 = vcombine.low %v1717_v5, %v1721_v23  ;;  %v1762_v5 = vld [vmem:[#allocation10 + $0x6b8] sm:$0xff] }
 0x45c   :  { %8420 = vmatpush1.bf16.msra.mxu1 %v10020_v33  ;;  %v10071_v33 = vcombine.high %v1718_v21, %v1722_v42 }
 0x45d   :  { %8748 = vmatpush1.bf16.msra.mxu0 %v10022_v34  ;;  %8430 = vmatprep.subr.bf16.mxu1 %v10029_v35  ;;  %v1725_v34 = vld [vmem:[#allocation10 + $0x590] sm:$0xff] }
 0x45e   :  { %8758 = vmatprep.subr.bf16.mxu0 %v10031_v39  ;;  %v1729_v35 = vld [vmem:[#allocation10 + $0x5b0] sm:$0xff]  ;;  %v1726_v39 = vld [vmem:[#allocation10 + $0x598] sm:$0xff] }
 0x45f   :  { %8422 = vmatmul.mubr.bf16.vlgmr.msra.gmra.mrb[20].mxu1 %v11851_v17  ;;  %v10077_v31 = vcombine.high %v1725_v34, %v1729_v35  ;;  %v10079_v3 = vcombine.high %v1726_v39, %v1730_v26 }
 0x460   :  { %8750 = vmatmul.mubr.bf16.vlgmr.msra.gmra.mrb[24].mxu0 %v11851_v17  ;;  %8431 = vmatpush1.bf16.msra.mxu1 %v10028_v8  ;;  %v10046_v17 = vcombine.low %v1694_v4, %v1698_v44  ;;  %v10070_v8 = vcombine.low %v1718_v21, %v1722_v42  ;;  %v10078_v4 = vcombine.low %v1726_v39, %v1730_v26 }
 0x461   :  { %8462 = vmatprep.mubr.bf16.mxu1 %v11855_v32  ;;  %8759 = vmatpush1.bf16.msra.mxu0 %v10030_v2  ;;  %v1733_v2 = vld [vmem:[#allocation10 + $0x5d0] sm:$0xff] }
 0x462   :  { %8790 = vmatprep.mubr.bf16.mxu0 %v11855_v32  ;;  %8432 = vmatprep.subr.bf16.mxu1 %v10037_v53  ;;  %v10052_v32 = vcombine.low %v1701_v48, %v1705_v49  ;;  %v1737_v53 = vld [vmem:[#allocation10 + $0x5f0] sm:$0xff]  ;;  %v1746_v48 = vld [vmem:[#allocation10 + $0x638] sm:$0xff] }
 0x463   :  { %8760 = vmatprep.subr.bf16.mxu0 %v10039_v63  ;;  %v10076_v63 = vcombine.low %v1725_v34, %v1729_v35  ;;  %v10085_v44 = vcombine.high %v1733_v2, %v1737_v53  ;;  %v10084_v49 = vcombine.low %v1733_v2, %v1737_v53  ;;  %v1770_v34 = vld [vmem:[#allocation10 + $0x6f8] sm:$0xff] }
 0x464   :  { %8433 = vmatpush1.bf16.msra.mxu1 %v10036_v45  ;;  %v10087_v45 = vcombine.high %v1734_v54, %v1738_v55  ;;  %v1778_v2 = vld [vmem:[#allocation10 + $0x738] sm:$0xff] }
 0x465   :  { %8761 = vmatpush1.bf16.msra.mxu0 %v10038_v12  ;;  %8434 = vmatprep.subr.bf16.mxu1 %v10045_v46  ;;  %v1741_v12 = vld [vmem:[#allocation10 + $0x610] sm:$0xff] }
 0x466   :  { %8762 = vmatprep.subr.bf16.mxu0 %v10047_v52  ;;  %v1745_v46 = vld [vmem:[#allocation10 + $0x630] sm:$0xff]  ;;  %v1742_v52 = vld [vmem:[#allocation10 + $0x618] sm:$0xff] }
 0x467   :  { %v10093_v40 = vcombine.high %v1741_v12, %v1745_v46  ;;  %v10092_v62 = vcombine.low %v1741_v12, %v1745_v46  ;;  %v10094_v13 = vcombine.low %v1742_v52, %v1746_v48  ;;  %v1786_v12 = vld [vmem:[#allocation10 + $0x778] sm:$0xff] }
 0x468   :  { %8435 = vmatpush1.bf16.msra.mxu1 %v10044_v57  ;;  %v10095_v57 = vcombine.high %v1742_v52, %v1746_v48 }
 0x469   :  { %8763 = vmatpush1.bf16.msra.mxu0 %v10046_v17  ;;  %8436 = vmatprep.subr.bf16.mxu1 %v10053_v11  ;;  %v1749_v17 = vld [vmem:[#allocation10 + $0x650] sm:$0xff] }
 0x46a   :  { %8764 = vmatprep.subr.bf16.mxu0 %v10055_v56  ;;  %v1753_v11 = vld [vmem:[#allocation10 + $0x670] sm:$0xff]  ;;  %v1750_v56 = vld [vmem:[#allocation10 + $0x658] sm:$0xff] }
 0x46b   :  { %v10101_v0 = vcombine.high %v1749_v17, %v1753_v11  ;;  %v10100_v23 = vcombine.low %v1749_v17, %v1753_v11  ;;  %v10102_v21 = vcombine.low %v1750_v56, %v1754_v14  ;;  %v1794_v17 = vld [vmem:[#allocation10 + $0x7b8] sm:$0xff] }
 0x46c   :  { %8437 = vmatpush1.bf16.msra.mxu1 %v10052_v32  ;;  %v10103_v32 = vcombine.high %v1750_v56, %v1754_v14 }
 0x46d   :  { %8765 = vmatpush1.bf16.msra.mxu0 %v10054_v19  ;;  %8438 = vmatprep.subr.bf16.mxu1 %v10061_v59  ;;  %v1757_v19 = vld [vmem:[#allocation10 + $0x690] sm:$0xff] }
 0x46e   :  { %8766 = vmatprep.subr.bf16.mxu0 %v10063_v27  ;;  %v1761_v59 = vld [vmem:[#allocation10 + $0x6b0] sm:$0xff]  ;;  %v1758_v27 = vld [vmem:[#allocation10 + $0x698] sm:$0xff] }
 0x46f   :  { %v10109_v42 = vcombine.high %v1757_v19, %v1761_v59  ;;  %v10108_v35 = vcombine.low %v1757_v19, %v1761_v59  ;;  %v10110_v39 = vcombine.low %v1758_v27, %v1762_v5  ;;  %v1802_v19 = vld [vmem:[#allocation10 + $0x7f8] sm:$0xff] }
 0x470   :  { %8439 = vmatpush1.bf16.msra.mxu1 %v10060_v25  ;;  %v10111_v25 = vcombine.high %v1758_v27, %v1762_v5 }
 0x471   :  { %8767 = vmatpush1.bf16.msra.mxu0 %v10062_v61  ;;  %8440 = vmatprep.subr.bf16.mxu1 %v10069_v1  ;;  %v1765_v61 = vld [vmem:[#allocation10 + $0x6d0] sm:$0xff] }
 0x472   :  { %8768 = vmatprep.subr.bf16.mxu0 %v10071_v33  ;;  %v1769_v1 = vld [vmem:[#allocation10 + $0x6f0] sm:$0xff]  ;;  %v1766_v33 = vld [vmem:[#allocation10 + $0x6d8] sm:$0xff] }
 0x473   :  { %v10117_v26 = vcombine.high %v1765_v61, %v1769_v1  ;;  %v10116_v53 = vcombine.low %v1765_v61, %v1769_v1  ;;  %v10118_v54 = vcombine.low %v1766_v33, %v1770_v34  ;;  %v1810_v61 = vld [vmem:[#allocation10 + $0x838] sm:$0xff] }
 0x474   :  { %8441 = vmatpush1.bf16.msra.mxu1 %v10068_v37  ;;  %v10119_v37 = vcombine.high %v1766_v33, %v1770_v34 }
 0x475   :  { %8769 = vmatpush1.bf16.msra.mxu0 %v10070_v8  ;;  %8442 = vmatprep.subr.bf16.mxu1 %v10077_v31  ;;  %v1773_v8 = vld [vmem:[#allocation10 + $0x710] sm:$0xff] }
 0x476   :  { %8770 = vmatprep.subr.bf16.mxu0 %v10079_v3  ;;  %v1777_v31 = vld [vmem:[#allocation10 + $0x730] sm:$0xff]  ;;  %v1774_v3 = vld [vmem:[#allocation10 + $0x718] sm:$0xff] }
 0x477   :  { %v10125_v55 = vcombine.high %v1773_v8, %v1777_v31  ;;  %v10124_v46 = vcombine.low %v1773_v8, %v1777_v31  ;;  %v10126_v52 = vcombine.low %v1774_v3, %v1778_v2  ;;  %v1814_v8 = vld [vmem:[#allocation10 + $0x858] sm:$0xff] }
 0x478   :  { %8443 = vmatpush1.bf16.msra.mxu1 %v10076_v63  ;;  %v10127_v63 = vcombine.high %v1774_v3, %v1778_v2  ;;  %v1818_v31 = vld [vmem:[#allocation10 + $0x878] sm:$0xff] }
 0x479   :  { %8771 = vmatpush1.bf16.msra.mxu0 %v10078_v4  ;;  %8444 = vmatprep.subr.bf16.mxu1 %v10085_v44  ;;  %v1781_v4 = vld [vmem:[#allocation10 + $0x750] sm:$0xff] }
 0x47a   :  { %8772 = vmatprep.subr.bf16.mxu0 %v10087_v45  ;;  %v1785_v44 = vld [vmem:[#allocation10 + $0x770] sm:$0xff]  ;;  %v1782_v45 = vld [vmem:[#allocation10 + $0x758] sm:$0xff] }
 0x47b   :  { %v10133_v48 = vcombine.high %v1781_v4, %v1785_v44  ;;  %v10132_v11 = vcombine.low %v1781_v4, %v1785_v44  ;;  %v10134_v56 = vcombine.low %v1782_v45, %v1786_v12  ;;  %v1826_v4 = vld [vmem:[#allocation10 + $0x8b8] sm:$0xff] }
 0x47c   :  { %8445 = vmatpush1.bf16.msra.mxu1 %v10084_v49  ;;  %v10135_v49 = vcombine.high %v1782_v45, %v1786_v12  ;;  %v10166_v45 = vcombine.low %v1814_v8, %v1818_v31 }
 0x47d   :  { %8773 = vmatpush1.bf16.msra.mxu0 %v10086_v50  ;;  %8446 = vmatprep.subr.bf16.mxu1 %v10093_v40  ;;  %v1789_v50 = vld [vmem:[#allocation10 + $0x790] sm:$0xff] }
 0x47e   :  { %8774 = vmatprep.subr.bf16.mxu0 %v10095_v57  ;;  %v1793_v40 = vld [vmem:[#allocation10 + $0x7b0] sm:$0xff]  ;;  %v1790_v57 = vld [vmem:[#allocation10 + $0x798] sm:$0xff] }
 0x47f   :  { %v10141_v14 = vcombine.high %v1789_v50, %v1793_v40  ;;  %v10140_v59 = vcombine.low %v1789_v50, %v1793_v40  ;;  %v10142_v27 = vcombine.low %v1790_v57, %v1794_v17  ;;  %v1834_v50 = vld [vmem:[#allocation10 + $0x8f8] sm:$0xff] }
 0x480   :  { %8447 = vmatpush1.bf16.msra.mxu1 %v10092_v62  ;;  %v10143_v62 = vcombine.high %v1790_v57, %v1794_v17 }
 0x481   :  { %8775 = vmatpush1.bf16.msra.mxu0 %v10094_v13  ;;  %8448 = vmatprep.subr.bf16.mxu1 %v10101_v0  ;;  %v1797_v13 = vld [vmem:[#allocation10 + $0x7d0] sm:$0xff] }
 0x482   :  { %8776 = vmatprep.subr.bf16.mxu0 %v10103_v32  ;;  %v1801_v0 = vld [vmem:[#allocation10 + $0x7f0] sm:$0xff]  ;;  %v1798_v32 = vld [vmem:[#allocation10 + $0x7d8] sm:$0xff] }
 0x483   :  { %v10149_v5 = vcombine.high %v1797_v13, %v1801_v0  ;;  %v10148_v1 = vcombine.low %v1797_v13, %v1801_v0  ;;  %v10150_v33 = vcombine.low %v1798_v32, %v1802_v19 }
 0x484   :  { %8449 = vmatpush1.bf16.msra.mxu1 %v10100_v23  ;;  %v10151_v23 = vcombine.high %v1798_v32, %v1802_v19  ;;  %v1845_v19 = vld [vmem:[#allocation10 + $0x950] sm:$0xff] }
 0x485   :  { %8777 = vmatpush1.bf16.msra.mxu0 %v10102_v21  ;;  %8450 = vmatprep.subr.bf16.mxu1 %v10109_v42  ;;  %v1805_v21 = vld [vmem:[#allocation10 + $0x810] sm:$0xff] }
 0x486   :  { %8778 = vmatprep.subr.bf16.mxu0 %v10111_v25  ;;  %v1809_v42 = vld [vmem:[#allocation10 + $0x830] sm:$0xff]  ;;  %v1806_v25 = vld [vmem:[#allocation10 + $0x818] sm:$0xff] }
 0x487   :  { %v10157_v34 = vcombine.high %v1805_v21, %v1809_v42  ;;  %v10158_v3 = vcombine.low %v1806_v25, %v1810_v61 }
 0x488   :  { %8451 = vmatpush1.bf16.msra.mxu1 %v10108_v35  ;;  %v10159_v35 = vcombine.high %v1806_v25, %v1810_v61  ;;  %v1853_v61 = vld [vmem:[#allocation10 + $0x990] sm:$0xff] }
 0x489   :  { %8779 = vmatpush1.bf16.msra.mxu0 %v10110_v39  ;;  %8452 = vmatprep.subr.bf16.mxu1 %v10117_v26  ;;  %v1813_v39 = vld [vmem:[#allocation10 + $0x850] sm:$0xff] }
 0x48a   :  { %8780 = vmatprep.subr.bf16.mxu0 %v10119_v37  ;;  %v1817_v26 = vld [vmem:[#allocation10 + $0x870] sm:$0xff]  ;;  %v10156_v37 = vcombine.low %v1805_v21, %v1809_v42 }
 0x48b   :  { %v10165_v2 = vcombine.high %v1813_v39, %v1817_v26  ;;  %v10164_v44 = vcombine.low %v1813_v39, %v1817_v26 }
 0x48c   :  { %8453 = vmatpush1.bf16.msra.mxu1 %v10116_v53  ;;  %v1821_v53 = vld [vmem:[#allocation10 + $0x890] sm:$0xff] }
 0x48d   :  { %8781 = vmatpush1.bf16.msra.mxu0 %v10118_v54  ;;  %8454 = vmatprep.subr.bf16.mxu1 %v10125_v55  ;;  %v1825_v54 = vld [vmem:[#allocation10 + $0x8b0] sm:$0xff]  ;;  %v10167_v55 = vcombine.high %v1814_v8, %v1818_v31 }
 0x48e   :  { %8782 = vmatprep.subr.bf16.mxu0 %v10127_v63  ;;  %v1822_v63 = vld [vmem:[#allocation10 + $0x898] sm:$0xff]  ;;  %v10173_v12 = vcombine.high %v1821_v53, %v1825_v54  ;;  %v10172_v40 = vcombine.low %v1821_v53, %v1825_v54  ;;  %v1861_v8 = vld [vmem:[#allocation10 + $0x9d0] sm:$0xff] }
 0x48f   :  { %v1865_v31 = vld [vmem:[#allocation10 + $0x9f0] sm:$0xff] }
 0x490   :  { %8455 = vmatpush1.bf16.msra.mxu1 %v10124_v46  ;;  %v10175_v46 = vcombine.high %v1822_v63, %v1826_v4 }
 0x491   :  { %8783 = vmatpush1.bf16.msra.mxu0 %v10126_v52  ;;  %8456 = vmatprep.subr.bf16.mxu1 %v10133_v48  ;;  %v1829_v52 = vld [vmem:[#allocation10 + $0x8d0] sm:$0xff] }
 0x492   :  { %8784 = vmatprep.subr.bf16.mxu0 %v10135_v49  ;;  %v1833_v48 = vld [vmem:[#allocation10 + $0x8f0] sm:$0xff]  ;;  %v1830_v49 = vld [vmem:[#allocation10 + $0x8d8] sm:$0xff] }
 0x493   :  { %v10181_v57 = vcombine.high %v1829_v52, %v1833_v48  ;;  %v10183_v17 = vcombine.high %v1830_v49, %v1834_v50  ;;  %v10182_v13 = vcombine.low %v1830_v49, %v1834_v50  ;;  %v1877_v50 = vld [vmem:[#allocation10 + $0xa50] sm:$0xff] }
 0x494   :  { %8457 = vmatpush1.bf16.msra.mxu1 %v10132_v11  ;;  %v1837_v11 = vld [vmem:[#allocation10 + $0x910] sm:$0xff] }
 0x495   :  { %8785 = vmatpush1.bf16.msra.mxu0 %v10134_v56  ;;  %8458 = vmatprep.subr.bf16.mxu1 %v10141_v14  ;;  %v1841_v56 = vld [vmem:[#allocation10 + $0x930] sm:$0xff]  ;;  %v1838_v14 = vld [vmem:[#allocation10 + $0x918] sm:$0xff] }
 0x496   :  { %8786 = vmatprep.subr.bf16.mxu0 %v10143_v62  ;;  %v1842_v62 = vld [vmem:[#allocation10 + $0x938] sm:$0xff]  ;;  %v10189_v0 = vcombine.high %v1837_v11, %v1841_v56 }
 0x497   :  { %v10191_v32 = vcombine.high %v1838_v14, %v1842_v62  ;;  %v10190_v21 = vcombine.low %v1838_v14, %v1842_v62  ;;  %v1885_v62 = vld [vmem:[#allocation10 + $0xa90] sm:$0xff] }
 0x498   :  { %8459 = vmatpush1.bf16.msra.mxu1 %v10140_v59  ;;  %v1849_v59 = vld [vmem:[#allocation10 + $0x970] sm:$0xff] }
 0x499   :  { %8787 = vmatpush1.bf16.msra.mxu0 %v10142_v27  ;;  %8460 = vmatprep.subr.bf16.mxu1 %v10149_v5  ;;  %v1846_v27 = vld [vmem:[#allocation10 + $0x958] sm:$0xff]  ;;  %v10197_v42 = vcombine.high %v1845_v19, %v1849_v59 }
 0x49a   :  { %8788 = vmatprep.subr.bf16.mxu0 %v10151_v23  ;;  %v1850_v5 = vld [vmem:[#allocation10 + $0x978] sm:$0xff]  ;;  %v10188_v23 = vcombine.low %v1837_v11, %v1841_v56 }
 0x49b   :  { %v10199_v25 = vcombine.high %v1846_v27, %v1850_v5  ;;  %v10198_v39 = vcombine.low %v1846_v27, %v1850_v5  ;;  %v1893_v5 = vld [vmem:[#allocation10 + $0xad0] sm:$0xff] }
 0x49c   :  { %8461 = vmatpush1.bf16.msra.mxu1 %v10148_v1  ;;  %v1857_v1 = vld [vmem:[#allocation10 + $0x9b0] sm:$0xff] }
 0x49d   :  { %8789 = vmatpush1.bf16.msra.mxu0 %v10150_v33  ;;  %8471 = vmatprep.subr.bf16.mxu1 %v10157_v34  ;;  %v1854_v33 = vld [vmem:[#allocation10 + $0x998] sm:$0xff]  ;;  %v10205_v26 = vcombine.high %v1853_v61, %v1857_v1  ;;  %v10204_v53 = vcombine.low %v1853_v61, %v1857_v1 }
 0x49e   :  { %8799 = vmatprep.subr.bf16.mxu0 %v10159_v35  ;;  %v1858_v34 = vld [vmem:[#allocation10 + $0x9b8] sm:$0xff]  ;;  %v10196_v35 = vcombine.low %v1845_v19, %v1849_v59 }
 0x49f   :  { %8463 = vmatmul.mubr.bf16.vlgmr.msra.gmra.mrb[20].mxu1 %v11911_v28  ;;  %v10206_v54 = vcombine.low %v1854_v33, %v1858_v34 }
 0x4a0   :  { %8791 = vmatmul.mubr.bf16.vlgmr.msra.gmra.mrb[24].mxu0 %v11911_v28  ;;  %8472 = vmatpush1.bf16.msra.mxu1 %v10156_v37  ;;  %v10174_v28 = vcombine.low %v1822_v63, %v1826_v4  ;;  %v10207_v37 = vcombine.high %v1854_v33, %v1858_v34  ;;  %v1869_v4 = vld [vmem:[#allocation10 + $0xa10] sm:$0xff] }
 0x4a1   :  { %8503 = vmatprep.mubr.bf16.mxu1 %v11913_v30  ;;  %8800 = vmatpush1.bf16.msra.mxu0 %v10158_v3  ;;  %v1862_v3 = vld [vmem:[#allocation10 + $0x9d8] sm:$0xff]  ;;  %v1901_v34 = vld [vmem:[#allocation10 + $0xb10] sm:$0xff] }
 0x4a2   :  { %8831 = vmatprep.mubr.bf16.mxu0 %v11913_v30  ;;  %8473 = vmatprep.subr.bf16.mxu1 %v10165_v2  ;;  %v10180_v30 = vcombine.low %v1829_v52, %v1833_v48  ;;  %v1866_v2 = vld [vmem:[#allocation10 + $0x9f8] sm:$0xff] }
 0x4a3   :  { %8801 = vmatprep.subr.bf16.mxu0 %v10167_v55  ;;  %v10213_v55 = vcombine.high %v1861_v8, %v1865_v31  ;;  %v10215_v63 = vcombine.high %v1862_v3, %v1866_v2  ;;  %v10214_v52 = vcombine.low %v1862_v3, %v1866_v2  ;;  %v1909_v2 = vld [vmem:[#allocation10 + $0xb50] sm:$0xff] }
 0x4a4   :  { %8474 = vmatpush1.bf16.msra.mxu1 %v10164_v44  ;;  %v1873_v44 = vld [vmem:[#allocation10 + $0xa30] sm:$0xff] }
 0x4a5   :  { %8802 = vmatpush1.bf16.msra.mxu0 %v10166_v45  ;;  %8475 = vmatprep.subr.bf16.mxu1 %v10173_v12  ;;  %v1870_v45 = vld [vmem:[#allocation10 + $0xa18] sm:$0xff]  ;;  %v10221_v48 = vcombine.high %v1869_v4, %v1873_v44 }
 0x4a6   :  { %8803 = vmatprep.subr.bf16.mxu0 %v10175_v46  ;;  %v1874_v12 = vld [vmem:[#allocation10 + $0xa38] sm:$0xff]  ;;  %v10212_v46 = vcombine.low %v1861_v8, %v1865_v31 }
 0x4a7   :  { %v10223_v49 = vcombine.high %v1870_v45, %v1874_v12  ;;  %v10222_v11 = vcombine.low %v1870_v45, %v1874_v12  ;;  %v1917_v12 = vld [vmem:[#allocation10 + $0xb90] sm:$0xff] }
 0x4a8   :  { %8476 = vmatpush1.bf16.msra.mxu1 %v10172_v40  ;;  %v1881_v40 = vld [vmem:[#allocation10 + $0xa70] sm:$0xff] }
 0x4a9   :  { %8804 = vmatpush1.bf16.msra.mxu0 %v10174_v28  ;;  %8477 = vmatprep.subr.bf16.mxu1 %v10181_v57  ;;  %v1878_v28 = vld [vmem:[#allocation10 + $0xa58] sm:$0xff]  ;;  %v10229_v56 = vcombine.high %v1877_v50, %v1881_v40 }
 0x4aa   :  { %8805 = vmatprep.subr.bf16.mxu0 %v10183_v17  ;;  %v1882_v57 = vld [vmem:[#allocation10 + $0xa78] sm:$0xff]  ;;  %v10220_v17 = vcombine.low %v1869_v4, %v1873_v44 }
 0x4ab   :  { %v10231_v14 = vcombine.high %v1878_v28, %v1882_v57  ;;  %v10230_v19 = vcombine.low %v1878_v28, %v1882_v57  ;;  %v1925_v57 = vld [vmem:[#allocation10 + $0xbd0] sm:$0xff] }
 0x4ac   :  { %8478 = vmatpush1.bf16.msra.mxu1 %v10180_v30  ;;  %v1889_v30 = vld [vmem:[#allocation10 + $0xab0] sm:$0xff] }
 0x4ad   :  { %8806 = vmatpush1.bf16.msra.mxu0 %v10182_v13  ;;  %8479 = vmatprep.subr.bf16.mxu1 %v10189_v0  ;;  %v1886_v13 = vld [vmem:[#allocation10 + $0xa98] sm:$0xff]  ;;  %v10237_v59 = vcombine.high %v1885_v62, %v1889_v30 }
 0x4ae   :  { %8807 = vmatprep.subr.bf16.mxu0 %v10191_v32  ;;  %v1890_v0 = vld [vmem:[#allocation10 + $0xab8] sm:$0xff]  ;;  %v10228_v32 = vcombine.low %v1877_v50, %v1881_v40 }
 0x4af   :  { %v10239_v27 = vcombine.high %v1886_v13, %v1890_v0  ;;  %v10238_v61 = vcombine.low %v1886_v13, %v1890_v0  ;;  %v1933_v0 = vld [vmem:[#allocation10 + $0xc10] sm:$0xff] }
 0x4b0   :  { %8480 = vmatpush1.bf16.msra.mxu1 %v10188_v23  ;;  %v1897_v23 = vld [vmem:[#allocation10 + $0xaf0] sm:$0xff] }
 0x4b1   :  { %8808 = vmatpush1.bf16.msra.mxu0 %v10190_v21  ;;  %8481 = vmatprep.subr.bf16.mxu1 %v10197_v42  ;;  %v1894_v21 = vld [vmem:[#allocation10 + $0xad8] sm:$0xff]  ;;  %v10245_v1 = vcombine.high %v1893_v5, %v1897_v23 }
 0x4b2   :  { %8809 = vmatprep.subr.bf16.mxu0 %v10199_v25  ;;  %v1898_v42 = vld [vmem:[#allocation10 + $0xaf8] sm:$0xff]  ;;  %v10236_v25 = vcombine.low %v1885_v62, %v1889_v30 }
 0x4b3   :  { %v10247_v33 = vcombine.high %v1894_v21, %v1898_v42  ;;  %v10246_v8 = vcombine.low %v1894_v21, %v1898_v42  ;;  %v1941_v42 = vld [vmem:[#allocation10 + $0xc50] sm:$0xff] }
 0x4b4   :  { %8482 = vmatpush1.bf16.msra.mxu1 %v10196_v35  ;;  %v1905_v35 = vld [vmem:[#allocation10 + $0xb30] sm:$0xff] }
 0x4b5   :  { %8810 = vmatpush1.bf16.msra.mxu0 %v10198_v39  ;;  %8483 = vmatprep.subr.bf16.mxu1 %v10205_v26  ;;  %v1902_v39 = vld [vmem:[#allocation10 + $0xb18] sm:$0xff]  ;;  %v10253_v31 = vcombine.high %v1901_v34, %v1905_v35 }
 0x4b6   :  { %8811 = vmatprep.subr.bf16.mxu0 %v10207_v37  ;;  %v1906_v26 = vld [vmem:[#allocation10 + $0xb38] sm:$0xff]  ;;  %v10244_v37 = vcombine.low %v1893_v5, %v1897_v23 }
 0x4b7   :  { %v10255_v3 = vcombine.high %v1902_v39, %v1906_v26  ;;  %v10254_v4 = vcombine.low %v1902_v39, %v1906_v26  ;;  %v1949_v39 = vld [vmem:[#allocation10 + $0xc90] sm:$0xff] }
 0x4b8   :  { %8484 = vmatpush1.bf16.msra.mxu1 %v10204_v53  ;;  %v1913_v53 = vld [vmem:[#allocation10 + $0xb70] sm:$0xff] }
 0x4b9   :  { %8812 = vmatpush1.bf16.msra.mxu0 %v10206_v54  ;;  %8485 = vmatprep.subr.bf16.mxu1 %v10213_v55  ;;  %v1910_v54 = vld [vmem:[#allocation10 + $0xb58] sm:$0xff]  ;;  %v10261_v44 = vcombine.high %v1909_v2, %v1913_v53  ;;  %v1953_v26 = vld [vmem:[#allocation10 + $0xcb0] sm:$0xff] }
 0x4ba   :  { %8813 = vmatprep.subr.bf16.mxu0 %v10215_v63  ;;  %v1914_v55 = vld [vmem:[#allocation10 + $0xb78] sm:$0xff]  ;;  %v10252_v63 = vcombine.low %v1901_v34, %v1905_v35 }
 0x4bb   :  { %v10263_v45 = vcombine.high %v1910_v54, %v1914_v55  ;;  %v10262_v50 = vcombine.low %v1910_v54, %v1914_v55  ;;  %v1957_v55 = vld [vmem:[#allocation10 + $0xcd0] sm:$0xff] }
 0x4bc   :  { %8486 = vmatpush1.bf16.msra.mxu1 %v10212_v46  ;;  %v1921_v46 = vld [vmem:[#allocation10 + $0xbb0] sm:$0xff] }
 0x4bd   :  { %8814 = vmatpush1.bf16.msra.mxu0 %v10214_v52  ;;  %8487 = vmatprep.subr.bf16.mxu1 %v10221_v48  ;;  %v1918_v52 = vld [vmem:[#allocation10 + $0xb98] sm:$0xff]  ;;  %v10269_v40 = vcombine.high %v1917_v12, %v1921_v46 }
 0x4be   :  { %8815 = vmatprep.subr.bf16.mxu0 %v10223_v49  ;;  %v1922_v48 = vld [vmem:[#allocation10 + $0xbb8] sm:$0xff]  ;;  %v10260_v49 = vcombine.low %v1909_v2, %v1913_v53  ;;  %v10301_v53 = vcombine.high %v1949_v39, %v1953_v26 }
 0x4bf   :  { %v10271_v28 = vcombine.high %v1918_v52, %v1922_v48  ;;  %v10270_v62 = vcombine.low %v1918_v52, %v1922_v48  ;;  %v1965_v52 = vld [vmem:[#allocation10 + $0xd10] sm:$0xff] }
 0x4c0   :  { %8488 = vmatpush1.bf16.msra.mxu1 %v10220_v17  ;;  %v1929_v17 = vld [vmem:[#allocation10 + $0xbf0] sm:$0xff] }
 0x4c1   :  { %8816 = vmatpush1.bf16.msra.mxu0 %v10222_v11  ;;  %8489 = vmatprep.subr.bf16.mxu1 %v10229_v56  ;;  %v1926_v11 = vld [vmem:[#allocation10 + $0xbd8] sm:$0xff]  ;;  %v10277_v30 = vcombine.high %v1925_v57, %v1929_v17  ;;  %v1969_v48 = vld [vmem:[#allocation10 + $0xd30] sm:$0xff] }
 0x4c2   :  { %8817 = vmatprep.subr.bf16.mxu0 %v10231_v14  ;;  %v1930_v56 = vld [vmem:[#allocation10 + $0xbf8] sm:$0xff]  ;;  %v10268_v14 = vcombine.low %v1917_v12, %v1921_v46 }
 0x4c3   :  { %v10279_v13 = vcombine.high %v1926_v11, %v1930_v56  ;;  %v10278_v5 = vcombine.low %v1926_v11, %v1930_v56  ;;  %v1977_v11 = vld [vmem:[#allocation10 + $0xd70] sm:$0xff]  ;;  %v1974_v56 = vld [vmem:[#allocation10 + $0xd58] sm:$0xff] }
 0x4c4   :  { %8490 = vmatpush1.bf16.msra.mxu1 %v10228_v32  ;;  %v1937_v32 = vld [vmem:[#allocation10 + $0xc30] sm:$0xff] }
 0x4c5   :  { %8818 = vmatpush1.bf16.msra.mxu0 %v10230_v19  ;;  %8491 = vmatprep.subr.bf16.mxu1 %v10237_v59  ;;  %v1934_v19 = vld [vmem:[#allocation10 + $0xc18] sm:$0xff]  ;;  %v10285_v23 = vcombine.high %v1933_v0, %v1937_v32 }
 0x4c6   :  { %8819 = vmatprep.subr.bf16.mxu0 %v10239_v27  ;;  %v1938_v59 = vld [vmem:[#allocation10 + $0xc38] sm:$0xff]  ;;  %v10276_v27 = vcombine.low %v1925_v57, %v1929_v17  ;;  %v1973_v17 = vld [vmem:[#allocation10 + $0xd50] sm:$0xff] }
 0x4c7   :  { %v10287_v21 = vcombine.high %v1934_v19, %v1938_v59  ;;  %v10286_v34 = vcombine.low %v1934_v19, %v1938_v59  ;;  %v1981_v19 = vld [vmem:[#allocation10 + $0xd90] sm:$0xff] }
 0x4c8   :  { %8492 = vmatpush1.bf16.msra.mxu1 %v10236_v25  ;;  %v1945_v25 = vld [vmem:[#allocation10 + $0xc70] sm:$0xff] }
 0x4c9   :  { %8820 = vmatpush1.bf16.msra.mxu0 %v10238_v61  ;;  %8493 = vmatprep.subr.bf16.mxu1 %v10245_v1  ;;  %v10284_v61 = vcombine.low %v1933_v0, %v1937_v32  ;;  %v1942_v1 = vld [vmem:[#allocation10 + $0xc58] sm:$0xff]  ;;  %v10293_v35 = vcombine.high %v1941_v42, %v1945_v25  ;;  %v10325_v0 = vcombine.high %v1973_v17, %v1977_v11  ;;  %v1985_v59 = vld [vmem:[#allocation10 + $0xdb0] sm:$0xff] }
 0x4ca   :  { %8821 = vmatprep.subr.bf16.mxu0 %v10247_v33  ;;  %v1946_v33 = vld [vmem:[#allocation10 + $0xc78] sm:$0xff] }
 0x4cb   :  { %v10294_v2 = vcombine.low %v1942_v1, %v1946_v33 }
 0x4cc   :  { %8494 = vmatpush1.bf16.msra.mxu1 %v10244_v37  ;;  %v10295_v37 = vcombine.high %v1942_v1, %v1946_v33  ;;  %v10333_v33 = vcombine.high %v1981_v19, %v1985_v59 }
 0x4cd   :  { %8822 = vmatpush1.bf16.msra.mxu0 %v10246_v8  ;;  %8495 = vmatprep.subr.bf16.mxu1 %v10253_v31  ;;  %v1950_v8 = vld [vmem:[#allocation10 + $0xc98] sm:$0xff] }
 0x4ce   :  { %8823 = vmatprep.subr.bf16.mxu0 %v10255_v3  ;;  %v1954_v31 = vld [vmem:[#allocation10 + $0xcb8] sm:$0xff]  ;;  %v10292_v3 = vcombine.low %v1941_v42, %v1945_v25  ;;  %v10324_v25 = vcombine.low %v1973_v17, %v1977_v11 }
 0x4cf   :  { %v10303_v54 = vcombine.high %v1950_v8, %v1954_v31 }
 0x4d0   :  { %8496 = vmatpush1.bf16.msra.mxu1 %v10252_v63  ;;  %v1961_v63 = vld [vmem:[#allocation10 + $0xcf0] sm:$0xff] }
 0x4d1   :  { %8824 = vmatpush1.bf16.msra.mxu0 %v10254_v4  ;;  %8497 = vmatprep.subr.bf16.mxu1 %v10261_v44  ;;  %v1958_v4 = vld [vmem:[#allocation10 + $0xcd8] sm:$0xff]  ;;  %v10309_v12 = vcombine.high %v1957_v55, %v1961_v63 }
 0x4d2   :  { %8825 = vmatprep.subr.bf16.mxu0 %v10263_v45  ;;  %v1962_v44 = vld [vmem:[#allocation10 + $0xcf8] sm:$0xff]  ;;  %v10300_v45 = vcombine.low %v1949_v39, %v1953_v26  ;;  %v1989_v39 = vld [vmem:[#allocation10 + $0xdd0] sm:$0xff] }
 0x4d3   :  { %v10311_v46 = vcombine.high %v1958_v4, %v1962_v44  ;;  %v1993_v26 = vld [vmem:[#allocation10 + $0xdf0] sm:$0xff] }
 0x4d4   :  { %8498 = vmatpush1.bf16.msra.mxu1 %v10260_v49  ;;  %v1966_v49 = vld [vmem:[#allocation10 + $0xd18] sm:$0xff] }
 0x4d5   :  { %8826 = vmatpush1.bf16.msra.mxu0 %v10262_v50  ;;  %8499 = vmatprep.subr.bf16.mxu1 %v10269_v40  ;;  %v1970_v50 = vld [vmem:[#allocation10 + $0xd38] sm:$0xff]  ;;  %v10310_v40 = vcombine.low %v1958_v4, %v1962_v44 }
 0x4d6   :  { %8827 = vmatprep.subr.bf16.mxu0 %v10271_v28  ;;  %v10317_v28 = vcombine.high %v1965_v52, %v1969_v48  ;;  %v10319_v57 = vcombine.high %v1966_v49, %v1970_v50 }
 0x4d8   :  { %8500 = vmatpush1.bf16.msra.mxu1 %v10268_v14  ;;  %v1978_v14 = vld [vmem:[#allocation10 + $0xd78] sm:$0xff] }
 0x4d9   :  { %8828 = vmatpush1.bf16.msra.mxu0 %v10270_v62  ;;  %8501 = vmatprep.subr.bf16.mxu1 %v10277_v30  ;;  %v10316_v62 = vcombine.low %v1965_v52, %v1969_v48  ;;  %v2571_v30 = vld [vmem:[#allocation12] sm:$0xff]  ;;  %v10327_v32 = vcombine.high %v1974_v56, %v1978_v14  ;;  %v10326_v1 = vcombine.low %v1974_v56, %v1978_v14  ;;  %v1997_v48 = vld [vmem:[#allocation10 + $0xe10] sm:$0xff] }
 0x4da   :  { %8829 = vmatprep.subr.bf16.mxu0 %v10279_v13  ;;  %v10318_v13 = vcombine.low %v1966_v49, %v1970_v50  ;;  %v2580_v42 = vrot.slane %v2571_v30, %v11825_v24  ;;  %v2001_v49 = vld [vmem:[#allocation10 + $0xe30] sm:$0xff] }
 0x4db   :  { %v10349_v17 = vcombine.high %v1997_v48, %v2001_v49  ;;  %v2005_v56 = vld [vmem:[#allocation10 + $0xe50] sm:$0xff] }
 0x4dc   :  { %8502 = vmatpush1.bf16.msra.mxu1 %v10276_v27  ;;  %v2576_v27 = vrot.slane %v2571_v30, %v11822_v22  ;;  %v2009_v14 = vld [vmem:[#allocation10 + $0xe70] sm:$0xff] }
 0x4dd   :  { %8830 = vmatpush1.bf16.msra.mxu0 %v10278_v5  ;;  %8512 = vmatprep.subr.bf16.mxu1 %v10285_v23  ;;  %v1982_v5 = vld [vmem:[#allocation10 + $0xd98] sm:$0xff] }
 0x4de   :  { %8840 = vmatprep.subr.bf16.mxu0 %v10287_v21  ;;  %v1986_v23 = vld [vmem:[#allocation10 + $0xdb8] sm:$0xff]  ;;  %v2584_v21 = vrot.slane %v2571_v30, %v11727_v7 }
 0x4df   :  { %8504 = vmatmul.mubr.bf16.vlgmr.msra.gmra.mrb[20].mxu1 %v11941_v60  ;;  %v10334_v44 = vcombine.low %v1982_v5, %v1986_v23 }
 0x4e0   :  { %8832 = vmatmul.mubr.bf16.vlgmr.msra.gmra.mrb[24].mxu0 %v11941_v60  ;;  %8513 = vmatpush1.bf16.msra.mxu1 %v10284_v61  ;;  %v10302_v60 = vcombine.low %v1950_v8, %v1954_v31  ;;  %v2588_v61 = vrot.slane %v2571_v30, %v11759_v38  ;;  %v1990_v31 = vld [vmem:[#allocation10 + $0xdd8] sm:$0xff] }
 0x4e1   :  { %8544 = vmatprep.mubr.bf16.mxu1 %v11943_v20  ;;  %8841 = vmatpush1.bf16.msra.mxu0 %v10286_v34  ;;  %v2010_v30 = vld [vmem:[#allocation10 + $0xe78] sm:$0xff] }
 0x4e2   :  { %8872 = vmatprep.mubr.bf16.mxu0 %v11943_v20  ;;  %8514 = vmatprep.subr.bf16.mxu1 %v10293_v35  ;;  %v10308_v20 = vcombine.low %v1957_v55, %v1961_v63  ;;  %v10335_v35 = vcombine.high %v1982_v5, %v1986_v23  ;;  %v2014_v5 = vld [vmem:[#allocation10 + $0xe98] sm:$0xff] }
 0x4e3   :  { %8842 = vmatprep.subr.bf16.mxu0 %v10295_v37  ;;  %v2018_v23 = vld [vmem:[#allocation10 + $0xeb8] sm:$0xff] }
 0x4e4   :  { %8515 = vmatpush1.bf16.msra.mxu1 %v10292_v3  ;;  %v1994_v3 = vld [vmem:[#allocation10 + $0xdf8] sm:$0xff] }
 0x4e5   :  { %8843 = vmatpush1.bf16.msra.mxu0 %v10294_v2  ;;  %8516 = vmatprep.subr.bf16.mxu1 %v10301_v53  ;;  %v10343_v52 = vcombine.high %v1990_v31, %v1994_v3 }
 0x4e6   :  { %8844 = vmatprep.subr.bf16.mxu0 %v10303_v54  ;;  %v10332_v54 = vcombine.low %v1981_v19, %v1985_v59  ;;  %v2013_v59 = vld [vmem:[#allocation10 + $0xe90] sm:$0xff] }
 0x4e8   :  { %8517 = vmatpush1.bf16.msra.mxu1 %v10300_v45  ;;  %v10341_v45 = vcombine.high %v1989_v39, %v1993_v26 }
 0x4e9   :  { %8845 = vmatpush1.bf16.msra.mxu0 %v10302_v60  ;;  %8518 = vmatprep.subr.bf16.mxu1 %v10309_v12 }
 0x4ea   :  { %8846 = vmatprep.subr.bf16.mxu0 %v10311_v46 }
 0x4ec   :  { %8519 = vmatpush1.bf16.msra.mxu1 %v10308_v20  ;;  %v1998_v20 = vld [vmem:[#allocation10 + $0xe18] sm:$0xff] }
 0x4ed   :  { %8847 = vmatpush1.bf16.msra.mxu0 %v10310_v40  ;;  %8520 = vmatprep.subr.bf16.mxu1 %v10317_v28  ;;  %v2002_v40 = vld [vmem:[#allocation10 + $0xe38] sm:$0xff]  ;;  %v10340_v28 = vcombine.low %v1989_v39, %v1993_v26  ;;  %v10366_v26 = vcombine.low %v2014_v5, %v2018_v23 }
 0x4ee   :  { %8848 = vmatprep.subr.bf16.mxu0 %v10319_v57  ;;  %v10342_v57 = vcombine.low %v1990_v31, %v1994_v3  ;;  %v10351_v11 = vcombine.high %v1998_v20, %v2002_v40  ;;  %v2033_v31 = vld [vmem:[#allocation10 + $0xf30] sm:$0xff]  ;;  %v2030_v3 = vld [vmem:[#allocation10 + $0xf18] sm:$0xff] }
 0x4f0   :  { %8521 = vmatpush1.bf16.msra.mxu1 %v10316_v62  ;;  %v2006_v62 = vld [vmem:[#allocation10 + $0xe58] sm:$0xff] }
 0x4f1   :  { %8849 = vmatpush1.bf16.msra.mxu0 %v10318_v13  ;;  %8522 = vmatprep.subr.bf16.mxu1 %v10325_v0  ;;  %v10348_v13 = vcombine.low %v1997_v48, %v2001_v49  ;;  %v10350_v0 = vcombine.low %v1998_v20, %v2002_v40  ;;  %v10359_v19 = vcombine.high %v2006_v62, %v2010_v30  ;;  %v2046_v48 = vld [vmem:[#allocation10 + $0xf98] sm:$0xff] }
 0x4f2   :  { %v8054_v34 = vpop.f32.mrb[16].mxu1  ;;  %8850 = vmatprep.subr.bf16.mxu0 %v10327_v32  ;;  %v10357_v32 = vcombine.high %v2005_v56, %v2009_v14  ;;  %v2050_v49 = vld [vmem:[#allocation10 + $0xfb8] sm:$0xff] }
 0x4f3   :  { %v11081_v22 = vadd.f32 %v8054_v34, %v2576_v27  ;;  %v8382_v37 = vpop.f32.mrb[20].mxu0  ;;  %v8056_v8 = vpop.f32.mrb[17].mxu1  ;;  %v2017_v27 = vld [vmem:[#allocation10 + $0xeb0] sm:$0xff]  ;;  %v2022_v34 = vld [vmem:[#allocation10 + $0xed8] sm:$0xff] }
 0x4f4   :  { %v11083_v7 = vadd.f32 %v8382_v37, %v2584_v21  ;;  %v11082_v2 = vadd.f32 %v8056_v8, %v2580_v42  ;;  %v8384_v24 = vpop.f32.mrb[21].mxu0  ;;  %v8058_v53 = vpop.f32.mrb[18].mxu1  ;;  %8523 = vmatpush1.bf16.msra.mxu1 %v10324_v25  ;;  %v10356_v21 = vcombine.low %v2005_v56, %v2009_v14  ;;  %v10358_v42 = vcombine.low %v2006_v62, %v2010_v30  ;;  %v2029_v8 = vld [vmem:[#allocation10 + $0xf10] sm:$0xff]  ;;  %v2058_v56 = vld [vmem:[#allocation10 + $0xff8] sm:$0xff] }
 0x4f5   :  { %v9045_v38 = vmax.f32 %v11081_v22, 0.0  ;;  %v11084_v55 = vadd.f32 %v8384_v24, %v2588_v61  ;;  %v8386_v63 = vpop.f32.mrb[22].mxu0  ;;  %8851 = vmatpush1.bf16.msra.mxu0 %v10326_v1  ;;  %v8059_v4 = vpop.f32.mrb[19].mxu1  ;;  %8524 = vmatprep.subr.bf16.mxu1 %v10333_v33  ;;  %v10365_v25 = vcombine.high %v2013_v59, %v2017_v27  ;;  %v10367_v61 = vcombine.high %v2014_v5, %v2018_v23  ;;  %v2021_v1 = vld [vmem:[#allocation10 + $0xed0] sm:$0xff] }
 0x4f6   :  { %v9047_v60 = vmax.f32 %v11083_v7, 0.0  ;;  %v9046_v12 = vmax.f32 %v11082_v2, 0.0  ;;  %v8387_v46 = vpop.f32.mrb[23].mxu0  ;;  %8852 = vmatprep.subr.bf16.mxu0 %v10335_v35  ;;  %v2025_v33 = vld [vmem:[#allocation10 + $0xef0] sm:$0xff]  ;;  %v2026_v35 = vld [vmem:[#allocation10 + $0xef8] sm:$0xff]  ;;  %v10364_v39 = vcombine.low %v2013_v59, %v2017_v27  ;;  %v10381_v53 = vcombine.high %v2029_v8, %v2033_v31 }
 0x4f7   :  { %9053 = vst [vmem:[%s12088_s12] sm:$0xff] %v9045_v38  ;;  %v9048_v50 = vmax.f32 %v11084_v55, 0.0  ;;  %v10373_v22 = vcombine.high %v2021_v1, %v2025_v33  ;;  %v10375_v37 = vcombine.high %v2022_v34, %v2026_v35  ;;  %v2034_v7 = vld [vmem:[#allocation10 + $0xf38] sm:$0xff]  ;;  %v10372_v2 = vcombine.low %v2021_v1, %v2025_v33  ;;  %v2037_v38 = vld [vmem:[#allocation10 + $0xf50] sm:$0xff] }
 0x4f8   :  { %9055 = vst [vmem:[%s12088_s12 + $0x10] sm:$0xff] %v9047_v60  ;;  %9054 = vst [vmem:[%s12088_s12 + $0x8] sm:$0xff] %v9046_v12  ;;  %8525 = vmatpush1.bf16.msra.mxu1 %v10332_v54  ;;  %v10374_v24 = vcombine.low %v2022_v34, %v2026_v35  ;;  %v10383_v54 = vcombine.high %v2030_v3, %v2034_v7  ;;  %v2041_v55 = vld [vmem:[#allocation10 + $0xf70] sm:$0xff]  ;;  %v2038_v63 = vld [vmem:[#allocation10 + $0xf58] sm:$0xff]  ;;  %v10398_v62 = vcombine.low %v2046_v48, %v2050_v49 }
 0x4f9   :  { %9056 = vst [vmem:[%s12088_s12 + $0x18] sm:$0xff] %v9048_v50  ;;  %8853 = vmatpush1.bf16.msra.mxu0 %v10334_v44  ;;  %8526 = vmatprep.subr.bf16.mxu1 %v10341_v45  ;;  %v2042_v4 = vld [vmem:[#allocation10 + $0xf78] sm:$0xff]  ;;  %v10380_v44 = vcombine.low %v2029_v8, %v2033_v31  ;;  %v10382_v45 = vcombine.low %v2030_v3, %v2034_v7  ;;  %v2045_v46 = vld [vmem:[#allocation10 + $0xf90] sm:$0xff] }
 0x4fa   :  { %8854 = vmatprep.subr.bf16.mxu0 %v10343_v52  ;;  %v10389_v60 = vcombine.high %v2037_v38, %v2041_v55  ;;  %v10391_v12 = vcombine.high %v2038_v63, %v2042_v4  ;;  %v2049_v52 = vld [vmem:[#allocation10 + $0xfb0] sm:$0xff]  ;;  %v10388_v50 = vcombine.low %v2037_v38, %v2041_v55  ;;  %v10390_v20 = vcombine.low %v2038_v63, %v2042_v4  ;;  %v2066_v59 = vld [vmem:[#allocation10 + $0x1038] sm:$0xff] }
 0x4fb   :  { %v10397_v40 = vcombine.high %v2045_v46, %v2049_v52  ;;  %v10396_v14 = vcombine.low %v2045_v46, %v2049_v52  ;;  %v2070_v1 = vld [vmem:[#allocation10 + $0x1058] sm:$0xff] }
 0x4fc   :  { %8527 = vmatpush1.bf16.msra.mxu1 %v10340_v28  ;;  %v10399_v28 = vcombine.high %v2046_v48, %v2050_v49  ;;  %v2074_v33 = vld [vmem:[#allocation10 + $0x1078] sm:$0xff]  ;;  %v2101_v49 = vld [vmem:[#allocation10 + $0x1150] sm:$0xff] }
 0x4fd   :  { %8855 = vmatpush1.bf16.msra.mxu0 %v10342_v57  ;;  %8528 = vmatprep.subr.bf16.mxu1 %v10349_v17  ;;  %v2053_v57 = vld [vmem:[#allocation10 + $0xfd0] sm:$0xff]  ;;  %v2082_v8 = vld [vmem:[#allocation10 + $0x10b8] sm:$0xff]  ;;  %v10422_v3 = vcombine.low %v2070_v1, %v2074_v33 }
 0x4fe   :  { %8856 = vmatprep.subr.bf16.mxu0 %v10351_v11  ;;  %v2057_v17 = vld [vmem:[#allocation10 + $0xff0] sm:$0xff]  ;;  %v2054_v11 = vld [vmem:[#allocation10 + $0xfd8] sm:$0xff] }
 0x4ff   :  { %v10405_v30 = vcombine.high %v2053_v57, %v2057_v17  ;;  %v10404_v27 = vcombine.low %v2053_v57, %v2057_v17  ;;  %v10406_v5 = vcombine.low %v2054_v11, %v2058_v56  ;;  %v2090_v38 = vld [vmem:[#allocation10 + $0x10f8] sm:$0xff] }
 0x500   :  { %8529 = vmatpush1.bf16.msra.mxu1 %v10348_v13  ;;  %v10407_v13 = vcombine.high %v2054_v11, %v2058_v56  ;;  %v2109_v56 = vld [vmem:[#allocation10 + $0x1190] sm:$0xff] }
 0x501   :  { %8857 = vmatpush1.bf16.msra.mxu0 %v10350_v0  ;;  %8530 = vmatprep.subr.bf16.mxu1 %v10357_v32  ;;  %v2061_v0 = vld [vmem:[#allocation10 + $0x1010] sm:$0xff] }
 0x502   :  { %8858 = vmatprep.subr.bf16.mxu0 %v10359_v19  ;;  %v2065_v32 = vld [vmem:[#allocation10 + $0x1030] sm:$0xff]  ;;  %v2062_v19 = vld [vmem:[#allocation10 + $0x1018] sm:$0xff] }
 0x503   :  { %v10413_v23 = vcombine.high %v2061_v0, %v2065_v32  ;;  %v10414_v34 = vcombine.low %v2062_v19, %v2066_v59 }
 0x504   :  { %8531 = vmatpush1.bf16.msra.mxu1 %v10356_v21  ;;  %v10415_v21 = vcombine.high %v2062_v19, %v2066_v59  ;;  %v2117_v59 = vld [vmem:[#allocation10 + $0x11d0] sm:$0xff] }
 0x505   :  { %8859 = vmatpush1.bf16.msra.mxu0 %v10358_v42  ;;  %8532 = vmatprep.subr.bf16.mxu1 %v10365_v25  ;;  %v2069_v42 = vld [vmem:[#allocation10 + $0x1050] sm:$0xff] }
 0x506   :  { %8860 = vmatprep.subr.bf16.mxu0 %v10367_v61  ;;  %v2073_v25 = vld [vmem:[#allocation10 + $0x1070] sm:$0xff]  ;;  %v10412_v61 = vcombine.low %v2061_v0, %v2065_v32 }
 0x507   :  { %v10421_v35 = vcombine.high %v2069_v42, %v2073_v25  ;;  %v10420_v31 = vcombine.low %v2069_v42, %v2073_v25 }
 0x508   :  { %8533 = vmatpush1.bf16.msra.mxu1 %v10364_v39  ;;  %v2077_v39 = vld [vmem:[#allocation10 + $0x1090] sm:$0xff] }
 0x509   :  { %8861 = vmatpush1.bf16.msra.mxu0 %v10366_v26  ;;  %8534 = vmatprep.subr.bf16.mxu1 %v10373_v22  ;;  %v2081_v26 = vld [vmem:[#allocation10 + $0x10b0] sm:$0xff]  ;;  %v10423_v22 = vcombine.high %v2070_v1, %v2074_v33 }
 0x50a   :  { %8862 = vmatprep.subr.bf16.mxu0 %v10375_v37  ;;  %v2078_v37 = vld [vmem:[#allocation10 + $0x1098] sm:$0xff]  ;;  %v10429_v7 = vcombine.high %v2077_v39, %v2081_v26  ;;  %v10428_v55 = vcombine.low %v2077_v39, %v2081_v26  ;;  %v2125_v1 = vld [vmem:[#allocation10 + $0x1210] sm:$0xff] }
 0x50b   :  { %v2129_v33 = vld [vmem:[#allocation10 + $0x1230] sm:$0xff] }
 0x50c   :  { %8535 = vmatpush1.bf16.msra.mxu1 %v10372_v2  ;;  %v10431_v2 = vcombine.high %v2078_v37, %v2082_v8 }
 0x50d   :  { %8863 = vmatpush1.bf16.msra.mxu0 %v10374_v24  ;;  %8536 = vmatprep.subr.bf16.mxu1 %v10381_v53  ;;  %v2085_v24 = vld [vmem:[#allocation10 + $0x10d0] sm:$0xff] }
 0x50e   :  { %8864 = vmatprep.subr.bf16.mxu0 %v10383_v54  ;;  %v2089_v53 = vld [vmem:[#allocation10 + $0x10f0] sm:$0xff]  ;;  %v2086_v54 = vld [vmem:[#allocation10 + $0x10d8] sm:$0xff] }
 0x50f   :  { %v10437_v63 = vcombine.high %v2085_v24, %v2089_v53  ;;  %v10439_v4 = vcombine.high %v2086_v54, %v2090_v38  ;;  %v10438_v46 = vcombine.low %v2086_v54, %v2090_v38  ;;  %v2141_v38 = vld [vmem:[#allocation10 + $0x1290] sm:$0xff] }
 0x510   :  { %8537 = vmatpush1.bf16.msra.mxu1 %v10380_v44  ;;  %v2093_v44 = vld [vmem:[#allocation10 + $0x1110] sm:$0xff] }
 0x511   :  { %8865 = vmatpush1.bf16.msra.mxu0 %v10382_v45  ;;  %8538 = vmatprep.subr.bf16.mxu1 %v10389_v60  ;;  %v2097_v45 = vld [vmem:[#allocation10 + $0x1130] sm:$0xff]  ;;  %v2094_v60 = vld [vmem:[#allocation10 + $0x1118] sm:$0xff] }
 0x512   :  { %8866 = vmatprep.subr.bf16.mxu0 %v10391_v12  ;;  %v2098_v12 = vld [vmem:[#allocation10 + $0x1138] sm:$0xff]  ;;  %v10445_v52 = vcombine.high %v2093_v44, %v2097_v45 }
 0x513   :  { %v10447_v48 = vcombine.high %v2094_v60, %v2098_v12  ;;  %v10446_v57 = vcombine.low %v2094_v60, %v2098_v12  ;;  %v2149_v12 = vld [vmem:[#allocation10 + $0x12d0] sm:$0xff] }
 0x514   :  { %8539 = vmatpush1.bf16.msra.mxu1 %v10388_v50  ;;  %v2105_v50 = vld [vmem:[#allocation10 + $0x1170] sm:$0xff] }
 0x515   :  { %8867 = vmatpush1.bf16.msra.mxu0 %v10390_v20  ;;  %8540 = vmatprep.subr.bf16.mxu1 %v10397_v40  ;;  %v2102_v20 = vld [vmem:[#allocation10 + $0x1158] sm:$0xff]  ;;  %v10453_v17 = vcombine.high %v2101_v49, %v2105_v50 }
 0x516   :  { %8868 = vmatprep.subr.bf16.mxu0 %v10399_v28  ;;  %v2106_v40 = vld [vmem:[#allocation10 + $0x1178] sm:$0xff]  ;;  %v10444_v28 = vcombine.low %v2093_v44, %v2097_v45 }
 0x517   :  { %v10455_v11 = vcombine.high %v2102_v20, %v2106_v40  ;;  %v10454_v0 = vcombine.low %v2102_v20, %v2106_v40  ;;  %v2157_v40 = vld [vmem:[#allocation10 + $0x1310] sm:$0xff] }
 0x518   :  { %8541 = vmatpush1.bf16.msra.mxu1 %v10396_v14  ;;  %v2113_v14 = vld [vmem:[#allocation10 + $0x11b0] sm:$0xff] }
 0x519   :  { %8869 = vmatpush1.bf16.msra.mxu0 %v10398_v62  ;;  %8542 = vmatprep.subr.bf16.mxu1 %v10405_v30  ;;  %v2110_v62 = vld [vmem:[#allocation10 + $0x1198] sm:$0xff]  ;;  %v10461_v32 = vcombine.high %v2109_v56, %v2113_v14 }
 0x51a   :  { %8870 = vmatprep.subr.bf16.mxu0 %v10407_v13  ;;  %v2114_v30 = vld [vmem:[#allocation10 + $0x11b8] sm:$0xff]  ;;  %v10452_v13 = vcombine.low %v2101_v49, %v2105_v50 }
 0x51b   :  { %v10463_v19 = vcombine.high %v2110_v62, %v2114_v30  ;;  %v10462_v42 = vcombine.low %v2110_v62, %v2114_v30  ;;  %v2165_v30 = vld [vmem:[#allocation10 + $0x1350] sm:$0xff] }
 0x51c   :  { %8543 = vmatpush1.bf16.msra.mxu1 %v10404_v27  ;;  %v2121_v27 = vld [vmem:[#allocation10 + $0x11f0] sm:$0xff] }
 0x51d   :  { %8871 = vmatpush1.bf16.msra.mxu0 %v10406_v5  ;;  %8553 = vmatprep.subr.bf16.mxu1 %v10413_v23  ;;  %v2118_v5 = vld [vmem:[#allocation10 + $0x11d8] sm:$0xff]  ;;  %v10469_v25 = vcombine.high %v2117_v59, %v2121_v27  ;;  %v10468_v39 = vcombine.low %v2117_v59, %v2121_v27 }
 0x51e   :  { %8881 = vmatprep.subr.bf16.mxu0 %v10415_v21  ;;  %v2122_v23 = vld [vmem:[#allocation10 + $0x11f8] sm:$0xff]  ;;  %v10460_v21 = vcombine.low %v2109_v56, %v2113_v14 }
 0x51f   :  { %8545 = vmatmul.mubr.bf16.vlgmr.msra.gmra.mrb[20].mxu1 %v11953_v29  ;;  %v10470_v26 = vcombine.low %v2118_v5, %v2122_v23 }
 0x520   :  { %8873 = vmatmul.mubr.bf16.vlgmr.msra.gmra.mrb[24].mxu0 %v11953_v29  ;;  %8554 = vmatpush1.bf16.msra.mxu1 %v10412_v61  ;;  %v10430_v29 = vcombine.low %v2078_v37, %v2082_v8  ;;  %v10471_v61 = vcombine.high %v2118_v5, %v2122_v23  ;;  %v2133_v8 = vld [vmem:[#allocation10 + $0x1250] sm:$0xff] }
 0x521   :  { %8585 = vmatprep.mubr.bf16.mxu1 %v11955_v58  ;;  %8882 = vmatpush1.bf16.msra.mxu0 %v10414_v34  ;;  %v2126_v34 = vld [vmem:[#allocation10 + $0x1218] sm:$0xff]  ;;  %v2173_v23 = vld [vmem:[#allocation10 + $0x1390] sm:$0xff] }
 0x522   :  { %8913 = vmatprep.mubr.bf16.mxu0 %v11955_v58  ;;  %8555 = vmatprep.subr.bf16.mxu1 %v10421_v35  ;;  %v10436_v58 = vcombine.low %v2085_v24, %v2089_v53  ;;  %v2130_v35 = vld [vmem:[#allocation10 + $0x1238] sm:$0xff] }
 0x523   :  { %8883 = vmatprep.subr.bf16.mxu0 %v10423_v22  ;;  %v10477_v22 = vcombine.high %v2125_v1, %v2129_v33  ;;  %v10479_v37 = vcombine.high %v2126_v34, %v2130_v35  ;;  %v10478_v24 = vcombine.low %v2126_v34, %v2130_v35  ;;  %v2181_v35 = vld [vmem:[#allocation10 + $0x13d0] sm:$0xff] }
 0x524   :  { %8556 = vmatpush1.bf16.msra.mxu1 %v10420_v31  ;;  %v2137_v31 = vld [vmem:[#allocation10 + $0x1270] sm:$0xff] }
 0x525   :  { %8884 = vmatpush1.bf16.msra.mxu0 %v10422_v3  ;;  %8557 = vmatprep.subr.bf16.mxu1 %v10429_v7  ;;  %v2134_v3 = vld [vmem:[#allocation10 + $0x1258] sm:$0xff]  ;;  %v10485_v53 = vcombine.high %v2133_v8, %v2137_v31 }
 0x526   :  { %8885 = vmatprep.subr.bf16.mxu0 %v10431_v2  ;;  %v2138_v7 = vld [vmem:[#allocation10 + $0x1278] sm:$0xff]  ;;  %v10476_v2 = vcombine.low %v2125_v1, %v2129_v33 }
 0x527   :  { %v10487_v54 = vcombine.high %v2134_v3, %v2138_v7  ;;  %v10486_v44 = vcombine.low %v2134_v3, %v2138_v7  ;;  %v2189_v7 = vld [vmem:[#allocation10 + $0x1410] sm:$0xff] }
 0x528   :  { %8558 = vmatpush1.bf16.msra.mxu1 %v10428_v55  ;;  %v2145_v55 = vld [vmem:[#allocation10 + $0x12b0] sm:$0xff] }
 0x529   :  { %8886 = vmatpush1.bf16.msra.mxu0 %v10430_v29  ;;  %8559 = vmatprep.subr.bf16.mxu1 %v10437_v63  ;;  %v2142_v29 = vld [vmem:[#allocation10 + $0x1298] sm:$0xff]  ;;  %v10493_v45 = vcombine.high %v2141_v38, %v2145_v55 }
 0x52a   :  { %8887 = vmatprep.subr.bf16.mxu0 %v10439_v4  ;;  %v2146_v63 = vld [vmem:[#allocation10 + $0x12b8] sm:$0xff]  ;;  %v10484_v4 = vcombine.low %v2133_v8, %v2137_v31 }
 0x52b   :  { %v10495_v60 = vcombine.high %v2142_v29, %v2146_v63  ;;  %v10494_v49 = vcombine.low %v2142_v29, %v2146_v63  ;;  %v2197_v63 = vld [vmem:[#allocation10 + $0x1450] sm:$0xff] }
 0x52c   :  { %8560 = vmatpush1.bf16.msra.mxu1 %v10436_v58  ;;  %v2153_v58 = vld [vmem:[#allocation10 + $0x12f0] sm:$0xff] }
 0x52d   :  { %8888 = vmatpush1.bf16.msra.mxu0 %v10438_v46  ;;  %8561 = vmatprep.subr.bf16.mxu1 %v10445_v52  ;;  %v2150_v46 = vld [vmem:[#allocation10 + $0x12d8] sm:$0xff]  ;;  %v10501_v50 = vcombine.high %v2149_v12, %v2153_v58 }
 0x52e   :  { %8889 = vmatprep.subr.bf16.mxu0 %v10447_v48  ;;  %v2154_v52 = vld [vmem:[#allocation10 + $0x12f8] sm:$0xff]  ;;  %v10492_v48 = vcombine.low %v2141_v38, %v2145_v55 }
 0x52f   :  { %v10503_v20 = vcombine.high %v2150_v46, %v2154_v52  ;;  %v10502_v56 = vcombine.low %v2150_v46, %v2154_v52  ;;  %v2205_v46 = vld [vmem:[#allocation10 + $0x1490] sm:$0xff] }
 0x530   :  { %8562 = vmatpush1.bf16.msra.mxu1 %v10444_v28  ;;  %v2161_v28 = vld [vmem:[#allocation10 + $0x1330] sm:$0xff] }
 0x531   :  { %8890 = vmatpush1.bf16.msra.mxu0 %v10446_v57  ;;  %8563 = vmatprep.subr.bf16.mxu1 %v10453_v17  ;;  %v2158_v57 = vld [vmem:[#allocation10 + $0x1318] sm:$0xff]  ;;  %v10509_v14 = vcombine.high %v2157_v40, %v2161_v28  ;;  %v2209_v52 = vld [vmem:[#allocation10 + $0x14b0] sm:$0xff] }
 0x532   :  { %8891 = vmatprep.subr.bf16.mxu0 %v10455_v11  ;;  %v2162_v17 = vld [vmem:[#allocation10 + $0x1338] sm:$0xff]  ;;  %v10500_v11 = vcombine.low %v2149_v12, %v2153_v58 }
 0x533   :  { %v10511_v62 = vcombine.high %v2158_v57, %v2162_v17  ;;  %v10510_v59 = vcombine.low %v2158_v57, %v2162_v17  ;;  %v2213_v17 = vld [vmem:[#allocation10 + $0x14d0] sm:$0xff] }
 0x534   :  { %8564 = vmatpush1.bf16.msra.mxu1 %v10452_v13  ;;  %v2169_v13 = vld [vmem:[#allocation10 + $0x1370] sm:$0xff] }
 0x535   :  { %8892 = vmatpush1.bf16.msra.mxu0 %v10454_v0  ;;  %8565 = vmatprep.subr.bf16.mxu1 %v10461_v32  ;;  %v2166_v0 = vld [vmem:[#allocation10 + $0x1358] sm:$0xff]  ;;  %v10517_v27 = vcombine.high %v2165_v30, %v2169_v13 }
 0x536   :  { %8893 = vmatprep.subr.bf16.mxu0 %v10463_v19  ;;  %v2170_v32 = vld [vmem:[#allocation10 + $0x1378] sm:$0xff]  ;;  %v10508_v19 = vcombine.low %v2157_v40, %v2161_v28  ;;  %v10557_v28 = vcombine.high %v2205_v46, %v2209_v52 }
 0x537   :  { %v10519_v5 = vcombine.high %v2166_v0, %v2170_v32  ;;  %v10518_v1 = vcombine.low %v2166_v0, %v2170_v32  ;;  %v2221_v0 = vld [vmem:[#allocation10 + $0x1510] sm:$0xff] }
 0x538   :  { %8566 = vmatpush1.bf16.msra.mxu1 %v10460_v21  ;;  %v2177_v21 = vld [vmem:[#allocation10 + $0x13b0] sm:$0xff] }
 0x539   :  { %8894 = vmatpush1.bf16.msra.mxu0 %v10462_v42  ;;  %8567 = vmatprep.subr.bf16.mxu1 %v10469_v25  ;;  %v2174_v42 = vld [vmem:[#allocation10 + $0x1398] sm:$0xff]  ;;  %v10525_v33 = vcombine.high %v2173_v23, %v2177_v21  ;;  %v2225_v32 = vld [vmem:[#allocation10 + $0x1530] sm:$0xff] }
 0x53a   :  { %8895 = vmatprep.subr.bf16.mxu0 %v10471_v61  ;;  %v2178_v25 = vld [vmem:[#allocation10 + $0x13b8] sm:$0xff]  ;;  %v10516_v61 = vcombine.low %v2165_v30, %v2169_v13 }
 0x53b   :  { %v10527_v34 = vcombine.high %v2174_v42, %v2178_v25  ;;  %v10526_v8 = vcombine.low %v2174_v42, %v2178_v25  ;;  %v2233_v42 = vld [vmem:[#allocation10 + $0x1570] sm:$0xff]  ;;  %v2230_v25 = vld [vmem:[#allocation10 + $0x1558] sm:$0xff] }
 0x53c   :  { %8568 = vmatpush1.bf16.msra.mxu1 %v10468_v39  ;;  %v2185_v39 = vld [vmem:[#allocation10 + $0x13f0] sm:$0xff] }
 0x53d   :  { %8896 = vmatpush1.bf16.msra.mxu0 %v10470_v26  ;;  %8569 = vmatprep.subr.bf16.mxu1 %v10477_v22  ;;  %v2182_v26 = vld [vmem:[#allocation10 + $0x13d8] sm:$0xff]  ;;  %v10533_v31 = vcombine.high %v2181_v35, %v2185_v39 }
 0x53e   :  { %8897 = vmatprep.subr.bf16.mxu0 %v10479_v37  ;;  %v2186_v22 = vld [vmem:[#allocation10 + $0x13f8] sm:$0xff]  ;;  %v10524_v37 = vcombine.low %v2173_v23, %v2177_v21  ;;  %v2229_v21 = vld [vmem:[#allocation10 + $0x1550] sm:$0xff] }
 0x53f   :  { %v10535_v3 = vcombine.high %v2182_v26, %v2186_v22  ;;  %v10534_v38 = vcombine.low %v2182_v26, %v2186_v22  ;;  %v2241_v26 = vld [vmem:[#allocation10 + $0x15b0] sm:$0xff]  ;;  %v2238_v22 = vld [vmem:[#allocation10 + $0x1598] sm:$0xff] }
 0x540   :  { %8570 = vmatpush1.bf16.msra.mxu1 %v10476_v2  ;;  %v2193_v2 = vld [vmem:[#allocation10 + $0x1430] sm:$0xff] }
 0x541   :  { %8898 = vmatpush1.bf16.msra.mxu0 %v10478_v24  ;;  %8571 = vmatprep.subr.bf16.mxu1 %v10485_v53  ;;  %v2190_v24 = vld [vmem:[#allocation10 + $0x1418] sm:$0xff]  ;;  %v10541_v55 = vcombine.high %v2189_v7, %v2193_v2 }
 0x542   :  { %8899 = vmatprep.subr.bf16.mxu0 %v10487_v54  ;;  %v2194_v53 = vld [vmem:[#allocation10 + $0x1438] sm:$0xff]  ;;  %v10532_v54 = vcombine.low %v2181_v35, %v2185_v39  ;;  %v2237_v39 = vld [vmem:[#allocation10 + $0x1590] sm:$0xff] }
 0x543   :  { %v10543_v29 = vcombine.high %v2190_v24, %v2194_v53  ;;  %v10542_v12 = vcombine.low %v2190_v24, %v2194_v53  ;;  %v2249_v24 = vld [vmem:[#allocation10 + $0x15f0] sm:$0xff]  ;;  %v2246_v53 = vld [vmem:[#allocation10 + $0x15d8] sm:$0xff] }
 0x544   :  { %8572 = vmatpush1.bf16.msra.mxu1 %v10484_v4  ;;  %v2201_v4 = vld [vmem:[#allocation10 + $0x1470] sm:$0xff] }
 0x545   :  { %8900 = vmatpush1.bf16.msra.mxu0 %v10486_v44  ;;  %8573 = vmatprep.subr.bf16.mxu1 %v10493_v45  ;;  %v10540_v44 = vcombine.low %v2189_v7, %v2193_v2  ;;  %v2198_v45 = vld [vmem:[#allocation10 + $0x1458] sm:$0xff]  ;;  %v10549_v58 = vcombine.high %v2197_v63, %v2201_v4  ;;  %v2245_v2 = vld [vmem:[#allocation10 + $0x15d0] sm:$0xff] }
 0x546   :  { %8901 = vmatprep.subr.bf16.mxu0 %v10495_v60  ;;  %v2202_v60 = vld [vmem:[#allocation10 + $0x1478] sm:$0xff] }
 0x547   :  { %v10550_v40 = vcombine.low %v2198_v45, %v2202_v60 }
 0x548   :  { %8574 = vmatpush1.bf16.msra.mxu1 %v10492_v48  ;;  %v10551_v48 = vcombine.high %v2198_v45, %v2202_v60  ;;  %v2254_v45 = vld [vmem:[#allocation10 + $0x1618] sm:$0xff] }
 0x549   :  { %8902 = vmatpush1.bf16.msra.mxu0 %v10494_v49  ;;  %8575 = vmatprep.subr.bf16.mxu1 %v10501_v50  ;;  %v2206_v49 = vld [vmem:[#allocation10 + $0x1498] sm:$0xff] }
 0x54a   :  { %8903 = vmatprep.subr.bf16.mxu0 %v10503_v20  ;;  %v2210_v50 = vld [vmem:[#allocation10 + $0x14b8] sm:$0xff]  ;;  %v10548_v20 = vcombine.low %v2197_v63, %v2201_v4  ;;  %v2253_v4 = vld [vmem:[#allocation10 + $0x1610] sm:$0xff] }
 0x54b   :  { %v10559_v57 = vcombine.high %v2206_v49, %v2210_v50  ;;  %v2258_v60 = vld [vmem:[#allocation10 + $0x1638] sm:$0xff] }
 0x54c   :  { %8576 = vmatpush1.bf16.msra.mxu1 %v10500_v11  ;;  %v2217_v11 = vld [vmem:[#allocation10 + $0x14f0] sm:$0xff] }
 0x54d   :  { %8904 = vmatpush1.bf16.msra.mxu0 %v10502_v56  ;;  %8577 = vmatprep.subr.bf16.mxu1 %v10509_v14  ;;  %v2214_v56 = vld [vmem:[#allocation10 + $0x14d8] sm:$0xff]  ;;  %v10565_v30 = vcombine.high %v2213_v17, %v2217_v11 }
 0x54e   :  { %8905 = vmatprep.subr.bf16.mxu0 %v10511_v62  ;;  %v2218_v14 = vld [vmem:[#allocation10 + $0x14f8] sm:$0xff]  ;;  %v10556_v62 = vcombine.low %v2205_v46, %v2209_v52  ;;  %v10607_v52 = vcombine.high %v2254_v45, %v2258_v60 }
 0x54f   :  { %v10567_v13 = vcombine.high %v2214_v56, %v2218_v14 }
 0x550   :  { %8578 = vmatpush1.bf16.msra.mxu1 %v10508_v19  ;;  %v2222_v19 = vld [vmem:[#allocation10 + $0x1518] sm:$0xff] }
 0x551   :  { %8906 = vmatpush1.bf16.msra.mxu0 %v10510_v59  ;;  %8579 = vmatprep.subr.bf16.mxu1 %v10517_v27  ;;  %v2226_v59 = vld [vmem:[#allocation10 + $0x1538] sm:$0xff]  ;;  %v10566_v27 = vcombine.low %v2214_v56, %v2218_v14  ;;  %v2273_v56 = vld [vmem:[#allocation10 + $0x16b0] sm:$0xff] }
 0x552   :  { %8907 = vmatprep.subr.bf16.mxu0 %v10519_v5  ;;  %v10573_v5 = vcombine.high %v2221_v0, %v2225_v32  ;;  %v10575_v23 = vcombine.high %v2222_v19, %v2226_v59  ;;  %v2270_v14 = vld [vmem:[#allocation10 + $0x1698] sm:$0xff] }
 0x554   :  { %8580 = vmatpush1.bf16.msra.mxu1 %v10516_v61  ;;  %v2234_v61 = vld [vmem:[#allocation10 + $0x1578] sm:$0xff] }
 0x555   :  { %8908 = vmatpush1.bf16.msra.mxu0 %v10518_v1  ;;  %8581 = vmatprep.subr.bf16.mxu1 %v10525_v33  ;;  %v10572_v1 = vcombine.low %v2221_v0, %v2225_v32  ;;  %v10574_v33 = vcombine.low %v2222_v19, %v2226_v59  ;;  %v10583_v35 = vcombine.high %v2230_v25, %v2234_v61  ;;  %v2277_v32 = vld [vmem:[#allocation10 + $0x16d0] sm:$0xff]  ;;  %v2278_v59 = vld [vmem:[#allocation10 + $0x16d8] sm:$0xff] }
 0x556   :  { %8909 = vmatprep.subr.bf16.mxu0 %v10527_v34  ;;  %v10581_v34 = vcombine.high %v2229_v21, %v2233_v42  ;;  %v2281_v19 = vld [vmem:[#allocation10 + $0x16f0] sm:$0xff] }
 0x558   :  { %8582 = vmatpush1.bf16.msra.mxu1 %v10524_v37  ;;  %v2242_v37 = vld [vmem:[#allocation10 + $0x15b8] sm:$0xff] }
 0x559   :  { %8910 = vmatpush1.bf16.msra.mxu0 %v10526_v8  ;;  %8583 = vmatprep.subr.bf16.mxu1 %v10533_v31  ;;  %v10580_v8 = vcombine.low %v2229_v21, %v2233_v42  ;;  %v10582_v31 = vcombine.low %v2230_v25, %v2234_v61  ;;  %v10591_v7 = vcombine.high %v2238_v22, %v2242_v37  ;;  %v2285_v42 = vld [vmem:[#allocation10 + $0x1710] sm:$0xff]  ;;  %v2286_v61 = vld [vmem:[#allocation10 + $0x1718] sm:$0xff] }
 0x55a   :  { %8911 = vmatprep.subr.bf16.mxu0 %v10535_v3  ;;  %v10589_v3 = vcombine.high %v2237_v39, %v2241_v26  ;;  %v2289_v25 = vld [vmem:[#allocation10 + $0x1730] sm:$0xff] }
 0x55c   :  { %8584 = vmatpush1.bf16.msra.mxu1 %v10532_v54  ;;  %v2250_v54 = vld [vmem:[#allocation10 + $0x15f8] sm:$0xff] }
 0x55d   :  { %8912 = vmatpush1.bf16.msra.mxu0 %v10534_v38  ;;  %8594 = vmatprep.subr.bf16.mxu1 %v10541_v55  ;;  %v10588_v38 = vcombine.low %v2237_v39, %v2241_v26  ;;  %v10590_v55 = vcombine.low %v2238_v22, %v2242_v37  ;;  %v10599_v63 = vcombine.high %v2246_v53, %v2250_v54  ;;  %v2293_v26 = vld [vmem:[#allocation10 + $0x1750] sm:$0xff]  ;;  %v2294_v37 = vld [vmem:[#allocation10 + $0x1758] sm:$0xff] }
 0x55e   :  { %8922 = vmatprep.subr.bf16.mxu0 %v10543_v29  ;;  %v10597_v29 = vcombine.high %v2245_v2, %v2249_v24  ;;  %v2297_v22 = vld [vmem:[#allocation10 + $0x1770] sm:$0xff] }
 0x55f   :  { %8586 = vmatmul.mubr.bf16.vlgmr.msra.gmra.mrb[20].mxu1 %v11964_v43 }
 0x560   :  { %8914 = vmatmul.mubr.bf16.vlgmr.msra.gmra.mrb[24].mxu0 %v11964_v43  ;;  %8595 = vmatpush1.bf16.msra.mxu1 %v10540_v44  ;;  %v10558_v43 = vcombine.low %v2206_v49, %v2210_v50  ;;  %v2257_v44 = vld [vmem:[#allocation10 + $0x1630] sm:$0xff]  ;;  %v2262_v50 = vld [vmem:[#allocation10 + $0x1658] sm:$0xff] }
 0x561   :  { %8626 = vmatprep.mubr.bf16.mxu1 %v11966_v47  ;;  %8923 = vmatpush1.bf16.msra.mxu0 %v10542_v12  ;;  %v10596_v12 = vcombine.low %v2245_v2, %v2249_v24  ;;  %v10605_v46 = vcombine.high %v2253_v4, %v2257_v44  ;;  %v2265_v49 = vld [vmem:[#allocation10 + $0x1670] sm:$0xff] }
 0x562   :  { %8954 = vmatprep.mubr.bf16.mxu0 %v11966_v47  ;;  %8596 = vmatprep.subr.bf16.mxu1 %v10549_v58  ;;  %v10564_v47 = vcombine.low %v2213_v17, %v2217_v11  ;;  %v10598_v58 = vcombine.low %v2246_v53, %v2250_v54  ;;  %v2269_v11 = vld [vmem:[#allocation10 + $0x1690] sm:$0xff]  ;;  %v2302_v54 = vld [vmem:[#allocation10 + $0x1798] sm:$0xff] }
 0x563   :  { %8924 = vmatprep.subr.bf16.mxu0 %v10551_v48  ;;  %v2261_v48 = vld [vmem:[#allocation10 + $0x1650] sm:$0xff] }
 0x564   :  { %8597 = vmatpush1.bf16.msra.mxu1 %v10548_v20  ;;  %v2266_v20 = vld [vmem:[#allocation10 + $0x1678] sm:$0xff]  ;;  %v2301_v24 = vld [vmem:[#allocation10 + $0x1790] sm:$0xff] }
 0x565   :  { %8925 = vmatpush1.bf16.msra.mxu0 %v10550_v40  ;;  %8598 = vmatprep.subr.bf16.mxu1 %v10557_v28  ;;  %v10604_v40 = vcombine.low %v2253_v4, %v2257_v44  ;;  %v10606_v28 = vcombine.low %v2254_v45, %v2258_v60  ;;  %v10615_v17 = vcombine.high %v2262_v50, %v2266_v20  ;;  %v2305_v53 = vld [vmem:[#allocation10 + $0x17b0] sm:$0xff]  ;;  %v2310_v60 = vld [vmem:[#allocation10 + $0x17d8] sm:$0xff] }
 0x566   :  { %8926 = vmatprep.subr.bf16.mxu0 %v10559_v57  ;;  %v10613_v57 = vcombine.high %v2261_v48, %v2265_v49  ;;  %v2309_v44 = vld [vmem:[#allocation10 + $0x17d0] sm:$0xff] }
 0x567   :  { %v2313_v45 = vld [vmem:[#allocation10 + $0x17f0] sm:$0xff] }
 0x568   :  { %8599 = vmatpush1.bf16.msra.mxu1 %v10556_v62  ;;  %v2274_v62 = vld [vmem:[#allocation10 + $0x16b8] sm:$0xff] }
 0x569   :  { %8927 = vmatpush1.bf16.msra.mxu0 %v10558_v43  ;;  %8600 = vmatprep.subr.bf16.mxu1 %v10565_v30  ;;  %v10612_v43 = vcombine.low %v2261_v48, %v2265_v49  ;;  %v10614_v30 = vcombine.low %v2262_v50, %v2266_v20  ;;  %v10623_v0 = vcombine.high %v2270_v14, %v2274_v62  ;;  %v2317_v49 = vld [vmem:[#allocation10 + $0x1810] sm:$0xff]  ;;  %v2318_v20 = vld [vmem:[#allocation10 + $0x1818] sm:$0xff] }
 0x56a   :  { %8928 = vmatprep.subr.bf16.mxu0 %v10567_v13  ;;  %v10621_v13 = vcombine.high %v2269_v11, %v2273_v56  ;;  %v2321_v50 = vld [vmem:[#allocation10 + $0x1830] sm:$0xff] }
 0x56c   :  { %8601 = vmatpush1.bf16.msra.mxu1 %v10564_v47  ;;  %v2282_v47 = vld [vmem:[#allocation10 + $0x16f8] sm:$0xff] }
 0x56d   :  { %8929 = vmatpush1.bf16.msra.mxu0 %v10566_v27  ;;  %8602 = vmatprep.subr.bf16.mxu1 %v10573_v5  ;;  %v10620_v27 = vcombine.low %v2269_v11, %v2273_v56  ;;  %v10622_v5 = vcombine.low %v2270_v14, %v2274_v62  ;;  %v10631_v21 = vcombine.high %v2278_v59, %v2282_v47  ;;  %v2325_v56 = vld [vmem:[#allocation10 + $0x1850] sm:$0xff] }
 0x56e   :  { %8930 = vmatprep.subr.bf16.mxu0 %v10575_v23  ;;  %v10629_v23 = vcombine.high %v2277_v32, %v2281_v19  ;;  %v2329_v14 = vld [vmem:[#allocation10 + $0x1870] sm:$0xff]  ;;  %v10668_v62 = vcombine.low %v2317_v49, %v2321_v50 }
 0x570   :  { %8603 = vmatpush1.bf16.msra.mxu1 %v10572_v1  ;;  %v2290_v1 = vld [vmem:[#allocation10 + $0x1738] sm:$0xff] }
 0x571   :  { %8931 = vmatpush1.bf16.msra.mxu0 %v10574_v33  ;;  %8604 = vmatprep.subr.bf16.mxu1 %v10581_v34  ;;  %v10628_v33 = vcombine.low %v2277_v32, %v2281_v19  ;;  %v10630_v34 = vcombine.low %v2278_v59, %v2282_v47  ;;  %v10639_v39 = vcombine.high %v2286_v61, %v2290_v1  ;;  %v2333_v32 = vld [vmem:[#allocation10 + $0x1890] sm:$0xff]  ;;  %v2334_v47 = vld [vmem:[#allocation10 + $0x1898] sm:$0xff] }
 0x572   :  { %8932 = vmatprep.subr.bf16.mxu0 %v10583_v35  ;;  %v10637_v35 = vcombine.high %v2285_v42, %v2289_v25  ;;  %v2337_v19 = vld [vmem:[#allocation10 + $0x18b0] sm:$0xff] }
 0x574   :  { %8605 = vmatpush1.bf16.msra.mxu1 %v10580_v8  ;;  %v2298_v8 = vld [vmem:[#allocation10 + $0x1778] sm:$0xff] }
 0x575   :  { %8933 = vmatpush1.bf16.msra.mxu0 %v10582_v31  ;;  %8606 = vmatprep.subr.bf16.mxu1 %v10589_v3  ;;  %v10636_v31 = vcombine.low %v2285_v42, %v2289_v25  ;;  %v10638_v3 = vcombine.low %v2286_v61, %v2290_v1  ;;  %v10647_v2 = vcombine.high %v2294_v37, %v2298_v8  ;;  %v2341_v25 = vld [vmem:[#allocation10 + $0x18d0] sm:$0xff]  ;;  %v2342_v1 = vld [vmem:[#allocation10 + $0x18d8] sm:$0xff] }
 0x576   :  { %8934 = vmatprep.subr.bf16.mxu0 %v10591_v7  ;;  %v10645_v7 = vcombine.high %v2293_v26, %v2297_v22  ;;  %v2345_v61 = vld [vmem:[#allocation10 + $0x18f0] sm:$0xff] }
 0x578   :  { %8607 = vmatpush1.bf16.msra.mxu1 %v10588_v38  ;;  %v2306_v38 = vld [vmem:[#allocation10 + $0x17b8] sm:$0xff] }
 0x579   :  { %8935 = vmatpush1.bf16.msra.mxu0 %v10590_v55  ;;  %8608 = vmatprep.subr.bf16.mxu1 %v10597_v29  ;;  %v10644_v55 = vcombine.low %v2293_v26, %v2297_v22  ;;  %v10646_v29 = vcombine.low %v2294_v37, %v2298_v8  ;;  %v10655_v4 = vcombine.high %v2302_v54, %v2306_v38  ;;  %v2349_v26 = vld [vmem:[#allocation10 + $0x1910] sm:$0xff]  ;;  %v2350_v37 = vld [vmem:[#allocation10 + $0x1918] sm:$0xff] }
 0x57a   :  { %8936 = vmatprep.subr.bf16.mxu0 %v10599_v63  ;;  %v10653_v63 = vcombine.high %v2301_v24, %v2305_v53  ;;  %v2353_v22 = vld [vmem:[#allocation10 + $0x1930] sm:$0xff]  ;;  %v2354_v8 = vld [vmem:[#allocation10 + $0x1938] sm:$0xff] }
 0x57c   :  { %8609 = vmatpush1.bf16.msra.mxu1 %v10596_v12  ;;  %v2314_v12 = vld [vmem:[#allocation10 + $0x17f8] sm:$0xff] }
 0x57d   :  { %8937 = vmatpush1.bf16.msra.mxu0 %v10598_v58  ;;  %8610 = vmatprep.subr.bf16.mxu1 %v10605_v46  ;;  %v10652_v58 = vcombine.low %v2301_v24, %v2305_v53  ;;  %v10654_v46 = vcombine.low %v2302_v54, %v2306_v38  ;;  %v10663_v48 = vcombine.high %v2310_v60, %v2314_v12  ;;  %v2361_v24 = vld [vmem:[#allocation10 + $0x1970] sm:$0xff]  ;;  %v2358_v53 = vld [vmem:[#allocation10 + $0x1958] sm:$0xff] }
 0x57e   :  { %8938 = vmatprep.subr.bf16.mxu0 %v10607_v52  ;;  %v10661_v52 = vcombine.high %v2309_v44, %v2313_v45  ;;  %v2362_v54 = vld [vmem:[#allocation10 + $0x1978] sm:$0xff]  ;;  %v10700_v38 = vcombine.low %v2349_v26, %v2353_v22 }
 0x580   :  { %8611 = vmatpush1.bf16.msra.mxu1 %v10604_v40  ;;  %v2322_v40 = vld [vmem:[#allocation10 + $0x1838] sm:$0xff] }
 0x581   :  { %8939 = vmatpush1.bf16.msra.mxu0 %v10606_v28  ;;  %8612 = vmatprep.subr.bf16.mxu1 %v10613_v57  ;;  %v10660_v28 = vcombine.low %v2309_v44, %v2313_v45  ;;  %v10662_v57 = vcombine.low %v2310_v60, %v2314_v12  ;;  %v10671_v11 = vcombine.high %v2318_v20, %v2322_v40  ;;  %v2369_v44 = vld [vmem:[#allocation10 + $0x19b0] sm:$0xff]  ;;  %v2366_v45 = vld [vmem:[#allocation10 + $0x1998] sm:$0xff] }
 0x582   :  { %8940 = vmatprep.subr.bf16.mxu0 %v10615_v17  ;;  %v10669_v17 = vcombine.high %v2317_v49, %v2321_v50  ;;  %v2370_v60 = vld [vmem:[#allocation10 + $0x19b8] sm:$0xff]  ;;  %v2377_v49 = vld [vmem:[#allocation10 + $0x19f0] sm:$0xff] }
 0x583   :  { %v2374_v50 = vld [vmem:[#allocation10 + $0x19d8] sm:$0xff] }
 0x584   :  { %8613 = vmatpush1.bf16.msra.mxu1 %v10612_v43  ;;  %v2326_v43 = vld [vmem:[#allocation10 + $0x1858] sm:$0xff] }
 0x585   :  { %8941 = vmatpush1.bf16.msra.mxu0 %v10614_v30  ;;  %8614 = vmatprep.subr.bf16.mxu1 %v10621_v13  ;;  %v2330_v30 = vld [vmem:[#allocation10 + $0x1878] sm:$0xff]  ;;  %v10670_v13 = vcombine.low %v2318_v20, %v2322_v40 }
 0x586   :  { %8942 = vmatprep.subr.bf16.mxu0 %v10623_v0  ;;  %v10677_v0 = vcombine.high %v2325_v56, %v2329_v14  ;;  %v10679_v59 = vcombine.high %v2326_v43, %v2330_v30  ;;  %v2378_v20 = vld [vmem:[#allocation10 + $0x19f8] sm:$0xff] }
 0x588   :  { %8615 = vmatpush1.bf16.msra.mxu1 %v10620_v27  ;;  %v2338_v27 = vld [vmem:[#allocation10 + $0x18b8] sm:$0xff] }
 0x589   :  { %8943 = vmatpush1.bf16.msra.mxu0 %v10622_v5  ;;  %8616 = vmatprep.subr.bf16.mxu1 %v10629_v23  ;;  %v10676_v5 = vcombine.low %v2325_v56, %v2329_v14  ;;  %v10678_v23 = vcombine.low %v2326_v43, %v2330_v30  ;;  %v10687_v42 = vcombine.high %v2334_v47, %v2338_v27  ;;  %v2385_v56 = vld [vmem:[#allocation10 + $0x1a30] sm:$0xff]  ;;  %v2382_v14 = vld [vmem:[#allocation10 + $0x1a18] sm:$0xff] }
 0x58a   :  { %8944 = vmatprep.subr.bf16.mxu0 %v10631_v21  ;;  %v10685_v21 = vcombine.high %v2333_v32, %v2337_v19  ;;  %v10726_v30 = vcombine.low %v2374_v50, %v2378_v20 }
 0x58c   :  { %8617 = vmatpush1.bf16.msra.mxu1 %v10628_v33  ;;  %v2346_v33 = vld [vmem:[#allocation10 + $0x18f8] sm:$0xff] }
 0x58d   :  { %8945 = vmatpush1.bf16.msra.mxu0 %v10630_v34  ;;  %8618 = vmatprep.subr.bf16.mxu1 %v10637_v35  ;;  %v10684_v34 = vcombine.low %v2333_v32, %v2337_v19  ;;  %v10693_v35 = vcombine.high %v2341_v25, %v2345_v61  ;;  %v2389_v32 = vld [vmem:[#allocation10 + $0x1a50] sm:$0xff] }
 0x58e   :  { %8946 = vmatprep.subr.bf16.mxu0 %v10639_v39  ;;  %v10695_v39 = vcombine.high %v2342_v1, %v2346_v33  ;;  %v2393_v19 = vld [vmem:[#allocation10 + $0x1a70] sm:$0xff] }
 0x590   :  { %8619 = vmatpush1.bf16.msra.mxu1 %v10636_v31  ;;  %v10694_v31 = vcombine.low %v2342_v1, %v2346_v33  ;;  %v2402_v1 = vld [vmem:[#allocation10 + $0x1ab8] sm:$0xff]  ;;  %v10740_v33 = vcombine.low %v2389_v32, %v2393_v19 }
 0x591   :  { %8947 = vmatpush1.bf16.msra.mxu0 %v10638_v3  ;;  %8620 = vmatprep.subr.bf16.mxu1 %v10645_v7  ;;  %v10701_v3 = vcombine.high %v2349_v26, %v2353_v22  ;;  %v10703_v7 = vcombine.high %v2350_v37, %v2354_v8  ;;  %v2409_v26 = vld [vmem:[#allocation10 + $0x1af0] sm:$0xff]  ;;  %v2406_v22 = vld [vmem:[#allocation10 + $0x1ad8] sm:$0xff] }
 0x592   :  { %8948 = vmatprep.subr.bf16.mxu0 %v10647_v2  ;;  %v2357_v2 = vld [vmem:[#allocation10 + $0x1950] sm:$0xff] }
 0x593   :  { %v10708_v12 = vcombine.low %v2357_v2, %v2361_v24 }
 0x594   :  { %8621 = vmatpush1.bf16.msra.mxu1 %v10644_v55  ;;  %v10702_v55 = vcombine.low %v2350_v37, %v2354_v8  ;;  %v2410_v37 = vld [vmem:[#allocation10 + $0x1af8] sm:$0xff] }
 0x595   :  { %8949 = vmatpush1.bf16.msra.mxu0 %v10646_v29  ;;  %8622 = vmatprep.subr.bf16.mxu1 %v10653_v63  ;;  %v10709_v29 = vcombine.high %v2357_v2, %v2361_v24  ;;  %v10711_v63 = vcombine.high %v2358_v53, %v2362_v54  ;;  %v2417_v2 = vld [vmem:[#allocation10 + $0x1b30] sm:$0xff]  ;;  %v2414_v24 = vld [vmem:[#allocation10 + $0x1b18] sm:$0xff] }
 0x596   :  { %8950 = vmatprep.subr.bf16.mxu0 %v10655_v4  ;;  %v2365_v4 = vld [vmem:[#allocation10 + $0x1990] sm:$0xff] }
 0x597   :  { %v10716_v40 = vcombine.low %v2365_v4, %v2369_v44 }
 0x598   :  { %8623 = vmatpush1.bf16.msra.mxu1 %v10652_v58  ;;  %v10710_v58 = vcombine.low %v2358_v53, %v2362_v54  ;;  %v2418_v53 = vld [vmem:[#allocation10 + $0x1b38] sm:$0xff] }
 0x599   :  { %8951 = vmatpush1.bf16.msra.mxu0 %v10654_v46  ;;  %8624 = vmatprep.subr.bf16.mxu1 %v10661_v52  ;;  %v10717_v46 = vcombine.high %v2365_v4, %v2369_v44  ;;  %v10719_v52 = vcombine.high %v2366_v45, %v2370_v60  ;;  %v2425_v4 = vld [vmem:[#allocation10 + $0x1b70] sm:$0xff]  ;;  %v2422_v44 = vld [vmem:[#allocation10 + $0x1b58] sm:$0xff] }
 0x59a   :  { %8952 = vmatprep.subr.bf16.mxu0 %v10663_v48  ;;  %v2373_v48 = vld [vmem:[#allocation10 + $0x19d0] sm:$0xff] }
 0x59b   :  { %v10724_v43 = vcombine.low %v2373_v48, %v2377_v49 }
 0x59c   :  { %8625 = vmatpush1.bf16.msra.mxu1 %v10660_v28  ;;  %v10718_v28 = vcombine.low %v2366_v45, %v2370_v60  ;;  %v2426_v45 = vld [vmem:[#allocation10 + $0x1b78] sm:$0xff] }
 0x59d   :  { %8953 = vmatpush1.bf16.msra.mxu0 %v10662_v57  ;;  %8635 = vmatprep.subr.bf16.mxu1 %v10669_v17  ;;  %v10725_v57 = vcombine.high %v2373_v48, %v2377_v49  ;;  %v10727_v17 = vcombine.high %v2374_v50, %v2378_v20  ;;  %v2433_v48 = vld [vmem:[#allocation10 + $0x1bb0] sm:$0xff]  ;;  %v2430_v49 = vld [vmem:[#allocation10 + $0x1b98] sm:$0xff] }
 0x59e   :  { %8963 = vmatprep.subr.bf16.mxu0 %v10671_v11  ;;  %v2381_v11 = vld [vmem:[#allocation10 + $0x1a10] sm:$0xff]  ;;  %v2434_v50 = vld [vmem:[#allocation10 + $0x1bb8] sm:$0xff] }
 0x59f   :  { %8627 = vmatmul.mubr.bf16.vlgmr.msra.gmra.mrb[20].mxu1 %v11974_v41 }
 0x5a0   :  { %8955 = vmatmul.mubr.bf16.vlgmr.msra.gmra.mrb[24].mxu0 %v11974_v41  ;;  %8636 = vmatpush1.bf16.msra.mxu1 %v10668_v62  ;;  %v10686_v41 = vcombine.low %v2334_v47, %v2338_v27  ;;  %v2386_v62 = vld [vmem:[#allocation10 + $0x1a38] sm:$0xff]  ;;  %v10732_v27 = vcombine.low %v2381_v11, %v2385_v56 }
 0x5a1   :  { %8667 = vmatprep.mubr.bf16.mxu1 %v11976_v6  ;;  %8964 = vmatpush1.bf16.msra.mxu0 %v10670_v13  ;;  %v10733_v13 = vcombine.high %v2381_v11, %v2385_v56  ;;  %v2394_v47 = vld [vmem:[#allocation10 + $0x1a78] sm:$0xff]  ;;  %v2441_v11 = vld [vmem:[#allocation10 + $0x1bf0] sm:$0xff] }
 0x5a2   :  { %8995 = vmatprep.mubr.bf16.mxu0 %v11976_v6  ;;  %8637 = vmatprep.subr.bf16.mxu1 %v10677_v0  ;;  %v10692_v6 = vcombine.low %v2341_v25, %v2345_v61  ;;  %v10735_v0 = vcombine.high %v2382_v14, %v2386_v62  ;;  %v2401_v25 = vld [vmem:[#allocation10 + $0x1ab0] sm:$0xff]  ;;  %v2398_v61 = vld [vmem:[#allocation10 + $0x1a98] sm:$0xff] }
 0x5a3   :  { %8965 = vmatprep.subr.bf16.mxu0 %v10679_v59  ;;  %v2390_v59 = vld [vmem:[#allocation10 + $0x1a58] sm:$0xff] }
 0x5a4   :  { %8638 = vmatpush1.bf16.msra.mxu1 %v10676_v5  ;;  %v10734_v5 = vcombine.low %v2382_v14, %v2386_v62  ;;  %v2438_v56 = vld [vmem:[#allocation10 + $0x1bd8] sm:$0xff] }
 0x5a5   :  { %8966 = vmatpush1.bf16.msra.mxu0 %v10678_v23  ;;  %8639 = vmatprep.subr.bf16.mxu1 %v10685_v21  ;;  %v10741_v23 = vcombine.high %v2389_v32, %v2393_v19  ;;  %v10743_v21 = vcombine.high %v2390_v59, %v2394_v47  ;;  %v2442_v14 = vld [vmem:[#allocation10 + $0x1bf8] sm:$0xff]  ;;  %v2449_v32 = vld [vmem:[#allocation10 + $0x1c30] sm:$0xff] }
 0x5a6   :  { %8967 = vmatprep.subr.bf16.mxu0 %v10687_v42  ;;  %v2397_v42 = vld [vmem:[#allocation10 + $0x1a90] sm:$0xff]  ;;  %v2446_v19 = vld [vmem:[#allocation10 + $0x1c18] sm:$0xff] }
 0x5a7   :  { %v10748_v8 = vcombine.low %v2397_v42, %v2401_v25 }
 0x5a8   :  { %8640 = vmatpush1.bf16.msra.mxu1 %v10684_v34  ;;  %v10742_v34 = vcombine.low %v2390_v59, %v2394_v47  ;;  %v2450_v59 = vld [vmem:[#allocation10 + $0x1c38] sm:$0xff] }
 0x5a9   :  { %8968 = vmatpush1.bf16.msra.mxu0 %v10686_v41  ;;  %8641 = vmatprep.subr.bf16.mxu1 %v10693_v35  ;;  %v10749_v41 = vcombine.high %v2397_v42, %v2401_v25  ;;  %v10751_v35 = vcombine.high %v2398_v61, %v2402_v1  ;;  %v2457_v42 = vld [vmem:[#allocation10 + $0x1c70] sm:$0xff] }
 0x5aa   :  { %8969 = vmatprep.subr.bf16.mxu0 %v10695_v39  ;;  %v2405_v39 = vld [vmem:[#allocation10 + $0x1ad0] sm:$0xff] }
 0x5ab   :  { %v10756_v54 = vcombine.low %v2405_v39, %v2409_v26 }
 0x5ac   :  { %8642 = vmatpush1.bf16.msra.mxu1 %v10692_v6  ;;  %v10750_v6 = vcombine.low %v2398_v61, %v2402_v1  ;;  %v2454_v61 = vld [vmem:[#allocation10 + $0x1c58] sm:$0xff] }
 0x5ad   :  { %8970 = vmatpush1.bf16.msra.mxu0 %v10694_v31  ;;  %8643 = vmatprep.subr.bf16.mxu1 %v10701_v3  ;;  %v10757_v31 = vcombine.high %v2405_v39, %v2409_v26  ;;  %v10759_v3 = vcombine.high %v2406_v22, %v2410_v37  ;;  %v2458_v1 = vld [vmem:[#allocation10 + $0x1c78] sm:$0xff] }
 0x5ae   :  { %8971 = vmatprep.subr.bf16.mxu0 %v10703_v7  ;;  %v2413_v7 = vld [vmem:[#allocation10 + $0x1b10] sm:$0xff]  ;;  %v10807_v39 = vcombine.high %v2454_v61, %v2458_v1  ;;  %v2462_v26 = vld [vmem:[#allocation10 + $0x1c98] sm:$0xff] }
 0x5af   :  { %v10764_v60 = vcombine.low %v2413_v7, %v2417_v2 }
 0x5b0   :  { %8644 = vmatpush1.bf16.msra.mxu1 %v10700_v38  ;;  %v10758_v38 = vcombine.low %v2406_v22, %v2410_v37  ;;  %v2466_v22 = vld [vmem:[#allocation10 + $0x1cb8] sm:$0xff] }
 0x5b1   :  { %8972 = vmatpush1.bf16.msra.mxu0 %v10702_v55  ;;  %8645 = vmatprep.subr.bf16.mxu1 %v10709_v29  ;;  %v10765_v55 = vcombine.high %v2413_v7, %v2417_v2  ;;  %v10767_v29 = vcombine.high %v2414_v24, %v2418_v53  ;;  %v2473_v7 = vld [vmem:[#allocation10 + $0x1cf0] sm:$0xff]  ;;  %v2470_v2 = vld [vmem:[#allocation10 + $0x1cd8] sm:$0xff] }
 0x5b2   :  { %8973 = vmatprep.subr.bf16.mxu0 %v10711_v63  ;;  %v2421_v63 = vld [vmem:[#allocation10 + $0x1b50] sm:$0xff] }
 0x5b3   :  { %v10772_v20 = vcombine.low %v2421_v63, %v2425_v4 }
 0x5b4   :  { %8646 = vmatpush1.bf16.msra.mxu1 %v10708_v12  ;;  %v10766_v12 = vcombine.low %v2414_v24, %v2418_v53  ;;  %v2474_v24 = vld [vmem:[#allocation10 + $0x1cf8] sm:$0xff] }
 0x5b5   :  { %8974 = vmatpush1.bf16.msra.mxu0 %v10710_v58  ;;  %8647 = vmatprep.subr.bf16.mxu1 %v10717_v46  ;;  %v10773_v58 = vcombine.high %v2421_v63, %v2425_v4  ;;  %v10775_v46 = vcombine.high %v2422_v44, %v2426_v45  ;;  %v2478_v63 = vld [vmem:[#allocation10 + $0x1d18] sm:$0xff] }
 0x5b6   :  { %8975 = vmatprep.subr.bf16.mxu0 %v10719_v52  ;;  %v2429_v52 = vld [vmem:[#allocation10 + $0x1b90] sm:$0xff]  ;;  %v2482_v4 = vld [vmem:[#allocation10 + $0x1d38] sm:$0xff] }
 0x5b7   :  { %v10780_v62 = vcombine.low %v2429_v52, %v2433_v48 }
 0x5b8   :  { %8648 = vmatpush1.bf16.msra.mxu1 %v10716_v40  ;;  %v10774_v40 = vcombine.low %v2422_v44, %v2426_v45  ;;  %v10822_v44 = vcombine.low %v2470_v2, %v2474_v24 }
 0x5b9   :  { %8976 = vmatpush1.bf16.msra.mxu0 %v10718_v28  ;;  %8649 = vmatprep.subr.bf16.mxu1 %v10725_v57  ;;  %v10781_v28 = vcombine.high %v2429_v52, %v2433_v48  ;;  %v10783_v57 = vcombine.high %v2430_v49, %v2434_v50  ;;  %v2490_v52 = vld [vmem:[#allocation10 + $0x1d78] sm:$0xff] }
 0x5ba   :  { %8977 = vmatprep.subr.bf16.mxu0 %v10727_v17  ;;  %v2437_v17 = vld [vmem:[#allocation10 + $0x1bd0] sm:$0xff] }
 0x5bb   :  { %v10788_v47 = vcombine.low %v2437_v17, %v2441_v11 }
 0x5bc   :  { %8650 = vmatpush1.bf16.msra.mxu1 %v10724_v43  ;;  %v10782_v43 = vcombine.low %v2430_v49, %v2434_v50  ;;  %v10830_v49 = vcombine.low %v2478_v63, %v2482_v4 }
 0x5bd   :  { %8978 = vmatpush1.bf16.msra.mxu0 %v10726_v30  ;;  %8651 = vmatprep.subr.bf16.mxu1 %v10733_v13  ;;  %v10789_v30 = vcombine.high %v2437_v17, %v2441_v11  ;;  %v10791_v13 = vcombine.high %v2438_v56, %v2442_v14  ;;  %v2498_v17 = vld [vmem:[#allocation10 + $0x1db8] sm:$0xff] }
 0x5be   :  { %8979 = vmatprep.subr.bf16.mxu0 %v10735_v0  ;;  %v2445_v0 = vld [vmem:[#allocation10 + $0x1c10] sm:$0xff] }
 0x5bf   :  { %v10796_v25 = vcombine.low %v2445_v0, %v2449_v32 }
 0x5c0   :  { %8652 = vmatpush1.bf16.msra.mxu1 %v10732_v27  ;;  %v10790_v27 = vcombine.low %v2438_v56, %v2442_v14 }
 0x5c1   :  { %8980 = vmatpush1.bf16.msra.mxu0 %v10734_v5  ;;  %8653 = vmatprep.subr.bf16.mxu1 %v10741_v23  ;;  %v10797_v5 = vcombine.high %v2445_v0, %v2449_v32  ;;  %v10799_v23 = vcombine.high %v2446_v19, %v2450_v59  ;;  %v2506_v0 = vld [vmem:[#allocation10 + $0x1df8] sm:$0xff] }
 0x5c2   :  { %8981 = vmatprep.subr.bf16.mxu0 %v10743_v21  ;;  %v2453_v21 = vld [vmem:[#allocation10 + $0x1c50] sm:$0xff] }
 0x5c3   :  { %v10804_v37 = vcombine.low %v2453_v21, %v2457_v42 }
 0x5c4   :  { %8654 = vmatpush1.bf16.msra.mxu1 %v10740_v33  ;;  %v10798_v33 = vcombine.low %v2446_v19, %v2450_v59 }
 0x5c5   :  { %8982 = vmatpush1.bf16.msra.mxu0 %v10742_v34  ;;  %8655 = vmatprep.subr.bf16.mxu1 %v10749_v41  ;;  %v10805_v34 = vcombine.high %v2453_v21, %v2457_v42  ;;  %v2461_v41 = vld [vmem:[#allocation10 + $0x1c90] sm:$0xff]  ;;  %v2514_v21 = vld [vmem:[#allocation10 + $0x1e38] sm:$0xff] }
 0x5c6   :  { %8983 = vmatprep.subr.bf16.mxu0 %v10751_v35  ;;  %v2465_v35 = vld [vmem:[#allocation10 + $0x1cb0] sm:$0xff] }
 0x5c7   :  { %v10812_v53 = vcombine.low %v2461_v41, %v2465_v35 }
 0x5c8   :  { %8656 = vmatpush1.bf16.msra.mxu1 %v10748_v8  ;;  %v10806_v8 = vcombine.low %v2454_v61, %v2458_v1 }
 0x5c9   :  { %8984 = vmatpush1.bf16.msra.mxu0 %v10750_v6  ;;  %8657 = vmatprep.subr.bf16.mxu1 %v10757_v31  ;;  %v10813_v6 = vcombine.high %v2461_v41, %v2465_v35  ;;  %v10815_v31 = vcombine.high %v2462_v26, %v2466_v22  ;;  %v2518_v41 = vld [vmem:[#allocation10 + $0x1e58] sm:$0xff] }
 0x5ca   :  { %8985 = vmatprep.subr.bf16.mxu0 %v10759_v3  ;;  %v2469_v3 = vld [vmem:[#allocation10 + $0x1cd0] sm:$0xff]  ;;  %v2522_v35 = vld [vmem:[#allocation10 + $0x1e78] sm:$0xff] }
 0x5cc   :  { %8658 = vmatpush1.bf16.msra.mxu1 %v10756_v54  ;;  %v10821_v54 = vcombine.high %v2469_v3, %v2473_v7 }
 0x5cd   :  { %8986 = vmatpush1.bf16.msra.mxu0 %v10758_v38  ;;  %8659 = vmatprep.subr.bf16.mxu1 %v10765_v55  ;;  %v10823_v38 = vcombine.high %v2470_v2, %v2474_v24  ;;  %v2477_v55 = vld [vmem:[#allocation10 + $0x1d10] sm:$0xff]  ;;  %v10870_v2 = vcombine.low %v2518_v41, %v2522_v35 }
 0x5ce   :  { %8987 = vmatprep.subr.bf16.mxu0 %v10767_v29  ;;  %v2481_v29 = vld [vmem:[#allocation10 + $0x1d30] sm:$0xff] }
 0x5cf   :  { %v10829_v45 = vcombine.high %v2477_v55, %v2481_v29  ;;  %v10828_v48 = vcombine.low %v2477_v55, %v2481_v29  ;;  %v2538_v55 = vld [vmem:[#allocation10 + $0x1ef8] sm:$0xff] }
 0x5d0   :  { %8660 = vmatpush1.bf16.msra.mxu1 %v10764_v60  ;;  %v10831_v60 = vcombine.high %v2478_v63, %v2482_v4 }
 0x5d1   :  { %8988 = vmatpush1.bf16.msra.mxu0 %v10766_v12  ;;  %8661 = vmatprep.subr.bf16.mxu1 %v10773_v58  ;;  %v2485_v12 = vld [vmem:[#allocation10 + $0x1d50] sm:$0xff] }
 0x5d2   :  { %8989 = vmatprep.subr.bf16.mxu0 %v10775_v46  ;;  %v2489_v58 = vld [vmem:[#allocation10 + $0x1d70] sm:$0xff]  ;;  %v2486_v46 = vld [vmem:[#allocation10 + $0x1d58] sm:$0xff] }
 0x5d3   :  { %v10837_v50 = vcombine.high %v2485_v12, %v2489_v58  ;;  %v10836_v11 = vcombine.low %v2485_v12, %v2489_v58  ;;  %v10838_v56 = vcombine.low %v2486_v46, %v2490_v52  ;;  %v2546_v12 = vld [vmem:[#allocation10 + $0x1f38] sm:$0xff] }
 0x5d4   :  { %8662 = vmatpush1.bf16.msra.mxu1 %v10772_v20  ;;  %v10839_v20 = vcombine.high %v2486_v46, %v2490_v52 }
 0x5d5   :  { %8990 = vmatpush1.bf16.msra.mxu0 %v10774_v40  ;;  %8663 = vmatprep.subr.bf16.mxu1 %v10781_v28  ;;  %v2493_v40 = vld [vmem:[#allocation10 + $0x1d90] sm:$0xff] }
 0x5d6   :  { %8991 = vmatprep.subr.bf16.mxu0 %v10783_v57  ;;  %v2497_v28 = vld [vmem:[#allocation10 + $0x1db0] sm:$0xff]  ;;  %v2494_v57 = vld [vmem:[#allocation10 + $0x1d98] sm:$0xff] }
 0x5d7   :  { %v10845_v14 = vcombine.high %v2493_v40, %v2497_v28  ;;  %v10844_v32 = vcombine.low %v2493_v40, %v2497_v28  ;;  %v10846_v19 = vcombine.low %v2494_v57, %v2498_v17  ;;  %v2554_v40 = vld [vmem:[#allocation10 + $0x1f78] sm:$0xff] }
 0x5d8   :  { %8664 = vmatpush1.bf16.msra.mxu1 %v10780_v62  ;;  %v10847_v62 = vcombine.high %v2494_v57, %v2498_v17 }
 0x5d9   :  { %8992 = vmatpush1.bf16.msra.mxu0 %v10782_v43  ;;  %8665 = vmatprep.subr.bf16.mxu1 %v10789_v30  ;;  %v2501_v43 = vld [vmem:[#allocation10 + $0x1dd0] sm:$0xff] }
 0x5da   :  { %8993 = vmatprep.subr.bf16.mxu0 %v10791_v13  ;;  %v2505_v30 = vld [vmem:[#allocation10 + $0x1df0] sm:$0xff]  ;;  %v2502_v13 = vld [vmem:[#allocation10 + $0x1dd8] sm:$0xff] }
 0x5db   :  { %v10853_v59 = vcombine.high %v2501_v43, %v2505_v30  ;;  %v10852_v42 = vcombine.low %v2501_v43, %v2505_v30  ;;  %v2562_v43 = vld [vmem:[#allocation10 + $0x1fb8] sm:$0xff] }
 0x5dc   :  { %8666 = vmatpush1.bf16.msra.mxu1 %v10788_v47  ;;  %v10855_v47 = vcombine.high %v2502_v13, %v2506_v0 }
 0x5dd   :  { %8994 = vmatpush1.bf16.msra.mxu0 %v10790_v27  ;;  %8676 = vmatprep.subr.bf16.mxu1 %v10797_v5  ;;  %v2509_v27 = vld [vmem:[#allocation10 + $0x1e10] sm:$0xff] }
 0x5de   :  { %9004 = vmatprep.subr.bf16.mxu0 %v10799_v23  ;;  %v2513_v5 = vld [vmem:[#allocation10 + $0x1e30] sm:$0xff]  ;;  %v2510_v23 = vld [vmem:[#allocation10 + $0x1e18] sm:$0xff] }
 0x5df   :  { %8668 = vmatmul.mubr.bf16.vlgmr.msra.gmra.mrb[20].mxu1 %v11984_v18  ;;  %v10861_v61 = vcombine.high %v2509_v27, %v2513_v5  ;;  %v10863_v1 = vcombine.high %v2510_v23, %v2514_v21 }
 0x5e0   :  { %8996 = vmatmul.mubr.bf16.vlgmr.msra.gmra.mrb[24].mxu0 %v11984_v18  ;;  %8677 = vmatpush1.bf16.msra.mxu1 %v10796_v25  ;;  %v10814_v18 = vcombine.low %v2462_v26, %v2466_v22  ;;  %v10854_v25 = vcombine.low %v2502_v13, %v2506_v0  ;;  %v10862_v26 = vcombine.low %v2510_v23, %v2514_v21 }
 0x5e1   :  { %8708 = vmatprep.mubr.bf16.mxu1 %v11986_v51  ;;  %9005 = vmatpush1.bf16.msra.mxu0 %v10798_v33  ;;  %v2517_v33 = vld [vmem:[#allocation10 + $0x1e50] sm:$0xff] }
 0x5e2   :  { %9036 = vmatprep.mubr.bf16.mxu0 %v11986_v51  ;;  %8678 = vmatprep.subr.bf16.mxu1 %v10805_v34  ;;  %v10820_v51 = vcombine.low %v2469_v3, %v2473_v7  ;;  %v2521_v34 = vld [vmem:[#allocation10 + $0x1e70] sm:$0xff]  ;;  %v2530_v3 = vld [vmem:[#allocation10 + $0x1eb8] sm:$0xff] }
 0x5e3   :  { %9006 = vmatprep.subr.bf16.mxu0 %v10807_v39  ;;  %v10860_v39 = vcombine.low %v2509_v27, %v2513_v5  ;;  %v10869_v22 = vcombine.high %v2517_v33, %v2521_v34  ;;  %v10868_v7 = vcombine.low %v2517_v33, %v2521_v34  ;;  %v2570_v27 = vld [vmem:[#allocation10 + $0x1ff8] sm:$0xff]  ;;  %v11220_v33 = vld [vmem:[#allocation13 + $0xc0] sm:$0xff]  }
 0x5e4   :  { %8679 = vmatpush1.bf16.msra.mxu1 %v10804_v37  ;;  %v10871_v37 = vcombine.high %v2518_v41, %v2522_v35  ;;  %v11221_v34 = vld [vmem:[#allocation13] sm:$0xff]   ;;  %v11223_v35 = vld [vmem:[#allocation13 + $0x48] sm:$0xff]  }
 0x5e5   :  { %9007 = vmatpush1.bf16.msra.mxu0 %v10806_v8  ;;  %8680 = vmatprep.subr.bf16.mxu1 %v10813_v6  ;;  %v2525_v8 = vld [vmem:[#allocation10 + $0x1e90] sm:$0xff]  ;;  %v11222_v41 = vld [vmem:[#allocation13 + $0x80] sm:$0xff]  }
 0x5e6   :  { %9008 = vmatprep.subr.bf16.mxu0 %v10815_v31  ;;  %v2529_v6 = vld [vmem:[#allocation10 + $0x1eb0] sm:$0xff]  ;;  %v2526_v31 = vld [vmem:[#allocation10 + $0x1e98] sm:$0xff] }
 0x5e7   :  { %v10877_v24 = vcombine.high %v2525_v8, %v2529_v6  ;;  %v10876_v29 = vcombine.low %v2525_v8, %v2529_v6  ;;  %v10878_v63 = vcombine.low %v2526_v31, %v2530_v3  ;;  %v11225_v6 = vld [vmem:[#allocation13 + $0x8] sm:$0xff]  }
 0x5e8   :  { %8681 = vmatpush1.bf16.msra.mxu1 %v10812_v53  ;;  %v10879_v53 = vcombine.high %v2526_v31, %v2530_v3  ;;  %v11226_v31 = vld [vmem:[#allocation13 + $0x88] sm:$0xff]   ;;  %v11227_v3 = vld [vmem:[#allocation13 + $0x50] sm:$0xff]  }
 0x5e9   :  { %9009 = vmatpush1.bf16.msra.mxu0 %v10814_v18  ;;  %8682 = vmatprep.subr.bf16.mxu1 %v10821_v54  ;;  %v2533_v18 = vld [vmem:[#allocation10 + $0x1ed0] sm:$0xff] }
 0x5ea   :  { %9010 = vmatprep.subr.bf16.mxu0 %v10823_v38  ;;  %v2537_v54 = vld [vmem:[#allocation10 + $0x1ef0] sm:$0xff]  ;;  %v2534_v38 = vld [vmem:[#allocation10 + $0x1ed8] sm:$0xff] }
 0x5eb   :  { %v10885_v4 = vcombine.high %v2533_v18, %v2537_v54  ;;  %v10884_v58 = vcombine.low %v2533_v18, %v2537_v54  ;;  %v10886_v46 = vcombine.low %v2534_v38, %v2538_v55  ;;  %v11232_v18 = vld [vmem:[#allocation13 + $0xd8] sm:$0xff]  }
 0x5ec   :  { %8683 = vmatpush1.bf16.msra.mxu1 %v10820_v51  ;;  %v10887_v51 = vcombine.high %v2534_v38, %v2538_v55  ;;  %v11234_v54 = vld [vmem:[#allocation13 + $0x98] sm:$0xff]   ;;  %v11235_v38 = vld [vmem:[#allocation13 + $0x60] sm:$0xff]  }
 0x5ed   :  { %9011 = vmatpush1.bf16.msra.mxu0 %v10822_v44  ;;  %8684 = vmatprep.subr.bf16.mxu1 %v10829_v45  ;;  %v2541_v44 = vld [vmem:[#allocation10 + $0x1f10] sm:$0xff]  ;;  %v11236_v55 = vld [vmem:[#allocation13 + $0xe0] sm:$0xff]  }
 0x5ee   :  { %9012 = vmatprep.subr.bf16.mxu0 %v10831_v60  ;;  %v2545_v45 = vld [vmem:[#allocation10 + $0x1f30] sm:$0xff]  ;;  %v2542_v60 = vld [vmem:[#allocation10 + $0x1f18] sm:$0xff] }
 0x5ef   :  { %v10893_v52 = vcombine.high %v2541_v44, %v2545_v45  ;;  %v10892_v28 = vcombine.low %v2541_v44, %v2545_v45  ;;  %v10894_v57 = vcombine.low %v2542_v60, %v2546_v12  ;;  %v11241_v44 = vld [vmem:[#allocation13 + $0x28] sm:$0xff]  }
 0x5f0   :  { %8685 = vmatpush1.bf16.msra.mxu1 %v10828_v48  ;;  %v10895_v48 = vcombine.high %v2542_v60, %v2546_v12  ;;  %v11242_v45 = vld [vmem:[#allocation13 + $0xa8] sm:$0xff]   ;;  %v11243_v60 = vld [vmem:[#allocation13 + $0x70] sm:$0xff]  }
 0x5f1   :  { %9013 = vmatpush1.bf16.msra.mxu0 %v10830_v49  ;;  %8686 = vmatprep.subr.bf16.mxu1 %v10837_v50  ;;  %v2549_v49 = vld [vmem:[#allocation10 + $0x1f50] sm:$0xff]  ;;  %v11244_v12 = vld [vmem:[#allocation13 + $0xf0] sm:$0xff]  }
 0x5f2   :  { %9014 = vmatprep.subr.bf16.mxu0 %v10839_v20  ;;  %v2553_v50 = vld [vmem:[#allocation10 + $0x1f70] sm:$0xff]  ;;  %v2550_v20 = vld [vmem:[#allocation10 + $0x1f58] sm:$0xff] }
 0x5f3   :  { %v10901_v17 = vcombine.high %v2549_v49, %v2553_v50  ;;  %v10900_v30 = vcombine.low %v2549_v49, %v2553_v50  ;;  %v10902_v13 = vcombine.low %v2550_v20, %v2554_v40  ;;  %v11249_v49 = vld [vmem:[#allocation13 + $0x38] sm:$0xff]  }
 0x5f4   :  { %8687 = vmatpush1.bf16.msra.mxu1 %v10836_v11  ;;  %v10903_v11 = vcombine.high %v2550_v20, %v2554_v40  ;;  %v11250_v50 = vld [vmem:[#allocation13 + $0xb8] sm:$0xff]   ;;  %v11251_v20 = vld [vmem:[#allocation13 + $0x140] sm:$0xff]  }
 0x5f5   :  { %9015 = vmatpush1.bf16.msra.mxu0 %v10838_v56  ;;  %8688 = vmatprep.subr.bf16.mxu1 %v10845_v14  ;;  %v2557_v56 = vld [vmem:[#allocation10 + $0x1f90] sm:$0xff]  ;;  %v11252_v40 = vld [vmem:[#allocation13 + $0x1c0] sm:$0xff]  }
 0x5f6   :  { %9016 = vmatprep.subr.bf16.mxu0 %v10847_v62  ;;  %v2561_v14 = vld [vmem:[#allocation10 + $0x1fb0] sm:$0xff]  ;;  %v2558_v62 = vld [vmem:[#allocation10 + $0x1f98] sm:$0xff] }
 0x5f7   :  { %v10909_v0 = vcombine.high %v2557_v56, %v2561_v14  ;;  %v10908_v5 = vcombine.low %v2557_v56, %v2561_v14  ;;  %v10910_v23 = vcombine.low %v2558_v62, %v2562_v43  ;;  %v11255_v56 = vld [vmem:[#allocation13 + $0x148] sm:$0xff]  }
 0x5f8   :  { %8689 = vmatpush1.bf16.msra.mxu1 %v10844_v32  ;;  %v10911_v32 = vcombine.high %v2558_v62, %v2562_v43  ;;  %v11287_v14 = vld [vmem:[%s12088_s12 + $0x10] sm:$0xff] }
 0x5f9   :  { %9017 = vmatpush1.bf16.msra.mxu0 %v10846_v19  ;;  %8690 = vmatprep.subr.bf16.mxu1 %v10853_v59  ;;  %v2565_v19 = vld [vmem:[#allocation10 + $0x1fd0] sm:$0xff]  ;;  %v9063_v62 = vpack.c.bf16 %v11287_v14, %v11287_v14 }
 0x5fa   :  { %9018 = vmatprep.subr.bf16.mxu0 %v10855_v47  ;;  %v2569_v59 = vld [vmem:[#allocation10 + $0x1ff0] sm:$0xff]  ;;  %v2566_v47 = vld [vmem:[#allocation10 + $0x1fd8] sm:$0xff] }
 0x5fb   :  { %v10917_v21 = vcombine.high %v2565_v19, %v2569_v59  ;;  %v11256_v43 = vld [vmem:[#allocation13 + $0x1c8] sm:$0xff]  }
 0x5fc   :  { %8691 = vmatpush1.bf16.msra.mxu1 %v10852_v42  ;;  %v10919_v42 = vcombine.high %v2566_v47, %v2570_v27 }
 0x5fd   :  { %9019 = vmatpush1.bf16.msra.mxu0 %v10854_v25  ;;  %8692 = vmatprep.subr.bf16.mxu1 %v10861_v61  ;;  %v10916_v25 = vcombine.low %v2565_v19, %v2569_v59  ;;  %v10918_v61 = vcombine.low %v2566_v47, %v2570_v27  ;;  %v11261_v19 = vld [vmem:[#allocation13 + $0x110] sm:$0xff]   ;;  %v11263_v47 = vld [vmem:[#allocation13 + $0x158] sm:$0xff]  }
 0x5fe   :  { %9020 = vmatprep.subr.bf16.mxu0 %v10863_v1  ;;  %v11219_v1 = vld [vmem:[#allocation13 + $0x40] sm:$0xff]   ;;  %v11262_v59 = vld [vmem:[#allocation13 + $0x190] sm:$0xff]   ;;  %v11264_v27 = vld [vmem:[#allocation13 + $0x1d8] sm:$0xff]  }
 0x600   :  { %8693 = vmatpush1.bf16.msra.mxu1 %v10860_v39  ;;  %v11284_v39 = vld [vmem:[%s12088_s12 + $0x8] sm:$0xff] }
 0x601   :  { %9021 = vmatpush1.bf16.msra.mxu0 %v10862_v26  ;;  %8694 = vmatprep.subr.bf16.mxu1 %v10869_v22  ;;  %v9062_v26 = vpack.c.bf16 %v11284_v39, %v11284_v39  ;;  %v11224_v22 = vld [vmem:[#allocation13 + $0xc8] sm:$0xff]   ;;  %v11276_v39 = vld [vmem:[#allocation13 + $0x1f0] sm:$0xff]  }
 0x602   :  { %9022 = vmatprep.subr.bf16.mxu0 %v10871_v37  ;;  %v11285_v37 = vld [vmem:[%s12088_s12 + $0x18] sm:$0xff] }
 0x603   :  { %v9064_v8 = vpack.c.bf16 %v11285_v37, %v11285_v37  ;;  %v11279_v37 = vld [vmem:[#allocation13 + $0x178] sm:$0xff]  }
 0x604   :  { %8695 = vmatpush1.bf16.msra.mxu1 %v10868_v7  ;;  %v11228_v7 = vld [vmem:[#allocation13 + $0xd0] sm:$0xff]  }
 0x605   :  { %9023 = vmatpush1.bf16.msra.mxu0 %v10870_v2  ;;  %8696 = vmatprep.subr.bf16.mxu1 %v10877_v24  ;;  %v11229_v2 = vld [vmem:[#allocation13 + $0x10] sm:$0xff]  }
 0x606   :  { %9024 = vmatprep.subr.bf16.mxu0 %v10879_v53  ;;  %v11230_v24 = vld [vmem:[#allocation13 + $0x90] sm:$0xff]   ;;  %v11231_v53 = vld [vmem:[#allocation13 + $0x58] sm:$0xff]  }
 0x608   :  { %8697 = vmatpush1.bf16.msra.mxu1 %v10876_v29  ;;  %v11237_v29 = vld [vmem:[#allocation13 + $0x20] sm:$0xff]  }
 0x609   :  { %9025 = vmatpush1.bf16.msra.mxu0 %v10878_v63  ;;  %8698 = vmatprep.subr.bf16.mxu1 %v10885_v4  ;;  %v11238_v63 = vld [vmem:[#allocation13 + $0xa0] sm:$0xff]   ;;  %v11239_v4 = vld [vmem:[#allocation13 + $0x68] sm:$0xff]  }
 0x60a   :  { %9026 = vmatprep.subr.bf16.mxu0 %v10887_v51  ;;  %v11240_v51 = vld [vmem:[#allocation13 + $0xe8] sm:$0xff]  }
 0x60c   :  { %8699 = vmatpush1.bf16.msra.mxu1 %v10884_v58  ;;  %v11245_v58 = vld [vmem:[#allocation13 + $0x30] sm:$0xff]  }
 0x60d   :  { %9027 = vmatpush1.bf16.msra.mxu0 %v10886_v46  ;;  %8700 = vmatprep.subr.bf16.mxu1 %v10893_v52  ;;  %v11246_v46 = vld [vmem:[#allocation13 + $0xb0] sm:$0xff]   ;;  %v11247_v52 = vld [vmem:[#allocation13 + $0x78] sm:$0xff]  }
 0x60e   :  { %9028 = vmatprep.subr.bf16.mxu0 %v10895_v48  ;;  %v11248_v48 = vld [vmem:[#allocation13 + $0xf8] sm:$0xff]  }
 0x610   :  { %8701 = vmatpush1.bf16.msra.mxu1 %v10892_v28  ;;  %v11253_v28 = vld [vmem:[#allocation13 + $0x100] sm:$0xff]  }
 0x611   :  { %9029 = vmatpush1.bf16.msra.mxu0 %v10894_v57  ;;  %8702 = vmatprep.subr.bf16.mxu1 %v10901_v17  ;;  %v11286_v57 = vld [vmem:[%s12088_s12] sm:$0xff] }
 0x612   :  { %9030 = vmatprep.subr.bf16.mxu0 %v10903_v11  ;;  %v9061_v17 = vpack.c.bf16 %v11286_v57, %v11286_v57  ;;  %v11254_v11 = vld [vmem:[#allocation13 + $0x180] sm:$0xff]  }
 0x614   :  { %8703 = vmatpush1.bf16.msra.mxu1 %v10900_v30  ;;  %v11257_v30 = vld [vmem:[#allocation13 + $0x108] sm:$0xff]  }
 0x615   :  { %9031 = vmatpush1.bf16.msra.mxu0 %v10902_v13  ;;  %8704 = vmatprep.subr.bf16.mxu1 %v10909_v0  ;;  %v11258_v13 = vld [vmem:[#allocation13 + $0x188] sm:$0xff]   ;;  %v11259_v0 = vld [vmem:[#allocation13 + $0x150] sm:$0xff]  }
 0x616   :  { %9032 = vmatprep.subr.bf16.mxu0 %v10911_v32  ;;  %v11260_v32 = vld [vmem:[#allocation13 + $0x1d0] sm:$0xff]  }
 0x618   :  { %8705 = vmatpush1.bf16.msra.mxu1 %v10908_v5  ;;  %v11265_v5 = vld [vmem:[#allocation13 + $0x118] sm:$0xff]  }
 0x619   :  { %9033 = vmatpush1.bf16.msra.mxu0 %v10910_v23  ;;  %8706 = vmatprep.subr.bf16.mxu1 %v10917_v21  ;;  %v11266_v23 = vld [vmem:[#allocation13 + $0x198] sm:$0xff]   ;;  %v11267_v21 = vld [vmem:[#allocation13 + $0x160] sm:$0xff]  }
 0x61a   :  { %9034 = vmatprep.subr.bf16.mxu0 %v10919_v42  ;;  %v11268_v42 = vld [vmem:[#allocation13 + $0x1e0] sm:$0xff]  }
 0x61c   :  { %8707 = vmatpush1.bf16.msra.mxu1 %v10916_v25  ;;  %v11269_v25 = vld [vmem:[#allocation13 + $0x120] sm:$0xff]  }
 0x61d   :  { %9035 = vmatpush1.bf16.msra.mxu0 %v10918_v61  ;;  %10987 = vmatprep.subr.bf16.mxu1 %v11219_v1  ;;  %v11270_v61 = vld [vmem:[#allocation13 + $0x1a0] sm:$0xff]   ;;  %v11271_v1 = vld [vmem:[#allocation13 + $0x168] sm:$0xff]  }
 0x61e   :  { %11009 = vmatprep.subr.bf16.mxu0 %v11220_v33  ;;  %v11272_v33 = vld [vmem:[#allocation13 + $0x1e8] sm:$0xff]  }
 0x61f   :  { %8709 = vmatmul.mubr.bf16.vlgmr.msra.gmra.mrb[20].mxu1 %v11993_v36 }
 0x620   :  { %9037 = vmatmul.mubr.bf16.vlgmr.msra.gmra.mrb[24].mxu0 %v11993_v36  ;;  %10988 = vmatpush3.bf16.msra.mxu1 %v11221_v34  ;;  %v11233_v36 = vld [vmem:[#allocation13 + $0x18] sm:$0xff]   ;;  %v11273_v34 = vld [vmem:[#allocation13 + $0x128] sm:$0xff]  }
 0x621   :  { %9620 = vmatprep.mubr.bf16.mxu1 %v9062_v26  ;;  %11010 = vmatpush3.bf16.msra.mxu0 %v11222_v41  ;;  %v11274_v41 = vld [vmem:[#allocation13 + $0x1a8] sm:$0xff]   ;;  %v11277_v26 = vld [vmem:[#allocation13 + $0x130] sm:$0xff]  }
 0x622   :  { %9660 = vmatprep.mubr.bf16.mxu0 %v9064_v8  ;;  %10989 = vmatprep.subr.bf16.mxu1 %v11223_v35  ;;  %v11275_v35 = vld [vmem:[#allocation13 + $0x170] sm:$0xff]   ;;  %v11280_v8 = vld [vmem:[#allocation13 + $0x1f8] sm:$0xff]  }
 0x623   :  { %11011 = vmatprep.subr.bf16.mxu0 %v11224_v22  ;;  %v11278_v22 = vld [vmem:[#allocation13 + $0x1b0] sm:$0xff]  }
 0x624   :  { %10990 = vmatpush3.bf16.msra.mxu1 %v11225_v6  ;;  %v11281_v6 = vld [vmem:[#allocation13 + $0x138] sm:$0xff]  }
 0x625   :  { %11012 = vmatpush3.bf16.msra.mxu0 %v11226_v31  ;;  %10991 = vmatprep.subr.bf16.mxu1 %v11227_v3  ;;  %v11282_v31 = vld [vmem:[#allocation13 + $0x1b8] sm:$0xff]  }
 0x626   :  { %11013 = vmatprep.subr.bf16.mxu0 %v11228_v7  ;;  %v11288_v3 = vld [vmem:[#allocation12] sm:$0xff] }
 0x627   :  { %v2592_v7 = vrot.slane %v11288_v3, %v11730_v9 }
 0x628   :  { %10992 = vmatpush3.bf16.msra.mxu1 %v11229_v2  ;;  %v2600_v2 = vrot.slane %v11288_v3, %v11733_v10 }
 0x629   :  { %11014 = vmatpush3.bf16.msra.mxu0 %v11230_v24  ;;  %10993 = vmatprep.subr.bf16.mxu1 %v11231_v53  ;;  %v2596_v24 = vrot.slane %v11288_v3, %v11740_v15  ;;  %v2604_v53 = vrot.slane %v11288_v3, %v11743_v16 }
 0x62a   :  { %11015 = vmatprep.subr.bf16.mxu0 %v11232_v18 }
 0x62c   :  { %10994 = vmatpush3.bf16.msra.mxu1 %v11233_v36 }
 0x62d   :  { %11016 = vmatpush3.bf16.msra.mxu0 %v11234_v54  ;;  %10995 = vmatprep.subr.bf16.mxu1 %v11235_v38 }
 0x62e   :  { %11017 = vmatprep.subr.bf16.mxu0 %v11236_v55 }
 0x630   :  { %10996 = vmatpush3.bf16.msra.mxu1 %v11237_v29 }
 0x631   :  { %11018 = vmatpush3.bf16.msra.mxu0 %v11238_v63  ;;  %10997 = vmatprep.subr.bf16.mxu1 %v11239_v4 }
 0x632   :  { %11019 = vmatprep.subr.bf16.mxu0 %v11240_v51 }
 0x634   :  { %10998 = vmatpush3.bf16.msra.mxu1 %v11241_v44 }
 0x635   :  { %11020 = vmatpush3.bf16.msra.mxu0 %v11242_v45  ;;  %10999 = vmatprep.subr.bf16.mxu1 %v11243_v60 }
 0x636   :  { %11021 = vmatprep.subr.bf16.mxu0 %v11244_v12 }
 0x638   :  { %11000 = vmatpush3.bf16.msra.mxu1 %v11245_v58 }
 0x639   :  { %11022 = vmatpush3.bf16.msra.mxu0 %v11246_v46  ;;  %11001 = vmatprep.subr.bf16.mxu1 %v11247_v52 }
 0x63a   :  { %11023 = vmatprep.subr.bf16.mxu0 %v11248_v48 }
 0x63c   :  { %11002 = vmatpush3.bf16.msra.mxu1 %v11249_v49 }
 0x63d   :  { %11024 = vmatpush3.bf16.msra.mxu0 %v11250_v50  ;;  %11031 = vmatprep.subr.bf16.mxu1 %v11251_v20  ;;  %v10920_v50 = vld [vmem:[#allocation15] ss:$0 sm:$0xff] }
 0x63e   :  { %11053 = vmatprep.subr.bf16.mxu0 %v11252_v40 }
 0x63f   :  { %9621 = vmatmul.mubr.bf16.vlgmr.msra.gmra.mrb[24].mxu1 %v9061_v17 }
 0x640   :  { %9661 = vmatmul.mubr.bf16.vlgmr.msra.gmra.mrb[28].mxu0 %v9063_v62  ;;  %11032 = vmatpush3.bf16.msra.mxu1 %v11253_v28 }
 0x641   :  { %11054 = vmatpush3.bf16.msra.mxu0 %v11254_v11  ;;  %11033 = vmatprep.subr.bf16.mxu1 %v11255_v56 }
 0x642   :  { %11055 = vmatprep.subr.bf16.mxu0 %v11256_v43 }
 0x644   :  { %11034 = vmatpush3.bf16.msra.mxu1 %v11257_v30 }
 0x645   :  { %11056 = vmatpush3.bf16.msra.mxu0 %v11258_v13  ;;  %11035 = vmatprep.subr.bf16.mxu1 %v11259_v0 }
 0x646   :  { %11057 = vmatprep.subr.bf16.mxu0 %v11260_v32 }
 0x648   :  { %11036 = vmatpush3.bf16.msra.mxu1 %v11261_v19 }
 0x649   :  { %11058 = vmatpush3.bf16.msra.mxu0 %v11262_v59  ;;  %11037 = vmatprep.subr.bf16.mxu1 %v11263_v47 }
 0x64a   :  { %11059 = vmatprep.subr.bf16.mxu0 %v11264_v27 }
 0x64c   :  { %11038 = vmatpush3.bf16.msra.mxu1 %v11265_v5 }
 0x64d   :  { %11060 = vmatpush3.bf16.msra.mxu0 %v11266_v23  ;;  %11039 = vmatprep.subr.bf16.mxu1 %v11267_v21 }
 0x64e   :  { %11061 = vmatprep.subr.bf16.mxu0 %v11268_v42 }
 0x650   :  { %11040 = vmatpush3.bf16.msra.mxu1 %v11269_v25 }
 0x651   :  { %11062 = vmatpush3.bf16.msra.mxu0 %v11270_v61  ;;  %11041 = vmatprep.subr.bf16.mxu1 %v11271_v1 }
 0x652   :  { %11063 = vmatprep.subr.bf16.mxu0 %v11272_v33 }
 0x654   :  { %11042 = vmatpush3.bf16.msra.mxu1 %v11273_v34 }
 0x655   :  { %11064 = vmatpush3.bf16.msra.mxu0 %v11274_v41  ;;  %11043 = vmatprep.subr.bf16.mxu1 %v11275_v35 }
 0x656   :  { %11065 = vmatprep.subr.bf16.mxu0 %v11276_v39 }
 0x658   :  { %11044 = vmatpush3.bf16.msra.mxu1 %v11277_v26 }
 0x659   :  { %11066 = vmatpush3.bf16.msra.mxu0 %v11278_v22  ;;  %11045 = vmatprep.subr.bf16.mxu1 %v11279_v37 }
 0x65a   :  { %11067 = vmatprep.subr.bf16.mxu0 %v11280_v8 }
 0x65c   :  { %11046 = vmatpush3.bf16.msra.mxu1 %v11281_v6 }
 0x65d   :  { %11068 = vmatpush3.bf16.msra.mxu0 %v11282_v31 }
 0x6f2   :  { %v8710_v18 = vpop.f32.mrb[20].mxu1 }
 0x6f3   :  { %v11085_v36 = vadd.f32 %v8710_v18, %v2592_v7  ;;  %v9038_v54 = vpop.f32.mrb[24].mxu0  ;;  %v8712_v38 = vpop.f32.mrb[21].mxu1 }
 0x6f4   :  { %v11087_v55 = vadd.f32 %v9038_v54, %v2600_v2  ;;  %v11086_v29 = vadd.f32 %v8712_v38, %v2596_v24  ;;  %v9040_v63 = vpop.f32.mrb[25].mxu0  ;;  %v8714_v4 = vpop.f32.mrb[22].mxu1 }
 0x6f5   :  { %v9049_v51 = vmax.f32 %v11085_v36, 0.0  ;;  %v11088_v44 = vadd.f32 %v9040_v63, %v2604_v53  ;;  %v9042_v45 = vpop.f32.mrb[26].mxu0  ;;  %v8715_v60 = vpop.f32.mrb[23].mxu1 }
 0x6f6   :  { %v9051_v12 = vmax.f32 %v11087_v55, 0.0  ;;  %v9050_v9 = vmax.f32 %v11086_v29, 0.0  ;;  %v9043_v58 = vpop.f32.mrb[27].mxu0 }
 0x6f7   :  { %9057 = vst [vmem:[%s12088_s12 + $0x20] sm:$0xff] %v9049_v51  ;;  %v9052_v10 = vmax.f32 %v11088_v44, 0.0  ;;  %v9065_v16 = vpack.c.bf16 %v9049_v51, %v9049_v51 }
 0x6f8   :  { %9059 = vst [vmem:[%s12088_s12 + $0x30] sm:$0xff] %v9051_v12  ;;  %9058 = vst [vmem:[%s12088_s12 + $0x28] sm:$0xff] %v9050_v9  ;;  %v9066_v15 = vpack.c.bf16 %v9050_v9, %v9050_v9  ;;  %v9067_v52 = vpack.c.bf16 %v9051_v12, %v9051_v12 }
 0x6f9   :  { %9060 = vst [vmem:[%s12088_s12 + $0x38] sm:$0xff] %v9052_v10  ;;  %v9068_v46 = vpack.c.bf16 %v9052_v10, %v9052_v10 }
 0x6fa   :  { %9700 = vmatprep.mubr.bf16.mxu1 %v9066_v15 }
 0x6fb   :  { %9740 = vmatprep.mubr.bf16.mxu0 %v9068_v46  ;;  %9701 = vmatmul.mubr.bf16.vlgmr.msra.gmra.mrb[28].mxu1 %v9065_v16 }
 0x6fc   :  { %9741 = vmatmul.mubr.bf16.vlgmr.msra.gmra.mrb[32].mxu0 %v9067_v52 }
 0x712   :  { %v11003_v48 = vpop.f32.mrb[24].mxu1 }
 0x713   :  { %v11025_v49 = vpop.f32.mrb[28].mxu0  ;;  %v11004_v20 = vpop.f32.mrb[25].mxu1 }
 0x714   :  { %v11005_v40 = vadd.f32 %v11004_v20, %v11003_v48  ;;  %v11026_v28 = vpop.f32.mrb[29].mxu0  ;;  %v11006_v57 = vpop.f32.mrb[26].mxu1 }
 0x715   :  { %v11027_v17 = vadd.f32 %v11026_v28, %v11025_v49  ;;  %v11028_v11 = vpop.f32.mrb[30].mxu0  ;;  %v11007_v56 = vpop.f32.mrb[27].mxu1 }
 0x716   :  { %v9623_v14 = vadd.f32 %v11005_v40, %v10920_v50  ;;  %v11029_v62 = vpop.f32.mrb[31].mxu0 }
 0x718   :  { %v9663_v43 = vadd.f32 %v11027_v17, %v9623_v14 }
 0x7ce   :  { %v11047_v30 = vpop.f32.mrb[28].mxu1 }
 0x7cf   :  { %v11069_v13 = vpop.f32.mrb[32].mxu0  ;;  %v11048_v0 = vpop.f32.mrb[29].mxu1 }
 0x7d0   :  { %v11049_v32 = vadd.f32 %v11048_v0, %v11047_v30  ;;  %v11070_v19 = vpop.f32.mrb[33].mxu0  ;;  %v11050_v59 = vpop.f32.mrb[30].mxu1 }
 0x7d1   :  { %v11071_v47 = vadd.f32 %v11070_v19, %v11069_v13  ;;  %v11072_v27 = vpop.f32.mrb[34].mxu0  ;;  %v11051_v5 = vpop.f32.mrb[31].mxu1 }
 0x7d2   :  { %v9703_v23 = vadd.f32 %v11049_v32, %v9663_v43  ;;  %v11073_v21 = vpop.f32.mrb[35].mxu0 }
 0x7d4   :  { %v9743_v42 = vadd.f32 %v11071_v47, %v9703_v23 }
 0x7d6   :  { %9748 = vst [vmem:[%s12089_s13] sm:$0xff] %v9743_v42 }
 0x7d7   :  { %9761 = vsyncpa [#allocation3], 1 }
 0x7d8   :  { %9762 = vsyncpa [#allocation5], 1 }
 0x7d9   :  { %9763 = vsyncpa [#allocation8], 1 }
 0x7da   :  { %9764 = vsyncpa [#allocation11], 1 }
 0x7db   :  { %9765 = vsyncpa [#allocation14], 1 }

</bundles_post_ra>
